<compile_context>
chip_gen: v6e
topology: v6e:2x2x1
jax: 0.10.0
libtpu: 0.0.40
codegen_flags: <defaults>
</compile_context>

<pallas_src>
import functools

import numpy as np
import jax
import jax.numpy as jnp
from jax import lax
from jax.experimental import pallas as pl
from jax.experimental.pallas import tpu as pltpu

BN_EPS = 1e-5
# bf16 matmul inputs (weights + activation scratch); accumulation / BN stats / tanh in f32.
MATMUL_DTYPE = jnp.bfloat16

# ConvTranspose(k=4, s=2, p=1) phase decomposition (per spatial dim):
#   even outputs: y[2m]   = x[m]*w[1] + x[m-1]*w[3]
#   odd  outputs: y[2m+1] = x[m]*w[2] + x[m+1]*w[0]
# With the input padded by 1, tap t of phase p reads padded offset _OFF[p][t]
# and uses kernel index _KIDX[p][t].
_OFF = ((0, 1), (1, 2))
_KIDX = ((3, 1), (2, 0))


def _vmem():
    return pl.BlockSpec(memory_space=pltpu.MemorySpace.VMEM)


# ----------------------------- one-time weight packing (outside jit) ---------

def _pack_linear(lin_w, lin_b, c0):
    # lin_w: (nz, 49*c0) = torch Linear.weight.T, columns in torch (c, y, x) order.
    # -> (7, nz, 7*c0): per output row y, columns in (x, c) lane order.
    nz = lin_w.shape[0]
    w = np.asarray(lin_w, np.float32).reshape(nz, c0, 7, 7)
    w = w.transpose(2, 0, 3, 1).reshape(7, nz, 7 * c0)
    b = np.asarray(lin_b, np.float32).reshape(c0, 7, 7).transpose(1, 2, 0)
    return w, b.reshape(7, 7 * c0)


def _pack_deconv_band(wt, W):
    # wt: (Cin, Cout, 4, 4) = torch ConvTranspose2d.weight.
    # -> (4, W*Cin, 2W*Cout): banded lane->lane weight per (py, a) = (row parity,
    # y-tap).  Input lanes (x_in, ci) un-padded; x padding is absorbed by dropping
    # out-of-range taps.  Output lanes (x_out, co), x_out = 2*x + px.
    wt = np.asarray(wt, np.float32)
    cin, cout = wt.shape[0], wt.shape[1]
    A = np.zeros((4, W * cin, 2 * W * cout), np.float32)
    for py in range(2):
        for a in range(2):
            kh = _KIDX[py][a]
            m = A[2 * py + a]
            for px in range(2):
                for c in range(2):
                    kw = _KIDX[px][c]
                    blk = wt[:, :, kh, kw]
                    for x in range(W):
                        xi = x + _OFF[px][c] - 1
                        if 0 <= xi < W:
                            m[xi * cin:(xi + 1) * cin,
                              (2 * x + px) * cout:(2 * x + px + 1) * cout] += blk
    return A


def _pack_conv3_band(wc, W):
    # wc: (Cout, Cin, 3, 3) = torch Conv2d.weight -> (3, W*Cin, W*Cout), banded per kh.
    wc = np.asarray(wc, np.float32)
    cout, cin = wc.shape[0], wc.shape[1]
    A = np.zeros((3, W * cin, W * cout), np.float32)
    for kh in range(3):
        for kw in range(3):
            blk = wc[:, :, kh, kw].T                      # (Cin, Cout)
            for x in range(W):
                xi = x + kw - 1
                if 0 <= xi < W:
                    A[kh, xi * cin:(xi + 1) * cin, x * cout:(x + 1) * cout] += blk
    return A


def _channel_fold(w_out, cout):
    # P: (w_out*cout, cout) folds (x, c) lanes to per-channel; PT broadcasts back.
    P = np.zeros((w_out * cout, cout), np.float32)
    for x in range(w_out):
        P[x * cout:(x + 1) * cout, :] = np.eye(cout, dtype=np.float32)
    return P, np.ascontiguousarray(P.T)


def pack_params(params, nz, ngf, nc):
    """One-time packing of torch-layout params into kernel-layout arrays."""
    del nz
    c0, c1, c2 = 4 * ngf, 2 * ngf, ngf
    wlin, blin = _pack_linear(params["lin_w"], params["lin_b"], c0)
    a1 = _pack_deconv_band(params["ct1_w"], 7)
    a2 = _pack_deconv_band(params["ct2_w"], 14)
    a3 = _pack_conv3_band(params["c3_w"], 28)
    p1, pt1 = _channel_fold(14, c1)
    p2, pt2 = _channel_fold(28, c2)
    b3lane = np.tile(np.asarray(params["c3_b"], np.float32).reshape(1, nc), (1, 28))
    f32 = jnp.float32
    return {
        "wlin": jnp.asarray(wlin, MATMUL_DTYPE),
        "blin": jnp.asarray(blin, f32),
        "a1": jnp.asarray(a1, MATMUL_DTYPE),
        "p1": jnp.asarray(p1, f32), "pt1": jnp.asarray(pt1, f32),
        "cb1": jnp.asarray(params["ct1_b"], f32).reshape(1, c1),
        "g1": jnp.asarray(params["bn1_g"], f32).reshape(1, c1),
        "be1": jnp.asarray(params["bn1_b"], f32).reshape(1, c1),
        "a2": jnp.asarray(a2, MATMUL_DTYPE),
        "p2": jnp.asarray(p2, f32), "pt2": jnp.asarray(pt2, f32),
        "cb2": jnp.asarray(params["ct2_b"], f32).reshape(1, c2),
        "g2": jnp.asarray(params["bn2_g"], f32).reshape(1, c2),
        "be2": jnp.asarray(params["bn2_b"], f32).reshape(1, c2),
        "a3": jnp.asarray(a3, MATMUL_DTYPE),
        "b3": jnp.asarray(b3lane, f32),
        "c2": c2,
    }


# ----------------------------- fused Pallas kernel ---------------------------

def _deconv_bn_relu(x_ref, a_ref, p_ref, pt_ref, cb_ref, g_ref, be_ref, xn_ref,
                    *, B, H, W, cout):
    """ConvTranspose2d(4,2,1) + BatchNorm2d(batch stats) + ReLU, phase-decomposed.

    x_ref : (B*(H+2), W*Cin)    y-padded input scratch, lanes = (x_in, ci)
    a_ref : (4, W*Cin, 2W*Cout) banded phase weights, index = 2*py + a
    xn_ref: (B*(2H+2), 2W*Cout) y-padded output scratch (pre-zeroed), lanes = (x_out, co)
    """
    l_out = 2 * W * cout
    cnt = float(B * (2 * H) * (2 * W))
    raw = [[None] * B for _ in range(2)]
    s1 = jnp.zeros((1, l_out), jnp.float32)
    s2 = jnp.zeros((1, l_out), jnp.float32)
    for py in range(2):
        for b in range(B):
            base = b * (H + 2)
            acc = None
            for a in range(2):
                o = _OFF[py][a]
                s = x_ref[base + o:base + o + H, :]
                d = jnp.dot(s, a_ref[2 * py + a],
                            preferred_element_type=jnp.float32)
                acc = d if acc is None else acc + d
            raw[py][b] = acc                                    # (H, l_out) f32
            s1 = s1 + jnp.sum(acc, axis=0, keepdims=True)
            s2 = s2 + jnp.sum(acc * acc, axis=0, keepdims=True)
    # Exact full-batch (N, 2H, 2W) channel statistics: fold (x, c) lanes with P.
    mu = jnp.dot(s1, p_ref[...], preferred_element_type=jnp.float32) / cnt
    ex2 = jnp.dot(s2, p_ref[...], preferred_element_type=jnp.float32) / cnt
    var = ex2 - mu * mu                  # conv bias is constant -> var unchanged
    scale = g_ref[...] * lax.rsqrt(var + BN_EPS)
    # (raw + cb - (mu + cb)) * scale + beta  -- conv bias cancels under batch-stat BN
    shift = be_ref[...] + (cb_ref[...] - (mu + cb_ref[...])) * scale
    mul_l = jnp.dot(scale, pt_ref[...], preferred_element_type=jnp.float32)
    add_l = jnp.dot(shift, pt_ref[...], preferred_element_type=jnp.float32)
    for py in range(2):
        for b in range(B):
            y = jnp.maximum(raw[py][b] * mul_l + add_l, 0.0).astype(xn_ref.dtype)
            nb = b * (2 * H + 2)
            for r in range(H):                 # interleave parities into (b, y) rows
                row = nb + 1 + 2 * r + py
                xn_ref[row:row + 1, :] = y[r:r + 1, :]


def generator_kernel(z_ref, wlin_ref, blin_ref,
                     a1_ref, p1_ref, pt1_ref, cb1_ref, g1_ref, be1_ref,
                     a2_ref, p2_ref, pt2_ref, cb2_ref, g2_ref, be2_ref,
                     a3_ref, b3_ref, out_ref,
                     x1, x2, x3, *, B, ngf, nc):
    c0, c1, c2 = 4 * ngf, 2 * ngf, ngf
    del c0, nc
    # Zero the (tiny) y-padded scratch buffers; only the border rows truly need it.
    x1[...] = jnp.zeros(x1.shape, x1.dtype)
    x2[...] = jnp.zeros(x2.shape, x2.dtype)
    x3[...] = jnp.zeros(x3.shape, x3.dtype)

    # Linear(nz -> 7*7*4ngf), written straight into the y-padded NHWC-row scratch.
    z = z_ref[...].astype(MATMUL_DTYPE)                       # (B, nz)
    for y in range(7):
        h = jnp.dot(z, wlin_ref[y], preferred_element_type=jnp.float32)
        h = (h + blin_ref[y:y + 1, :]).astype(x1.dtype)       # (B, 7*c0)
        for b in range(B):
            row = b * 9 + 1 + y
            x1[row:row + 1, :] = h[b:b + 1, :]

    # ConvTranspose2d(4ngf -> 2ngf, 4, 2, 1) + BN + ReLU : 7x7 -> 14x14
    _deconv_bn_relu(x1, a1_ref, p1_ref, pt1_ref, cb1_ref, g1_ref, be1_ref, x2,
                    B=B, H=7, W=7, cout=c1)
    # ConvTranspose2d(2ngf -> ngf, 4, 2, 1) + BN + ReLU : 14x14 -> 28x28
    _deconv_bn_relu(x2, a2_ref, p2_ref, pt2_ref, cb2_ref, g2_ref, be2_ref, x3,
                    B=B, H=14, W=14, cout=c2)

    # Conv2d(ngf -> nc, 3, 1, 1) + Tanh : 28x28 -> 28x28
    for b in range(B):
        base = b * 30
        acc = None
        for kh in range(3):
            s = x3[base + kh:base + kh + 28, :]
            d = jnp.dot(s, a3_ref[kh], preferred_element_type=jnp.float32)
            acc = d if acc is None else acc + d
        out_ref[b * 28:(b + 1) * 28, :] = jnp.tanh(acc + b3_ref[...]).astype(out_ref.dtype)


# ----------------------------- forward wrapper --------------------------------

def cnn_generator_forward(packed, z, *, nz, ngf, nc):
    z2 = z.reshape(-1, nz)                                    # input.view(-1, nz)
    B = z2.shape[0]
    lanes = 28 * ngf                                          # 7*4ngf = 14*2ngf = 28*ngf
    kernel = functools.partial(generator_kernel, B=B, ngf=ngf, nc=nc)
    out = pl.pallas_call(
        kernel,
        out_shape=jax.ShapeDtypeStruct((B * 28, 28 * nc), jnp.float32),
        in_specs=[_vmem()] * 17,
        out_specs=_vmem(),
        scratch_shapes=[
            pltpu.VMEM((B * 9, lanes), MATMUL_DTYPE),   # y-padded 7x7x4ngf
            pltpu.VMEM((B * 16, lanes), MATMUL_DTYPE),  # y-padded 14x14x2ngf
            pltpu.VMEM((B * 30, lanes), MATMUL_DTYPE),  # y-padded 28x28xngf
        ],
    )(z2, packed["wlin"], packed["blin"],
      packed["a1"], packed["p1"], packed["pt1"], packed["cb1"], packed["g1"], packed["be1"],
      packed["a2"], packed["p2"], packed["pt2"], packed["cb2"], packed["g2"], packed["be2"],
      packed["a3"], packed["b3"])
    out = out.reshape(B, 28, 28, nc).transpose(0, 3, 1, 2)    # NCHW (free for nc == 1)
    return out
    # TODO(synk): nn.parallel.data_parallel / ngpu branch is device placement only
    # (no math) and is not modeled.


# ----------------------------- params + pure-JAX reference --------------------

def init_params(key, nz, ngf, nc):
    ks = jax.random.split(key, 8)
    F = 7 * 7 * ngf * 4
    s = 0.05
    return {
        "lin_w": s * jax.random.normal(ks[0], (nz, F), jnp.float32),   # Linear.weight.T
        "lin_b": s * jax.random.normal(ks[1], (1, F), jnp.float32),
        "ct1_w": s * jax.random.normal(ks[2], (ngf * 4, ngf * 2, 4, 4), jnp.float32),
        "ct1_b": s * jax.random.normal(ks[3], (1, ngf * 2), jnp.float32),
        "bn1_g": jnp.ones((1, ngf * 2), jnp.float32),
        "bn1_b": jnp.zeros((1, ngf * 2), jnp.float32),
        "ct2_w": s * jax.random.normal(ks[4], (ngf * 2, ngf, 4, 4), jnp.float32),
        "ct2_b": s * jax.random.normal(ks[5], (1, ngf), jnp.float32),
        "bn2_g": jnp.ones((1, ngf), jnp.float32),
        "bn2_b": jnp.zeros((1, ngf), jnp.float32),
        "c3_w": s * jax.random.normal(ks[6], (nc, ngf, 3, 3), jnp.float32),
        "c3_b": s * jax.random.normal(ks[7], (1, nc), jnp.float32),
    }


def reference_forward(params, z, *, nz, ngf, nc):
    # f32 XLA reference of the same forward (training-mode BatchNorm).
    del nc
    z2 = z.reshape(-1, nz)
    B = z2.shape[0]
    c0 = 4 * ngf
    h = (z2 @ params["lin_w"] + params["lin_b"]).reshape(B, c0, 7, 7)

    def deconv(x, wt, b):
        w2 = jnp.flip(wt, (2, 3)).transpose(1, 0, 2, 3)           # (Cout, Cin, 4, 4)
        y = lax.conv_general_dilated(x, w2, (1, 1), [(2, 2), (2, 2)],
                                     lhs_dilation=(2, 2),
                                     dimension_numbers=("NCHW", "OIHW", "NCHW"))
        return y + b.reshape(1, -1, 1, 1)

    def bn_relu(x, g, bta):
        m = jnp.mean(x, axis=(0, 2, 3), keepdims=True)
        v = jnp.mean((x - m) ** 2, axis=(0, 2, 3), keepdims=True)
        y = (x - m) * lax.rsqrt(v + BN_EPS) * g.reshape(1, -1, 1, 1) + bta.reshape(1, -1, 1, 1)
        return jnp.maximum(y, 0.0)

    h = bn_relu(deconv(h, params["ct1_w"], params["ct1_b"]), params["bn1_g"], params["bn1_b"])
    h = bn_relu(deconv(h, params["ct2_w"], params["ct2_b"]), params["bn2_g"], params["bn2_b"])
    y = lax.conv_general_dilated(h, params["c3_w"], (1, 1), [(1, 1), (1, 1)],
                                 dimension_numbers=("NCHW", "OIHW", "NCHW"))
    return jnp.tanh(y + params["c3_b"].reshape(1, -1, 1, 1))


if __name__ == "__main__":
    nz, ngf, nc, B = 32, 8, 1, 2
    key = jax.random.PRNGKey(0)
    kz, kp = jax.random.split(key)
    z = jax.random.normal(kz, (B, nz, 1, 1), jnp.float32)        # DCGAN-style latent
    params = init_params(kp, nz, ngf, nc)
    packed = pack_params(params, nz, ngf, nc)                    # one-time, outside jit
    packed.pop("c2", None)

    fwd = jax.jit(functools.partial(cnn_generator_forward, nz=nz, ngf=ngf, nc=nc))
    out = fwd(packed, z)
    jax.block_until_ready(out)

    assert out.shape == (B, nc, 28, 28), out.shape
    assert bool(jnp.all(jnp.isfinite(out)))
    assert bool(jnp.all(jnp.abs(out) <= 1.0 + 1e-6))             # tanh range

    ref = reference_forward(params, z, nz=nz, ngf=ngf, nc=nc)
    rel = float(jnp.linalg.norm(out - ref) / (jnp.linalg.norm(ref) + 1e-12))
    # bf16 matmul inputs vs f32 reference: a few-percent relative error is expected;
    # a structural/indexing bug would be O(1).
    assert rel < 0.1, rel
    print("KERNEL_OK")
</pallas_src>

<mosaic_0001>
module attributes {stable_mosaic.version = 11 : i64} {
  func.func @generator_kernel(%arg0: memref<2x32xf32, #tpu.memory_space<vmem>>, %arg1: memref<7x32x224xbf16, #tpu.memory_space<vmem>>, %arg2: memref<7x224xf32, #tpu.memory_space<vmem>>, %arg3: memref<4x224x224xbf16, #tpu.memory_space<vmem>>, %arg4: memref<224x16xf32, #tpu.memory_space<vmem>>, %arg5: memref<16x224xf32, #tpu.memory_space<vmem>>, %arg6: memref<1x16xf32, #tpu.memory_space<vmem>>, %arg7: memref<1x16xf32, #tpu.memory_space<vmem>>, %arg8: memref<1x16xf32, #tpu.memory_space<vmem>>, %arg9: memref<4x224x224xbf16, #tpu.memory_space<vmem>>, %arg10: memref<224x8xf32, #tpu.memory_space<vmem>>, %arg11: memref<8x224xf32, #tpu.memory_space<vmem>>, %arg12: memref<1x8xf32, #tpu.memory_space<vmem>>, %arg13: memref<1x8xf32, #tpu.memory_space<vmem>>, %arg14: memref<1x8xf32, #tpu.memory_space<vmem>>, %arg15: memref<3x224x28xbf16, #tpu.memory_space<vmem>>, %arg16: memref<1x28xf32, #tpu.memory_space<vmem>>, %arg17: memref<56x28xf32, #tpu.memory_space<vmem>>, %arg18: memref<18x224xbf16, #tpu.memory_space<vmem>>, %arg19: memref<32x224xbf16, #tpu.memory_space<vmem>>, %arg20: memref<60x224xbf16, #tpu.memory_space<vmem>>) attributes {dimension_semantics = [], scalar_prefetch = 0 : i64, scratch_operands = 3 : i64, tpu.core_type = #tpu.core_type<tc>} {
    %cst = arith.constant 0.000000e+00 : bf16
    %0 = vector.broadcast %cst : bf16 to vector<18x224xbf16>
    %c0 = arith.constant 0 : index
    %c0_0 = arith.constant 0 : index
    %1 = vector.load %arg18[%c0, %c0_0] : memref<18x224xbf16, #tpu.memory_space<vmem>>, vector<18x224xbf16>
    tpu.vector_store %arg18[%c0, %c0_0], %0 {strides = array<i32>} : memref<18x224xbf16, #tpu.memory_space<vmem>>, vector<18x224xbf16>,
    %cst_1 = arith.constant 0.000000e+00 : bf16
    %2 = vector.broadcast %cst_1 : bf16 to vector<32x224xbf16>
    %c0_2 = arith.constant 0 : index
    %c0_3 = arith.constant 0 : index
    %3 = vector.load %arg19[%c0_2, %c0_3] : memref<32x224xbf16, #tpu.memory_space<vmem>>, vector<32x224xbf16>
    tpu.vector_store %arg19[%c0_2, %c0_3], %2 {strides = array<i32>} : memref<32x224xbf16, #tpu.memory_space<vmem>>, vector<32x224xbf16>,
    %cst_4 = arith.constant 0.000000e+00 : bf16
    %4 = vector.broadcast %cst_4 : bf16 to vector<60x224xbf16>
    %c0_5 = arith.constant 0 : index
    %c0_6 = arith.constant 0 : index
    %5 = vector.load %arg20[%c0_5, %c0_6] : memref<60x224xbf16, #tpu.memory_space<vmem>>, vector<60x224xbf16>
    tpu.vector_store %arg20[%c0_5, %c0_6], %4 {strides = array<i32>} : memref<60x224xbf16, #tpu.memory_space<vmem>>, vector<60x224xbf16>,
    %c0_7 = arith.constant 0 : index
    %c0_8 = arith.constant 0 : index
    %6 = vector.load %arg0[%c0_7, %c0_8] : memref<2x32xf32, #tpu.memory_space<vmem>>, vector<2x32xf32>
    %7 = arith.truncf %6 : vector<2x32xf32> to vector<2x32xbf16>
    %c0_9 = arith.constant 0 : index
    %c0_10 = arith.constant 0 : index
    %c0_11 = arith.constant 0 : index
    %8 = vector.load %arg1[%c0_9, %c0_10, %c0_11] : memref<7x32x224xbf16, #tpu.memory_space<vmem>>, vector<1x32x224xbf16>
    %9 = vector.shape_cast %8 : vector<1x32x224xbf16> to vector<32x224xbf16>
    %cst_12 = arith.constant dense<0.000000e+00> : vector<2x224xf32>
    %10 = tpu.matmul %7, %9, %cst_12 {dimension_numbers = #tpu.dot_dimension_numbers<[1], [0], [0], [1], [0, 0, 1, 1], [], []>} : vector<2x32xbf16>, vector<32x224xbf16>, vector<2x224xf32> -> vector<2x224xf32>
    %c0_13 = arith.constant 0 : index
    %c0_14 = arith.constant 0 : index
    %11 = vector.load %arg2[%c0_13, %c0_14] : memref<7x224xf32, #tpu.memory_space<vmem>>, vector<1x224xf32>
    %12 = vector.broadcast %11 : vector<1x224xf32> to vector<2x224xf32>
    %13 = arith.addf %10, %12 : vector<2x224xf32>
    %14 = arith.truncf %13 : vector<2x224xf32> to vector<2x224xbf16>
    %15 = vector.extract_strided_slice %14 {offsets = [0, 0], sizes = [1, 224], strides = [1, 1]} : vector<2x224xbf16> to vector<1x224xbf16>
    %c1 = arith.constant 1 : index
    %c0_15 = arith.constant 0 : index
    %16 = vector.load %arg18[%c1, %c0_15] : memref<18x224xbf16, #tpu.memory_space<vmem>>, vector<1x224xbf16>
    tpu.vector_store %arg18[%c1, %c0_15], %15 {strides = array<i32>} : memref<18x224xbf16, #tpu.memory_space<vmem>>, vector<1x224xbf16>,
    %17 = vector.extract_strided_slice %14 {offsets = [1, 0], sizes = [1, 224], strides = [1, 1]} : vector<2x224xbf16> to vector<1x224xbf16>
    %c10 = arith.constant 10 : index
    %c0_16 = arith.constant 0 : index
    %18 = vector.load %arg18[%c10, %c0_16] : memref<18x224xbf16, #tpu.memory_space<vmem>>, vector<1x224xbf16>
    tpu.vector_store %arg18[%c10, %c0_16], %17 {strides = array<i32>} : memref<18x224xbf16, #tpu.memory_space<vmem>>, vector<1x224xbf16>,
    %c1_17 = arith.constant 1 : index
    %c0_18 = arith.constant 0 : index
    %c0_19 = arith.constant 0 : index
    %19 = vector.load %arg1[%c1_17, %c0_18, %c0_19] : memref<7x32x224xbf16, #tpu.memory_space<vmem>>, vector<1x32x224xbf16>
    %20 = vector.shape_cast %19 : vector<1x32x224xbf16> to vector<32x224xbf16>
    %cst_20 = arith.constant dense<0.000000e+00> : vector<2x224xf32>
    %21 = tpu.matmul %7, %20, %cst_20 {dimension_numbers = #tpu.dot_dimension_numbers<[1], [0], [0], [1], [0, 0, 1, 1], [], []>} : vector<2x32xbf16>, vector<32x224xbf16>, vector<2x224xf32> -> vector<2x224xf32>
    %c1_21 = arith.constant 1 : index
    %c0_22 = arith.constant 0 : index
    %22 = vector.load %arg2[%c1_21, %c0_22] : memref<7x224xf32, #tpu.memory_space<vmem>>, vector<1x224xf32>
    %23 = vector.broadcast %22 : vector<1x224xf32> to vector<2x224xf32>
    %24 = arith.addf %21, %23 : vector<2x224xf32>
    %25 = arith.truncf %24 : vector<2x224xf32> to vector<2x224xbf16>
    %26 = vector.extract_strided_slice %25 {offsets = [0, 0], sizes = [1, 224], strides = [1, 1]} : vector<2x224xbf16> to vector<1x224xbf16>
    %c2 = arith.constant 2 : index
    %c0_23 = arith.constant 0 : index
    %27 = vector.load %arg18[%c2, %c0_23] : memref<18x224xbf16, #tpu.memory_space<vmem>>, vector<1x224xbf16>
    tpu.vector_store %arg18[%c2, %c0_23], %26 {strides = array<i32>} : memref<18x224xbf16, #tpu.memory_space<vmem>>, vector<1x224xbf16>,
    %28 = vector.extract_strided_slice %25 {offsets = [1, 0], sizes = [1, 224], strides = [1, 1]} : vector<2x224xbf16> to vector<1x224xbf16>
    %c11 = arith.constant 11 : index
    %c0_24 = arith.constant 0 : index
    %29 = vector.load %arg18[%c11, %c0_24] : memref<18x224xbf16, #tpu.memory_space<vmem>>, vector<1x224xbf16>
    tpu.vector_store %arg18[%c11, %c0_24], %28 {strides = array<i32>} : memref<18x224xbf16, #tpu.memory_space<vmem>>, vector<1x224xbf16>,
    %c2_25 = arith.constant 2 : index
    %c0_26 = arith.constant 0 : index
    %c0_27 = arith.constant 0 : index
    %30 = vector.load %arg1[%c2_25, %c0_26, %c0_27] : memref<7x32x224xbf16, #tpu.memory_space<vmem>>, vector<1x32x224xbf16>
    %31 = vector.shape_cast %30 : vector<1x32x224xbf16> to vector<32x224xbf16>
    %cst_28 = arith.constant dense<0.000000e+00> : vector<2x224xf32>
    %32 = tpu.matmul %7, %31, %cst_28 {dimension_numbers = #tpu.dot_dimension_numbers<[1], [0], [0], [1], [0, 0, 1, 1], [], []>} : vector<2x32xbf16>, vector<32x224xbf16>, vector<2x224xf32> -> vector<2x224xf32>
    %c2_29 = arith.constant 2 : index
    %c0_30 = arith.constant 0 : index
    %33 = vector.load %arg2[%c2_29, %c0_30] : memref<7x224xf32, #tpu.memory_space<vmem>>, vector<1x224xf32>
    %34 = vector.broadcast %33 : vector<1x224xf32> to vector<2x224xf32>
    %35 = arith.addf %32, %34 : vector<2x224xf32>
    %36 = arith.truncf %35 : vector<2x224xf32> to vector<2x224xbf16>
    %37 = vector.extract_strided_slice %36 {offsets = [0, 0], sizes = [1, 224], strides = [1, 1]} : vector<2x224xbf16> to vector<1x224xbf16>
    %c3 = arith.constant 3 : index
    %c0_31 = arith.constant 0 : index
    %38 = vector.load %arg18[%c3, %c0_31] : memref<18x224xbf16, #tpu.memory_space<vmem>>, vector<1x224xbf16>
    tpu.vector_store %arg18[%c3, %c0_31], %37 {strides = array<i32>} : memref<18x224xbf16, #tpu.memory_space<vmem>>, vector<1x224xbf16>,
    %39 = vector.extract_strided_slice %36 {offsets = [1, 0], sizes = [1, 224], strides = [1, 1]} : vector<2x224xbf16> to vector<1x224xbf16>
    %c12 = arith.constant 12 : index
    %c0_32 = arith.constant 0 : index
    %40 = vector.load %arg18[%c12, %c0_32] : memref<18x224xbf16, #tpu.memory_space<vmem>>, vector<1x224xbf16>
    tpu.vector_store %arg18[%c12, %c0_32], %39 {strides = array<i32>} : memref<18x224xbf16, #tpu.memory_space<vmem>>, vector<1x224xbf16>,
    %c3_33 = arith.constant 3 : index
    %c0_34 = arith.constant 0 : index
    %c0_35 = arith.constant 0 : index
    %41 = vector.load %arg1[%c3_33, %c0_34, %c0_35] : memref<7x32x224xbf16, #tpu.memory_space<vmem>>, vector<1x32x224xbf16>
    %42 = vector.shape_cast %41 : vector<1x32x224xbf16> to vector<32x224xbf16>
    %cst_36 = arith.constant dense<0.000000e+00> : vector<2x224xf32>
    %43 = tpu.matmul %7, %42, %cst_36 {dimension_numbers = #tpu.dot_dimension_numbers<[1], [0], [0], [1], [0, 0, 1, 1], [], []>} : vector<2x32xbf16>, vector<32x224xbf16>, vector<2x224xf32> -> vector<2x224xf32>
    %c3_37 = arith.constant 3 : index
    %c0_38 = arith.constant 0 : index
    %44 = vector.load %arg2[%c3_37, %c0_38] : memref<7x224xf32, #tpu.memory_space<vmem>>, vector<1x224xf32>
    %45 = vector.broadcast %44 : vector<1x224xf32> to vector<2x224xf32>
    %46 = arith.addf %43, %45 : vector<2x224xf32>
    %47 = arith.truncf %46 : vector<2x224xf32> to vector<2x224xbf16>
    %48 = vector.extract_strided_slice %47 {offsets = [0, 0], sizes = [1, 224], strides = [1, 1]} : vector<2x224xbf16> to vector<1x224xbf16>
    %c4 = arith.constant 4 : index
    %c0_39 = arith.constant 0 : index
    %49 = vector.load %arg18[%c4, %c0_39] : memref<18x224xbf16, #tpu.memory_space<vmem>>, vector<1x224xbf16>
    tpu.vector_store %arg18[%c4, %c0_39], %48 {strides = array<i32>} : memref<18x224xbf16, #tpu.memory_space<vmem>>, vector<1x224xbf16>,
    %50 = vector.extract_strided_slice %47 {offsets = [1, 0], sizes = [1, 224], strides = [1, 1]} : vector<2x224xbf16> to vector<1x224xbf16>
    %c13 = arith.constant 13 : index
    %c0_40 = arith.constant 0 : index
    %51 = vector.load %arg18[%c13, %c0_40] : memref<18x224xbf16, #tpu.memory_space<vmem>>, vector<1x224xbf16>
    tpu.vector_store %arg18[%c13, %c0_40], %50 {strides = array<i32>} : memref<18x224xbf16, #tpu.memory_space<vmem>>, vector<1x224xbf16>,
    %c4_41 = arith.constant 4 : index
    %c0_42 = arith.constant 0 : index
    %c0_43 = arith.constant 0 : index
    %52 = vector.load %arg1[%c4_41, %c0_42, %c0_43] : memref<7x32x224xbf16, #tpu.memory_space<vmem>>, vector<1x32x224xbf16>
    %53 = vector.shape_cast %52 : vector<1x32x224xbf16> to vector<32x224xbf16>
    %cst_44 = arith.constant dense<0.000000e+00> : vector<2x224xf32>
    %54 = tpu.matmul %7, %53, %cst_44 {dimension_numbers = #tpu.dot_dimension_numbers<[1], [0], [0], [1], [0, 0, 1, 1], [], []>} : vector<2x32xbf16>, vector<32x224xbf16>, vector<2x224xf32> -> vector<2x224xf32>
    %c4_45 = arith.constant 4 : index
    %c0_46 = arith.constant 0 : index
    %55 = vector.load %arg2[%c4_45, %c0_46] : memref<7x224xf32, #tpu.memory_space<vmem>>, vector<1x224xf32>
    %56 = vector.broadcast %55 : vector<1x224xf32> to vector<2x224xf32>
    %57 = arith.addf %54, %56 : vector<2x224xf32>
    %58 = arith.truncf %57 : vector<2x224xf32> to vector<2x224xbf16>
    %59 = vector.extract_strided_slice %58 {offsets = [0, 0], sizes = [1, 224], strides = [1, 1]} : vector<2x224xbf16> to vector<1x224xbf16>
    %c5 = arith.constant 5 : index
    %c0_47 = arith.constant 0 : index
    %60 = vector.load %arg18[%c5, %c0_47] : memref<18x224xbf16, #tpu.memory_space<vmem>>, vector<1x224xbf16>
    tpu.vector_store %arg18[%c5, %c0_47], %59 {strides = array<i32>} : memref<18x224xbf16, #tpu.memory_space<vmem>>, vector<1x224xbf16>,
    %61 = vector.extract_strided_slice %58 {offsets = [1, 0], sizes = [1, 224], strides = [1, 1]} : vector<2x224xbf16> to vector<1x224xbf16>
    %c14 = arith.constant 14 : index
    %c0_48 = arith.constant 0 : index
    %62 = vector.load %arg18[%c14, %c0_48] : memref<18x224xbf16, #tpu.memory_space<vmem>>, vector<1x224xbf16>
    tpu.vector_store %arg18[%c14, %c0_48], %61 {strides = array<i32>} : memref<18x224xbf16, #tpu.memory_space<vmem>>, vector<1x224xbf16>,
    %c5_49 = arith.constant 5 : index
    %c0_50 = arith.constant 0 : index
    %c0_51 = arith.constant 0 : index
    %63 = vector.load %arg1[%c5_49, %c0_50, %c0_51] : memref<7x32x224xbf16, #tpu.memory_space<vmem>>, vector<1x32x224xbf16>
    %64 = vector.shape_cast %63 : vector<1x32x224xbf16> to vector<32x224xbf16>
    %cst_52 = arith.constant dense<0.000000e+00> : vector<2x224xf32>
    %65 = tpu.matmul %7, %64, %cst_52 {dimension_numbers = #tpu.dot_dimension_numbers<[1], [0], [0], [1], [0, 0, 1, 1], [], []>} : vector<2x32xbf16>, vector<32x224xbf16>, vector<2x224xf32> -> vector<2x224xf32>
    %c5_53 = arith.constant 5 : index
    %c0_54 = arith.constant 0 : index
    %66 = vector.load %arg2[%c5_53, %c0_54] : memref<7x224xf32, #tpu.memory_space<vmem>>, vector<1x224xf32>
    %67 = vector.broadcast %66 : vector<1x224xf32> to vector<2x224xf32>
    %68 = arith.addf %65, %67 : vector<2x224xf32>
    %69 = arith.truncf %68 : vector<2x224xf32> to vector<2x224xbf16>
    %70 = vector.extract_strided_slice %69 {offsets = [0, 0], sizes = [1, 224], strides = [1, 1]} : vector<2x224xbf16> to vector<1x224xbf16>
    %c6 = arith.constant 6 : index
    %c0_55 = arith.constant 0 : index
    %71 = vector.load %arg18[%c6, %c0_55] : memref<18x224xbf16, #tpu.memory_space<vmem>>, vector<1x224xbf16>
    tpu.vector_store %arg18[%c6, %c0_55], %70 {strides = array<i32>} : memref<18x224xbf16, #tpu.memory_space<vmem>>, vector<1x224xbf16>,
    %72 = vector.extract_strided_slice %69 {offsets = [1, 0], sizes = [1, 224], strides = [1, 1]} : vector<2x224xbf16> to vector<1x224xbf16>
    %c15 = arith.constant 15 : index
    %c0_56 = arith.constant 0 : index
    %73 = vector.load %arg18[%c15, %c0_56] : memref<18x224xbf16, #tpu.memory_space<vmem>>, vector<1x224xbf16>
    tpu.vector_store %arg18[%c15, %c0_56], %72 {strides = array<i32>} : memref<18x224xbf16, #tpu.memory_space<vmem>>, vector<1x224xbf16>,
    %c6_57 = arith.constant 6 : index
    %c0_58 = arith.constant 0 : index
    %c0_59 = arith.constant 0 : index
    %74 = vector.load %arg1[%c6_57, %c0_58, %c0_59] : memref<7x32x224xbf16, #tpu.memory_space<vmem>>, vector<1x32x224xbf16>
    %75 = vector.shape_cast %74 : vector<1x32x224xbf16> to vector<32x224xbf16>
    %cst_60 = arith.constant dense<0.000000e+00> : vector<2x224xf32>
    %76 = tpu.matmul %7, %75, %cst_60 {dimension_numbers = #tpu.dot_dimension_numbers<[1], [0], [0], [1], [0, 0, 1, 1], [], []>} : vector<2x32xbf16>, vector<32x224xbf16>, vector<2x224xf32> -> vector<2x224xf32>
    %c6_61 = arith.constant 6 : index
    %c0_62 = arith.constant 0 : index
    %77 = vector.load %arg2[%c6_61, %c0_62] : memref<7x224xf32, #tpu.memory_space<vmem>>, vector<1x224xf32>
    %78 = vector.broadcast %77 : vector<1x224xf32> to vector<2x224xf32>
    %79 = arith.addf %76, %78 : vector<2x224xf32>
    %80 = arith.truncf %79 : vector<2x224xf32> to vector<2x224xbf16>
    %81 = vector.extract_strided_slice %80 {offsets = [0, 0], sizes = [1, 224], strides = [1, 1]} : vector<2x224xbf16> to vector<1x224xbf16>
    %c7 = arith.constant 7 : index
    %c0_63 = arith.constant 0 : index
    %82 = vector.load %arg18[%c7, %c0_63] : memref<18x224xbf16, #tpu.memory_space<vmem>>, vector<1x224xbf16>
    tpu.vector_store %arg18[%c7, %c0_63], %81 {strides = array<i32>} : memref<18x224xbf16, #tpu.memory_space<vmem>>, vector<1x224xbf16>,
    %83 = vector.extract_strided_slice %80 {offsets = [1, 0], sizes = [1, 224], strides = [1, 1]} : vector<2x224xbf16> to vector<1x224xbf16>
    %c16 = arith.constant 16 : index
    %c0_64 = arith.constant 0 : index
    %84 = vector.load %arg18[%c16, %c0_64] : memref<18x224xbf16, #tpu.memory_space<vmem>>, vector<1x224xbf16>
    tpu.vector_store %arg18[%c16, %c0_64], %83 {strides = array<i32>} : memref<18x224xbf16, #tpu.memory_space<vmem>>, vector<1x224xbf16>,
    %cst_65 = arith.constant 0.000000e+00 : f32
    %85 = vector.broadcast %cst_65 : f32 to vector<1x224xf32>
    %cst_66 = arith.constant 0.000000e+00 : f32
    %86 = vector.broadcast %cst_66 : f32 to vector<1x224xf32>
    %c0_67 = arith.constant 0 : index
    %c0_68 = arith.constant 0 : index
    %87 = vector.load %arg18[%c0_67, %c0_68] : memref<18x224xbf16, #tpu.memory_space<vmem>>, vector<7x224xbf16>
    %c0_69 = arith.constant 0 : index
    %c0_70 = arith.constant 0 : index
    %c0_71 = arith.constant 0 : index
    %88 = vector.load %arg3[%c0_69, %c0_70, %c0_71] : memref<4x224x224xbf16, #tpu.memory_space<vmem>>, vector<1x224x224xbf16>
    %89 = vector.shape_cast %88 : vector<1x224x224xbf16> to vector<224x224xbf16>
    %cst_72 = arith.constant dense<0.000000e+00> : vector<7x224xf32>
    %90 = tpu.matmul %87, %89, %cst_72 {dimension_numbers = #tpu.dot_dimension_numbers<[1], [0], [0], [1], [0, 0, 1, 1], [], []>} : vector<7x224xbf16>, vector<224x224xbf16>, vector<7x224xf32> -> vector<7x224xf32>
    %c1_73 = arith.constant 1 : index
    %c0_74 = arith.constant 0 : index
    %91 = vector.load %arg18[%c1_73, %c0_74] : memref<18x224xbf16, #tpu.memory_space<vmem>>, vector<7x224xbf16>
    %c1_75 = arith.constant 1 : index
    %c0_76 = arith.constant 0 : index
    %c0_77 = arith.constant 0 : index
    %92 = vector.load %arg3[%c1_75, %c0_76, %c0_77] : memref<4x224x224xbf16, #tpu.memory_space<vmem>>, vector<1x224x224xbf16>
    %93 = vector.shape_cast %92 : vector<1x224x224xbf16> to vector<224x224xbf16>
    %cst_78 = arith.constant dense<0.000000e+00> : vector<7x224xf32>
    %94 = tpu.matmul %91, %93, %cst_78 {dimension_numbers = #tpu.dot_dimension_numbers<[1], [0], [0], [1], [0, 0, 1, 1], [], []>} : vector<7x224xbf16>, vector<224x224xbf16>, vector<7x224xf32> -> vector<7x224xf32>
    %95 = arith.addf %90, %94 : vector<7x224xf32>
    %cst_79 = arith.constant dense<0.000000e+00> : vector<224xf32>
    %96 = vector.multi_reduction <add>, %95, %cst_79 [0] : vector<7x224xf32> to vector<224xf32>
    %97 = vector.shape_cast %96 : vector<224xf32> to vector<1x224xf32>
    %98 = arith.addf %85, %97 : vector<1x224xf32>
    %99 = arith.mulf %95, %95 : vector<7x224xf32>
    %cst_80 = arith.constant dense<0.000000e+00> : vector<224xf32>
    %100 = vector.multi_reduction <add>, %99, %cst_80 [0] : vector<7x224xf32> to vector<224xf32>
    %101 = vector.shape_cast %100 : vector<224xf32> to vector<1x224xf32>
    %102 = arith.addf %86, %101 : vector<1x224xf32>
    %c9 = arith.constant 9 : index
    %c0_81 = arith.constant 0 : index
    %103 = vector.load %arg18[%c9, %c0_81] : memref<18x224xbf16, #tpu.memory_space<vmem>>, vector<7x224xbf16>
    %c0_82 = arith.constant 0 : index
    %c0_83 = arith.constant 0 : index
    %c0_84 = arith.constant 0 : index
    %104 = vector.load %arg3[%c0_82, %c0_83, %c0_84] : memref<4x224x224xbf16, #tpu.memory_space<vmem>>, vector<1x224x224xbf16>
    %105 = vector.shape_cast %104 : vector<1x224x224xbf16> to vector<224x224xbf16>
    %cst_85 = arith.constant dense<0.000000e+00> : vector<7x224xf32>
    %106 = tpu.matmul %103, %105, %cst_85 {dimension_numbers = #tpu.dot_dimension_numbers<[1], [0], [0], [1], [0, 0, 1, 1], [], []>} : vector<7x224xbf16>, vector<224x224xbf16>, vector<7x224xf32> -> vector<7x224xf32>
    %c10_86 = arith.constant 10 : index
    %c0_87 = arith.constant 0 : index
    %107 = vector.load %arg18[%c10_86, %c0_87] : memref<18x224xbf16, #tpu.memory_space<vmem>>, vector<7x224xbf16>
    %c1_88 = arith.constant 1 : index
    %c0_89 = arith.constant 0 : index
    %c0_90 = arith.constant 0 : index
    %108 = vector.load %arg3[%c1_88, %c0_89, %c0_90] : memref<4x224x224xbf16, #tpu.memory_space<vmem>>, vector<1x224x224xbf16>
    %109 = vector.shape_cast %108 : vector<1x224x224xbf16> to vector<224x224xbf16>
    %cst_91 = arith.constant dense<0.000000e+00> : vector<7x224xf32>
    %110 = tpu.matmul %107, %109, %cst_91 {dimension_numbers = #tpu.dot_dimension_numbers<[1], [0], [0], [1], [0, 0, 1, 1], [], []>} : vector<7x224xbf16>, vector<224x224xbf16>, vector<7x224xf32> -> vector<7x224xf32>
    %111 = arith.addf %106, %110 : vector<7x224xf32>
    %cst_92 = arith.constant dense<0.000000e+00> : vector<224xf32>
    %112 = vector.multi_reduction <add>, %111, %cst_92 [0] : vector<7x224xf32> to vector<224xf32>
    %113 = vector.shape_cast %112 : vector<224xf32> to vector<1x224xf32>
    %114 = arith.addf %98, %113 : vector<1x224xf32>
    %115 = arith.mulf %111, %111 : vector<7x224xf32>
    %cst_93 = arith.constant dense<0.000000e+00> : vector<224xf32>
    %116 = vector.multi_reduction <add>, %115, %cst_93 [0] : vector<7x224xf32> to vector<224xf32>
    %117 = vector.shape_cast %116 : vector<224xf32> to vector<1x224xf32>
    %118 = arith.addf %102, %117 : vector<1x224xf32>
    %c1_94 = arith.constant 1 : index
    %c0_95 = arith.constant 0 : index
    %119 = vector.load %arg18[%c1_94, %c0_95] : memref<18x224xbf16, #tpu.memory_space<vmem>>, vector<7x224xbf16>
    %c2_96 = arith.constant 2 : index
    %c0_97 = arith.constant 0 : index
    %c0_98 = arith.constant 0 : index
    %120 = vector.load %arg3[%c2_96, %c0_97, %c0_98] : memref<4x224x224xbf16, #tpu.memory_space<vmem>>, vector<1x224x224xbf16>
    %121 = vector.shape_cast %120 : vector<1x224x224xbf16> to vector<224x224xbf16>
    %cst_99 = arith.constant dense<0.000000e+00> : vector<7x224xf32>
    %122 = tpu.matmul %119, %121, %cst_99 {dimension_numbers = #tpu.dot_dimension_numbers<[1], [0], [0], [1], [0, 0, 1, 1], [], []>} : vector<7x224xbf16>, vector<224x224xbf16>, vector<7x224xf32> -> vector<7x224xf32>
    %c2_100 = arith.constant 2 : index
    %c0_101 = arith.constant 0 : index
    %123 = vector.load %arg18[%c2_100, %c0_101] : memref<18x224xbf16, #tpu.memory_space<vmem>>, vector<7x224xbf16>
    %c3_102 = arith.constant 3 : index
    %c0_103 = arith.constant 0 : index
    %c0_104 = arith.constant 0 : index
    %124 = vector.load %arg3[%c3_102, %c0_103, %c0_104] : memref<4x224x224xbf16, #tpu.memory_space<vmem>>, vector<1x224x224xbf16>
    %125 = vector.shape_cast %124 : vector<1x224x224xbf16> to vector<224x224xbf16>
    %cst_105 = arith.constant dense<0.000000e+00> : vector<7x224xf32>
    %126 = tpu.matmul %123, %125, %cst_105 {dimension_numbers = #tpu.dot_dimension_numbers<[1], [0], [0], [1], [0, 0, 1, 1], [], []>} : vector<7x224xbf16>, vector<224x224xbf16>, vector<7x224xf32> -> vector<7x224xf32>
    %127 = arith.addf %122, %126 : vector<7x224xf32>
    %cst_106 = arith.constant dense<0.000000e+00> : vector<224xf32>
    %128 = vector.multi_reduction <add>, %127, %cst_106 [0] : vector<7x224xf32> to vector<224xf32>
    %129 = vector.shape_cast %128 : vector<224xf32> to vector<1x224xf32>
    %130 = arith.addf %114, %129 : vector<1x224xf32>
    %131 = arith.mulf %127, %127 : vector<7x224xf32>
    %cst_107 = arith.constant dense<0.000000e+00> : vector<224xf32>
    %132 = vector.multi_reduction <add>, %131, %cst_107 [0] : vector<7x224xf32> to vector<224xf32>
    %133 = vector.shape_cast %132 : vector<224xf32> to vector<1x224xf32>
    %134 = arith.addf %118, %133 : vector<1x224xf32>
    %c10_108 = arith.constant 10 : index
    %c0_109 = arith.constant 0 : index
    %135 = vector.load %arg18[%c10_108, %c0_109] : memref<18x224xbf16, #tpu.memory_space<vmem>>, vector<7x224xbf16>
    %c2_110 = arith.constant 2 : index
    %c0_111 = arith.constant 0 : index
    %c0_112 = arith.constant 0 : index
    %136 = vector.load %arg3[%c2_110, %c0_111, %c0_112] : memref<4x224x224xbf16, #tpu.memory_space<vmem>>, vector<1x224x224xbf16>
    %137 = vector.shape_cast %136 : vector<1x224x224xbf16> to vector<224x224xbf16>
    %cst_113 = arith.constant dense<0.000000e+00> : vector<7x224xf32>
    %138 = tpu.matmul %135, %137, %cst_113 {dimension_numbers = #tpu.dot_dimension_numbers<[1], [0], [0], [1], [0, 0, 1, 1], [], []>} : vector<7x224xbf16>, vector<224x224xbf16>, vector<7x224xf32> -> vector<7x224xf32>
    %c11_114 = arith.constant 11 : index
    %c0_115 = arith.constant 0 : index
    %139 = vector.load %arg18[%c11_114, %c0_115] : memref<18x224xbf16, #tpu.memory_space<vmem>>, vector<7x224xbf16>
    %c3_116 = arith.constant 3 : index
    %c0_117 = arith.constant 0 : index
    %c0_118 = arith.constant 0 : index
    %140 = vector.load %arg3[%c3_116, %c0_117, %c0_118] : memref<4x224x224xbf16, #tpu.memory_space<vmem>>, vector<1x224x224xbf16>
    %141 = vector.shape_cast %140 : vector<1x224x224xbf16> to vector<224x224xbf16>
    %cst_119 = arith.constant dense<0.000000e+00> : vector<7x224xf32>
    %142 = tpu.matmul %139, %141, %cst_119 {dimension_numbers = #tpu.dot_dimension_numbers<[1], [0], [0], [1], [0, 0, 1, 1], [], []>} : vector<7x224xbf16>, vector<224x224xbf16>, vector<7x224xf32> -> vector<7x224xf32>
    %143 = arith.addf %138, %142 : vector<7x224xf32>
    %cst_120 = arith.constant dense<0.000000e+00> : vector<224xf32>
    %144 = vector.multi_reduction <add>, %143, %cst_120 [0] : vector<7x224xf32> to vector<224xf32>
    %145 = vector.shape_cast %144 : vector<224xf32> to vector<1x224xf32>
    %146 = arith.addf %130, %145 : vector<1x224xf32>
    %147 = arith.mulf %143, %143 : vector<7x224xf32>
    %cst_121 = arith.constant dense<0.000000e+00> : vector<224xf32>
    %148 = vector.multi_reduction <add>, %147, %cst_121 [0] : vector<7x224xf32> to vector<224xf32>
    %149 = vector.shape_cast %148 : vector<224xf32> to vector<1x224xf32>
    %150 = arith.addf %134, %149 : vector<1x224xf32>
    %c0_122 = arith.constant 0 : index
    %c0_123 = arith.constant 0 : index
    %151 = vector.load %arg4[%c0_122, %c0_123] : memref<224x16xf32, #tpu.memory_space<vmem>>, vector<224x16xf32>
    %cst_124 = arith.constant dense<0.000000e+00> : vector<1x16xf32>
    %152 = tpu.matmul %146, %151, %cst_124 {dimension_numbers = #tpu.dot_dimension_numbers<[1], [0], [0], [1], [0, 0, 1, 1], [], []>} : vector<1x224xf32>, vector<224x16xf32>, vector<1x16xf32> -> vector<1x16xf32>
    %cst_125 = arith.constant 3.920000e+02 : f32
    %153 = vector.broadcast %cst_125 : f32 to vector<1x16xf32>
    %154 = arith.divf %152, %153 : vector<1x16xf32>
    %c0_126 = arith.constant 0 : index
    %c0_127 = arith.constant 0 : index
    %155 = vector.load %arg4[%c0_126, %c0_127] : memref<224x16xf32, #tpu.memory_space<vmem>>, vector<224x16xf32>
    %cst_128 = arith.constant dense<0.000000e+00> : vector<1x16xf32>
    %156 = tpu.matmul %150, %155, %cst_128 {dimension_numbers = #tpu.dot_dimension_numbers<[1], [0], [0], [1], [0, 0, 1, 1], [], []>} : vector<1x224xf32>, vector<224x16xf32>, vector<1x16xf32> -> vector<1x16xf32>
    %cst_129 = arith.constant 3.920000e+02 : f32
    %157 = vector.broadcast %cst_129 : f32 to vector<1x16xf32>
    %158 = arith.divf %156, %157 : vector<1x16xf32>
    %159 = arith.mulf %154, %154 : vector<1x16xf32>
    %160 = arith.subf %158, %159 : vector<1x16xf32>
    %c0_130 = arith.constant 0 : index
    %c0_131 = arith.constant 0 : index
    %161 = vector.load %arg7[%c0_130, %c0_131] : memref<1x16xf32, #tpu.memory_space<vmem>>, vector<1x16xf32>
    %cst_132 = arith.constant 9.99999974E-6 : f32
    %162 = vector.broadcast %cst_132 : f32 to vector<1x16xf32>
    %163 = arith.addf %160, %162 : vector<1x16xf32>
    %164 = math.rsqrt %163 : vector<1x16xf32>
    %165 = arith.mulf %161, %164 : vector<1x16xf32>
    %c0_133 = arith.constant 0 : index
    %c0_134 = arith.constant 0 : index
    %166 = vector.load %arg8[%c0_133, %c0_134] : memref<1x16xf32, #tpu.memory_space<vmem>>, vector<1x16xf32>
    %c0_135 = arith.constant 0 : index
    %c0_136 = arith.constant 0 : index
    %167 = vector.load %arg6[%c0_135, %c0_136] : memref<1x16xf32, #tpu.memory_space<vmem>>, vector<1x16xf32>
    %c0_137 = arith.constant 0 : index
    %c0_138 = arith.constant 0 : index
    %168 = vector.load %arg6[%c0_137, %c0_138] : memref<1x16xf32, #tpu.memory_space<vmem>>, vector<1x16xf32>
    %169 = arith.addf %154, %168 : vector<1x16xf32>
    %170 = arith.subf %167, %169 : vector<1x16xf32>
    %171 = arith.mulf %170, %165 : vector<1x16xf32>
    %172 = arith.addf %166, %171 : vector<1x16xf32>
    %c0_139 = arith.constant 0 : index
    %c0_140 = arith.constant 0 : index
    %173 = vector.load %arg5[%c0_139, %c0_140] : memref<16x224xf32, #tpu.memory_space<vmem>>, vector<16x224xf32>
    %cst_141 = arith.constant dense<0.000000e+00> : vector<1x224xf32>
    %174 = tpu.matmul %165, %173, %cst_141 {dimension_numbers = #tpu.dot_dimension_numbers<[1], [0], [0], [1], [0, 0, 1, 1], [], []>} : vector<1x16xf32>, vector<16x224xf32>, vector<1x224xf32> -> vector<1x224xf32>
    %c0_142 = arith.constant 0 : index
    %c0_143 = arith.constant 0 : index
    %175 = vector.load %arg5[%c0_142, %c0_143] : memref<16x224xf32, #tpu.memory_space<vmem>>, vector<16x224xf32>
    %cst_144 = arith.constant dense<0.000000e+00> : vector<1x224xf32>
    %176 = tpu.matmul %172, %175, %cst_144 {dimension_numbers = #tpu.dot_dimension_numbers<[1], [0], [0], [1], [0, 0, 1, 1], [], []>} : vector<1x16xf32>, vector<16x224xf32>, vector<1x224xf32> -> vector<1x224xf32>
    %177 = vector.broadcast %174 : vector<1x224xf32> to vector<7x224xf32>
    %178 = arith.mulf %95, %177 : vector<7x224xf32>
    %179 = vector.broadcast %176 : vector<1x224xf32> to vector<7x224xf32>
    %180 = arith.addf %178, %179 : vector<7x224xf32>
    %cst_145 = arith.constant 0.000000e+00 : f32
    %181 = vector.broadcast %cst_145 : f32 to vector<7x224xf32>
    %182 = arith.maximumf %180, %181 : vector<7x224xf32>
    %183 = arith.truncf %182 : vector<7x224xf32> to vector<7x224xbf16>
    %184 = vector.extract_strided_slice %183 {offsets = [0, 0], sizes = [1, 224], strides = [1, 1]} : vector<7x224xbf16> to vector<1x224xbf16>
    %c1_146 = arith.constant 1 : index
    %c0_147 = arith.constant 0 : index
    %185 = vector.load %arg19[%c1_146, %c0_147] : memref<32x224xbf16, #tpu.memory_space<vmem>>, vector<1x224xbf16>
    tpu.vector_store %arg19[%c1_146, %c0_147], %184 {strides = array<i32>} : memref<32x224xbf16, #tpu.memory_space<vmem>>, vector<1x224xbf16>,
    %186 = vector.extract_strided_slice %183 {offsets = [1, 0], sizes = [1, 224], strides = [1, 1]} : vector<7x224xbf16> to vector<1x224xbf16>
    %c3_148 = arith.constant 3 : index
    %c0_149 = arith.constant 0 : index
    %187 = vector.load %arg19[%c3_148, %c0_149] : memref<32x224xbf16, #tpu.memory_space<vmem>>, vector<1x224xbf16>
    tpu.vector_store %arg19[%c3_148, %c0_149], %186 {strides = array<i32>} : memref<32x224xbf16, #tpu.memory_space<vmem>>, vector<1x224xbf16>,
    %188 = vector.extract_strided_slice %183 {offsets = [2, 0], sizes = [1, 224], strides = [1, 1]} : vector<7x224xbf16> to vector<1x224xbf16>
    %c5_150 = arith.constant 5 : index
    %c0_151 = arith.constant 0 : index
    %189 = vector.load %arg19[%c5_150, %c0_151] : memref<32x224xbf16, #tpu.memory_space<vmem>>, vector<1x224xbf16>
    tpu.vector_store %arg19[%c5_150, %c0_151], %188 {strides = array<i32>} : memref<32x224xbf16, #tpu.memory_space<vmem>>, vector<1x224xbf16>,
    %190 = vector.extract_strided_slice %183 {offsets = [3, 0], sizes = [1, 224], strides = [1, 1]} : vector<7x224xbf16> to vector<1x224xbf16>
    %c7_152 = arith.constant 7 : index
    %c0_153 = arith.constant 0 : index
    %191 = vector.load %arg19[%c7_152, %c0_153] : memref<32x224xbf16, #tpu.memory_space<vmem>>, vector<1x224xbf16>
    tpu.vector_store %arg19[%c7_152, %c0_153], %190 {strides = array<i32>} : memref<32x224xbf16, #tpu.memory_space<vmem>>, vector<1x224xbf16>,
    %192 = vector.extract_strided_slice %183 {offsets = [4, 0], sizes = [1, 224], strides = [1, 1]} : vector<7x224xbf16> to vector<1x224xbf16>
    %c9_154 = arith.constant 9 : index
    %c0_155 = arith.constant 0 : index
    %193 = vector.load %arg19[%c9_154, %c0_155] : memref<32x224xbf16, #tpu.memory_space<vmem>>, vector<1x224xbf16>
    tpu.vector_store %arg19[%c9_154, %c0_155], %192 {strides = array<i32>} : memref<32x224xbf16, #tpu.memory_space<vmem>>, vector<1x224xbf16>,
    %194 = vector.extract_strided_slice %183 {offsets = [5, 0], sizes = [1, 224], strides = [1, 1]} : vector<7x224xbf16> to vector<1x224xbf16>
    %c11_156 = arith.constant 11 : index
    %c0_157 = arith.constant 0 : index
    %195 = vector.load %arg19[%c11_156, %c0_157] : memref<32x224xbf16, #tpu.memory_space<vmem>>, vector<1x224xbf16>
    tpu.vector_store %arg19[%c11_156, %c0_157], %194 {strides = array<i32>} : memref<32x224xbf16, #tpu.memory_space<vmem>>, vector<1x224xbf16>,
    %196 = vector.extract_strided_slice %183 {offsets = [6, 0], sizes = [1, 224], strides = [1, 1]} : vector<7x224xbf16> to vector<1x224xbf16>
    %c13_158 = arith.constant 13 : index
    %c0_159 = arith.constant 0 : index
    %197 = vector.load %arg19[%c13_158, %c0_159] : memref<32x224xbf16, #tpu.memory_space<vmem>>, vector<1x224xbf16>
    tpu.vector_store %arg19[%c13_158, %c0_159], %196 {strides = array<i32>} : memref<32x224xbf16, #tpu.memory_space<vmem>>, vector<1x224xbf16>,
    %198 = vector.broadcast %174 : vector<1x224xf32> to vector<7x224xf32>
    %199 = arith.mulf %111, %198 : vector<7x224xf32>
    %200 = vector.broadcast %176 : vector<1x224xf32> to vector<7x224xf32>
    %201 = arith.addf %199, %200 : vector<7x224xf32>
    %cst_160 = arith.constant 0.000000e+00 : f32
    %202 = vector.broadcast %cst_160 : f32 to vector<7x224xf32>
    %203 = arith.maximumf %201, %202 : vector<7x224xf32>
    %204 = arith.truncf %203 : vector<7x224xf32> to vector<7x224xbf16>
    %205 = vector.extract_strided_slice %204 {offsets = [0, 0], sizes = [1, 224], strides = [1, 1]} : vector<7x224xbf16> to vector<1x224xbf16>
    %c17 = arith.constant 17 : index
    %c0_161 = arith.constant 0 : index
    %206 = vector.load %arg19[%c17, %c0_161] : memref<32x224xbf16, #tpu.memory_space<vmem>>, vector<1x224xbf16>
    tpu.vector_store %arg19[%c17, %c0_161], %205 {strides = array<i32>} : memref<32x224xbf16, #tpu.memory_space<vmem>>, vector<1x224xbf16>,
    %207 = vector.extract_strided_slice %204 {offsets = [1, 0], sizes = [1, 224], strides = [1, 1]} : vector<7x224xbf16> to vector<1x224xbf16>
    %c19 = arith.constant 19 : index
    %c0_162 = arith.constant 0 : index
    %208 = vector.load %arg19[%c19, %c0_162] : memref<32x224xbf16, #tpu.memory_space<vmem>>, vector<1x224xbf16>
    tpu.vector_store %arg19[%c19, %c0_162], %207 {strides = array<i32>} : memref<32x224xbf16, #tpu.memory_space<vmem>>, vector<1x224xbf16>,
    %209 = vector.extract_strided_slice %204 {offsets = [2, 0], sizes = [1, 224], strides = [1, 1]} : vector<7x224xbf16> to vector<1x224xbf16>
    %c21 = arith.constant 21 : index
    %c0_163 = arith.constant 0 : index
    %210 = vector.load %arg19[%c21, %c0_163] : memref<32x224xbf16, #tpu.memory_space<vmem>>, vector<1x224xbf16>
    tpu.vector_store %arg19[%c21, %c0_163], %209 {strides = array<i32>} : memref<32x224xbf16, #tpu.memory_space<vmem>>, vector<1x224xbf16>,
    %211 = vector.extract_strided_slice %204 {offsets = [3, 0], sizes = [1, 224], strides = [1, 1]} : vector<7x224xbf16> to vector<1x224xbf16>
    %c23 = arith.constant 23 : index
    %c0_164 = arith.constant 0 : index
    %212 = vector.load %arg19[%c23, %c0_164] : memref<32x224xbf16, #tpu.memory_space<vmem>>, vector<1x224xbf16>
    tpu.vector_store %arg19[%c23, %c0_164], %211 {strides = array<i32>} : memref<32x224xbf16, #tpu.memory_space<vmem>>, vector<1x224xbf16>,
    %213 = vector.extract_strided_slice %204 {offsets = [4, 0], sizes = [1, 224], strides = [1, 1]} : vector<7x224xbf16> to vector<1x224xbf16>
    %c25 = arith.constant 25 : index
    %c0_165 = arith.constant 0 : index
    %214 = vector.load %arg19[%c25, %c0_165] : memref<32x224xbf16, #tpu.memory_space<vmem>>, vector<1x224xbf16>
    tpu.vector_store %arg19[%c25, %c0_165], %213 {strides = array<i32>} : memref<32x224xbf16, #tpu.memory_space<vmem>>, vector<1x224xbf16>,
    %215 = vector.extract_strided_slice %204 {offsets = [5, 0], sizes = [1, 224], strides = [1, 1]} : vector<7x224xbf16> to vector<1x224xbf16>
    %c27 = arith.constant 27 : index
    %c0_166 = arith.constant 0 : index
    %216 = vector.load %arg19[%c27, %c0_166] : memref<32x224xbf16, #tpu.memory_space<vmem>>, vector<1x224xbf16>
    tpu.vector_store %arg19[%c27, %c0_166], %215 {strides = array<i32>} : memref<32x224xbf16, #tpu.memory_space<vmem>>, vector<1x224xbf16>,
    %217 = vector.extract_strided_slice %204 {offsets = [6, 0], sizes = [1, 224], strides = [1, 1]} : vector<7x224xbf16> to vector<1x224xbf16>
    %c29 = arith.constant 29 : index
    %c0_167 = arith.constant 0 : index
    %218 = vector.load %arg19[%c29, %c0_167] : memref<32x224xbf16, #tpu.memory_space<vmem>>, vector<1x224xbf16>
    tpu.vector_store %arg19[%c29, %c0_167], %217 {strides = array<i32>} : memref<32x224xbf16, #tpu.memory_space<vmem>>, vector<1x224xbf16>,
    %219 = vector.broadcast %174 : vector<1x224xf32> to vector<7x224xf32>
    %220 = arith.mulf %127, %219 : vector<7x224xf32>
    %221 = vector.broadcast %176 : vector<1x224xf32> to vector<7x224xf32>
    %222 = arith.addf %220, %221 : vector<7x224xf32>
    %cst_168 = arith.constant 0.000000e+00 : f32
    %223 = vector.broadcast %cst_168 : f32 to vector<7x224xf32>
    %224 = arith.maximumf %222, %223 : vector<7x224xf32>
    %225 = arith.truncf %224 : vector<7x224xf32> to vector<7x224xbf16>
    %226 = vector.extract_strided_slice %225 {offsets = [0, 0], sizes = [1, 224], strides = [1, 1]} : vector<7x224xbf16> to vector<1x224xbf16>
    %c2_169 = arith.constant 2 : index
    %c0_170 = arith.constant 0 : index
    %227 = vector.load %arg19[%c2_169, %c0_170] : memref<32x224xbf16, #tpu.memory_space<vmem>>, vector<1x224xbf16>
    tpu.vector_store %arg19[%c2_169, %c0_170], %226 {strides = array<i32>} : memref<32x224xbf16, #tpu.memory_space<vmem>>, vector<1x224xbf16>,
    %228 = vector.extract_strided_slice %225 {offsets = [1, 0], sizes = [1, 224], strides = [1, 1]} : vector<7x224xbf16> to vector<1x224xbf16>
    %c4_171 = arith.constant 4 : index
    %c0_172 = arith.constant 0 : index
    %229 = vector.load %arg19[%c4_171, %c0_172] : memref<32x224xbf16, #tpu.memory_space<vmem>>, vector<1x224xbf16>
    tpu.vector_store %arg19[%c4_171, %c0_172], %228 {strides = array<i32>} : memref<32x224xbf16, #tpu.memory_space<vmem>>, vector<1x224xbf16>,
    %230 = vector.extract_strided_slice %225 {offsets = [2, 0], sizes = [1, 224], strides = [1, 1]} : vector<7x224xbf16> to vector<1x224xbf16>
    %c6_173 = arith.constant 6 : index
    %c0_174 = arith.constant 0 : index
    %231 = vector.load %arg19[%c6_173, %c0_174] : memref<32x224xbf16, #tpu.memory_space<vmem>>, vector<1x224xbf16>
    tpu.vector_store %arg19[%c6_173, %c0_174], %230 {strides = array<i32>} : memref<32x224xbf16, #tpu.memory_space<vmem>>, vector<1x224xbf16>,
    %232 = vector.extract_strided_slice %225 {offsets = [3, 0], sizes = [1, 224], strides = [1, 1]} : vector<7x224xbf16> to vector<1x224xbf16>
    %c8 = arith.constant 8 : index
    %c0_175 = arith.constant 0 : index
    %233 = vector.load %arg19[%c8, %c0_175] : memref<32x224xbf16, #tpu.memory_space<vmem>>, vector<1x224xbf16>
    tpu.vector_store %arg19[%c8, %c0_175], %232 {strides = array<i32>} : memref<32x224xbf16, #tpu.memory_space<vmem>>, vector<1x224xbf16>,
    %234 = vector.extract_strided_slice %225 {offsets = [4, 0], sizes = [1, 224], strides = [1, 1]} : vector<7x224xbf16> to vector<1x224xbf16>
    %c10_176 = arith.constant 10 : index
    %c0_177 = arith.constant 0 : index
    %235 = vector.load %arg19[%c10_176, %c0_177] : memref<32x224xbf16, #tpu.memory_space<vmem>>, vector<1x224xbf16>
    tpu.vector_store %arg19[%c10_176, %c0_177], %234 {strides = array<i32>} : memref<32x224xbf16, #tpu.memory_space<vmem>>, vector<1x224xbf16>,
    %236 = vector.extract_strided_slice %225 {offsets = [5, 0], sizes = [1, 224], strides = [1, 1]} : vector<7x224xbf16> to vector<1x224xbf16>
    %c12_178 = arith.constant 12 : index
    %c0_179 = arith.constant 0 : index
    %237 = vector.load %arg19[%c12_178, %c0_179] : memref<32x224xbf16, #tpu.memory_space<vmem>>, vector<1x224xbf16>
    tpu.vector_store %arg19[%c12_178, %c0_179], %236 {strides = array<i32>} : memref<32x224xbf16, #tpu.memory_space<vmem>>, vector<1x224xbf16>,
    %238 = vector.extract_strided_slice %225 {offsets = [6, 0], sizes = [1, 224], strides = [1, 1]} : vector<7x224xbf16> to vector<1x224xbf16>
    %c14_180 = arith.constant 14 : index
    %c0_181 = arith.constant 0 : index
    %239 = vector.load %arg19[%c14_180, %c0_181] : memref<32x224xbf16, #tpu.memory_space<vmem>>, vector<1x224xbf16>
    tpu.vector_store %arg19[%c14_180, %c0_181], %238 {strides = array<i32>} : memref<32x224xbf16, #tpu.memory_space<vmem>>, vector<1x224xbf16>,
    %240 = vector.broadcast %174 : vector<1x224xf32> to vector<7x224xf32>
    %241 = arith.mulf %143, %240 : vector<7x224xf32>
    %242 = vector.broadcast %176 : vector<1x224xf32> to vector<7x224xf32>
    %243 = arith.addf %241, %242 : vector<7x224xf32>
    %cst_182 = arith.constant 0.000000e+00 : f32
    %244 = vector.broadcast %cst_182 : f32 to vector<7x224xf32>
    %245 = arith.maximumf %243, %244 : vector<7x224xf32>
    %246 = arith.truncf %245 : vector<7x224xf32> to vector<7x224xbf16>
    %247 = vector.extract_strided_slice %246 {offsets = [0, 0], sizes = [1, 224], strides = [1, 1]} : vector<7x224xbf16> to vector<1x224xbf16>
    %c18 = arith.constant 18 : index
    %c0_183 = arith.constant 0 : index
    %248 = vector.load %arg19[%c18, %c0_183] : memref<32x224xbf16, #tpu.memory_space<vmem>>, vector<1x224xbf16>
    tpu.vector_store %arg19[%c18, %c0_183], %247 {strides = array<i32>} : memref<32x224xbf16, #tpu.memory_space<vmem>>, vector<1x224xbf16>,
    %249 = vector.extract_strided_slice %246 {offsets = [1, 0], sizes = [1, 224], strides = [1, 1]} : vector<7x224xbf16> to vector<1x224xbf16>
    %c20 = arith.constant 20 : index
    %c0_184 = arith.constant 0 : index
    %250 = vector.load %arg19[%c20, %c0_184] : memref<32x224xbf16, #tpu.memory_space<vmem>>, vector<1x224xbf16>
    tpu.vector_store %arg19[%c20, %c0_184], %249 {strides = array<i32>} : memref<32x224xbf16, #tpu.memory_space<vmem>>, vector<1x224xbf16>,
    %251 = vector.extract_strided_slice %246 {offsets = [2, 0], sizes = [1, 224], strides = [1, 1]} : vector<7x224xbf16> to vector<1x224xbf16>
    %c22 = arith.constant 22 : index
    %c0_185 = arith.constant 0 : index
    %252 = vector.load %arg19[%c22, %c0_185] : memref<32x224xbf16, #tpu.memory_space<vmem>>, vector<1x224xbf16>
    tpu.vector_store %arg19[%c22, %c0_185], %251 {strides = array<i32>} : memref<32x224xbf16, #tpu.memory_space<vmem>>, vector<1x224xbf16>,
    %253 = vector.extract_strided_slice %246 {offsets = [3, 0], sizes = [1, 224], strides = [1, 1]} : vector<7x224xbf16> to vector<1x224xbf16>
    %c24 = arith.constant 24 : index
    %c0_186 = arith.constant 0 : index
    %254 = vector.load %arg19[%c24, %c0_186] : memref<32x224xbf16, #tpu.memory_space<vmem>>, vector<1x224xbf16>
    tpu.vector_store %arg19[%c24, %c0_186], %253 {strides = array<i32>} : memref<32x224xbf16, #tpu.memory_space<vmem>>, vector<1x224xbf16>,
    %255 = vector.extract_strided_slice %246 {offsets = [4, 0], sizes = [1, 224], strides = [1, 1]} : vector<7x224xbf16> to vector<1x224xbf16>
    %c26 = arith.constant 26 : index
    %c0_187 = arith.constant 0 : index
    %256 = vector.load %arg19[%c26, %c0_187] : memref<32x224xbf16, #tpu.memory_space<vmem>>, vector<1x224xbf16>
    tpu.vector_store %arg19[%c26, %c0_187], %255 {strides = array<i32>} : memref<32x224xbf16, #tpu.memory_space<vmem>>, vector<1x224xbf16>,
    %257 = vector.extract_strided_slice %246 {offsets = [5, 0], sizes = [1, 224], strides = [1, 1]} : vector<7x224xbf16> to vector<1x224xbf16>
    %c28 = arith.constant 28 : index
    %c0_188 = arith.constant 0 : index
    %258 = vector.load %arg19[%c28, %c0_188] : memref<32x224xbf16, #tpu.memory_space<vmem>>, vector<1x224xbf16>
    tpu.vector_store %arg19[%c28, %c0_188], %257 {strides = array<i32>} : memref<32x224xbf16, #tpu.memory_space<vmem>>, vector<1x224xbf16>,
    %259 = vector.extract_strided_slice %246 {offsets = [6, 0], sizes = [1, 224], strides = [1, 1]} : vector<7x224xbf16> to vector<1x224xbf16>
    %c30 = arith.constant 30 : index
    %c0_189 = arith.constant 0 : index
    %260 = vector.load %arg19[%c30, %c0_189] : memref<32x224xbf16, #tpu.memory_space<vmem>>, vector<1x224xbf16>
    tpu.vector_store %arg19[%c30, %c0_189], %259 {strides = array<i32>} : memref<32x224xbf16, #tpu.memory_space<vmem>>, vector<1x224xbf16>,
    %cst_190 = arith.constant 0.000000e+00 : f32
    %261 = vector.broadcast %cst_190 : f32 to vector<1x224xf32>
    %cst_191 = arith.constant 0.000000e+00 : f32
    %262 = vector.broadcast %cst_191 : f32 to vector<1x224xf32>
    %c0_192 = arith.constant 0 : index
    %c0_193 = arith.constant 0 : index
    %263 = vector.load %arg19[%c0_192, %c0_193] : memref<32x224xbf16, #tpu.memory_space<vmem>>, vector<14x224xbf16>
    %c0_194 = arith.constant 0 : index
    %c0_195 = arith.constant 0 : index
    %c0_196 = arith.constant 0 : index
    %264 = vector.load %arg9[%c0_194, %c0_195, %c0_196] : memref<4x224x224xbf16, #tpu.memory_space<vmem>>, vector<1x224x224xbf16>
    %265 = vector.shape_cast %264 : vector<1x224x224xbf16> to vector<224x224xbf16>
    %cst_197 = arith.constant dense<0.000000e+00> : vector<14x224xf32>
    %266 = tpu.matmul %263, %265, %cst_197 {dimension_numbers = #tpu.dot_dimension_numbers<[1], [0], [0], [1], [0, 0, 1, 1], [], []>} : vector<14x224xbf16>, vector<224x224xbf16>, vector<14x224xf32> -> vector<14x224xf32>
    %c1_198 = arith.constant 1 : index
    %c0_199 = arith.constant 0 : index
    %267 = vector.load %arg19[%c1_198, %c0_199] : memref<32x224xbf16, #tpu.memory_space<vmem>>, vector<14x224xbf16>
    %c1_200 = arith.constant 1 : index
    %c0_201 = arith.constant 0 : index
    %c0_202 = arith.constant 0 : index
    %268 = vector.load %arg9[%c1_200, %c0_201, %c0_202] : memref<4x224x224xbf16, #tpu.memory_space<vmem>>, vector<1x224x224xbf16>
    %269 = vector.shape_cast %268 : vector<1x224x224xbf16> to vector<224x224xbf16>
    %cst_203 = arith.constant dense<0.000000e+00> : vector<14x224xf32>
    %270 = tpu.matmul %267, %269, %cst_203 {dimension_numbers = #tpu.dot_dimension_numbers<[1], [0], [0], [1], [0, 0, 1, 1], [], []>} : vector<14x224xbf16>, vector<224x224xbf16>, vector<14x224xf32> -> vector<14x224xf32>
    %271 = arith.addf %266, %270 : vector<14x224xf32>
    %cst_204 = arith.constant dense<0.000000e+00> : vector<224xf32>
    %272 = vector.multi_reduction <add>, %271, %cst_204 [0] : vector<14x224xf32> to vector<224xf32>
    %273 = vector.shape_cast %272 : vector<224xf32> to vector<1x224xf32>
    %274 = arith.addf %261, %273 : vector<1x224xf32>
    %275 = arith.mulf %271, %271 : vector<14x224xf32>
    %cst_205 = arith.constant dense<0.000000e+00> : vector<224xf32>
    %276 = vector.multi_reduction <add>, %275, %cst_205 [0] : vector<14x224xf32> to vector<224xf32>
    %277 = vector.shape_cast %276 : vector<224xf32> to vector<1x224xf32>
    %278 = arith.addf %262, %277 : vector<1x224xf32>
    %c16_206 = arith.constant 16 : index
    %c0_207 = arith.constant 0 : index
    %279 = vector.load %arg19[%c16_206, %c0_207] : memref<32x224xbf16, #tpu.memory_space<vmem>>, vector<14x224xbf16>
    %c0_208 = arith.constant 0 : index
    %c0_209 = arith.constant 0 : index
    %c0_210 = arith.constant 0 : index
    %280 = vector.load %arg9[%c0_208, %c0_209, %c0_210] : memref<4x224x224xbf16, #tpu.memory_space<vmem>>, vector<1x224x224xbf16>
    %281 = vector.shape_cast %280 : vector<1x224x224xbf16> to vector<224x224xbf16>
    %cst_211 = arith.constant dense<0.000000e+00> : vector<14x224xf32>
    %282 = tpu.matmul %279, %281, %cst_211 {dimension_numbers = #tpu.dot_dimension_numbers<[1], [0], [0], [1], [0, 0, 1, 1], [], []>} : vector<14x224xbf16>, vector<224x224xbf16>, vector<14x224xf32> -> vector<14x224xf32>
    %c17_212 = arith.constant 17 : index
    %c0_213 = arith.constant 0 : index
    %283 = vector.load %arg19[%c17_212, %c0_213] : memref<32x224xbf16, #tpu.memory_space<vmem>>, vector<14x224xbf16>
    %c1_214 = arith.constant 1 : index
    %c0_215 = arith.constant 0 : index
    %c0_216 = arith.constant 0 : index
    %284 = vector.load %arg9[%c1_214, %c0_215, %c0_216] : memref<4x224x224xbf16, #tpu.memory_space<vmem>>, vector<1x224x224xbf16>
    %285 = vector.shape_cast %284 : vector<1x224x224xbf16> to vector<224x224xbf16>
    %cst_217 = arith.constant dense<0.000000e+00> : vector<14x224xf32>
    %286 = tpu.matmul %283, %285, %cst_217 {dimension_numbers = #tpu.dot_dimension_numbers<[1], [0], [0], [1], [0, 0, 1, 1], [], []>} : vector<14x224xbf16>, vector<224x224xbf16>, vector<14x224xf32> -> vector<14x224xf32>
    %287 = arith.addf %282, %286 : vector<14x224xf32>
    %cst_218 = arith.constant dense<0.000000e+00> : vector<224xf32>
    %288 = vector.multi_reduction <add>, %287, %cst_218 [0] : vector<14x224xf32> to vector<224xf32>
    %289 = vector.shape_cast %288 : vector<224xf32> to vector<1x224xf32>
    %290 = arith.addf %274, %289 : vector<1x224xf32>
    %291 = arith.mulf %287, %287 : vector<14x224xf32>
    %cst_219 = arith.constant dense<0.000000e+00> : vector<224xf32>
    %292 = vector.multi_reduction <add>, %291, %cst_219 [0] : vector<14x224xf32> to vector<224xf32>
    %293 = vector.shape_cast %292 : vector<224xf32> to vector<1x224xf32>
    %294 = arith.addf %278, %293 : vector<1x224xf32>
    %c1_220 = arith.constant 1 : index
    %c0_221 = arith.constant 0 : index
    %295 = vector.load %arg19[%c1_220, %c0_221] : memref<32x224xbf16, #tpu.memory_space<vmem>>, vector<14x224xbf16>
    %c2_222 = arith.constant 2 : index
    %c0_223 = arith.constant 0 : index
    %c0_224 = arith.constant 0 : index
    %296 = vector.load %arg9[%c2_222, %c0_223, %c0_224] : memref<4x224x224xbf16, #tpu.memory_space<vmem>>, vector<1x224x224xbf16>
    %297 = vector.shape_cast %296 : vector<1x224x224xbf16> to vector<224x224xbf16>
    %cst_225 = arith.constant dense<0.000000e+00> : vector<14x224xf32>
    %298 = tpu.matmul %295, %297, %cst_225 {dimension_numbers = #tpu.dot_dimension_numbers<[1], [0], [0], [1], [0, 0, 1, 1], [], []>} : vector<14x224xbf16>, vector<224x224xbf16>, vector<14x224xf32> -> vector<14x224xf32>
    %c2_226 = arith.constant 2 : index
    %c0_227 = arith.constant 0 : index
    %299 = vector.load %arg19[%c2_226, %c0_227] : memref<32x224xbf16, #tpu.memory_space<vmem>>, vector<14x224xbf16>
    %c3_228 = arith.constant 3 : index
    %c0_229 = arith.constant 0 : index
    %c0_230 = arith.constant 0 : index
    %300 = vector.load %arg9[%c3_228, %c0_229, %c0_230] : memref<4x224x224xbf16, #tpu.memory_space<vmem>>, vector<1x224x224xbf16>
    %301 = vector.shape_cast %300 : vector<1x224x224xbf16> to vector<224x224xbf16>
    %cst_231 = arith.constant dense<0.000000e+00> : vector<14x224xf32>
    %302 = tpu.matmul %299, %301, %cst_231 {dimension_numbers = #tpu.dot_dimension_numbers<[1], [0], [0], [1], [0, 0, 1, 1], [], []>} : vector<14x224xbf16>, vector<224x224xbf16>, vector<14x224xf32> -> vector<14x224xf32>
    %303 = arith.addf %298, %302 : vector<14x224xf32>
    %cst_232 = arith.constant dense<0.000000e+00> : vector<224xf32>
    %304 = vector.multi_reduction <add>, %303, %cst_232 [0] : vector<14x224xf32> to vector<224xf32>
    %305 = vector.shape_cast %304 : vector<224xf32> to vector<1x224xf32>
    %306 = arith.addf %290, %305 : vector<1x224xf32>
    %307 = arith.mulf %303, %303 : vector<14x224xf32>
    %cst_233 = arith.constant dense<0.000000e+00> : vector<224xf32>
    %308 = vector.multi_reduction <add>, %307, %cst_233 [0] : vector<14x224xf32> to vector<224xf32>
    %309 = vector.shape_cast %308 : vector<224xf32> to vector<1x224xf32>
    %310 = arith.addf %294, %309 : vector<1x224xf32>
    %c17_234 = arith.constant 17 : index
    %c0_235 = arith.constant 0 : index
    %311 = vector.load %arg19[%c17_234, %c0_235] : memref<32x224xbf16, #tpu.memory_space<vmem>>, vector<14x224xbf16>
    %c2_236 = arith.constant 2 : index
    %c0_237 = arith.constant 0 : index
    %c0_238 = arith.constant 0 : index
    %312 = vector.load %arg9[%c2_236, %c0_237, %c0_238] : memref<4x224x224xbf16, #tpu.memory_space<vmem>>, vector<1x224x224xbf16>
    %313 = vector.shape_cast %312 : vector<1x224x224xbf16> to vector<224x224xbf16>
    %cst_239 = arith.constant dense<0.000000e+00> : vector<14x224xf32>
    %314 = tpu.matmul %311, %313, %cst_239 {dimension_numbers = #tpu.dot_dimension_numbers<[1], [0], [0], [1], [0, 0, 1, 1], [], []>} : vector<14x224xbf16>, vector<224x224xbf16>, vector<14x224xf32> -> vector<14x224xf32>
    %c18_240 = arith.constant 18 : index
    %c0_241 = arith.constant 0 : index
    %315 = vector.load %arg19[%c18_240, %c0_241] : memref<32x224xbf16, #tpu.memory_space<vmem>>, vector<14x224xbf16>
    %c3_242 = arith.constant 3 : index
    %c0_243 = arith.constant 0 : index
    %c0_244 = arith.constant 0 : index
    %316 = vector.load %arg9[%c3_242, %c0_243, %c0_244] : memref<4x224x224xbf16, #tpu.memory_space<vmem>>, vector<1x224x224xbf16>
    %317 = vector.shape_cast %316 : vector<1x224x224xbf16> to vector<224x224xbf16>
    %cst_245 = arith.constant dense<0.000000e+00> : vector<14x224xf32>
    %318 = tpu.matmul %315, %317, %cst_245 {dimension_numbers = #tpu.dot_dimension_numbers<[1], [0], [0], [1], [0, 0, 1, 1], [], []>} : vector<14x224xbf16>, vector<224x224xbf16>, vector<14x224xf32> -> vector<14x224xf32>
    %319 = arith.addf %314, %318 : vector<14x224xf32>
    %cst_246 = arith.constant dense<0.000000e+00> : vector<224xf32>
    %320 = vector.multi_reduction <add>, %319, %cst_246 [0] : vector<14x224xf32> to vector<224xf32>
    %321 = vector.shape_cast %320 : vector<224xf32> to vector<1x224xf32>
    %322 = arith.addf %306, %321 : vector<1x224xf32>
    %323 = arith.mulf %319, %319 : vector<14x224xf32>
    %cst_247 = arith.constant dense<0.000000e+00> : vector<224xf32>
    %324 = vector.multi_reduction <add>, %323, %cst_247 [0] : vector<14x224xf32> to vector<224xf32>
    %325 = vector.shape_cast %324 : vector<224xf32> to vector<1x224xf32>
    %326 = arith.addf %310, %325 : vector<1x224xf32>
    %c0_248 = arith.constant 0 : index
    %c0_249 = arith.constant 0 : index
    %327 = vector.load %arg10[%c0_248, %c0_249] : memref<224x8xf32, #tpu.memory_space<vmem>>, vector<224x8xf32>
    %cst_250 = arith.constant dense<0.000000e+00> : vector<1x8xf32>
    %328 = tpu.matmul %322, %327, %cst_250 {dimension_numbers = #tpu.dot_dimension_numbers<[1], [0], [0], [1], [0, 0, 1, 1], [], []>} : vector<1x224xf32>, vector<224x8xf32>, vector<1x8xf32> -> vector<1x8xf32>
    %cst_251 = arith.constant 1.568000e+03 : f32
    %329 = vector.broadcast %cst_251 : f32 to vector<1x8xf32>
    %330 = arith.divf %328, %329 : vector<1x8xf32>
    %c0_252 = arith.constant 0 : index
    %c0_253 = arith.constant 0 : index
    %331 = vector.load %arg10[%c0_252, %c0_253] : memref<224x8xf32, #tpu.memory_space<vmem>>, vector<224x8xf32>
    %cst_254 = arith.constant dense<0.000000e+00> : vector<1x8xf32>
    %332 = tpu.matmul %326, %331, %cst_254 {dimension_numbers = #tpu.dot_dimension_numbers<[1], [0], [0], [1], [0, 0, 1, 1], [], []>} : vector<1x224xf32>, vector<224x8xf32>, vector<1x8xf32> -> vector<1x8xf32>
    %cst_255 = arith.constant 1.568000e+03 : f32
    %333 = vector.broadcast %cst_255 : f32 to vector<1x8xf32>
    %334 = arith.divf %332, %333 : vector<1x8xf32>
    %335 = arith.mulf %330, %330 : vector<1x8xf32>
    %336 = arith.subf %334, %335 : vector<1x8xf32>
    %c0_256 = arith.constant 0 : index
    %c0_257 = arith.constant 0 : index
    %337 = vector.load %arg13[%c0_256, %c0_257] : memref<1x8xf32, #tpu.memory_space<vmem>>, vector<1x8xf32>
    %cst_258 = arith.constant 9.99999974E-6 : f32
    %338 = vector.broadcast %cst_258 : f32 to vector<1x8xf32>
    %339 = arith.addf %336, %338 : vector<1x8xf32>
    %340 = math.rsqrt %339 : vector<1x8xf32>
    %341 = arith.mulf %337, %340 : vector<1x8xf32>
    %c0_259 = arith.constant 0 : index
    %c0_260 = arith.constant 0 : index
    %342 = vector.load %arg14[%c0_259, %c0_260] : memref<1x8xf32, #tpu.memory_space<vmem>>, vector<1x8xf32>
    %c0_261 = arith.constant 0 : index
    %c0_262 = arith.constant 0 : index
    %343 = vector.load %arg12[%c0_261, %c0_262] : memref<1x8xf32, #tpu.memory_space<vmem>>, vector<1x8xf32>
    %c0_263 = arith.constant 0 : index
    %c0_264 = arith.constant 0 : index
    %344 = vector.load %arg12[%c0_263, %c0_264] : memref<1x8xf32, #tpu.memory_space<vmem>>, vector<1x8xf32>
    %345 = arith.addf %330, %344 : vector<1x8xf32>
    %346 = arith.subf %343, %345 : vector<1x8xf32>
    %347 = arith.mulf %346, %341 : vector<1x8xf32>
    %348 = arith.addf %342, %347 : vector<1x8xf32>
    %c0_265 = arith.constant 0 : index
    %c0_266 = arith.constant 0 : index
    %349 = vector.load %arg11[%c0_265, %c0_266] : memref<8x224xf32, #tpu.memory_space<vmem>>, vector<8x224xf32>
    %cst_267 = arith.constant dense<0.000000e+00> : vector<1x224xf32>
    %350 = tpu.matmul %341, %349, %cst_267 {dimension_numbers = #tpu.dot_dimension_numbers<[1], [0], [0], [1], [0, 0, 1, 1], [], []>} : vector<1x8xf32>, vector<8x224xf32>, vector<1x224xf32> -> vector<1x224xf32>
    %c0_268 = arith.constant 0 : index
    %c0_269 = arith.constant 0 : index
    %351 = vector.load %arg11[%c0_268, %c0_269] : memref<8x224xf32, #tpu.memory_space<vmem>>, vector<8x224xf32>
    %cst_270 = arith.constant dense<0.000000e+00> : vector<1x224xf32>
    %352 = tpu.matmul %348, %351, %cst_270 {dimension_numbers = #tpu.dot_dimension_numbers<[1], [0], [0], [1], [0, 0, 1, 1], [], []>} : vector<1x8xf32>, vector<8x224xf32>, vector<1x224xf32> -> vector<1x224xf32>
    %353 = vector.broadcast %350 : vector<1x224xf32> to vector<14x224xf32>
    %354 = arith.mulf %271, %353 : vector<14x224xf32>
    %355 = vector.broadcast %352 : vector<1x224xf32> to vector<14x224xf32>
    %356 = arith.addf %354, %355 : vector<14x224xf32>
    %cst_271 = arith.constant 0.000000e+00 : f32
    %357 = vector.broadcast %cst_271 : f32 to vector<14x224xf32>
    %358 = arith.maximumf %356, %357 : vector<14x224xf32>
    %359 = arith.truncf %358 : vector<14x224xf32> to vector<14x224xbf16>
    %360 = vector.extract_strided_slice %359 {offsets = [0, 0], sizes = [1, 224], strides = [1, 1]} : vector<14x224xbf16> to vector<1x224xbf16>
    %c1_272 = arith.constant 1 : index
    %c0_273 = arith.constant 0 : index
    %361 = vector.load %arg20[%c1_272, %c0_273] : memref<60x224xbf16, #tpu.memory_space<vmem>>, vector<1x224xbf16>
    tpu.vector_store %arg20[%c1_272, %c0_273], %360 {strides = array<i32>} : memref<60x224xbf16, #tpu.memory_space<vmem>>, vector<1x224xbf16>,
    %362 = vector.extract_strided_slice %359 {offsets = [1, 0], sizes = [1, 224], strides = [1, 1]} : vector<14x224xbf16> to vector<1x224xbf16>
    %c3_274 = arith.constant 3 : index
    %c0_275 = arith.constant 0 : index
    %363 = vector.load %arg20[%c3_274, %c0_275] : memref<60x224xbf16, #tpu.memory_space<vmem>>, vector<1x224xbf16>
    tpu.vector_store %arg20[%c3_274, %c0_275], %362 {strides = array<i32>} : memref<60x224xbf16, #tpu.memory_space<vmem>>, vector<1x224xbf16>,
    %364 = vector.extract_strided_slice %359 {offsets = [2, 0], sizes = [1, 224], strides = [1, 1]} : vector<14x224xbf16> to vector<1x224xbf16>
    %c5_276 = arith.constant 5 : index
    %c0_277 = arith.constant 0 : index
    %365 = vector.load %arg20[%c5_276, %c0_277] : memref<60x224xbf16, #tpu.memory_space<vmem>>, vector<1x224xbf16>
    tpu.vector_store %arg20[%c5_276, %c0_277], %364 {strides = array<i32>} : memref<60x224xbf16, #tpu.memory_space<vmem>>, vector<1x224xbf16>,
    %366 = vector.extract_strided_slice %359 {offsets = [3, 0], sizes = [1, 224], strides = [1, 1]} : vector<14x224xbf16> to vector<1x224xbf16>
    %c7_278 = arith.constant 7 : index
    %c0_279 = arith.constant 0 : index
    %367 = vector.load %arg20[%c7_278, %c0_279] : memref<60x224xbf16, #tpu.memory_space<vmem>>, vector<1x224xbf16>
    tpu.vector_store %arg20[%c7_278, %c0_279], %366 {strides = array<i32>} : memref<60x224xbf16, #tpu.memory_space<vmem>>, vector<1x224xbf16>,
    %368 = vector.extract_strided_slice %359 {offsets = [4, 0], sizes = [1, 224], strides = [1, 1]} : vector<14x224xbf16> to vector<1x224xbf16>
    %c9_280 = arith.constant 9 : index
    %c0_281 = arith.constant 0 : index
    %369 = vector.load %arg20[%c9_280, %c0_281] : memref<60x224xbf16, #tpu.memory_space<vmem>>, vector<1x224xbf16>
    tpu.vector_store %arg20[%c9_280, %c0_281], %368 {strides = array<i32>} : memref<60x224xbf16, #tpu.memory_space<vmem>>, vector<1x224xbf16>,
    %370 = vector.extract_strided_slice %359 {offsets = [5, 0], sizes = [1, 224], strides = [1, 1]} : vector<14x224xbf16> to vector<1x224xbf16>
    %c11_282 = arith.constant 11 : index
    %c0_283 = arith.constant 0 : index
    %371 = vector.load %arg20[%c11_282, %c0_283] : memref<60x224xbf16, #tpu.memory_space<vmem>>, vector<1x224xbf16>
    tpu.vector_store %arg20[%c11_282, %c0_283], %370 {strides = array<i32>} : memref<60x224xbf16, #tpu.memory_space<vmem>>, vector<1x224xbf16>,
    %372 = vector.extract_strided_slice %359 {offsets = [6, 0], sizes = [1, 224], strides = [1, 1]} : vector<14x224xbf16> to vector<1x224xbf16>
    %c13_284 = arith.constant 13 : index
    %c0_285 = arith.constant 0 : index
    %373 = vector.load %arg20[%c13_284, %c0_285] : memref<60x224xbf16, #tpu.memory_space<vmem>>, vector<1x224xbf16>
    tpu.vector_store %arg20[%c13_284, %c0_285], %372 {strides = array<i32>} : memref<60x224xbf16, #tpu.memory_space<vmem>>, vector<1x224xbf16>,
    %374 = vector.extract_strided_slice %359 {offsets = [7, 0], sizes = [1, 224], strides = [1, 1]} : vector<14x224xbf16> to vector<1x224xbf16>
    %c15_286 = arith.constant 15 : index
    %c0_287 = arith.constant 0 : index
    %375 = vector.load %arg20[%c15_286, %c0_287] : memref<60x224xbf16, #tpu.memory_space<vmem>>, vector<1x224xbf16>
    tpu.vector_store %arg20[%c15_286, %c0_287], %374 {strides = array<i32>} : memref<60x224xbf16, #tpu.memory_space<vmem>>, vector<1x224xbf16>,
    %376 = vector.extract_strided_slice %359 {offsets = [8, 0], sizes = [1, 224], strides = [1, 1]} : vector<14x224xbf16> to vector<1x224xbf16>
    %c17_288 = arith.constant 17 : index
    %c0_289 = arith.constant 0 : index
    %377 = vector.load %arg20[%c17_288, %c0_289] : memref<60x224xbf16, #tpu.memory_space<vmem>>, vector<1x224xbf16>
    tpu.vector_store %arg20[%c17_288, %c0_289], %376 {strides = array<i32>} : memref<60x224xbf16, #tpu.memory_space<vmem>>, vector<1x224xbf16>,
    %378 = vector.extract_strided_slice %359 {offsets = [9, 0], sizes = [1, 224], strides = [1, 1]} : vector<14x224xbf16> to vector<1x224xbf16>
    %c19_290 = arith.constant 19 : index
    %c0_291 = arith.constant 0 : index
    %379 = vector.load %arg20[%c19_290, %c0_291] : memref<60x224xbf16, #tpu.memory_space<vmem>>, vector<1x224xbf16>
    tpu.vector_store %arg20[%c19_290, %c0_291], %378 {strides = array<i32>} : memref<60x224xbf16, #tpu.memory_space<vmem>>, vector<1x224xbf16>,
    %380 = vector.extract_strided_slice %359 {offsets = [10, 0], sizes = [1, 224], strides = [1, 1]} : vector<14x224xbf16> to vector<1x224xbf16>
    %c21_292 = arith.constant 21 : index
    %c0_293 = arith.constant 0 : index
    %381 = vector.load %arg20[%c21_292, %c0_293] : memref<60x224xbf16, #tpu.memory_space<vmem>>, vector<1x224xbf16>
    tpu.vector_store %arg20[%c21_292, %c0_293], %380 {strides = array<i32>} : memref<60x224xbf16, #tpu.memory_space<vmem>>, vector<1x224xbf16>,
    %382 = vector.extract_strided_slice %359 {offsets = [11, 0], sizes = [1, 224], strides = [1, 1]} : vector<14x224xbf16> to vector<1x224xbf16>
    %c23_294 = arith.constant 23 : index
    %c0_295 = arith.constant 0 : index
    %383 = vector.load %arg20[%c23_294, %c0_295] : memref<60x224xbf16, #tpu.memory_space<vmem>>, vector<1x224xbf16>
    tpu.vector_store %arg20[%c23_294, %c0_295], %382 {strides = array<i32>} : memref<60x224xbf16, #tpu.memory_space<vmem>>, vector<1x224xbf16>,
    %384 = vector.extract_strided_slice %359 {offsets = [12, 0], sizes = [1, 224], strides = [1, 1]} : vector<14x224xbf16> to vector<1x224xbf16>
    %c25_296 = arith.constant 25 : index
    %c0_297 = arith.constant 0 : index
    %385 = vector.load %arg20[%c25_296, %c0_297] : memref<60x224xbf16, #tpu.memory_space<vmem>>, vector<1x224xbf16>
    tpu.vector_store %arg20[%c25_296, %c0_297], %384 {strides = array<i32>} : memref<60x224xbf16, #tpu.memory_space<vmem>>, vector<1x224xbf16>,
    %386 = vector.extract_strided_slice %359 {offsets = [13, 0], sizes = [1, 224], strides = [1, 1]} : vector<14x224xbf16> to vector<1x224xbf16>
    %c27_298 = arith.constant 27 : index
    %c0_299 = arith.constant 0 : index
    %387 = vector.load %arg20[%c27_298, %c0_299] : memref<60x224xbf16, #tpu.memory_space<vmem>>, vector<1x224xbf16>
    tpu.vector_store %arg20[%c27_298, %c0_299], %386 {strides = array<i32>} : memref<60x224xbf16, #tpu.memory_space<vmem>>, vector<1x224xbf16>,
    %388 = vector.broadcast %350 : vector<1x224xf32> to vector<14x224xf32>
    %389 = arith.mulf %287, %388 : vector<14x224xf32>
    %390 = vector.broadcast %352 : vector<1x224xf32> to vector<14x224xf32>
    %391 = arith.addf %389, %390 : vector<14x224xf32>
    %cst_300 = arith.constant 0.000000e+00 : f32
    %392 = vector.broadcast %cst_300 : f32 to vector<14x224xf32>
    %393 = arith.maximumf %391, %392 : vector<14x224xf32>
    %394 = arith.truncf %393 : vector<14x224xf32> to vector<14x224xbf16>
    %395 = vector.extract_strided_slice %394 {offsets = [0, 0], sizes = [1, 224], strides = [1, 1]} : vector<14x224xbf16> to vector<1x224xbf16>
    %c31 = arith.constant 31 : index
    %c0_301 = arith.constant 0 : index
    %396 = vector.load %arg20[%c31, %c0_301] : memref<60x224xbf16, #tpu.memory_space<vmem>>, vector<1x224xbf16>
    tpu.vector_store %arg20[%c31, %c0_301], %395 {strides = array<i32>} : memref<60x224xbf16, #tpu.memory_space<vmem>>, vector<1x224xbf16>,
    %397 = vector.extract_strided_slice %394 {offsets = [1, 0], sizes = [1, 224], strides = [1, 1]} : vector<14x224xbf16> to vector<1x224xbf16>
    %c33 = arith.constant 33 : index
    %c0_302 = arith.constant 0 : index
    %398 = vector.load %arg20[%c33, %c0_302] : memref<60x224xbf16, #tpu.memory_space<vmem>>, vector<1x224xbf16>
    tpu.vector_store %arg20[%c33, %c0_302], %397 {strides = array<i32>} : memref<60x224xbf16, #tpu.memory_space<vmem>>, vector<1x224xbf16>,
    %399 = vector.extract_strided_slice %394 {offsets = [2, 0], sizes = [1, 224], strides = [1, 1]} : vector<14x224xbf16> to vector<1x224xbf16>
    %c35 = arith.constant 35 : index
    %c0_303 = arith.constant 0 : index
    %400 = vector.load %arg20[%c35, %c0_303] : memref<60x224xbf16, #tpu.memory_space<vmem>>, vector<1x224xbf16>
    tpu.vector_store %arg20[%c35, %c0_303], %399 {strides = array<i32>} : memref<60x224xbf16, #tpu.memory_space<vmem>>, vector<1x224xbf16>,
    %401 = vector.extract_strided_slice %394 {offsets = [3, 0], sizes = [1, 224], strides = [1, 1]} : vector<14x224xbf16> to vector<1x224xbf16>
    %c37 = arith.constant 37 : index
    %c0_304 = arith.constant 0 : index
    %402 = vector.load %arg20[%c37, %c0_304] : memref<60x224xbf16, #tpu.memory_space<vmem>>, vector<1x224xbf16>
    tpu.vector_store %arg20[%c37, %c0_304], %401 {strides = array<i32>} : memref<60x224xbf16, #tpu.memory_space<vmem>>, vector<1x224xbf16>,
    %403 = vector.extract_strided_slice %394 {offsets = [4, 0], sizes = [1, 224], strides = [1, 1]} : vector<14x224xbf16> to vector<1x224xbf16>
    %c39 = arith.constant 39 : index
    %c0_305 = arith.constant 0 : index
    %404 = vector.load %arg20[%c39, %c0_305] : memref<60x224xbf16, #tpu.memory_space<vmem>>, vector<1x224xbf16>
    tpu.vector_store %arg20[%c39, %c0_305], %403 {strides = array<i32>} : memref<60x224xbf16, #tpu.memory_space<vmem>>, vector<1x224xbf16>,
    %405 = vector.extract_strided_slice %394 {offsets = [5, 0], sizes = [1, 224], strides = [1, 1]} : vector<14x224xbf16> to vector<1x224xbf16>
    %c41 = arith.constant 41 : index
    %c0_306 = arith.constant 0 : index
    %406 = vector.load %arg20[%c41, %c0_306] : memref<60x224xbf16, #tpu.memory_space<vmem>>, vector<1x224xbf16>
    tpu.vector_store %arg20[%c41, %c0_306], %405 {strides = array<i32>} : memref<60x224xbf16, #tpu.memory_space<vmem>>, vector<1x224xbf16>,
    %407 = vector.extract_strided_slice %394 {offsets = [6, 0], sizes = [1, 224], strides = [1, 1]} : vector<14x224xbf16> to vector<1x224xbf16>
    %c43 = arith.constant 43 : index
    %c0_307 = arith.constant 0 : index
    %408 = vector.load %arg20[%c43, %c0_307] : memref<60x224xbf16, #tpu.memory_space<vmem>>, vector<1x224xbf16>
    tpu.vector_store %arg20[%c43, %c0_307], %407 {strides = array<i32>} : memref<60x224xbf16, #tpu.memory_space<vmem>>, vector<1x224xbf16>,
    %409 = vector.extract_strided_slice %394 {offsets = [7, 0], sizes = [1, 224], strides = [1, 1]} : vector<14x224xbf16> to vector<1x224xbf16>
    %c45 = arith.constant 45 : index
    %c0_308 = arith.constant 0 : index
    %410 = vector.load %arg20[%c45, %c0_308] : memref<60x224xbf16, #tpu.memory_space<vmem>>, vector<1x224xbf16>
    tpu.vector_store %arg20[%c45, %c0_308], %409 {strides = array<i32>} : memref<60x224xbf16, #tpu.memory_space<vmem>>, vector<1x224xbf16>,
    %411 = vector.extract_strided_slice %394 {offsets = [8, 0], sizes = [1, 224], strides = [1, 1]} : vector<14x224xbf16> to vector<1x224xbf16>
    %c47 = arith.constant 47 : index
    %c0_309 = arith.constant 0 : index
    %412 = vector.load %arg20[%c47, %c0_309] : memref<60x224xbf16, #tpu.memory_space<vmem>>, vector<1x224xbf16>
    tpu.vector_store %arg20[%c47, %c0_309], %411 {strides = array<i32>} : memref<60x224xbf16, #tpu.memory_space<vmem>>, vector<1x224xbf16>,
    %413 = vector.extract_strided_slice %394 {offsets = [9, 0], sizes = [1, 224], strides = [1, 1]} : vector<14x224xbf16> to vector<1x224xbf16>
    %c49 = arith.constant 49 : index
    %c0_310 = arith.constant 0 : index
    %414 = vector.load %arg20[%c49, %c0_310] : memref<60x224xbf16, #tpu.memory_space<vmem>>, vector<1x224xbf16>
    tpu.vector_store %arg20[%c49, %c0_310], %413 {strides = array<i32>} : memref<60x224xbf16, #tpu.memory_space<vmem>>, vector<1x224xbf16>,
    %415 = vector.extract_strided_slice %394 {offsets = [10, 0], sizes = [1, 224], strides = [1, 1]} : vector<14x224xbf16> to vector<1x224xbf16>
    %c51 = arith.constant 51 : index
    %c0_311 = arith.constant 0 : index
    %416 = vector.load %arg20[%c51, %c0_311] : memref<60x224xbf16, #tpu.memory_space<vmem>>, vector<1x224xbf16>
    tpu.vector_store %arg20[%c51, %c0_311], %415 {strides = array<i32>} : memref<60x224xbf16, #tpu.memory_space<vmem>>, vector<1x224xbf16>,
    %417 = vector.extract_strided_slice %394 {offsets = [11, 0], sizes = [1, 224], strides = [1, 1]} : vector<14x224xbf16> to vector<1x224xbf16>
    %c53 = arith.constant 53 : index
    %c0_312 = arith.constant 0 : index
    %418 = vector.load %arg20[%c53, %c0_312] : memref<60x224xbf16, #tpu.memory_space<vmem>>, vector<1x224xbf16>
    tpu.vector_store %arg20[%c53, %c0_312], %417 {strides = array<i32>} : memref<60x224xbf16, #tpu.memory_space<vmem>>, vector<1x224xbf16>,
    %419 = vector.extract_strided_slice %394 {offsets = [12, 0], sizes = [1, 224], strides = [1, 1]} : vector<14x224xbf16> to vector<1x224xbf16>
    %c55 = arith.constant 55 : index
    %c0_313 = arith.constant 0 : index
    %420 = vector.load %arg20[%c55, %c0_313] : memref<60x224xbf16, #tpu.memory_space<vmem>>, vector<1x224xbf16>
    tpu.vector_store %arg20[%c55, %c0_313], %419 {strides = array<i32>} : memref<60x224xbf16, #tpu.memory_space<vmem>>, vector<1x224xbf16>,
    %421 = vector.extract_strided_slice %394 {offsets = [13, 0], sizes = [1, 224], strides = [1, 1]} : vector<14x224xbf16> to vector<1x224xbf16>
    %c57 = arith.constant 57 : index
    %c0_314 = arith.constant 0 : index
    %422 = vector.load %arg20[%c57, %c0_314] : memref<60x224xbf16, #tpu.memory_space<vmem>>, vector<1x224xbf16>
    tpu.vector_store %arg20[%c57, %c0_314], %421 {strides = array<i32>} : memref<60x224xbf16, #tpu.memory_space<vmem>>, vector<1x224xbf16>,
    %423 = vector.broadcast %350 : vector<1x224xf32> to vector<14x224xf32>
    %424 = arith.mulf %303, %423 : vector<14x224xf32>
    %425 = vector.broadcast %352 : vector<1x224xf32> to vector<14x224xf32>
    %426 = arith.addf %424, %425 : vector<14x224xf32>
    %cst_315 = arith.constant 0.000000e+00 : f32
    %427 = vector.broadcast %cst_315 : f32 to vector<14x224xf32>
    %428 = arith.maximumf %426, %427 : vector<14x224xf32>
    %429 = arith.truncf %428 : vector<14x224xf32> to vector<14x224xbf16>
    %430 = vector.extract_strided_slice %429 {offsets = [0, 0], sizes = [1, 224], strides = [1, 1]} : vector<14x224xbf16> to vector<1x224xbf16>
    %c2_316 = arith.constant 2 : index
    %c0_317 = arith.constant 0 : index
    %431 = vector.load %arg20[%c2_316, %c0_317] : memref<60x224xbf16, #tpu.memory_space<vmem>>, vector<1x224xbf16>
    tpu.vector_store %arg20[%c2_316, %c0_317], %430 {strides = array<i32>} : memref<60x224xbf16, #tpu.memory_space<vmem>>, vector<1x224xbf16>,
    %432 = vector.extract_strided_slice %429 {offsets = [1, 0], sizes = [1, 224], strides = [1, 1]} : vector<14x224xbf16> to vector<1x224xbf16>
    %c4_318 = arith.constant 4 : index
    %c0_319 = arith.constant 0 : index
    %433 = vector.load %arg20[%c4_318, %c0_319] : memref<60x224xbf16, #tpu.memory_space<vmem>>, vector<1x224xbf16>
    tpu.vector_store %arg20[%c4_318, %c0_319], %432 {strides = array<i32>} : memref<60x224xbf16, #tpu.memory_space<vmem>>, vector<1x224xbf16>,
    %434 = vector.extract_strided_slice %429 {offsets = [2, 0], sizes = [1, 224], strides = [1, 1]} : vector<14x224xbf16> to vector<1x224xbf16>
    %c6_320 = arith.constant 6 : index
    %c0_321 = arith.constant 0 : index
    %435 = vector.load %arg20[%c6_320, %c0_321] : memref<60x224xbf16, #tpu.memory_space<vmem>>, vector<1x224xbf16>
    tpu.vector_store %arg20[%c6_320, %c0_321], %434 {strides = array<i32>} : memref<60x224xbf16, #tpu.memory_space<vmem>>, vector<1x224xbf16>,
    %436 = vector.extract_strided_slice %429 {offsets = [3, 0], sizes = [1, 224], strides = [1, 1]} : vector<14x224xbf16> to vector<1x224xbf16>
    %c8_322 = arith.constant 8 : index
    %c0_323 = arith.constant 0 : index
    %437 = vector.load %arg20[%c8_322, %c0_323] : memref<60x224xbf16, #tpu.memory_space<vmem>>, vector<1x224xbf16>
    tpu.vector_store %arg20[%c8_322, %c0_323], %436 {strides = array<i32>} : memref<60x224xbf16, #tpu.memory_space<vmem>>, vector<1x224xbf16>,
    %438 = vector.extract_strided_slice %429 {offsets = [4, 0], sizes = [1, 224], strides = [1, 1]} : vector<14x224xbf16> to vector<1x224xbf16>
    %c10_324 = arith.constant 10 : index
    %c0_325 = arith.constant 0 : index
    %439 = vector.load %arg20[%c10_324, %c0_325] : memref<60x224xbf16, #tpu.memory_space<vmem>>, vector<1x224xbf16>
    tpu.vector_store %arg20[%c10_324, %c0_325], %438 {strides = array<i32>} : memref<60x224xbf16, #tpu.memory_space<vmem>>, vector<1x224xbf16>,
    %440 = vector.extract_strided_slice %429 {offsets = [5, 0], sizes = [1, 224], strides = [1, 1]} : vector<14x224xbf16> to vector<1x224xbf16>
    %c12_326 = arith.constant 12 : index
    %c0_327 = arith.constant 0 : index
    %441 = vector.load %arg20[%c12_326, %c0_327] : memref<60x224xbf16, #tpu.memory_space<vmem>>, vector<1x224xbf16>
    tpu.vector_store %arg20[%c12_326, %c0_327], %440 {strides = array<i32>} : memref<60x224xbf16, #tpu.memory_space<vmem>>, vector<1x224xbf16>,
    %442 = vector.extract_strided_slice %429 {offsets = [6, 0], sizes = [1, 224], strides = [1, 1]} : vector<14x224xbf16> to vector<1x224xbf16>
    %c14_328 = arith.constant 14 : index
    %c0_329 = arith.constant 0 : index
    %443 = vector.load %arg20[%c14_328, %c0_329] : memref<60x224xbf16, #tpu.memory_space<vmem>>, vector<1x224xbf16>
    tpu.vector_store %arg20[%c14_328, %c0_329], %442 {strides = array<i32>} : memref<60x224xbf16, #tpu.memory_space<vmem>>, vector<1x224xbf16>,
    %444 = vector.extract_strided_slice %429 {offsets = [7, 0], sizes = [1, 224], strides = [1, 1]} : vector<14x224xbf16> to vector<1x224xbf16>
    %c16_330 = arith.constant 16 : index
    %c0_331 = arith.constant 0 : index
    %445 = vector.load %arg20[%c16_330, %c0_331] : memref<60x224xbf16, #tpu.memory_space<vmem>>, vector<1x224xbf16>
    tpu.vector_store %arg20[%c16_330, %c0_331], %444 {strides = array<i32>} : memref<60x224xbf16, #tpu.memory_space<vmem>>, vector<1x224xbf16>,
    %446 = vector.extract_strided_slice %429 {offsets = [8, 0], sizes = [1, 224], strides = [1, 1]} : vector<14x224xbf16> to vector<1x224xbf16>
    %c18_332 = arith.constant 18 : index
    %c0_333 = arith.constant 0 : index
    %447 = vector.load %arg20[%c18_332, %c0_333] : memref<60x224xbf16, #tpu.memory_space<vmem>>, vector<1x224xbf16>
    tpu.vector_store %arg20[%c18_332, %c0_333], %446 {strides = array<i32>} : memref<60x224xbf16, #tpu.memory_space<vmem>>, vector<1x224xbf16>,
    %448 = vector.extract_strided_slice %429 {offsets = [9, 0], sizes = [1, 224], strides = [1, 1]} : vector<14x224xbf16> to vector<1x224xbf16>
    %c20_334 = arith.constant 20 : index
    %c0_335 = arith.constant 0 : index
    %449 = vector.load %arg20[%c20_334, %c0_335] : memref<60x224xbf16, #tpu.memory_space<vmem>>, vector<1x224xbf16>
    tpu.vector_store %arg20[%c20_334, %c0_335], %448 {strides = array<i32>} : memref<60x224xbf16, #tpu.memory_space<vmem>>, vector<1x224xbf16>,
    %450 = vector.extract_strided_slice %429 {offsets = [10, 0], sizes = [1, 224], strides = [1, 1]} : vector<14x224xbf16> to vector<1x224xbf16>
    %c22_336 = arith.constant 22 : index
    %c0_337 = arith.constant 0 : index
    %451 = vector.load %arg20[%c22_336, %c0_337] : memref<60x224xbf16, #tpu.memory_space<vmem>>, vector<1x224xbf16>
    tpu.vector_store %arg20[%c22_336, %c0_337], %450 {strides = array<i32>} : memref<60x224xbf16, #tpu.memory_space<vmem>>, vector<1x224xbf16>,
    %452 = vector.extract_strided_slice %429 {offsets = [11, 0], sizes = [1, 224], strides = [1, 1]} : vector<14x224xbf16> to vector<1x224xbf16>
    %c24_338 = arith.constant 24 : index
    %c0_339 = arith.constant 0 : index
    %453 = vector.load %arg20[%c24_338, %c0_339] : memref<60x224xbf16, #tpu.memory_space<vmem>>, vector<1x224xbf16>
    tpu.vector_store %arg20[%c24_338, %c0_339], %452 {strides = array<i32>} : memref<60x224xbf16, #tpu.memory_space<vmem>>, vector<1x224xbf16>,
    %454 = vector.extract_strided_slice %429 {offsets = [12, 0], sizes = [1, 224], strides = [1, 1]} : vector<14x224xbf16> to vector<1x224xbf16>
    %c26_340 = arith.constant 26 : index
    %c0_341 = arith.constant 0 : index
    %455 = vector.load %arg20[%c26_340, %c0_341] : memref<60x224xbf16, #tpu.memory_space<vmem>>, vector<1x224xbf16>
    tpu.vector_store %arg20[%c26_340, %c0_341], %454 {strides = array<i32>} : memref<60x224xbf16, #tpu.memory_space<vmem>>, vector<1x224xbf16>,
    %456 = vector.extract_strided_slice %429 {offsets = [13, 0], sizes = [1, 224], strides = [1, 1]} : vector<14x224xbf16> to vector<1x224xbf16>
    %c28_342 = arith.constant 28 : index
    %c0_343 = arith.constant 0 : index
    %457 = vector.load %arg20[%c28_342, %c0_343] : memref<60x224xbf16, #tpu.memory_space<vmem>>, vector<1x224xbf16>
    tpu.vector_store %arg20[%c28_342, %c0_343], %456 {strides = array<i32>} : memref<60x224xbf16, #tpu.memory_space<vmem>>, vector<1x224xbf16>,
    %458 = vector.broadcast %350 : vector<1x224xf32> to vector<14x224xf32>
    %459 = arith.mulf %319, %458 : vector<14x224xf32>
    %460 = vector.broadcast %352 : vector<1x224xf32> to vector<14x224xf32>
    %461 = arith.addf %459, %460 : vector<14x224xf32>
    %cst_344 = arith.constant 0.000000e+00 : f32
    %462 = vector.broadcast %cst_344 : f32 to vector<14x224xf32>
    %463 = arith.maximumf %461, %462 : vector<14x224xf32>
    %464 = arith.truncf %463 : vector<14x224xf32> to vector<14x224xbf16>
    %465 = vector.extract_strided_slice %464 {offsets = [0, 0], sizes = [1, 224], strides = [1, 1]} : vector<14x224xbf16> to vector<1x224xbf16>
    %c32 = arith.constant 32 : index
    %c0_345 = arith.constant 0 : index
    %466 = vector.load %arg20[%c32, %c0_345] : memref<60x224xbf16, #tpu.memory_space<vmem>>, vector<1x224xbf16>
    tpu.vector_store %arg20[%c32, %c0_345], %465 {strides = array<i32>} : memref<60x224xbf16, #tpu.memory_space<vmem>>, vector<1x224xbf16>,
    %467 = vector.extract_strided_slice %464 {offsets = [1, 0], sizes = [1, 224], strides = [1, 1]} : vector<14x224xbf16> to vector<1x224xbf16>
    %c34 = arith.constant 34 : index
    %c0_346 = arith.constant 0 : index
    %468 = vector.load %arg20[%c34, %c0_346] : memref<60x224xbf16, #tpu.memory_space<vmem>>, vector<1x224xbf16>
    tpu.vector_store %arg20[%c34, %c0_346], %467 {strides = array<i32>} : memref<60x224xbf16, #tpu.memory_space<vmem>>, vector<1x224xbf16>,
    %469 = vector.extract_strided_slice %464 {offsets = [2, 0], sizes = [1, 224], strides = [1, 1]} : vector<14x224xbf16> to vector<1x224xbf16>
    %c36 = arith.constant 36 : index
    %c0_347 = arith.constant 0 : index
    %470 = vector.load %arg20[%c36, %c0_347] : memref<60x224xbf16, #tpu.memory_space<vmem>>, vector<1x224xbf16>
    tpu.vector_store %arg20[%c36, %c0_347], %469 {strides = array<i32>} : memref<60x224xbf16, #tpu.memory_space<vmem>>, vector<1x224xbf16>,
    %471 = vector.extract_strided_slice %464 {offsets = [3, 0], sizes = [1, 224], strides = [1, 1]} : vector<14x224xbf16> to vector<1x224xbf16>
    %c38 = arith.constant 38 : index
    %c0_348 = arith.constant 0 : index
    %472 = vector.load %arg20[%c38, %c0_348] : memref<60x224xbf16, #tpu.memory_space<vmem>>, vector<1x224xbf16>
    tpu.vector_store %arg20[%c38, %c0_348], %471 {strides = array<i32>} : memref<60x224xbf16, #tpu.memory_space<vmem>>, vector<1x224xbf16>,
    %473 = vector.extract_strided_slice %464 {offsets = [4, 0], sizes = [1, 224], strides = [1, 1]} : vector<14x224xbf16> to vector<1x224xbf16>
    %c40 = arith.constant 40 : index
    %c0_349 = arith.constant 0 : index
    %474 = vector.load %arg20[%c40, %c0_349] : memref<60x224xbf16, #tpu.memory_space<vmem>>, vector<1x224xbf16>
    tpu.vector_store %arg20[%c40, %c0_349], %473 {strides = array<i32>} : memref<60x224xbf16, #tpu.memory_space<vmem>>, vector<1x224xbf16>,
    %475 = vector.extract_strided_slice %464 {offsets = [5, 0], sizes = [1, 224], strides = [1, 1]} : vector<14x224xbf16> to vector<1x224xbf16>
    %c42 = arith.constant 42 : index
    %c0_350 = arith.constant 0 : index
    %476 = vector.load %arg20[%c42, %c0_350] : memref<60x224xbf16, #tpu.memory_space<vmem>>, vector<1x224xbf16>
    tpu.vector_store %arg20[%c42, %c0_350], %475 {strides = array<i32>} : memref<60x224xbf16, #tpu.memory_space<vmem>>, vector<1x224xbf16>,
    %477 = vector.extract_strided_slice %464 {offsets = [6, 0], sizes = [1, 224], strides = [1, 1]} : vector<14x224xbf16> to vector<1x224xbf16>
    %c44 = arith.constant 44 : index
    %c0_351 = arith.constant 0 : index
    %478 = vector.load %arg20[%c44, %c0_351] : memref<60x224xbf16, #tpu.memory_space<vmem>>, vector<1x224xbf16>
    tpu.vector_store %arg20[%c44, %c0_351], %477 {strides = array<i32>} : memref<60x224xbf16, #tpu.memory_space<vmem>>, vector<1x224xbf16>,
    %479 = vector.extract_strided_slice %464 {offsets = [7, 0], sizes = [1, 224], strides = [1, 1]} : vector<14x224xbf16> to vector<1x224xbf16>
    %c46 = arith.constant 46 : index
    %c0_352 = arith.constant 0 : index
    %480 = vector.load %arg20[%c46, %c0_352] : memref<60x224xbf16, #tpu.memory_space<vmem>>, vector<1x224xbf16>
    tpu.vector_store %arg20[%c46, %c0_352], %479 {strides = array<i32>} : memref<60x224xbf16, #tpu.memory_space<vmem>>, vector<1x224xbf16>,
    %481 = vector.extract_strided_slice %464 {offsets = [8, 0], sizes = [1, 224], strides = [1, 1]} : vector<14x224xbf16> to vector<1x224xbf16>
    %c48 = arith.constant 48 : index
    %c0_353 = arith.constant 0 : index
    %482 = vector.load %arg20[%c48, %c0_353] : memref<60x224xbf16, #tpu.memory_space<vmem>>, vector<1x224xbf16>
    tpu.vector_store %arg20[%c48, %c0_353], %481 {strides = array<i32>} : memref<60x224xbf16, #tpu.memory_space<vmem>>, vector<1x224xbf16>,
    %483 = vector.extract_strided_slice %464 {offsets = [9, 0], sizes = [1, 224], strides = [1, 1]} : vector<14x224xbf16> to vector<1x224xbf16>
    %c50 = arith.constant 50 : index
    %c0_354 = arith.constant 0 : index
    %484 = vector.load %arg20[%c50, %c0_354] : memref<60x224xbf16, #tpu.memory_space<vmem>>, vector<1x224xbf16>
    tpu.vector_store %arg20[%c50, %c0_354], %483 {strides = array<i32>} : memref<60x224xbf16, #tpu.memory_space<vmem>>, vector<1x224xbf16>,
    %485 = vector.extract_strided_slice %464 {offsets = [10, 0], sizes = [1, 224], strides = [1, 1]} : vector<14x224xbf16> to vector<1x224xbf16>
    %c52 = arith.constant 52 : index
    %c0_355 = arith.constant 0 : index
    %486 = vector.load %arg20[%c52, %c0_355] : memref<60x224xbf16, #tpu.memory_space<vmem>>, vector<1x224xbf16>
    tpu.vector_store %arg20[%c52, %c0_355], %485 {strides = array<i32>} : memref<60x224xbf16, #tpu.memory_space<vmem>>, vector<1x224xbf16>,
    %487 = vector.extract_strided_slice %464 {offsets = [11, 0], sizes = [1, 224], strides = [1, 1]} : vector<14x224xbf16> to vector<1x224xbf16>
    %c54 = arith.constant 54 : index
    %c0_356 = arith.constant 0 : index
    %488 = vector.load %arg20[%c54, %c0_356] : memref<60x224xbf16, #tpu.memory_space<vmem>>, vector<1x224xbf16>
    tpu.vector_store %arg20[%c54, %c0_356], %487 {strides = array<i32>} : memref<60x224xbf16, #tpu.memory_space<vmem>>, vector<1x224xbf16>,
    %489 = vector.extract_strided_slice %464 {offsets = [12, 0], sizes = [1, 224], strides = [1, 1]} : vector<14x224xbf16> to vector<1x224xbf16>
    %c56 = arith.constant 56 : index
    %c0_357 = arith.constant 0 : index
    %490 = vector.load %arg20[%c56, %c0_357] : memref<60x224xbf16, #tpu.memory_space<vmem>>, vector<1x224xbf16>
    tpu.vector_store %arg20[%c56, %c0_357], %489 {strides = array<i32>} : memref<60x224xbf16, #tpu.memory_space<vmem>>, vector<1x224xbf16>,
    %491 = vector.extract_strided_slice %464 {offsets = [13, 0], sizes = [1, 224], strides = [1, 1]} : vector<14x224xbf16> to vector<1x224xbf16>
    %c58 = arith.constant 58 : index
    %c0_358 = arith.constant 0 : index
    %492 = vector.load %arg20[%c58, %c0_358] : memref<60x224xbf16, #tpu.memory_space<vmem>>, vector<1x224xbf16>
    tpu.vector_store %arg20[%c58, %c0_358], %491 {strides = array<i32>} : memref<60x224xbf16, #tpu.memory_space<vmem>>, vector<1x224xbf16>,
    %c0_359 = arith.constant 0 : index
    %c0_360 = arith.constant 0 : index
    %493 = vector.load %arg20[%c0_359, %c0_360] : memref<60x224xbf16, #tpu.memory_space<vmem>>, vector<28x224xbf16>
    %c0_361 = arith.constant 0 : index
    %c0_362 = arith.constant 0 : index
    %c0_363 = arith.constant 0 : index
    %494 = vector.load %arg15[%c0_361, %c0_362, %c0_363] : memref<3x224x28xbf16, #tpu.memory_space<vmem>>, vector<1x224x28xbf16>
    %495 = vector.shape_cast %494 : vector<1x224x28xbf16> to vector<224x28xbf16>
    %cst_364 = arith.constant dense<0.000000e+00> : vector<28x28xf32>
    %496 = tpu.matmul %493, %495, %cst_364 {dimension_numbers = #tpu.dot_dimension_numbers<[1], [0], [0], [1], [0, 0, 1, 1], [], []>} : vector<28x224xbf16>, vector<224x28xbf16>, vector<28x28xf32> -> vector<28x28xf32>
    %c1_365 = arith.constant 1 : index
    %c0_366 = arith.constant 0 : index
    %497 = vector.load %arg20[%c1_365, %c0_366] : memref<60x224xbf16, #tpu.memory_space<vmem>>, vector<28x224xbf16>
    %c1_367 = arith.constant 1 : index
    %c0_368 = arith.constant 0 : index
    %c0_369 = arith.constant 0 : index
    %498 = vector.load %arg15[%c1_367, %c0_368, %c0_369] : memref<3x224x28xbf16, #tpu.memory_space<vmem>>, vector<1x224x28xbf16>
    %499 = vector.shape_cast %498 : vector<1x224x28xbf16> to vector<224x28xbf16>
    %cst_370 = arith.constant dense<0.000000e+00> : vector<28x28xf32>
    %500 = tpu.matmul %497, %499, %cst_370 {dimension_numbers = #tpu.dot_dimension_numbers<[1], [0], [0], [1], [0, 0, 1, 1], [], []>} : vector<28x224xbf16>, vector<224x28xbf16>, vector<28x28xf32> -> vector<28x28xf32>
    %501 = arith.addf %496, %500 : vector<28x28xf32>
    %c2_371 = arith.constant 2 : index
    %c0_372 = arith.constant 0 : index
    %502 = vector.load %arg20[%c2_371, %c0_372] : memref<60x224xbf16, #tpu.memory_space<vmem>>, vector<28x224xbf16>
    %c2_373 = arith.constant 2 : index
    %c0_374 = arith.constant 0 : index
    %c0_375 = arith.constant 0 : index
    %503 = vector.load %arg15[%c2_373, %c0_374, %c0_375] : memref<3x224x28xbf16, #tpu.memory_space<vmem>>, vector<1x224x28xbf16>
    %504 = vector.shape_cast %503 : vector<1x224x28xbf16> to vector<224x28xbf16>
    %cst_376 = arith.constant dense<0.000000e+00> : vector<28x28xf32>
    %505 = tpu.matmul %502, %504, %cst_376 {dimension_numbers = #tpu.dot_dimension_numbers<[1], [0], [0], [1], [0, 0, 1, 1], [], []>} : vector<28x224xbf16>, vector<224x28xbf16>, vector<28x28xf32> -> vector<28x28xf32>
    %506 = arith.addf %501, %505 : vector<28x28xf32>
    %c0_377 = arith.constant 0 : index
    %c0_378 = arith.constant 0 : index
    %507 = vector.load %arg16[%c0_377, %c0_378] : memref<1x28xf32, #tpu.memory_space<vmem>>, vector<1x28xf32>
    %508 = vector.broadcast %507 : vector<1x28xf32> to vector<28x28xf32>
    %509 = arith.addf %506, %508 : vector<28x28xf32>
    %510 = math.tanh %509 : vector<28x28xf32>
    %c0_379 = arith.constant 0 : index
    %c0_380 = arith.constant 0 : index
    %511 = vector.load %arg17[%c0_379, %c0_380] : memref<56x28xf32, #tpu.memory_space<vmem>>, vector<28x28xf32>
    tpu.vector_store %arg17[%c0_379, %c0_380], %510 {strides = array<i32>} : memref<56x28xf32, #tpu.memory_space<vmem>>, vector<28x28xf32>,
    %c30_381 = arith.constant 30 : index
    %c0_382 = arith.constant 0 : index
    %512 = vector.load %arg20[%c30_381, %c0_382] : memref<60x224xbf16, #tpu.memory_space<vmem>>, vector<28x224xbf16>
    %c0_383 = arith.constant 0 : index
    %c0_384 = arith.constant 0 : index
    %c0_385 = arith.constant 0 : index
    %513 = vector.load %arg15[%c0_383, %c0_384, %c0_385] : memref<3x224x28xbf16, #tpu.memory_space<vmem>>, vector<1x224x28xbf16>
    %514 = vector.shape_cast %513 : vector<1x224x28xbf16> to vector<224x28xbf16>
    %cst_386 = arith.constant dense<0.000000e+00> : vector<28x28xf32>
    %515 = tpu.matmul %512, %514, %cst_386 {dimension_numbers = #tpu.dot_dimension_numbers<[1], [0], [0], [1], [0, 0, 1, 1], [], []>} : vector<28x224xbf16>, vector<224x28xbf16>, vector<28x28xf32> -> vector<28x28xf32>
    %c31_387 = arith.constant 31 : index
    %c0_388 = arith.constant 0 : index
    %516 = vector.load %arg20[%c31_387, %c0_388] : memref<60x224xbf16, #tpu.memory_space<vmem>>, vector<28x224xbf16>
    %c1_389 = arith.constant 1 : index
    %c0_390 = arith.constant 0 : index
    %c0_391 = arith.constant 0 : index
    %517 = vector.load %arg15[%c1_389, %c0_390, %c0_391] : memref<3x224x28xbf16, #tpu.memory_space<vmem>>, vector<1x224x28xbf16>
    %518 = vector.shape_cast %517 : vector<1x224x28xbf16> to vector<224x28xbf16>
    %cst_392 = arith.constant dense<0.000000e+00> : vector<28x28xf32>
    %519 = tpu.matmul %516, %518, %cst_392 {dimension_numbers = #tpu.dot_dimension_numbers<[1], [0], [0], [1], [0, 0, 1, 1], [], []>} : vector<28x224xbf16>, vector<224x28xbf16>, vector<28x28xf32> -> vector<28x28xf32>
    %520 = arith.addf %515, %519 : vector<28x28xf32>
    %c32_393 = arith.constant 32 : index
    %c0_394 = arith.constant 0 : index
    %521 = vector.load %arg20[%c32_393, %c0_394] : memref<60x224xbf16, #tpu.memory_space<vmem>>, vector<28x224xbf16>
    %c2_395 = arith.constant 2 : index
    %c0_396 = arith.constant 0 : index
    %c0_397 = arith.constant 0 : index
    %522 = vector.load %arg15[%c2_395, %c0_396, %c0_397] : memref<3x224x28xbf16, #tpu.memory_space<vmem>>, vector<1x224x28xbf16>
    %523 = vector.shape_cast %522 : vector<1x224x28xbf16> to vector<224x28xbf16>
    %cst_398 = arith.constant dense<0.000000e+00> : vector<28x28xf32>
    %524 = tpu.matmul %521, %523, %cst_398 {dimension_numbers = #tpu.dot_dimension_numbers<[1], [0], [0], [1], [0, 0, 1, 1], [], []>} : vector<28x224xbf16>, vector<224x28xbf16>, vector<28x28xf32> -> vector<28x28xf32>
    %525 = arith.addf %520, %524 : vector<28x28xf32>
    %c0_399 = arith.constant 0 : index
    %c0_400 = arith.constant 0 : index
    %526 = vector.load %arg16[%c0_399, %c0_400] : memref<1x28xf32, #tpu.memory_space<vmem>>, vector<1x28xf32>
    %527 = vector.broadcast %526 : vector<1x28xf32> to vector<28x28xf32>
    %528 = arith.addf %525, %527 : vector<28x28xf32>
    %529 = math.tanh %528 : vector<28x28xf32>
    %c28_401 = arith.constant 28 : index
    %c0_402 = arith.constant 0 : index
    %530 = vector.load %arg17[%c28_401, %c0_402] : memref<56x28xf32, #tpu.memory_space<vmem>>, vector<28x28xf32>
    tpu.vector_store %arg17[%c28_401, %c0_402], %529 {strides = array<i32>} : memref<56x28xf32, #tpu.memory_space<vmem>>, vector<28x28xf32>,
    return
  }
}

</mosaic_0001>

<bundles_post_ra>
// kernel: cnn_generator_forward.1
= control target key start
LH: loop header
LB: loop body
LE: loop exit
PB: predicated region body
PF: predicated region fallthrough
CT: control target
= control target key end

     0   :  { %s10467_s0 = inlined_call_operand.vmem [shape: f32[2,32], index: 0, kind: input, shape index: {}]   ;;  %s10468_s1 = inlined_call_operand.hbm [shape: bf16[7,32,224], index: 1, kind: input, shape index: {}]   ;;  %s10469_s2 = inlined_call_operand.hbm [shape: f32[7,224], index: 2, kind: input, shape index: {}]   ;;  %s10470_s3 = inlined_call_operand.vmem [shape: bf16[4,224,224], index: 3, kind: input, shape index: {}]   ;;  %s10471_s4 = inlined_call_operand.vmem [shape: f32[224,16], index: 4, kind: input, shape index: {}]   ;;  %s10472_s5 = inlined_call_operand.vmem [shape: f32[16,224], index: 5, kind: input, shape index: {}]   ;;  %s10473_s6 = inlined_call_operand.hbm [shape: f32[1,16], index: 6, kind: input, shape index: {}]   ;;  %s10474_s7 = inlined_call_operand.hbm [shape: f32[1,16], index: 7, kind: input, shape index: {}]   ;;  %s10475_s8 = inlined_call_operand.hbm [shape: f32[1,16], index: 8, kind: input, shape index: {}]   ;;  %s10476_s9 = inlined_call_operand.hbm [shape: bf16[4,224,224], index: 9, kind: input, shape index: {}]   ;;  %s10477_s10 = inlined_call_operand.vmem [shape: f32[224,8], index: 10, kind: input, shape index: {}]   ;;  %s10478_s11 = inlined_call_operand.hbm [shape: f32[8,224], index: 11, kind: input, shape index: {}]   ;;  %s10479_s12 = inlined_call_operand.hbm [shape: f32[1,8], index: 12, kind: input, shape index: {}]   ;;  %s10480_s13 = inlined_call_operand.hbm [shape: f32[1,8], index: 13, kind: input, shape index: {}]   ;;  %s10481_s14 = inlined_call_operand.hbm [shape: f32[1,8], index: 14, kind: input, shape index: {}]   ;;  %s10482_s15 = inlined_call_operand.vmem [shape: bf16[3,224,28], index: 15, kind: input, shape index: {}]   ;;  %s10483_s16 = inlined_call_operand.hbm [shape: f32[1,28], index: 16, kind: input, shape index: {}]   ;;  %s10484_s17 = inlined_call_operand.hbm [shape: f32[56,28], index: 17, kind: output, shape index: {}]  }
   0x1   :  { %10545 = sst [smem:[#allocation63_spill]] %s10467_s0 }
   0x2   :  { %10546 = sst [smem:[#allocation64_spill]] %s10468_s1 }
   0x3   :  { %22 = vsyncpa [#allocation6], 0 }
   0x4   :  { %23 = vsyncpa [#allocation9], 0 }
   0x5   :  { %24 = vsyncpa [#allocation12], 0 }
   0x6   :  { %25 = vsyncpa [#allocation15], 0 }
   0x7   :  { %26 = vsyncpa [#allocation18], 0 }
   0x8   :  { %27 = vsyncpa [#allocation21], 0 }
   0x9   :  { %28 = vsyncpa [#allocation7], 0  ;;  %s7583_s24 = smov [#allocation8]   ;;  %s7584_s26 = smov [#allocation11]  }
   0xa   :  { %s49_s25 = sshll.u32 %s7583_s24, 4  ;;  %s75_s27 = sshll.u32 %s7584_s26, 4  ;;  %s50_s25 = int_to_ptr.vmem [resolvable:$true] %s49_s25  ;;  %s76_s27 = int_to_ptr.vmem [resolvable:$true] %s75_s27 }
   0xb   :  { %s7337_s28 = scalar_lea.vmem %s50_s25, 256  ;;  %p7342_p1 = scmp.lt.s32.totalorder %s50_s25, %s50_s25 }
   0xc   :  { %p7338_p0 = scmp.ne.s32.totalorder %s50_s25, %s7337_s28  ;;  %p7343_p2 = scmp.lt.s32.totalorder %s7337_s28, %s7337_s28 }
   0xe   :  { %p7344_p3 = por %p7343_p2, %p7342_p1 }
  0x10   :  { %p7345_p4 = pnand %p7344_p3, %p7338_p0 }
  0x12   :  { %7348 = shalt.err (!%p7345_p4)
}
  0x13   :  { %52 = dma.hbm_to_vmem [thread:$0]  %s10469_s2, 256, %s50_s25, [#allocation9]  }
  0x14   :  { %s7357_s30 = scalar_lea.vmem %s76_s27, 16  ;;  %s7361_s18 = scalar_lea.vmem %s76_s27, 32 }
  0x15   :  { %p7358_p5 = scmp.ne.s32.totalorder %s76_s27, %s7357_s30  ;;  %p7362_p6 = scmp.lt.s32.totalorder %s76_s27, %s76_s27 }
  0x16   :  { %p7363_p7 = scmp.lt.s32.totalorder %s7361_s18, %s7357_s30 }
  0x18   :  { %p7364_p8 = por %p7363_p7, %p7362_p6 }
  0x1a   :  { %p7365_p9 = pnand %p7364_p8, %p7358_p5 }
  0x1c   :  { %7368 = shalt.err (!%p7365_p9)
}
  0x1d   :  { %78 = dma.hbm_to_vmem [thread:$0]  %s10474_s7, 16, %s76_s27, [#allocation12]  }
  0x1e   :  { %s7585_s20 = smov [#allocation14]   ;;  %s7586_s22 = smov [#allocation17]  }
  0x1f   :  { %s94_s21 = sshll.u32 %s7585_s20, 4  ;;  %s119_s23 = sshll.u32 %s7586_s22, 4  ;;  %s95_s21 = int_to_ptr.vmem [resolvable:$true] %s94_s21  ;;  %s120_s23 = int_to_ptr.vmem [resolvable:$true] %s119_s23 }
  0x20   :  { %s7377_s24 = scalar_lea.vmem %s95_s21, 14336  ;;  %p7382_p11 = scmp.lt.s32.totalorder %s95_s21, %s95_s21 }
  0x21   :  { %p7378_p10 = scmp.ne.s32.totalorder %s95_s21, %s7377_s24  ;;  %p7383_p12 = scmp.lt.s32.totalorder %s7377_s24, %s7377_s24 }
  0x23   :  { %p7384_p13 = por %p7383_p12, %p7382_p11 }
  0x25   :  { %p7385_p0 = pnand %p7384_p13, %p7378_p10 }
  0x27   :  { %7388 = shalt.err (!%p7385_p0)
}
  0x28   :  { %s7587_s2 = smov 128   ;;  %s7588_s25 = smov 8  }
  0x29   :  { %100 = dma.hbm_to_vmem [thread:$0]  %s10476_s9, 14336, %s95_s21, [#allocation15], %s7587_s2, %s7587_s2, %s7588_s25  }
  0x2a   :  { %s7397_s27 = scalar_lea.vmem %s120_s23, 16  ;;  %s7401_s28 = scalar_lea.vmem %s120_s23, 32 }
  0x2b   :  { %p7398_p1 = scmp.ne.s32.totalorder %s120_s23, %s7397_s27  ;;  %p7402_p2 = scmp.lt.s32.totalorder %s120_s23, %s120_s23 }
  0x2c   :  { %p7403_p3 = scmp.lt.s32.totalorder %s7401_s28, %s7397_s27 }
  0x2e   :  { %p7404_p4 = por %p7403_p3, %p7402_p2 }
  0x30   :  { %p7405_p5 = pnand %p7404_p4, %p7398_p1 }
  0x32   :  { %7408 = shalt.err (!%p7405_p5)
}
  0x33   :  { %122 = dma.hbm_to_vmem [thread:$0]  %s10479_s12, 16, %s120_s23, [#allocation18]  }
  0x34   :  { %s7589_s30 = smov [#allocation20]   ;;  %s7590_s19 = smov [#allocation5]  }
  0x35   :  { %s139_s18 = sshll.u32 %s7589_s30, 4  ;;  %s36_s1 = sshll.u32 %s7590_s19, 4  ;;  %s140_s18 = int_to_ptr.vmem [resolvable:$true] %s139_s18  ;;  %s37_s1 = int_to_ptr.vmem [resolvable:$true] %s36_s1 }
  0x36   :  { %s7417_s20 = scalar_lea.vmem %s140_s18, 16  ;;  %s7421_s9 = scalar_lea.vmem %s140_s18, 32 }
  0x37   :  { %p7418_p6 = scmp.ne.s32.totalorder %s140_s18, %s7417_s20  ;;  %p7422_p7 = scmp.lt.s32.totalorder %s140_s18, %s140_s18 }
  0x38   :  { %p7423_p8 = scmp.lt.s32.totalorder %s7421_s9, %s7417_s20 }
  0x3a   :  { %p7424_p9 = por %p7423_p8, %p7422_p7 }
  0x3c   :  { %p7425_p10 = pnand %p7424_p9, %p7418_p6 }
  0x3e   :  { %7428 = shalt.err (!%p7425_p10)
}
  0x3f   :  { %142 = dma.hbm_to_vmem [thread:$0]  %s10481_s14, 16, %s140_s18, [#allocation21]  }
  0x40   :  { %s7437_s24 = scalar_lea.vmem %s37_s1, 3584  ;;  %p7442_p12 = scmp.lt.s32.totalorder %s37_s1, %s37_s1 }
  0x41   :  { %p7438_p11 = scmp.ne.s32.totalorder %s37_s1, %s7437_s24  ;;  %p7443_p13 = scmp.lt.s32.totalorder %s7437_s24, %s7437_s24 }
  0x43   :  { %p7444_p0 = por %p7443_p13, %p7442_p12 }
  0x45   :  { %p7445_p1 = pnand %p7444_p0, %p7438_p11 }
  0x47   :  { %7448 = shalt.err (!%p7445_p1)
}
  0x48   :  { %s10547_s26 = sld [smem:[#allocation64_spill]]  ;;  %s7591_s7 = smov [#allocation10]  }
  0x49   :  { %s65_s27 = sshll.u32 %s7591_s7, 4  ;;  %s7592_s28 = smov [#allocation13]   ;;  %s66_s27 = int_to_ptr.vmem [resolvable:$true] %s65_s27 }
  0x4a   :  { %s85_s29 = sshll.u32 %s7592_s28, 4  ;;  %s7457_s14 = scalar_lea.vmem %s66_s27, 16  ;;  %s86_s29 = int_to_ptr.vmem [resolvable:$true] %s85_s29 }
  0x4b   :  { %p7458_p2 = scmp.ne.s32.totalorder %s66_s27, %s7457_s14  ;;  %s7461_s0 = scalar_lea.vmem %s66_s27, 32 }
  0x4c   :  { %p7462_p3 = scmp.lt.s32.totalorder %s66_s27, %s66_s27  ;;  %p7463_p4 = scmp.lt.s32.totalorder %s7461_s0, %s7457_s14 }
  0x4e   :  { %42 = dma.hbm_to_vmem [thread:$0]  %s10547_s26, 3584, %s37_s1, [#allocation6], %s7587_s2, %s7587_s2, %s7588_s25  }
  0x4f   :  { %p7464_p5 = por %p7463_p4, %p7462_p3 }
  0x51   :  { %p7465_p6 = pnand %p7464_p5, %p7458_p2 }
  0x53   :  { %7468 = shalt.err (!%p7465_p6)
}
  0x54   :  { %68 = dma.hbm_to_vmem [thread:$0]  %s10473_s6, 16, %s66_s27, [#allocation9]  }
  0x55   :  { %s7477_s19 = scalar_lea.vmem %s86_s29, 16  ;;  %s7481_s1 = scalar_lea.vmem %s86_s29, 32 }
  0x56   :  { %p7478_p7 = scmp.ne.s32.totalorder %s86_s29, %s7477_s19  ;;  %p7482_p8 = scmp.lt.s32.totalorder %s86_s29, %s86_s29 }
  0x57   :  { %p7483_p9 = scmp.lt.s32.totalorder %s7481_s1, %s7477_s19 }
  0x59   :  { %p7484_p10 = por %p7483_p9, %p7482_p8 }
  0x5b   :  { %p7485_p11 = pnand %p7484_p10, %p7478_p7 }
  0x5d   :  { %7488 = shalt.err (!%p7485_p11)
}
  0x5e   :  { %88 = dma.hbm_to_vmem [thread:$0]  %s10475_s8, 16, %s86_s29, [#allocation12]  }
  0x5f   :  { %s7593_s21 = smov [#allocation16]   ;;  %s7594_s24 = smov [#allocation19]  }
  0x60   :  { %s109_s22 = sshll.u32 %s7593_s21, 4  ;;  %s129_s12 = sshll.u32 %s7594_s24, 4  ;;  %s110_s22 = int_to_ptr.vmem [resolvable:$true] %s109_s22  ;;  %s130_s12 = int_to_ptr.vmem [resolvable:$true] %s129_s12 }
  0x61   :  { %s7497_s23 = scalar_lea.vmem %s110_s22, 256  ;;  %p7502_p13 = scmp.lt.s32.totalorder %s110_s22, %s110_s22 }
  0x62   :  { %p7498_p12 = scmp.ne.s32.totalorder %s110_s22, %s7497_s23  ;;  %p7503_p0 = scmp.lt.s32.totalorder %s7497_s23, %s7497_s23 }
  0x64   :  { %p7504_p1 = por %p7503_p0, %p7502_p13 }
  0x66   :  { %p7505_p2 = pnand %p7504_p1, %p7498_p12 }
  0x68   :  { %7508 = shalt.err (!%p7505_p2)
}
  0x69   :  { %112 = dma.hbm_to_vmem [thread:$0]  %s10478_s11, 256, %s110_s22, [#allocation15]  }
  0x6a   :  { %s7517_s7 = scalar_lea.vmem %s130_s12, 16  ;;  %s7521_s8 = scalar_lea.vmem %s130_s12, 32 }
  0x6b   :  { %p7518_p3 = scmp.ne.s32.totalorder %s130_s12, %s7517_s7  ;;  %p7522_p4 = scmp.lt.s32.totalorder %s130_s12, %s130_s12 }
  0x6c   :  { %p7523_p5 = scmp.lt.s32.totalorder %s7521_s8, %s7517_s7 }
  0x6e   :  { %p7524_p6 = por %p7523_p5, %p7522_p4 }
  0x70   :  { %p7525_p7 = pnand %p7524_p6, %p7518_p3 }
  0x72   :  { %7528 = shalt.err (!%p7525_p7)
}
  0x73   :  { %132 = dma.hbm_to_vmem [thread:$0]  %s10480_s13, 16, %s130_s12, [#allocation18]  }
  0x74   :  { %s7595_s29 = smov [#allocation22]  }
  0x75   :  { %s151_s14 = sshll.u32 %s7595_s29, 4  ;;  %s152_s14 = int_to_ptr.vmem [resolvable:$true] %s151_s14 }
  0x76   :  { %s7537_s0 = scalar_lea.vmem %s152_s14, 16  ;;  %s7541_s30 = scalar_lea.vmem %s152_s14, 32 }
  0x77   :  { %p7538_p8 = scmp.ne.s32.totalorder %s152_s14, %s7537_s0  ;;  %p7542_p9 = scmp.lt.s32.totalorder %s152_s14, %s152_s14 }
  0x78   :  { %p7543_p10 = scmp.lt.s32.totalorder %s7541_s30, %s7537_s0 }
  0x7a   :  { %p7544_p11 = por %p7543_p10, %p7542_p9 }
  0x7c   :  { %p7545_p12 = pnand %p7544_p11, %p7538_p8 }
  0x7e   :  { %7548 = shalt.err (!%p7545_p12)
}
  0x7f   :  { %154 = dma.hbm_to_vmem [thread:$0]  %s10483_s16, 16, %s152_s14, [#allocation21]  }
  0x80   :  { %7569 = dma.done.wait [#allocation6], 3584  }
  0x81   :  { %7570 = vsyncadd [#allocation6], 4294963712 }
  0x82   :  { %7571 = dma.done.wait [#allocation9], 272  }
  0x83   :  { %7572 = vsyncadd [#allocation9], 4294967024 }
  0x84   :  { %7573 = dma.done.wait [#allocation12], 32  }
  0x85   :  { %7574 = vsyncadd [#allocation12], 4294967264 }
  0x86   :  { %7575 = dma.done.wait [#allocation15], 14592  }
  0x87   :  { %7576 = vsyncadd [#allocation15], 4294952704 }
  0x88   :  { %7577 = dma.done.wait [#allocation18], 32  }
  0x89   :  { %7578 = vsyncadd [#allocation18], 4294967264 }
  0x8a   :  { %7579 = dma.done.wait [#allocation21], 32  }
  0x8b   :  { %7580 = vsyncadd [#allocation21], 4294967264  ;;  %v10487_v0 = vmov 0   ;;  %v6774_v1 = vld [vmem:[#allocation5 + $0x14] ss:$8 sps:$4 sm:$0xff]   ;;  %s10548_s19 = sld [smem:[#allocation63_spill]] }
  0x8c   :  { %287 = vmatprep.mubr.bf16.mxu0 %v10487_v0  ;;  %401 = vmatprep.mubr.bf16.mxu1 %v10487_v0  ;;  %v6776_v2 = vld [vmem:[#allocation5 + $0x34] ss:$8 sps:$4 sm:$0xff]   ;;  %v6778_v3 = vld [vmem:[#allocation5 + $0x10] ss:$8 sps:$4 sm:$0xff]   ;;  %v6780_v5 = vld [vmem:[#allocation5 + $0x4] ss:$8 sps:$4 sm:$0xff]  }
  0x8d   :  { %267 = vmatprep.subr.bf16.mxu0 %v6774_v1  ;;  %v6779_v4 = vld [vmem:[#allocation5 + $0x30] ss:$8 sps:$4 sm:$0xff]   ;;  %381 = vmatprep.subr.bf16.mxu1 %v6776_v2  ;;  %v6782_v6 = vld [vmem:[#allocation5 + $0x24] ss:$8 sps:$4 sm:$0xff]   ;;  %v6784_v7 = vld [vmem:[#allocation5] ss:$8 sps:$4 sm:$0xff]  }
  0x8e   :  { %268 = vmatpush1.bf16.msra.mxu0 %v6778_v3  ;;  %382 = vmatpush1.bf16.msra.mxu1 %v6779_v4  ;;  %v6785_v8 = vld [vmem:[#allocation5 + $0x20] ss:$8 sps:$4 sm:$0xff]   ;;  %v6786_v10 = vld [vmem:[#allocation5 + $0x50] ss:$8 sps:$4 sm:$0xff]   ;;  %v6788_v11 = vld [vmem:[#allocation5 + $0x54] ss:$8 sps:$4 sm:$0xff]  }
  0x8f   :  { %269 = vmatprep.subr.bf16.mxu0 %v6780_v5  ;;  %383 = vmatprep.subr.bf16.mxu1 %v6782_v6  ;;  %v6789_v13 = vld [vmem:[#allocation5 + $0x70] ss:$8 sps:$4 sm:$0xff]   ;;  %vm251_vm0 = vcmask 261120   ;;  %v6791_v14 = vld [vmem:[#allocation5 + $0x74] ss:$8 sps:$4 sm:$0xff]   ;;  %vm189_vm1 = vcmask 1043456  }
  0x90   :  { %v6794_v15 = vld [vmem:[#allocation5 + $0x44] ss:$8 sps:$4 sm:$0xff]   ;;  %v6792_v17 = vld [vmem:[#allocation5 + $0x40] ss:$8 sps:$4 sm:$0xff]   ;;  %v6800_v19 = vld [vmem:[#allocation5 + $0x94] ss:$8 sps:$4 sm:$0xff]  }
  0x91   :  { %v213_v9 = vld [vmem:[%s10548_s19] sm:$0x3]  ;;  %v6797_v16 = vld [vmem:[#allocation5 + $0x64] ss:$8 sps:$4 sm:$0xff]   ;;  %v6803_v20 = vld [vmem:[#allocation5 + $0xb4] ss:$8 sps:$4 sm:$0xff]  }
  0x92   :  { %v214_v12 = vpack.c.bf16 %v213_v9, %v213_v9  ;;  %270 = vmatpush1.bf16.msra.mxu0 %v6784_v7  ;;  %384 = vmatpush1.bf16.msra.mxu1 %v6785_v8  ;;  %v6795_v18 = vld [vmem:[#allocation5 + $0x60] ss:$8 sps:$4 sm:$0xff]   ;;  %v6798_v21 = vld [vmem:[#allocation5 + $0x90] ss:$8 sps:$4 sm:$0xff]   ;;  %v6806_v23 = vld [vmem:[#allocation5 + $0x84] ss:$8 sps:$4 sm:$0xff]  }
  0x93   :  { %480 = vmatprep.subr.bf16.mxu0 %v6788_v11  ;;  %588 = vmatprep.subr.bf16.mxu1 %v6791_v14  ;;  %v6801_v22 = vld [vmem:[#allocation5 + $0xb0] ss:$8 sps:$4 sm:$0xff]   ;;  %v6809_v24 = vld [vmem:[#allocation5 + $0xa4] ss:$8 sps:$4 sm:$0xff]   ;;  %v6804_v25 = vld [vmem:[#allocation5 + $0x80] ss:$8 sps:$4 sm:$0xff]  }
  0x94   :  { %v6807_v26 = vld [vmem:[#allocation5 + $0xa0] ss:$8 sps:$4 sm:$0xff]   ;;  %v6812_v27 = vld [vmem:[#allocation5 + $0xd4] ss:$8 sps:$4 sm:$0xff]   ;;  %v6810_v29 = vld [vmem:[#allocation5 + $0xd0] ss:$8 sps:$4 sm:$0xff]  }
  0x95   :  { %6072 = vmatmul.mubr.msk.bf16.vlgmr.msra.gmra.mxu0 %vm251_vm0, %v214_v12  ;;  %6078 = vmatmul.mubr.msk.bf16.vlgmr.msra.gmra.mxu1 %vm251_vm0, %v214_v12  ;;  %v7744_v28 = vld [vmem:[%s10470_s3 + $0x154] ss:$8 sps:$4 sm:$0xff]   ;;  %v6822_v31 = vld [vmem:[%s10470_s3 + $0x150] ss:$8 sps:$4 sm:$0xff]   ;;  %v6821_v35 = vld [vmem:[%s10470_s3 + $0x64] ss:$8 sps:$4 sm:$0xff]  }
  0x96   :  { %481 = vmatpush1.bf16.msra.mxu0 %v6786_v10  ;;  %589 = vmatpush1.bf16.msra.mxu1 %v6789_v13  ;;  %v6815_v30 = vld [vmem:[#allocation5 + $0xc4] ss:$8 sps:$4 sm:$0xff]   ;;  %v6813_v32 = vld [vmem:[#allocation5 + $0xc0] ss:$8 sps:$4 sm:$0xff]   ;;  %vm190_vm2 = vcmask 785412   ;;  %vm194_vm4 = vcmask 1040384  }
  0x97   :  { %482 = vmatprep.subr.bf16.mxu0 %v6794_v15  ;;  %590 = vmatprep.subr.bf16.mxu1 %v6797_v16  ;;  %v7755_v33 = vld [vmem:[%s10470_s3 + $0x74] ss:$8 sps:$4 sm:$0xff]   ;;  %v6816_v34 = vld [vmem:[%s10470_s3 + $0x70] ss:$8 sps:$4 sm:$0xff]   ;;  %v6819_v36 = vld [vmem:[%s10470_s3 + $0x60] ss:$8 sps:$4 sm:$0xff]  }
  0x98   :  { %500 = vmatprep.mubr.bf16.mxu0 %v10487_v0  ;;  %608 = vmatprep.mubr.bf16.mxu1 %v10487_v0  ;;  %v6827_v37 = vld [vmem:[%s10470_s3 + $0x54] ss:$8 sps:$4 sm:$0xff]   ;;  %v6825_v38 = vld [vmem:[%s10470_s3 + $0x50] ss:$8 sps:$4 sm:$0xff]   ;;  %v6830_v39 = vld [vmem:[%s10470_s3 + $0x144] ss:$8 sps:$4 sm:$0xff]  }
  0x99   :  { %v6828_v40 = vld [vmem:[%s10470_s3 + $0x140] ss:$8 sps:$4 sm:$0xff]   ;;  %v6833_v41 = vld [vmem:[%s10470_s3 + $0x44] ss:$8 sps:$4 sm:$0xff]   ;;  %vm191_vm3 = vmor %vm190_vm2, %vm189_vm1  ;;  %vm195_vm5 = vcmask 782340   ;;  %v10549_v47 = vmov 0 }
  0x9a   :  { %483 = vmatpush1.bf16.msra.mxu0 %v6792_v17  ;;  %591 = vmatpush1.bf16.msra.mxu1 %v6795_v18  ;;  %v6831_v42 = vld [vmem:[%s10470_s3 + $0x40] ss:$8 sps:$4 sm:$0xff]   ;;  %192 = vst.msk [vmem:[#allocation2] sm:$0xff] %vm191_vm3, %v10487_v0  ;;  %193 = vst.msk [vmem:[#allocation2 + $0x8] sm:$0xff] %vm191_vm3, %v10487_v0  ;;  %v6836_v43 = vld [vmem:[%s10470_s3 + $0x134] ss:$8 sps:$4 sm:$0xff]  }
  0x9b   :  { %687 = vmatprep.subr.bf16.mxu0 %v6800_v19  ;;  %795 = vmatprep.subr.bf16.mxu1 %v6803_v20  ;;  %198 = vst.msk [vmem:[#allocation3] sm:$0xff] %vm191_vm3, %v10487_v0  ;;  %199 = vst.msk [vmem:[#allocation3 + $0x8] sm:$0xff] %vm191_vm3, %v10487_v0  ;;  %v6834_v44 = vld [vmem:[%s10470_s3 + $0x130] ss:$8 sps:$4 sm:$0xff]   ;;  %v6839_v45 = vld [vmem:[%s10470_s3 + $0x34] ss:$8 sps:$4 sm:$0xff]  }
  0x9c   :  { %200 = vst.msk [vmem:[#allocation3 + $0x10] sm:$0xff] %vm191_vm3, %v10487_v0  ;;  %201 = vst.msk [vmem:[#allocation3 + $0x18] sm:$0xff] %vm191_vm3, %v10487_v0  ;;  %v6837_v46 = vld [vmem:[%s10470_s3 + $0x30] ss:$8 sps:$4 sm:$0xff]   ;;  %vm308_vm6 = vsmask.f32 7938 }
  0x9d   :  { %6084 = vmatmul.mubr.msk.bf16.vlgmr.msra.gmra.mxu0 %vm251_vm0, %v214_v12  ;;  %6090 = vmatmul.mubr.msk.bf16.vlgmr.msra.gmra.mxu1 %vm251_vm0, %v214_v12  ;;  %202 = vst.msk [vmem:[#allocation4] sm:$0xff] %vm191_vm3, %v10487_v0  ;;  %203 = vst.msk [vmem:[#allocation4 + $0x8] sm:$0xff] %vm191_vm3, %v10487_v0  ;;  %vm311_vm7 = vsmask.f32 7954  ;;  %v6840_v48 = vld [vmem:[%s10470_s3 + $0x120] ss:$8 sps:$4 sm:$0xff]  }
  0x9e   :  { %688 = vmatpush1.bf16.msra.mxu0 %v6798_v21  ;;  %796 = vmatpush1.bf16.msra.mxu1 %v6801_v22  ;;  %204 = vst.msk [vmem:[#allocation4 + $0x10] sm:$0xff] %vm191_vm3, %v10487_v0  ;;  %205 = vst.msk [vmem:[#allocation4 + $0x18] sm:$0xff] %vm191_vm3, %v10487_v0  ;;  %v6842_v49 = vld [vmem:[%s10470_s3 + $0x124] ss:$8 sps:$4 sm:$0xff]   ;;  %v6843_v50 = vld [vmem:[%s10470_s3 + $0x20] ss:$8 sps:$4 sm:$0xff]  }
  0x9f   :  { %689 = vmatprep.subr.bf16.mxu0 %v6806_v23  ;;  %797 = vmatprep.subr.bf16.mxu1 %v6809_v24  ;;  %206 = vst.msk [vmem:[#allocation4 + $0x20] sm:$0xff] %vm191_vm3, %v10487_v0  ;;  %207 = vst.msk [vmem:[#allocation4 + $0x28] sm:$0xff] %vm191_vm3, %v10487_v0  ;;  %v6845_v51 = vld [vmem:[%s10470_s3 + $0x24] ss:$8 sps:$4 sm:$0xff]   ;;  %v6846_v52 = vld [vmem:[%s10470_s3 + $0x110] ss:$8 sps:$4 sm:$0xff]  }
  0xa0   :  { %707 = vmatprep.mubr.bf16.mxu0 %v10487_v0  ;;  %815 = vmatprep.mubr.bf16.mxu1 %v10487_v0  ;;  %208 = vst.msk [vmem:[#allocation4 + $0x30] sm:$0xff] %vm191_vm3, %v10487_v0  ;;  %vm309_vm8 = vmand %vm194_vm4, %vm308_vm6  ;;  %v6848_v53 = vld [vmem:[%s10470_s3 + $0x114] ss:$8 sps:$4 sm:$0xff]   ;;  %v6849_v54 = vld [vmem:[%s10470_s3 + $0x10] ss:$8 sps:$4 sm:$0xff]   ;;  %v10552_v14 = vmov 0 }
  0xa1   :  { %vm312_vm9 = vmand %vm195_vm5, %vm311_vm7  ;;  %v6851_v55 = vld [vmem:[%s10470_s3 + $0x14] ss:$8 sps:$4 sm:$0xff]   ;;  %v6852_v56 = vld [vmem:[%s10470_s3 + $0x100] ss:$8 sps:$4 sm:$0xff]   ;;  %vm943_vm12 = vsmask.f32 256 }
  0xa2   :  { %690 = vmatpush1.bf16.msra.mxu0 %v6804_v25  ;;  %798 = vmatpush1.bf16.msra.mxu1 %v6807_v26  ;;  %vm7814_vm10 = vmor %vm312_vm9, %vm309_vm8  ;;  %v6854_v57 = vld [vmem:[%s10470_s3 + $0x104] ss:$8 sps:$4 sm:$0xff]   ;;  %v6855_v58 = vld [vmem:[%s10470_s3] ss:$8 sps:$4 sm:$0xff]   ;;  %vm10485_vm13 = vsmask.f32 4352  ;;  %v221_v26 = vlaneseq }
  0xa3   :  { %894 = vmatprep.subr.bf16.mxu0 %v6812_v27  ;;  %1173 = vmatprep.subr.bf16.mxu1 %v7744_v28  ;;  %v10550_v47 = vsel %vm7814_vm10, 4294967295, %v10549_v47  ;;  %v6857_v59 = vld [vmem:[%s10470_s3 + $0x4] ss:$8 sps:$4 sm:$0xff]   ;;  %v6860_v60 = vld [vmem:[%s10470_s3 + $0xf4] ss:$8 sps:$4 sm:$0xff]   ;;  %vm196_vm11 = vmor %vm195_vm5, %vm194_vm4  ;;  %vm321_vm1 = vcmask 1041409  }
  0xa4   :  { %10551 = vst [vmem:[#allocation31_spill] sm:$0xff] %v10550_v47  ;;  %v6863_v61 = vld [vmem:[%s10470_s3 + $0xd4] ss:$8 sps:$4 sm:$0xff]   ;;  %v6858_v62 = vld [vmem:[%s10470_s3 + $0xf0] ss:$8 sps:$4 sm:$0xff]   ;;  %vm944_vm14 = vmand %vm194_vm4, %vm943_vm12  ;;  %v222_v27 = vshrl.u32 %v221_v26, 7 }
  0xa5   :  { %6096 = vmatmul.mubr.msk.bf16.vlgmr.msra.gmra.mxu0 %vm251_vm0, %v214_v12  ;;  %6102 = vmatmul.mubr.msk.bf16.vlgmr.msra.gmra.mxu1 %vm251_vm0, %v214_v12  ;;  %v6861_v63 = vld [vmem:[%s10470_s3 + $0xd0] ss:$8 sps:$4 sm:$0xff]   ;;  %v7869_v1 = vld [vmem:[%s10470_s3 + $0xe4] ss:$8 sps:$4 sm:$0xff]   ;;  %v6864_v2 = vld [vmem:[%s10470_s3 + $0xe0] ss:$8 sps:$4 sm:$0xff]  }
  0xa6   :  { %895 = vmatpush1.bf16.msra.mxu0 %v6810_v29  ;;  %914 = vmatprep.mubr.bf16.mxu0 %v10487_v0  ;;  %v7877_v3 = vld [vmem:[%s10470_s3 + $0xc4] ss:$8 sps:$4 sm:$0xff]   ;;  %v7883_v4 = vld [vmem:[%s10470_s3 + $0xc0] ss:$8 sps:$4 sm:$0xff]   ;;  %v7888_v5 = vld [vmem:[%s10470_s3 + $0x1b4] ss:$8 sps:$4 sm:$0xff]  }
  0xa7   :  { %896 = vmatprep.subr.bf16.mxu0 %v6815_v30  ;;  %1174 = vmatpush1.bf16.msra.mxu1 %v6822_v31  ;;  %v7896_v6 = vld [vmem:[%s10470_s3 + $0xb4] ss:$8 sps:$4 sm:$0xff]   ;;  %197 = vst.msk [vmem:[#allocation2 + $0x10] sm:$0x11] %vm196_vm11, %v10487_v0  ;;  %v7902_v7 = vld [vmem:[%s10470_s3 + $0x1b0] ss:$8 sps:$4 sm:$0xff]   ;;  %vm946_vm15 = vmand %vm195_vm5, %vm10485_vm13 }
  0xa8   :  { %1175 = vmatprep.subr.bf16.mxu1 %v6830_v39  ;;  %v7909_v8 = vld [vmem:[%s10470_s3 + $0xb0] ss:$8 sps:$4 sm:$0xff]   ;;  %v7914_v9 = vld [vmem:[%s10470_s3 + $0x1a4] ss:$8 sps:$4 sm:$0xff]   ;;  %v7920_v10 = vld [vmem:[%s10470_s3 + $0x1a0] ss:$8 sps:$4 sm:$0xff]  }
  0xa9   :  { %v7925_v11 = vld [vmem:[%s10470_s3 + $0xa4] ss:$8 sps:$4 sm:$0xff]   ;;  %v7941_v13 = vld [vmem:[%s10470_s3 + $0x194] ss:$8 sps:$4 sm:$0xff]   ;;  %v7957_v16 = vld [vmem:[%s10470_s3 + $0x190] ss:$8 sps:$4 sm:$0xff]  }
  0xaa   :  { %897 = vmatpush1.bf16.msra.mxu0 %v6813_v32  ;;  %v7951_v15 = vld [vmem:[%s10470_s3 + $0x94] ss:$8 sps:$4 sm:$0xff]   ;;  %v7964_v17 = vld [vmem:[%s10470_s3 + $0x90] ss:$8 sps:$4 sm:$0xff]   ;;  %v7969_v18 = vld [vmem:[%s10470_s3 + $0x184] ss:$8 sps:$4 sm:$0xff]  }
  0xab   :  { %1357 = vmatprep.subr.bf16.mxu0 %v7755_v33  ;;  %1176 = vmatpush1.bf16.msra.mxu1 %v6828_v40  ;;  %v7975_v19 = vld [vmem:[%s10470_s3 + $0x180] ss:$8 sps:$4 sm:$0xff]   ;;  %v7980_v20 = vld [vmem:[%s10470_s3 + $0x84] ss:$8 sps:$4 sm:$0xff]   ;;  %v7990_v22 = vld [vmem:[%s10470_s3 + $0x174] ss:$8 sps:$4 sm:$0xff]  }
  0xac   :  { %1177 = vmatprep.subr.bf16.mxu1 %v6836_v43  ;;  %v7985_v21 = vld [vmem:[%s10470_s3 + $0x80] ss:$8 sps:$4 sm:$0xff]   ;;  %v7999_v23 = vld [vmem:[%s10470_s3 + $0x170] ss:$8 sps:$4 sm:$0xff]   ;;  %v8008_v24 = vld [vmem:[%s10470_s3 + $0x164] ss:$8 sps:$4 sm:$0xff]  }
  0xad   :  { %6108 = vmatmul.mubr.msk.bf16.vlgmr.msra.gmra.mxu0 %vm251_vm0, %v214_v12  ;;  %v7932_v12 = vld [vmem:[%s10470_s3 + $0xa0] ss:$8 sps:$4 sm:$0xff]   ;;  %vm7943_vm0 = vmor %vm946_vm15, %vm944_vm14  ;;  %v8019_v29 = vsub.s32 0, %v222_v27  ;;  %v8021_v32 = vsub.s32 1, %v222_v27  ;;  %vm322_vm2 = vsmask.f32 1280 }
  0xae   :  { %1358 = vmatpush1.bf16.msra.mxu0 %v6816_v34  ;;  %v10553_v14 = vsel %vm7943_vm0, 4294967295, %v10552_v14  ;;  %v8013_v25 = vld [vmem:[%s10470_s3 + $0x160] ss:$8 sps:$4 sm:$0xff]   ;;  %vm324_vm3 = vcmask 783365   ;;  %vm325_vm4 = vsmask.f32 5376  ;;  %vm323_vm5 = vmand %vm321_vm1, %vm322_vm2 }
  0xaf   :  { %1359 = vmatprep.subr.bf16.mxu0 %v6821_v35  ;;  %1178 = vmatpush1.bf16.msra.mxu1 %v6834_v44  ;;  %10554 = vst [vmem:[#allocation32_spill] sm:$0xff] %v10553_v14  ;;  %10555 = vst [vmem:[#allocation33_spill] sm:$0xff] %v8019_v29  ;;  %v337_v30 = vld [vmem:[#allocation8 + $0x1] ss:$8 sm:$0x3]  ;;  %vm528_vm8 = vcmask 1042434  }
  0xb0   :  { %1179 = vmatprep.subr.bf16.mxu1 %v6842_v49  ;;  %v219_v31 = vld [vmem:[#allocation8] ss:$8 sm:$0x3]  ;;  %vm326_vm6 = vmand %vm324_vm3, %vm325_vm4  ;;  %vm529_vm9 = vsmask.f32 2304  ;;  %vm531_vm11 = vcmask 784390  }
  0xb1   :  { %v224_v34 = vrot.slane %v219_v31, %v8019_v29  ;;  %v228_v35 = vrot.slane %v219_v31, %v8021_v32  ;;  %vm8030_vm7 = vmor %vm326_vm6, %vm323_vm5  ;;  %vm532_vm12 = vsmask.f32 6400  ;;  %vm422_vm14 = vsmask.f32 7942  ;;  %v8586_v0 = vld [vmem:[%s10470_s3 + $0x244] ss:$8 sps:$4 sm:$0xff]  }
  0xb2   :  { %1360 = vmatpush1.bf16.msra.mxu0 %v6819_v36  ;;  %v346_v36 = vrot.slane %v337_v30, %v8021_v32  ;;  %vm424_vm15 = vsmask.f32 7958  ;;  %vm8046_vm2 = vmand %vm528_vm8, %vm529_vm9  ;;  %v8604_v14 = vld [vmem:[%s10470_s3 + $0x240] ss:$8 sps:$4 sm:$0xff]  }
  0xb3   :  { %1361 = vmatprep.subr.bf16.mxu0 %v6827_v37  ;;  %1180 = vmatpush1.bf16.msra.mxu1 %v6840_v48  ;;  %vm533_vm4 = vmand %vm531_vm11, %vm532_vm12 }
  0xb4   :  { %1181 = vmatprep.subr.bf16.mxu1 %v6848_v53  ;;  %v10556_v53 = vmov 0  ;;  %vm8056_vm5 = vmand %vm321_vm1, %vm422_vm14  ;;  %vm735_vm1 = vcmask 1043459   ;;  %vm738_vm14 = vcmask 785415  }
  0xb5   :  { %v10557_v53 = vsel %vm8030_vm7, 4294967295, %v10556_v53  ;;  %vm8062_vm6 = vmand %vm324_vm3, %vm424_vm15  ;;  %vm736_vm3 = vsmask.f32 3328  ;;  %vm10486_vm15 = vsmask.f32 7424 }
  0xb6   :  { %1362 = vmatpush1.bf16.msra.mxu0 %v6825_v38  ;;  %10558 = vst [vmem:[#allocation34_spill] sm:$0xff] %v10557_v53  ;;  %vm8069_vm9 = vmor %vm533_vm4, %vm8046_vm2  ;;  %vm629_vm2 = vsmask.f32 7946  ;;  %vm631_vm4 = vsmask.f32 7962 }
  0xb7   :  { %1363 = vmatprep.subr.bf16.mxu0 %v6833_v41  ;;  %1182 = vmatpush1.bf16.msra.mxu1 %v6846_v52  ;;  %v436_v41 = vld [vmem:[#allocation8 + $0x2] ss:$8 sm:$0x3]  ;;  %v314_v52 = vld [vmem:[#allocation2] sm:$0x11]  ;;  %vm8082_vm12 = vmor %vm8062_vm6, %vm8056_vm5 }
  0xb8   :  { %1183 = vmatprep.subr.bf16.mxu1 %v6854_v57  ;;  %vm8091_vm5 = vmand %vm735_vm1, %vm736_vm3  ;;  %v8617_v53 = vld [vmem:[%s10470_s3 + $0x324] ss:$8 sps:$4 sm:$0xff]  }
  0xb9   :  { %vm740_vm6 = vmand %vm738_vm14, %vm10486_vm15 }
  0xba   :  { %1364 = vmatpush1.bf16.msra.mxu0 %v6831_v42  ;;  %vm8106_vm3 = vmand %vm528_vm8, %vm629_vm2  ;;  %vm838_vm2 = vsmask.f32 7966 }
  0xbb   :  { %1365 = vmatprep.subr.bf16.mxu0 %v6839_v45  ;;  %1184 = vmatpush1.bf16.msra.mxu1 %v6852_v56  ;;  %v544_v45 = vld [vmem:[#allocation8 + $0x3] ss:$8 sm:$0x3]  ;;  %vm632_vm13 = vmand %vm531_vm11, %vm631_vm4  ;;  %vm836_vm11 = vsmask.f32 7950 }
  0xbc   :  { %1185 = vmatprep.subr.bf16.mxu1 %v6860_v60  ;;  %v549_v57 = vrot.slane %v544_v45, %v8019_v29  ;;  %vm8114_vm15 = vmor %vm740_vm6, %vm8091_vm5  ;;  %vm1406_vm6 = vcmask 784384  }
  0xbd   :  { %vm8122_vm8 = vmor %vm632_vm13, %vm8106_vm3  ;;  %vm2389_vm3 = vcmask 130048  }
  0xbe   :  { %1366 = vmatpush1.bf16.msra.mxu0 %v6837_v46  ;;  %vm837_vm13 = vmand %vm735_vm1, %vm836_vm11  ;;  %vm1169_vm1 = vcmask 785408   ;;  %vm3227_vm11 = vcmask 1045504  }
  0xbf   :  { %1367 = vmatprep.subr.bf16.mxu0 %v6845_v51  ;;  %1186 = vmatpush1.bf16.msra.mxu1 %v6858_v62  ;;  %v441_v51 = vrot.slane %v436_v41, %v8019_v29  ;;  %vm839_vm4 = vmand %vm738_vm14, %vm838_vm2  ;;  %vm1398_vm14 = vcmask 1046528   ;;  %vm3237_vm2 = vcmask 783360  }
  0xc0   :  { %1187 = vmatprep.subr.bf16.mxu1 %v7869_v1  ;;  %vm8137_vm5 = vmor %vm839_vm4, %vm837_vm13  ;;  %vm4246_vm13 = vcmask 64512   ;;  %vm209_vm4 = vcmask 1041408  }
  0xc2   :  { %1368 = vmatpush1.bf16.msra.mxu0 %v6843_v50 }
  0xc3   :  { %1369 = vmatprep.subr.bf16.mxu0 %v6851_v55  ;;  %1188 = vmatpush1.bf16.msra.mxu1 %v6864_v2 }
  0xc4   :  { %1193 = vmatprep.subr.bf16.mxu1 %v7888_v5 }
  0xc6   :  { %1370 = vmatpush1.bf16.msra.mxu0 %v6849_v54  ;;  %v419_v54 = vld [vmem:[#allocation2] sm:$0x22] }
  0xc7   :  { %1371 = vmatprep.subr.bf16.mxu0 %v6857_v59  ;;  %1194 = vmatpush2.bf16.msra.mxu1 %v7902_v7  ;;  %v553_v59 = vrot.slane %v544_v45, %v8021_v32 }
  0xc8   :  { %1195 = vmatprep.subr.bf16.mxu1 %v7914_v9 }
  0xca   :  { %1372 = vmatpush1.bf16.msra.mxu0 %v6855_v58  ;;  %v445_v58 = vrot.slane %v436_v41, %v8021_v32  ;;  %v751_v41 = vld [vmem:[#allocation8 + $0x5] ss:$8 sm:$0x3] }
  0xcb   :  { %1377 = vmatprep.subr.bf16.mxu0 %v6863_v61  ;;  %1196 = vmatpush2.bf16.msra.mxu1 %v7920_v10 }
  0xcc   :  { %1197 = vmatprep.subr.bf16.mxu1 %v7941_v13 }
  0xce   :  { %1378 = vmatpush2.bf16.msra.mxu0 %v6861_v63  ;;  %v328_v63 = vld [vmem:[#allocation2 + $0x8] sm:$0x22] }
  0xcf   :  { %1379 = vmatprep.subr.bf16.mxu0 %v7877_v3  ;;  %1198 = vmatpush2.bf16.msra.mxu1 %v7957_v16 }
  0xd0   :  { %1199 = vmatprep.subr.bf16.mxu1 %v7969_v18 }
  0xd2   :  { %1380 = vmatpush2.bf16.msra.mxu0 %v7883_v4 }
  0xd3   :  { %1381 = vmatprep.subr.bf16.mxu0 %v7896_v6  ;;  %1200 = vmatpush2.bf16.msra.mxu1 %v7975_v19 }
  0xd4   :  { %1201 = vmatprep.subr.bf16.mxu1 %v7990_v22 }
  0xd6   :  { %1382 = vmatpush2.bf16.msra.mxu0 %v7909_v8 }
  0xd7   :  { %1383 = vmatprep.subr.bf16.mxu0 %v7925_v11  ;;  %1202 = vmatpush2.bf16.msra.mxu1 %v7999_v23 }
  0xd8   :  { %1203 = vmatprep.subr.bf16.mxu1 %v8008_v24 }
  0xda   :  { %1384 = vmatpush2.bf16.msra.mxu0 %v7932_v12 }
  0xdb   :  { %1385 = vmatprep.subr.bf16.mxu0 %v7951_v15  ;;  %1204 = vmatpush2.bf16.msra.mxu1 %v8013_v25 }
  0xdc   :  { %1451 = vmatprep.subr.bf16.mxu1 %v7744_v28 }
  0xde   :  { %1386 = vmatpush2.bf16.msra.mxu0 %v7964_v17 }
  0xdf   :  { %1387 = vmatprep.subr.bf16.mxu0 %v7980_v20 }
  0xe2   :  { %1388 = vmatpush2.bf16.msra.mxu0 %v7985_v21 }
  0xe3   :  { %1515 = vmatprep.subr.bf16.mxu0 %v7755_v33  ;;  %v342_v33 = vrot.slane %v337_v30, %v8019_v29 }
 0x155   :  { %v289_v37 = vpop.f32.mrf.mxu0  ;;  %v403_v28 = vpop.f32.mrf.mxu1 }
 0x156   :  { %v404_v38 = vadd.f32 %v403_v28, %v342_v33  ;;  %v290_v42 = vadd.f32 %v289_v37, %v224_v34  ;;  %v643_v37 = vld [vmem:[#allocation8 + $0x4] ss:$8 sm:$0x3] }
 0x157   :  { %v291_v39 = vpop.f32.mrf.mxu0  ;;  %v405_v40 = vpop.f32.mrf.mxu1 }
 0x158   :  { %v292_v43 = vadd.f32 %v291_v39, %v228_v35  ;;  %v406_v44 = vadd.f32 %v405_v40, %v346_v36 }
 0x159   :  { %v293_v46 = vpop.f32.mrf.mxu0  ;;  %v407_v48 = vpop.f32.mrf.mxu1 }
 0x15a   :  { %v6739_v49 = vpack.c.bf16 %v292_v43, %v290_v42  ;;  %v6740_v50 = vpack.c.bf16 %v406_v44, %v404_v38 }
 0x15b   :  { %v294_v55 = vpop.f32.mrf.mxu0  ;;  %v408_v56 = vpop.f32.mrf.mxu1 }
 0x15c   :  { %v304_v60 = vshll.u32 %v6739_v49, 16  ;;  %v317_v61 = vshrl.u32 %v6739_v49, 16  ;;  %v8037_v62 = vrot.slane %v6740_v50, 7  ;;  %v648_v49 = vrot.slane %v643_v37, %v8019_v29 }
 0x15d   :  { %v502_v2 = vpop.f32.mrf.mxu0  ;;  %v610_v26 = vpop.f32.mrf.mxu1  ;;  %v10565_v50 = vmov 0  ;;  %v756_v55 = vrot.slane %v751_v41, %v8019_v29  ;;  %v652_v56 = vrot.slane %v643_v37, %v8021_v32 }
 0x15e   :  { %v315_v27 = vsel %vm7814_vm10, %v304_v60, %v314_v52  ;;  %v319_v30 = vrot.slane %v317_v61, 7  ;;  %v420_v31 = vsel %vm8030_vm7, %v8037_v62, %v419_v54  ;;  %v611_v33 = vadd.f32 %v610_v26, %v549_v57 }
 0x15f   :  { %316 = vst [vmem:[#allocation2] sm:$0x11] %v315_v27  ;;  %421 = vst [vmem:[#allocation2] sm:$0x22] %v420_v31  ;;  %v504_v34 = vpop.f32.mrf.mxu0  ;;  %v612_v36 = vpop.f32.mrf.mxu1  ;;  %v503_v38 = vadd.f32 %v502_v2, %v441_v51  ;;  %v10566_v50 = vsel %vm8069_vm9, 4294967295, %v10565_v50  ;;  %v760_v57 = vrot.slane %v751_v41, %v8021_v32  ;;  %v10568_v61 = vmov 0 }
 0x160   :  { %v329_v28 = vsel %vm8030_vm7, %v319_v30, %v328_v63  ;;  %v505_v39 = vadd.f32 %v504_v34, %v445_v58  ;;  %v613_v40 = vadd.f32 %v612_v36, %v553_v59  ;;  %10567 = vst [vmem:[#allocation35_spill] sm:$0xff] %v10566_v50  ;;  %v626_v51 = vld [vmem:[#allocation2] sm:$0x44]  ;;  %v10569_v61 = vsel %vm8082_vm12, 4294967295, %v10568_v61  ;;  %v535_v63 = vld [vmem:[#allocation2 + $0x8] sm:$0x44] }
 0x161   :  { %330 = vst [vmem:[#allocation2 + $0x8] sm:$0x22] %v329_v28  ;;  %v506_v43 = vpop.f32.mrf.mxu0  ;;  %v614_v44 = vpop.f32.mrf.mxu1  ;;  %10570 = vst [vmem:[#allocation36_spill] sm:$0xff] %v10569_v61  ;;  %v8611_v50 = vld [vmem:[%s10470_s3 + $0x330] ss:$8 sps:$4 sm:$0xff]  }
 0x162   :  { %v6741_v46 = vpack.c.bf16 %v505_v39, %v503_v38  ;;  %v6742_v48 = vpack.c.bf16 %v613_v40, %v611_v33  ;;  %v850_v43 = vld [vmem:[#allocation8 + $0x6] ss:$8 sm:$0x3]  ;;  %10584 = vst [vmem:[#allocation40_spill] sm:$0xff] %v8611_v50 }
 0x163   :  { %v507_v52 = vpop.f32.mrf.mxu0  ;;  %v615_v54 = vpop.f32.mrf.mxu1 }
 0x164   :  { %v517_v58 = vshll.u32 %v6741_v46, 16  ;;  %v524_v59 = vshrl.u32 %v6741_v46, 16  ;;  %v8076_v60 = vrot.slane %v6742_v48, 6  ;;  %v833_v52 = vld [vmem:[#allocation2] sm:$0x88] }
 0x165   :  { %v709_v2 = vpop.f32.mrf.mxu0  ;;  %v817_v26 = vpop.f32.mrf.mxu1 }
 0x166   :  { %v519_v27 = vrot.slane %v517_v58, 7  ;;  %v521_v30 = vld [vmem:[#allocation2] sm:$0x22]  ;;  %v526_v31 = vrot.slane %v524_v59, 6  ;;  %v627_v33 = vsel %vm8069_vm9, %v8076_v60, %v626_v51  ;;  %v710_v34 = vadd.f32 %v709_v2, %v648_v49 }
 0x167   :  { %628 = vst [vmem:[#allocation2] sm:$0x44] %v627_v33  ;;  %v818_v35 = vadd.f32 %v817_v26, %v756_v55  ;;  %v711_v36 = vpop.f32.mrf.mxu0  ;;  %v819_v28 = vpop.f32.mrf.mxu1  ;;  %v10578_v2 = vmov 0  ;;  %v742_v26 = vld [vmem:[#allocation2 + $0x8] sm:$0x88] }
 0x168   :  { %v427_v38 = vld [vmem:[#allocation2 + $0x8] sm:$0x22]  ;;  %v522_v39 = vsel %vm8082_vm12, %v519_v27, %v521_v30  ;;  %v536_v40 = vsel %vm8069_vm9, %v526_v31, %v535_v63  ;;  %v712_v41 = vadd.f32 %v711_v36, %v652_v56  ;;  %v820_v42 = vadd.f32 %v819_v28, %v760_v57 }
 0x169   :  { %v428_v44 = vsel %vm8082_vm12, %v8037_v62, %v427_v38  ;;  %523 = vst [vmem:[#allocation2] sm:$0x22] %v522_v39  ;;  %537 = vst [vmem:[#allocation2 + $0x8] sm:$0x44] %v536_v40  ;;  %v713_v46 = vpop.f32.mrf.mxu0  ;;  %v821_v48 = vpop.f32.mrf.mxu1  ;;  %v10575_v62 = vmov 0  ;;  %v855_v56 = vrot.slane %v850_v43, %v8019_v29  ;;  %v859_v63 = vrot.slane %v850_v43, %v8021_v32 }
 0x16a   :  { %429 = vst [vmem:[#allocation2 + $0x8] sm:$0x22] %v428_v44  ;;  %v6743_v49 = vpack.c.bf16 %v712_v41, %v710_v34  ;;  %v6744_v51 = vpack.c.bf16 %v820_v42, %v818_v35  ;;  %v10576_v62 = vsel %vm8114_vm15, 4294967295, %v10575_v62  ;;  %v10579_v2 = vsel %vm8122_vm8, 4294967295, %v10578_v2  ;;  %v948_v42 = vld [vmem:[#allocation2 + $0x10] sm:$0x11] }
 0x16b   :  { %10577 = vst [vmem:[#allocation37_spill] sm:$0xff] %v10576_v62  ;;  %v714_v54 = vpop.f32.mrf.mxu0  ;;  %v822_v55 = vpop.f32.mrf.mxu1  ;;  %10580 = vst [vmem:[#allocation38_spill] sm:$0xff] %v10579_v2  ;;  %v10581_v46 = vmov 0 }
 0x16c   :  { %v724_v57 = vshll.u32 %v6743_v49, 16  ;;  %v731_v58 = vshrl.u32 %v6743_v49, 16  ;;  %v831_v59 = vrot.slane %v6744_v51, 5  ;;  %v10582_v46 = vsel %vm8137_vm5, 4294967295, %v10581_v46 }
 0x16d   :  { %v916_v27 = vpop.f32.mrf.mxu0  ;;  %10583 = vst [vmem:[#allocation39_spill] sm:$0xff] %v10582_v46  ;;  %v8627_v46 = vld [vmem:[%s10470_s3 + $0x320] ss:$8 sps:$4 sm:$0xff]  }
 0x16e   :  { %v726_v30 = vrot.slane %v724_v57, 6  ;;  %v728_v31 = vld [vmem:[#allocation2] sm:$0x44]  ;;  %v733_v33 = vrot.slane %v731_v58, 5  ;;  %v834_v34 = vsel %vm8114_vm15, %v831_v59, %v833_v52  ;;  %v917_v28 = vadd.f32 %v916_v27, %v855_v56 }
 0x16f   :  { %835 = vst [vmem:[#allocation2] sm:$0x88] %v834_v34  ;;  %v918_v35 = vpop.f32.mrf.mxu0 }
 0x170   :  { %v634_v36 = vld [vmem:[#allocation2 + $0x8] sm:$0x44]  ;;  %v729_v32 = vsel %vm8122_vm8, %v726_v30, %v728_v31  ;;  %v743_v37 = vsel %vm8114_vm15, %v733_v33, %v742_v26  ;;  %v919_v38 = vadd.f32 %v918_v35, %v859_v63 }
 0x171   :  { %v635_v39 = vsel %vm8122_vm8, %v8076_v60, %v634_v36  ;;  %730 = vst [vmem:[#allocation2] sm:$0x44] %v729_v32  ;;  %744 = vst [vmem:[#allocation2 + $0x8] sm:$0x88] %v743_v37  ;;  %v920_v40 = vpop.f32.mrf.mxu0  ;;  %v7299_v32 = vld [vmem:[%s10470_s3 + $0x64] ss:$8 sps:$4 sm:$0xff]  }
 0x172   :  { %636 = vst [vmem:[#allocation2 + $0x8] sm:$0x44] %v635_v39  ;;  %v6745_v41 = vpack.c.bf16 %v919_v38, %v917_v28 }
 0x173   :  { %v921_v43 = vpop.f32.mrf.mxu0 }
 0x174   :  { %v931_v44 = vshll.u32 %v6745_v41, 16  ;;  %v938_v45 = vshrl.u32 %v6745_v41, 16  ;;  %v7300_v41 = vld [vmem:[%s10470_s3 + $0x60] ss:$8 sps:$4 sm:$0xff]   ;;  %v7301_v43 = vld [vmem:[%s10470_s3 + $0x150] ss:$8 sps:$4 sm:$0xff]  }
 0x176   :  { %v933_v48 = vrot.slane %v931_v44, 5  ;;  %v935_v49 = vld [vmem:[#allocation2] sm:$0x88]  ;;  %v949_v60 = vsel %vm7943_vm0, %v938_v45, %v948_v42  ;;  %v7302_v44 = vld [vmem:[%s10470_s3 + $0x54] ss:$8 sps:$4 sm:$0xff]  }
 0x177   :  { %950 = vst [vmem:[#allocation2 + $0x10] sm:$0x11] %v949_v60  ;;  %v7303_v45 = vld [vmem:[%s10470_s3 + $0x144] ss:$8 sps:$4 sm:$0xff]   ;;  %v7306_v60 = vld [vmem:[%s10470_s3 + $0x140] ss:$8 sps:$4 sm:$0xff]  }
 0x178   :  { %v841_v51 = vld [vmem:[#allocation2 + $0x8] sm:$0x88]  ;;  %v936_v52 = vsel %vm8137_vm5, %v933_v48, %v935_v49  ;;  %v7304_v48 = vld [vmem:[%s10470_s3 + $0x50] ss:$8 sps:$4 sm:$0xff]  }
 0x179   :  { %v842_v54 = vsel %vm8137_vm5, %v831_v59, %v841_v51  ;;  %937 = vst [vmem:[#allocation2] sm:$0x88] %v936_v52  ;;  %v7298_v59 = vld [vmem:[%s10470_s3 + $0x70] ss:$8 sps:$4 sm:$0xff]   ;;  %v7305_v49 = vld [vmem:[%s10470_s3 + $0x44] ss:$8 sps:$4 sm:$0xff]  }
 0x17a   :  { %843 = vst [vmem:[#allocation2 + $0x8] sm:$0x88] %v842_v54  ;;  %v7307_v51 = vld [vmem:[%s10470_s3 + $0x134] ss:$8 sps:$4 sm:$0xff]   ;;  %v7308_v52 = vld [vmem:[%s10470_s3 + $0x40] ss:$8 sps:$4 sm:$0xff]  }
 0x17b   :  { %v7309_v54 = vld [vmem:[%s10470_s3 + $0x34] ss:$8 sps:$4 sm:$0xff]  }
 0x180   :  { %v951_v55 = vld [vmem:[#allocation2] sm:$0xff] }
 0x181   :  { %v6140_v56 = vcombine.high %v951_v55, %v951_v55  ;;  %v6139_v57 = vcombine.low %v951_v55, %v951_v55  ;;  %v8147_v58 = vld [vmem:[#allocation2 + $0x8] sm:$0xff]  ;;  %v7310_v55 = vld [vmem:[%s10470_s3 + $0x130] ss:$8 sps:$4 sm:$0xff]  }
 0x182   :  { %v6203_v63 = vcombine.high %v8147_v58, %v8147_v58  ;;  %v8152_v31 = vld [vmem:[#allocation2 + $0xc] ss:$8 sps:$4 sm:$0x1e]   ;;  %v6993_v61 = vld [vmem:[#allocation2] ss:$8 sps:$4 sm:$0x1e]  }
 0x183   :  { %6198 = vmatprep.mubr.msk.bf16.mxu0 %vm1169_vm1, %v6140_v56  ;;  %v1024_v26 = vshll.u32 %v6140_v56, 16  ;;  %v1017_v27 = vshll.u32 %v6139_v57, 16  ;;  %v1022_v33 = vshrl.u32 %v6140_v56, 16  ;;  %v1015_v35 = vshrl.u32 %v6139_v57, 16  ;;  %v7311_v56 = vld [vmem:[%s10470_s3 + $0x124] ss:$8 sps:$4 sm:$0xff]  }
 0x184   :  { %1390 = vmatmul.mubr.bf16.vlgmr.msra.gmra.mxu0 %v6139_v57  ;;  %v1507_v30 = vshll.u32 %v6203_v63, 16  ;;  %v1505_v37 = vshrl.u32 %v6203_v63, 16  ;;  %v10490_v42 = vrot.slane %v8152_v31, 1  ;;  %v7312_v57 = vld [vmem:[%s10470_s3 + $0x30] ss:$8 sps:$4 sm:$0xff]   ;;  %v2069_v62 = vshrl.u32 %v8152_v31, 16 }
 0x185   :  { %1516 = vmatpush1.bf16.msra.mxu0 %v7298_v59  ;;  %v1026_v34 = vrot.slane %v1024_v26, 1  ;;  %v1019_v36 = vrot.slane %v1017_v27, 1  ;;  %v7313_v63 = vld [vmem:[%s10470_s3 + $0x24] ss:$8 sps:$4 sm:$0xff]   ;;  %v7314_v26 = vld [vmem:[%s10470_s3 + $0x120] ss:$8 sps:$4 sm:$0xff]  }
 0x186   :  { %1517 = vmatprep.subr.bf16.mxu0 %v7299_v32  ;;  %v1509_v28 = vrot.slane %v1507_v30, 1  ;;  %v7315_v27 = vld [vmem:[%s10470_s3 + $0x114] ss:$8 sps:$4 sm:$0xff]   ;;  %v7316_v30 = vld [vmem:[%s10470_s3 + $0x20] ss:$8 sps:$4 sm:$0xff]   ;;  %v2072_v2 = vshll.u32 %v8152_v31, 16 }
 0x187   :  { %v8160_v38 = vor.u32 %v1026_v34, %v1022_v33  ;;  %v8162_v39 = vor.u32 %v1019_v36, %v1015_v35  ;;  %v7317_v59 = vld [vmem:[%s10470_s3 + $0x14] ss:$8 sps:$4 sm:$0xff]   ;;  %v7318_v33 = vld [vmem:[%s10470_s3 + $0x110] ss:$8 sps:$4 sm:$0xff]   ;;  %v7319_v34 = vld [vmem:[%s10470_s3 + $0x104] ss:$8 sps:$4 sm:$0xff]  }
 0x188   :  { %v1510_v40 = vor.u32 %v1509_v28, %v1505_v37  ;;  %v7320_v35 = vld [vmem:[%s10470_s3 + $0x10] ss:$8 sps:$4 sm:$0xff]   ;;  %v7321_v36 = vld [vmem:[%s10470_s3 + $0x4] ss:$8 sps:$4 sm:$0xff]   ;;  %v7322_v32 = vld [vmem:[%s10470_s3 + $0x100] ss:$8 sps:$4 sm:$0xff]  }
 0x189   :  { %1518 = vmatpush1.bf16.msra.mxu0 %v7300_v41  ;;  %6169 = vmatprep.mubr.msk.bf16.mxu1 %vm1169_vm1, %v8160_v38  ;;  %v7323_v37 = vld [vmem:[%s10470_s3 + $0xf4] ss:$8 sps:$4 sm:$0xff]   ;;  %v7324_v28 = vld [vmem:[%s10470_s3] ss:$8 sps:$4 sm:$0xff]   ;;  %v7326_v41 = vld [vmem:[%s10470_s3 + $0xf0] ss:$8 sps:$4 sm:$0xff]  }
 0x18a   :  { %1206 = vmatmul.mubr.bf16.vlgmr.msra.gmra.mxu1 %v8162_v39  ;;  %6204 = vmatprep.mubr.msk.bf16.mxu0 %vm1169_vm1, %v1510_v40  ;;  %v7325_v40 = vld [vmem:[%s10470_s3 + $0xd4] ss:$8 sps:$4 sm:$0xff]   ;;  %v10585_v47 = vrot.slane %v8152_v31, 1  ;;  %v2071_v29 = vrot.slane %v2069_v62, 1 }
 0x18b   :  { %1452 = vmatpush1.bf16.msra.mxu1 %v7301_v43  ;;  %6201 = vmatprep.mubr.msk.bf16.mxu1 %vm1169_vm1, %v10490_v42  ;;  %v7327_v43 = vld [vmem:[%s10470_s3 + $0xd0] ss:$8 sps:$4 sm:$0xff]   ;;  %v8598_v42 = vld [vmem:[%s10470_s3 + $0x334] ss:$8 sps:$4 sm:$0xff]  }
 0x18c   :  { %1519 = vmatprep.subr.bf16.mxu0 %v7302_v44  ;;  %1453 = vmatprep.subr.bf16.mxu1 %v7303_v45  ;;  %v7328_v44 = vld [vmem:[%s10470_s3 + $0xe0] ss:$8 sps:$4 sm:$0xff]   ;;  %v8388_v45 = vld [vmem:[%s10470_s3 + $0x1f0] ss:$8 sps:$4 sm:$0xff]  }
 0x18d   :  { %1520 = vmatpush1.bf16.msra.mxu0 %v7304_v48  ;;  %v8394_v48 = vld [vmem:[%s10470_s3 + $0x1e4] ss:$8 sps:$4 sm:$0xff]  }
 0x18e   :  { %1521 = vmatprep.subr.bf16.mxu0 %v7305_v49  ;;  %v8400_v49 = vld [vmem:[%s10470_s3 + $0x2e0] ss:$8 sps:$4 sm:$0xff]  }
 0x18f   :  { %1454 = vmatpush1.bf16.msra.mxu1 %v7306_v60  ;;  %v8406_v60 = vld [vmem:[%s10470_s3 + $0x2d4] ss:$8 sps:$4 sm:$0xff]  }
 0x190   :  { %1455 = vmatprep.subr.bf16.mxu1 %v7307_v51  ;;  %v8412_v51 = vld [vmem:[%s10470_s3 + $0x1e0] ss:$8 sps:$4 sm:$0xff]  }
 0x191   :  { %1522 = vmatpush1.bf16.msra.mxu0 %v7308_v52  ;;  %v8418_v52 = vld [vmem:[%s10470_s3 + $0x1d4] ss:$8 sps:$4 sm:$0xff]  }
 0x192   :  { %1523 = vmatprep.subr.bf16.mxu0 %v7309_v54  ;;  %v8424_v54 = vld [vmem:[%s10470_s3 + $0x2d0] ss:$8 sps:$4 sm:$0xff]  }
 0x193   :  { %1456 = vmatpush1.bf16.msra.mxu1 %v7310_v55  ;;  %v8430_v55 = vld [vmem:[%s10470_s3 + $0x2c4] ss:$8 sps:$4 sm:$0xff]  }
 0x194   :  { %1457 = vmatprep.subr.bf16.mxu1 %v7311_v56  ;;  %v8436_v56 = vld [vmem:[%s10470_s3 + $0x1d0] ss:$8 sps:$4 sm:$0xff]  }
 0x195   :  { %1524 = vmatpush1.bf16.msra.mxu0 %v7312_v57  ;;  %v8442_v57 = vld [vmem:[%s10470_s3 + $0x1c4] ss:$8 sps:$4 sm:$0xff]  }
 0x196   :  { %1525 = vmatprep.subr.bf16.mxu0 %v7313_v63  ;;  %v8448_v63 = vld [vmem:[%s10470_s3 + $0x2c0] ss:$8 sps:$4 sm:$0xff]  }
 0x197   :  { %1458 = vmatpush1.bf16.msra.mxu1 %v7314_v26  ;;  %v8454_v26 = vld [vmem:[%s10470_s3 + $0x2b4] ss:$8 sps:$4 sm:$0xff]  }
 0x198   :  { %1459 = vmatprep.subr.bf16.mxu1 %v7315_v27  ;;  %v8460_v27 = vld [vmem:[%s10470_s3 + $0x1c0] ss:$8 sps:$4 sm:$0xff]  }
 0x199   :  { %1526 = vmatpush1.bf16.msra.mxu0 %v7316_v30  ;;  %v8466_v30 = vld [vmem:[%s10470_s3 + $0x294] ss:$8 sps:$4 sm:$0xff]  }
 0x19a   :  { %1527 = vmatprep.subr.bf16.mxu0 %v7317_v59  ;;  %v8472_v59 = vld [vmem:[%s10470_s3 + $0x2b0] ss:$8 sps:$4 sm:$0xff]  }
 0x19b   :  { %1460 = vmatpush1.bf16.msra.mxu1 %v7318_v33  ;;  %v8478_v33 = vld [vmem:[%s10470_s3 + $0x2a4] ss:$8 sps:$4 sm:$0xff]  }
 0x19c   :  { %1461 = vmatprep.subr.bf16.mxu1 %v7319_v34  ;;  %v8484_v34 = vld [vmem:[%s10470_s3 + $0x290] ss:$8 sps:$4 sm:$0xff]  }
 0x19d   :  { %1528 = vmatpush1.bf16.msra.mxu0 %v7320_v35  ;;  %v8490_v35 = vld [vmem:[%s10470_s3 + $0x284] ss:$8 sps:$4 sm:$0xff]  }
 0x19e   :  { %1529 = vmatprep.subr.bf16.mxu0 %v7321_v36  ;;  %v8496_v36 = vld [vmem:[%s10470_s3 + $0x2a0] ss:$8 sps:$4 sm:$0xff]  }
 0x19f   :  { %1462 = vmatpush1.bf16.msra.mxu1 %v7322_v32  ;;  %v8502_v32 = vld [vmem:[%s10470_s3 + $0x374] ss:$8 sps:$4 sm:$0xff]  }
 0x1a0   :  { %1463 = vmatprep.subr.bf16.mxu1 %v7323_v37  ;;  %v8508_v37 = vld [vmem:[%s10470_s3 + $0x280] ss:$8 sps:$4 sm:$0xff]  }
 0x1a1   :  { %1530 = vmatpush1.bf16.msra.mxu0 %v7324_v28  ;;  %v8514_v28 = vld [vmem:[%s10470_s3 + $0x274] ss:$8 sps:$4 sm:$0xff]  }
 0x1a2   :  { %1535 = vmatprep.subr.bf16.mxu0 %v7325_v40  ;;  %v8520_v40 = vld [vmem:[%s10470_s3 + $0x370] ss:$8 sps:$4 sm:$0xff]  }
 0x1a3   :  { %1464 = vmatpush1.bf16.msra.mxu1 %v7326_v41  ;;  %v8526_v41 = vld [vmem:[%s10470_s3 + $0x364] ss:$8 sps:$4 sm:$0xff]  }
 0x1a4   :  { %1465 = vmatprep.subr.bf16.mxu1 %v7869_v1  ;;  %v6202_v1 = vcombine.low %v8147_v58, %v8147_v58  ;;  %v8376_v58 = vld [vmem:[%s10470_s3 + $0x2f0] ss:$8 sps:$4 sm:$0xff]  }
 0x1a5   :  { %1536 = vmatpush2.bf16.msra.mxu0 %v7327_v43  ;;  %v8532_v43 = vld [vmem:[%s10470_s3 + $0x270] ss:$8 sps:$4 sm:$0xff]  }
 0x1a6   :  { %1537 = vmatprep.subr.bf16.mxu0 %v7877_v3  ;;  %v1500_v3 = vshll.u32 %v6202_v1, 16 }
 0x1a7   :  { %1466 = vmatpush1.bf16.msra.mxu1 %v7328_v44  ;;  %v8538_v44 = vld [vmem:[%s10470_s3 + $0x264] ss:$8 sps:$4 sm:$0xff]  }
 0x1a8   :  { %1471 = vmatprep.subr.bf16.mxu1 %v7888_v5  ;;  %v8281_v5 = vld [vmem:[%s10470_s3 + $0x234] ss:$8 sps:$4 sm:$0xff]  }
 0x1a9   :  { %1538 = vmatpush2.bf16.msra.mxu0 %v7883_v4  ;;  %v1502_v4 = vrot.slane %v1500_v3, 1  ;;  %v8550_v3 = vld [vmem:[%s10470_s3 + $0x354] ss:$8 sps:$4 sm:$0xff]  }
 0x1aa   :  { %1539 = vmatprep.subr.bf16.mxu0 %v7896_v6  ;;  %v1498_v6 = vshrl.u32 %v6202_v1, 16  ;;  %v8544_v1 = vld [vmem:[%s10470_s3 + $0x360] ss:$8 sps:$4 sm:$0xff]  }
 0x1ab   :  { %1472 = vmatpush2.bf16.msra.mxu1 %v7902_v7  ;;  %v8289_v7 = vld [vmem:[%s10470_s3 + $0x230] ss:$8 sps:$4 sm:$0xff]  }
 0x1ac   :  { %1473 = vmatprep.subr.bf16.mxu1 %v7914_v9  ;;  %v8295_v9 = vld [vmem:[%s10470_s3 + $0x224] ss:$8 sps:$4 sm:$0xff]  }
 0x1ad   :  { %1540 = vmatpush2.bf16.msra.mxu0 %v7909_v8  ;;  %v1503_v8 = vor.u32 %v1502_v4, %v1498_v6  ;;  %v8556_v4 = vld [vmem:[%s10470_s3 + $0x260] ss:$8 sps:$4 sm:$0xff]   ;;  %v8562_v6 = vld [vmem:[%s10470_s3 + $0x254] ss:$8 sps:$4 sm:$0xff]  }
 0x1ae   :  { %1541 = vmatprep.subr.bf16.mxu0 %v7925_v11  ;;  %v8304_v11 = vld [vmem:[%s10470_s3 + $0x314] ss:$8 sps:$4 sm:$0xff]  }
 0x1af   :  { %1474 = vmatpush2.bf16.msra.mxu1 %v7920_v10  ;;  %v8299_v10 = vld [vmem:[#allocation2 + $0x8] ss:$8 sps:$4 sm:$0x1e]  }
 0x1b0   :  { %1475 = vmatprep.subr.bf16.mxu1 %v7941_v13  ;;  %v6916_v13 = vld [vmem:[#allocation2 + $0x4] ss:$8 sps:$4 sm:$0x1e]  }
 0x1b1   :  { %1542 = vmatpush2.bf16.msra.mxu0 %v7932_v12  ;;  %v8312_v12 = vld [vmem:[%s10470_s3 + $0x220] ss:$8 sps:$4 sm:$0xff]  }
 0x1b2   :  { %1543 = vmatprep.subr.bf16.mxu0 %v7951_v15  ;;  %v8318_v15 = vld [vmem:[%s10470_s3 + $0x214] ss:$8 sps:$4 sm:$0xff]  }
 0x1b3   :  { %1476 = vmatpush2.bf16.msra.mxu1 %v7957_v16  ;;  %v8324_v16 = vld [vmem:[%s10470_s3 + $0x310] ss:$8 sps:$4 sm:$0xff]  }
 0x1b4   :  { %1477 = vmatprep.subr.bf16.mxu1 %v7969_v18  ;;  %v8331_v18 = vld [vmem:[%s10470_s3 + $0x304] ss:$8 sps:$4 sm:$0xff]  }
 0x1b5   :  { %1544 = vmatpush2.bf16.msra.mxu0 %v7964_v17  ;;  %v10489_v17 = vrot.slane %v8299_v10, 1 }
 0x1b6   :  { %1545 = vmatprep.subr.bf16.mxu0 %v7980_v20  ;;  %v8337_v20 = vld [vmem:[%s10470_s3 + $0x210] ss:$8 sps:$4 sm:$0xff]  }
 0x1b7   :  { %1478 = vmatpush2.bf16.msra.mxu1 %v7975_v19  ;;  %v1659_v19 = vrot.slane %v6916_v13, 1  ;;  %v8574_v13 = vld [vmem:[%s10470_s3 + $0x344] ss:$8 sps:$4 sm:$0xff]  }
 0x1b8   :  { %1479 = vmatprep.subr.bf16.mxu1 %v7990_v22  ;;  %v8352_v22 = vld [vmem:[%s10470_s3 + $0x300] ss:$8 sps:$4 sm:$0xff]  }
 0x1b9   :  { %1546 = vmatpush2.bf16.msra.mxu0 %v7985_v21  ;;  %v8345_v21 = vld [vmem:[%s10470_s3 + $0x204] ss:$8 sps:$4 sm:$0xff]  }
 0x1ba   :  { %1985 = vmatprep.subr.bf16.mxu0 %v8281_v5 }
 0x1bb   :  { %1480 = vmatpush2.bf16.msra.mxu1 %v7999_v23  ;;  %v8358_v23 = vld [vmem:[%s10470_s3 + $0x2f4] ss:$8 sps:$4 sm:$0xff]  }
 0x1bc   :  { %1548 = vmatmul.mubr.bf16.vlgmr.msra.gmra.mxu0 %v1503_v8  ;;  %1481 = vmatprep.subr.bf16.mxu1 %v8008_v24  ;;  %v8364_v24 = vld [vmem:[%s10470_s3 + $0x200] ss:$8 sps:$4 sm:$0xff]   ;;  %v8568_v8 = vld [vmem:[%s10470_s3 + $0x350] ss:$8 sps:$4 sm:$0xff]  }
 0x1bd   :  { %1986 = vmatpush1.bf16.msra.mxu0 %v8289_v7  ;;  %6320 = vmatprep.mubr.msk.bf16.mxu0 %vm1169_vm1, %v8160_v38  ;;  %v8382_v38 = vld [vmem:[%s10470_s3 + $0x2e4] ss:$8 sps:$4 sm:$0xff]  }
 0x1be   :  { %1987 = vmatprep.subr.bf16.mxu0 %v8295_v9 }
 0x1bf   :  { %1482 = vmatpush2.bf16.msra.mxu1 %v8013_v25  ;;  %v8370_v25 = vld [vmem:[%s10470_s3 + $0x1f4] ss:$8 sps:$4 sm:$0xff]  }
 0x1c0   :  { %1804 = vmatprep.subr.bf16.mxu1 %v8304_v11 }
 0x1c1   :  { %1988 = vmatpush1.bf16.msra.mxu0 %v8312_v12 }
 0x1c2   :  { %1484 = vmatmul.mubr.bf16.vlgmr.msra.gmra.mxu1 %v10489_v17  ;;  %1989 = vmatprep.subr.bf16.mxu0 %v8318_v15  ;;  %v8592_v17 = vld [vmem:[%s10470_s3 + $0x340] ss:$8 sps:$4 sm:$0xff]  }
 0x1c3   :  { %1805 = vmatpush1.bf16.msra.mxu1 %v8324_v16  ;;  %6291 = vmatprep.mubr.msk.bf16.mxu1 %vm1169_vm1, %v1659_v19  ;;  %v8580_v19 = vld [vmem:[%s10470_s3 + $0x250] ss:$8 sps:$4 sm:$0xff]  }
 0x1c4   :  { %1806 = vmatprep.subr.bf16.mxu1 %v8331_v18 }
 0x1c5   :  { %1990 = vmatpush1.bf16.msra.mxu0 %v8337_v20 }
 0x1c6   :  { %1991 = vmatprep.subr.bf16.mxu0 %v8345_v21 }
 0x1c7   :  { %1807 = vmatpush1.bf16.msra.mxu1 %v8352_v22 }
 0x1c8   :  { %1808 = vmatprep.subr.bf16.mxu1 %v8358_v23 }
 0x1c9   :  { %1992 = vmatpush1.bf16.msra.mxu0 %v8364_v24 }
 0x1ca   :  { %1993 = vmatprep.subr.bf16.mxu0 %v8370_v25 }
 0x1cb   :  { %1809 = vmatpush1.bf16.msra.mxu1 %v8376_v58 }
 0x1cc   :  { %1810 = vmatprep.subr.bf16.mxu1 %v8382_v38 }
 0x1cd   :  { %1994 = vmatpush1.bf16.msra.mxu0 %v8388_v45 }
 0x1ce   :  { %1995 = vmatprep.subr.bf16.mxu0 %v8394_v48 }
 0x1cf   :  { %1811 = vmatpush1.bf16.msra.mxu1 %v8400_v49 }
 0x1d0   :  { %1812 = vmatprep.subr.bf16.mxu1 %v8406_v60 }
 0x1d1   :  { %1996 = vmatpush1.bf16.msra.mxu0 %v8412_v51 }
 0x1d2   :  { %1997 = vmatprep.subr.bf16.mxu0 %v8418_v52 }
 0x1d3   :  { %1813 = vmatpush1.bf16.msra.mxu1 %v8424_v54 }
 0x1d4   :  { %1814 = vmatprep.subr.bf16.mxu1 %v8430_v55 }
 0x1d5   :  { %1998 = vmatpush1.bf16.msra.mxu0 %v8436_v56 }
 0x1d6   :  { %1999 = vmatprep.subr.bf16.mxu0 %v8442_v57 }
 0x1d7   :  { %1815 = vmatpush1.bf16.msra.mxu1 %v8448_v63 }
 0x1d8   :  { %1816 = vmatprep.subr.bf16.mxu1 %v8454_v26 }
 0x1d9   :  { %2000 = vmatpush1.bf16.msra.mxu0 %v8460_v27 }
 0x1da   :  { %2005 = vmatprep.subr.bf16.mxu0 %v8466_v30 }
 0x1db   :  { %1817 = vmatpush1.bf16.msra.mxu1 %v8472_v59 }
 0x1dc   :  { %1818 = vmatprep.subr.bf16.mxu1 %v8478_v33 }
 0x1dd   :  { %2006 = vmatpush2.bf16.msra.mxu0 %v8484_v34 }
 0x1de   :  { %2007 = vmatprep.subr.bf16.mxu0 %v8490_v35 }
 0x1df   :  { %1819 = vmatpush1.bf16.msra.mxu1 %v8496_v36 }
 0x1e0   :  { %1824 = vmatprep.subr.bf16.mxu1 %v8502_v32 }
 0x1e1   :  { %2008 = vmatpush2.bf16.msra.mxu0 %v8508_v37 }
 0x1e2   :  { %2009 = vmatprep.subr.bf16.mxu0 %v8514_v28 }
 0x1e3   :  { %1825 = vmatpush2.bf16.msra.mxu1 %v8520_v40 }
 0x1e4   :  { %1826 = vmatprep.subr.bf16.mxu1 %v8526_v41 }
 0x1e5   :  { %2010 = vmatpush2.bf16.msra.mxu0 %v8532_v43 }
 0x1e6   :  { %2011 = vmatprep.subr.bf16.mxu0 %v8538_v44 }
 0x1e7   :  { %1827 = vmatpush2.bf16.msra.mxu1 %v8544_v1 }
 0x1e8   :  { %1828 = vmatprep.subr.bf16.mxu1 %v8550_v3 }
 0x1e9   :  { %2012 = vmatpush2.bf16.msra.mxu0 %v8556_v4 }
 0x1ea   :  { %2013 = vmatprep.subr.bf16.mxu0 %v8562_v6 }
 0x1eb   :  { %1829 = vmatpush2.bf16.msra.mxu1 %v8568_v8 }
 0x1ec   :  { %1830 = vmatprep.subr.bf16.mxu1 %v8574_v13 }
 0x1ed   :  { %2014 = vmatpush2.bf16.msra.mxu0 %v8580_v19 }
 0x1ee   :  { %2015 = vmatprep.subr.bf16.mxu0 %v8586_v0 }
 0x1ef   :  { %1831 = vmatpush2.bf16.msra.mxu1 %v8592_v17 }
 0x1f0   :  { %1832 = vmatprep.subr.bf16.mxu1 %v8598_v42 }
 0x1f1   :  { %2016 = vmatpush2.bf16.msra.mxu0 %v8604_v14 }
 0x1f2   :  { %2121 = vmatprep.subr.bf16.mxu0 %v8281_v5  ;;  %v2074_v5 = vrot.slane %v2072_v2, 2 }
 0x1f3   :  { %1833 = vmatpush2.bf16.msra.mxu1 %v8611_v50  ;;  %v1658_v50 = vrot.slane %v6993_v61, 1  ;;  %v10587_v61 = vrot.slane %v8299_v10, 1 }
 0x1f4   :  { %2018 = vmatmul.mubr.bf16.vlgmr.msra.gmra.mxu0 %v8162_v39  ;;  %1834 = vmatprep.subr.bf16.mxu1 %v8617_v53  ;;  %v2075_v39 = vor.u32 %v2074_v5, %v2071_v29  ;;  %v2064_v29 = vshll.u32 %v8299_v10, 16 }
 0x1f5   :  { %2122 = vmatpush1.bf16.msra.mxu0 %v8289_v7  ;;  %6322 = vmatprep.mubr.msk.bf16.mxu0 %vm1169_vm1, %v10585_v47  ;;  %v2061_v47 = vshrl.u32 %v8299_v10, 16  ;;  %v10510_v10 = vmov 0.0  }
 0x1f6   :  { %2123 = vmatprep.subr.bf16.mxu0 %v8295_v9  ;;  %v2066_v2 = vrot.slane %v2064_v29, 2 }
 0x1f7   :  { %1835 = vmatpush2.bf16.msra.mxu1 %v8627_v46  ;;  %v2063_v62 = vrot.slane %v2061_v47, 1 }
 0x1f8   :  { %2080 = vmatprep.subr.bf16.mxu1 %v8304_v11 }
 0x1f9   :  { %2124 = vmatpush1.bf16.msra.mxu0 %v8312_v12 }
 0x1fa   :  { %1837 = vmatmul.mubr.bf16.vlgmr.msra.gmra.mxu1 %v1658_v50  ;;  %2125 = vmatprep.subr.bf16.mxu0 %v8318_v15  ;;  %v10586_v50 = vld [vmem:[#allocation40_spill] sm:$0xff] }
 0x1fb   :  { %2081 = vmatpush1.bf16.msra.mxu1 %v8324_v16  ;;  %6321 = vmatprep.mubr.msk.bf16.mxu1 %vm1169_vm1, %v2075_v39  ;;  %v2209_v16 = vld [vmem:[%s10471_s4 + $0x68] sm:$0xff] }
 0x1fc   :  { %2082 = vmatprep.subr.bf16.mxu1 %v8331_v18  ;;  %v2208_v18 = vld [vmem:[%s10471_s4 + $0x60] sm:$0xff] }
 0x1fd   :  { %2126 = vmatpush1.bf16.msra.mxu0 %v8337_v20 }
 0x1fe   :  { %2127 = vmatprep.subr.bf16.mxu0 %v8345_v21  ;;  %v2207_v21 = vld [vmem:[%s10471_s4 + $0x58] sm:$0xff] }
 0x1ff   :  { %2083 = vmatpush1.bf16.msra.mxu1 %v8352_v22  ;;  %v2206_v22 = vld [vmem:[%s10471_s4 + $0x50] sm:$0xff] }
 0x200   :  { %2084 = vmatprep.subr.bf16.mxu1 %v8358_v23  ;;  %v2205_v23 = vld [vmem:[%s10471_s4 + $0x48] sm:$0xff] }
 0x201   :  { %2128 = vmatpush1.bf16.msra.mxu0 %v8364_v24  ;;  %v2204_v24 = vld [vmem:[%s10471_s4 + $0x40] sm:$0xff] }
 0x202   :  { %2129 = vmatprep.subr.bf16.mxu0 %v8370_v25  ;;  %v2203_v25 = vld [vmem:[%s10471_s4 + $0x38] sm:$0xff] }
 0x203   :  { %2085 = vmatpush1.bf16.msra.mxu1 %v8376_v58  ;;  %v2202_v58 = vld [vmem:[%s10471_s4 + $0x30] sm:$0xff] }
 0x204   :  { %2086 = vmatprep.subr.bf16.mxu1 %v8382_v38  ;;  %v2201_v38 = vld [vmem:[%s10471_s4 + $0x28] sm:$0xff] }
 0x205   :  { %2130 = vmatpush1.bf16.msra.mxu0 %v8388_v45  ;;  %v2200_v45 = vld [vmem:[%s10471_s4 + $0x20] sm:$0xff] }
 0x206   :  { %2131 = vmatprep.subr.bf16.mxu0 %v8394_v48  ;;  %v2199_v48 = vld [vmem:[%s10471_s4 + $0x18] sm:$0xff] }
 0x207   :  { %2087 = vmatpush1.bf16.msra.mxu1 %v8400_v49  ;;  %v2198_v49 = vld [vmem:[%s10471_s4 + $0x10] sm:$0xff] }
 0x208   :  { %2088 = vmatprep.subr.bf16.mxu1 %v8406_v60  ;;  %v2197_v60 = vld [vmem:[%s10471_s4 + $0x8] sm:$0xff] }
 0x209   :  { %2132 = vmatpush1.bf16.msra.mxu0 %v8412_v51  ;;  %v2196_v51 = vld [vmem:[%s10471_s4] sm:$0xff] }
 0x20a   :  { %2133 = vmatprep.subr.bf16.mxu0 %v8418_v52  ;;  %v2223_v52 = vld [vmem:[%s10471_s4 + $0xd8] sm:$0xff] }
 0x20b   :  { %2089 = vmatpush1.bf16.msra.mxu1 %v8424_v54  ;;  %v2222_v54 = vld [vmem:[%s10471_s4 + $0xd0] sm:$0xff] }
 0x20c   :  { %2090 = vmatprep.subr.bf16.mxu1 %v8430_v55  ;;  %v2221_v55 = vld [vmem:[%s10471_s4 + $0xc8] sm:$0xff] }
 0x20d   :  { %2134 = vmatpush1.bf16.msra.mxu0 %v8436_v56  ;;  %v2220_v56 = vld [vmem:[%s10471_s4 + $0xc0] sm:$0xff] }
 0x20e   :  { %2135 = vmatprep.subr.bf16.mxu0 %v8442_v57 }
 0x20f   :  { %2091 = vmatpush1.bf16.msra.mxu1 %v8448_v63  ;;  %v2219_v63 = vld [vmem:[%s10471_s4 + $0xb8] sm:$0xff] }
 0x210   :  { %2092 = vmatprep.subr.bf16.mxu1 %v8454_v26 }
 0x211   :  { %2136 = vmatpush1.bf16.msra.mxu0 %v8460_v27  ;;  %v2218_v27 = vld [vmem:[%s10471_s4 + $0xb0] sm:$0xff] }
 0x212   :  { %2141 = vmatprep.subr.bf16.mxu0 %v8466_v30 }
 0x213   :  { %2093 = vmatpush1.bf16.msra.mxu1 %v8472_v59  ;;  %v2217_v59 = vld [vmem:[%s10471_s4 + $0xa8] sm:$0xff] }
 0x214   :  { %2094 = vmatprep.subr.bf16.mxu1 %v8478_v33  ;;  %v2216_v33 = vld [vmem:[%s10471_s4 + $0xa0] sm:$0xff] }
 0x215   :  { %2142 = vmatpush2.bf16.msra.mxu0 %v8484_v34 }
 0x216   :  { %2143 = vmatprep.subr.bf16.mxu0 %v8490_v35 }
 0x217   :  { %2095 = vmatpush1.bf16.msra.mxu1 %v8496_v36  ;;  %v2215_v36 = vld [vmem:[%s10471_s4 + $0x98] sm:$0xff] }
 0x218   :  { %2100 = vmatprep.subr.bf16.mxu1 %v8502_v32 }
 0x219   :  { %2144 = vmatpush2.bf16.msra.mxu0 %v8508_v37 }
 0x21a   :  { %2145 = vmatprep.subr.bf16.mxu0 %v8514_v28  ;;  %v2214_v28 = vld [vmem:[%s10471_s4 + $0x90] sm:$0xff] }
 0x21b   :  { %2101 = vmatpush2.bf16.msra.mxu1 %v8520_v40 }
 0x21c   :  { %2102 = vmatprep.subr.bf16.mxu1 %v8526_v41 }
 0x21d   :  { %2146 = vmatpush2.bf16.msra.mxu0 %v8532_v43  ;;  %v2213_v43 = vld [vmem:[%s10471_s4 + $0x88] sm:$0xff] }
 0x21e   :  { %2147 = vmatprep.subr.bf16.mxu0 %v8538_v44 }
 0x21f   :  { %2103 = vmatpush2.bf16.msra.mxu1 %v8544_v1  ;;  %v2212_v1 = vld [vmem:[%s10471_s4 + $0x80] sm:$0xff] }
 0x220   :  { %2104 = vmatprep.subr.bf16.mxu1 %v8550_v3 }
 0x221   :  { %2148 = vmatpush2.bf16.msra.mxu0 %v8556_v4 }
 0x222   :  { %2149 = vmatprep.subr.bf16.mxu0 %v8562_v6 }
 0x223   :  { %2105 = vmatpush2.bf16.msra.mxu1 %v8568_v8 }
 0x224   :  { %2106 = vmatprep.subr.bf16.mxu1 %v8574_v13 }
 0x225   :  { %2150 = vmatpush2.bf16.msra.mxu0 %v8580_v19 }
 0x226   :  { %2151 = vmatprep.subr.bf16.mxu0 %v8586_v0  ;;  %v2067_v0 = vor.u32 %v2066_v2, %v2063_v62 }
 0x227   :  { %2107 = vmatpush2.bf16.msra.mxu1 %v8592_v17 }
 0x228   :  { %2108 = vmatprep.subr.bf16.mxu1 %v8598_v42 }
 0x229   :  { %2152 = vmatpush2.bf16.msra.mxu0 %v8604_v14  ;;  %v2211_v14 = vld [vmem:[%s10471_s4 + $0x78] sm:$0xff] }
 0x22a   :  { %2302 = vmatprep.subr.mxu0 %v10510_v10 }
 0x22b   :  { %2109 = vmatpush2.bf16.msra.mxu1 %v10586_v50 }
 0x22c   :  { %2154 = vmatmul.mubr.bf16.vlgmr.msra.gmra.mxu0 %v10587_v61  ;;  %2110 = vmatprep.subr.bf16.mxu1 %v8617_v53  ;;  %v2210_v53 = vld [vmem:[%s10471_s4 + $0x70] sm:$0xff] }
 0x22d   :  { %2303 = vmatpush1.msra.mxu0 %v2211_v14 }
 0x22e   :  { %2304 = vmatprep.subr.mxu0 %v10510_v10 }
 0x22f   :  { %2111 = vmatpush2.bf16.msra.mxu1 %v8627_v46  ;;  %2305 = vmatpush1.msra.mxu0 %v2210_v53 }
 0x230   :  { %2227 = vmatprep.subr.mxu1 %v10510_v10  ;;  %2306 = vmatprep.subr.mxu0 %v10510_v10 }
 0x231   :  { %2307 = vmatpush1.msra.mxu0 %v2209_v16 }
 0x232   :  { %2113 = vmatmul.mubr.bf16.vlgmr.msra.gmra.mxu1 %v2067_v0  ;;  %2308 = vmatprep.subr.mxu0 %v10510_v10 }
 0x233   :  { %2228 = vmatpush1.msra.mxu1 %v2211_v14  ;;  %2309 = vmatpush1.msra.mxu0 %v2208_v18 }
 0x234   :  { %2229 = vmatprep.subr.mxu1 %v10510_v10  ;;  %2310 = vmatprep.subr.mxu0 %v10510_v10 }
 0x235   :  { %2230 = vmatpush1.msra.mxu1 %v2210_v53  ;;  %2311 = vmatpush1.msra.mxu0 %v2207_v21 }
 0x236   :  { %2231 = vmatprep.subr.mxu1 %v10510_v10  ;;  %2312 = vmatprep.subr.mxu0 %v10510_v10 }
 0x237   :  { %2232 = vmatpush1.msra.mxu1 %v2209_v16  ;;  %2313 = vmatpush1.msra.mxu0 %v2206_v22 }
 0x238   :  { %2233 = vmatprep.subr.mxu1 %v10510_v10  ;;  %2314 = vmatprep.subr.mxu0 %v10510_v10 }
 0x239   :  { %2234 = vmatpush1.msra.mxu1 %v2208_v18  ;;  %2315 = vmatpush1.msra.mxu0 %v2205_v23 }
 0x23a   :  { %2235 = vmatprep.subr.mxu1 %v10510_v10  ;;  %2316 = vmatprep.subr.mxu0 %v10510_v10 }
 0x23b   :  { %2236 = vmatpush1.msra.mxu1 %v2207_v21  ;;  %2317 = vmatpush1.msra.mxu0 %v2204_v24 }
 0x23c   :  { %2237 = vmatprep.subr.mxu1 %v10510_v10  ;;  %2318 = vmatprep.subr.mxu0 %v10510_v10 }
 0x23d   :  { %2238 = vmatpush1.msra.mxu1 %v2206_v22  ;;  %2319 = vmatpush1.msra.mxu0 %v2203_v25 }
 0x23e   :  { %2239 = vmatprep.subr.mxu1 %v10510_v10  ;;  %2320 = vmatprep.subr.mxu0 %v10510_v10 }
 0x23f   :  { %2240 = vmatpush1.msra.mxu1 %v2205_v23  ;;  %2321 = vmatpush1.msra.mxu0 %v2202_v58 }
 0x240   :  { %2241 = vmatprep.subr.mxu1 %v10510_v10  ;;  %2322 = vmatprep.subr.mxu0 %v10510_v10 }
 0x241   :  { %2242 = vmatpush1.msra.mxu1 %v2204_v24  ;;  %2323 = vmatpush1.msra.mxu0 %v2201_v38 }
 0x242   :  { %2243 = vmatprep.subr.mxu1 %v10510_v10  ;;  %2324 = vmatprep.subr.mxu0 %v10510_v10 }
 0x243   :  { %2244 = vmatpush1.msra.mxu1 %v2203_v25  ;;  %2325 = vmatpush1.msra.mxu0 %v2200_v45 }
 0x244   :  { %v1391_v31 = vpop.f32.mrf.mxu0  ;;  %2245 = vmatprep.subr.mxu1 %v10510_v10  ;;  %2326 = vmatprep.subr.mxu0 %v10510_v10 }
 0x245   :  { %2246 = vmatpush1.msra.mxu1 %v2202_v58  ;;  %2327 = vmatpush1.msra.mxu0 %v2199_v48 }
 0x246   :  { %v1393_v42 = vpop.f32.mrf.mxu0  ;;  %2247 = vmatprep.subr.mxu1 %v10510_v10  ;;  %2328 = vmatprep.subr.mxu0 %v10510_v10 }
 0x247   :  { %2248 = vmatpush1.msra.mxu1 %v2201_v38  ;;  %2329 = vmatpush1.msra.mxu0 %v2198_v49 }
 0x248   :  { %v1395_v7 = vpop.f32.mrf.mxu0  ;;  %2249 = vmatprep.subr.mxu1 %v10510_v10  ;;  %2330 = vmatprep.subr.mxu0 %v10510_v10 }
 0x249   :  { %2250 = vmatpush1.msra.mxu1 %v2200_v45  ;;  %2331 = vmatpush1.msra.mxu0 %v2197_v60 }
 0x24a   :  { %v1207_v9 = vpop.f32.mrf.mxu1  ;;  %v1396_v11 = vpop.f32.mrf.mxu0  ;;  %2251 = vmatprep.subr.mxu1 %v10510_v10  ;;  %2332 = vmatprep.subr.mxu0 %v10510_v10 }
 0x24b   :  { %v8698_v12 = vadd.f32 %v1391_v31, %v1207_v9  ;;  %2252 = vmatpush1.msra.mxu1 %v2199_v48  ;;  %2333 = vmatpush1.msra.mxu0 %v2196_v51 }
 0x24c   :  { %v1209_v46 = vpop.f32.mrf.mxu1  ;;  %2253 = vmatprep.subr.mxu1 %v10510_v10  ;;  %2342 = vmatprep.subr.mxu0 %v10510_v10 }
 0x24d   :  { %v8705_v15 = vadd.f32 %v1393_v42, %v1209_v46  ;;  %2254 = vmatpush1.msra.mxu1 %v2198_v49  ;;  %2343 = vmatpush2.msra.mxu0 %v2223_v52  ;;  %v1399_v47 = vsel %vm1398_vm14, %v8698_v12, 0.0  ;;  %v1416_v29 = vmul.f32 %v8698_v12, %v8698_v12 }
 0x24e   :  { %v1211_v17 = vpop.f32.mrf.mxu1  ;;  %2255 = vmatprep.subr.mxu1 %v10510_v10  ;;  %2344 = vmatprep.subr.mxu0 %v10510_v10  ;;  %v1400_v62 = vrot.slane %v1399_v47, 4 }
 0x24f   :  { %2256 = vmatpush1.msra.mxu1 %v2197_v60  ;;  %2345 = vmatpush2.msra.mxu0 %v2222_v54  ;;  %v1407_v50 = vsel %vm1406_vm6, %v8705_v15, 0.0  ;;  %v1417_v61 = vmul.f32 %v8705_v15, %v8705_v15  ;;  %v1418_v0 = vsel %vm1398_vm14, %v1416_v29, 0.0 }
 0x250   :  { %v1212_v20 = vpop.f32.mrf.mxu1  ;;  %2257 = vmatprep.subr.mxu1 %v10510_v10  ;;  %2346 = vmatprep.subr.mxu0 %v10510_v10  ;;  %v1408_v2 = vrot.slane %v1407_v50, 4  ;;  %v1401_v11 = vadd.f32 %v1400_v62, %v1399_v47  ;;  %v1419_v14 = vrot.slane %v1418_v0, 4 }
 0x251   :  { %2258 = vmatpush1.msra.mxu1 %v2196_v51  ;;  %2347 = vmatpush2.msra.mxu0 %v2221_v55  ;;  %v1425_v42 = vsel %vm1406_vm6, %v1417_v61, 0.0 }
 0x252   :  { %2267 = vmatprep.subr.mxu1 %v10510_v10  ;;  %2348 = vmatprep.subr.mxu0 %v10510_v10  ;;  %v1409_v53 = vadd.f32 %v1408_v2, %v1407_v50  ;;  %v1426_v17 = vrot.slane %v1425_v42, 4  ;;  %v1402_v23 = vrot.slane %v1401_v11, 2  ;;  %v1420_v58 = vadd.f32 %v1419_v14, %v1418_v0 }
 0x253   :  { %2268 = vmatpush2.msra.mxu1 %v2223_v52  ;;  %2349 = vmatpush2.msra.mxu0 %v2220_v56 }
 0x254   :  { %2269 = vmatprep.subr.mxu1 %v10510_v10  ;;  %2350 = vmatprep.subr.mxu0 %v10510_v10  ;;  %v1410_v38 = vrot.slane %v1409_v53, 2  ;;  %v1427_v49 = vadd.f32 %v1426_v17, %v1425_v42 }
 0x255   :  { %2270 = vmatpush2.msra.mxu1 %v2222_v54  ;;  %2351 = vmatpush2.msra.mxu0 %v2219_v63 }
 0x256   :  { %2271 = vmatprep.subr.mxu1 %v10510_v10  ;;  %2352 = vmatprep.subr.mxu0 %v10510_v10 }
 0x257   :  { %2272 = vmatpush2.msra.mxu1 %v2221_v55  ;;  %2353 = vmatpush2.msra.mxu0 %v2218_v27 }
 0x258   :  { %2273 = vmatprep.subr.mxu1 %v10510_v10  ;;  %2354 = vmatprep.subr.mxu0 %v10510_v10 }
 0x259   :  { %2274 = vmatpush2.msra.mxu1 %v2220_v56  ;;  %2355 = vmatpush2.msra.mxu0 %v2217_v59  ;;  %v1403_v56 = vadd.f32 %v1402_v23, %v1401_v11 }
 0x25a   :  { %2275 = vmatprep.subr.mxu1 %v10510_v10  ;;  %2356 = vmatprep.subr.mxu0 %v10510_v10 }
 0x25b   :  { %2276 = vmatpush2.msra.mxu1 %v2219_v63  ;;  %2357 = vmatpush2.msra.mxu0 %v2216_v33 }
 0x25c   :  { %2277 = vmatprep.subr.mxu1 %v10510_v10  ;;  %2358 = vmatprep.subr.mxu0 %v10510_v10 }
 0x25d   :  { %2278 = vmatpush2.msra.mxu1 %v2218_v27  ;;  %2359 = vmatpush2.msra.mxu0 %v2215_v36  ;;  %v1421_v27 = vrot.slane %v1420_v58, 2 }
 0x25e   :  { %2279 = vmatprep.subr.mxu1 %v10510_v10  ;;  %2360 = vmatprep.subr.mxu0 %v10510_v10 }
 0x25f   :  { %2280 = vmatpush2.msra.mxu1 %v2217_v59  ;;  %2361 = vmatpush2.msra.mxu0 %v2214_v28 }
 0x260   :  { %2281 = vmatprep.subr.mxu1 %v10510_v10  ;;  %2362 = vmatprep.subr.mxu0 %v10510_v10 }
 0x261   :  { %2282 = vmatpush2.msra.mxu1 %v2216_v33  ;;  %2363 = vmatpush2.msra.mxu0 %v2213_v43  ;;  %v1428_v33 = vrot.slane %v1427_v49, 2 }
 0x262   :  { %2283 = vmatprep.subr.mxu1 %v10510_v10  ;;  %2364 = vmatprep.subr.mxu0 %v10510_v10 }
 0x263   :  { %2284 = vmatpush2.msra.mxu1 %v2215_v36  ;;  %2365 = vmatpush2.msra.mxu0 %v2212_v1 }
 0x264   :  { %2285 = vmatprep.subr.mxu1 %v10510_v10 }
 0x265   :  { %2286 = vmatpush2.msra.mxu1 %v2214_v28 }
 0x266   :  { %2287 = vmatprep.subr.mxu1 %v10510_v10 }
 0x267   :  { %2288 = vmatpush2.msra.mxu1 %v2213_v43 }
 0x268   :  { %2289 = vmatprep.subr.mxu1 %v10510_v10 }
 0x269   :  { %2290 = vmatpush2.msra.mxu1 %v2212_v1 }
 0x27c   :  { %v1549_v57 = vpop.f32.mrf.mxu0 }
 0x27e   :  { %v1551_v26 = vpop.f32.mrf.mxu0 }
 0x280   :  { %v1553_v30 = vpop.f32.mrf.mxu0 }
 0x281   :  { %v1411_v30 = vadd.f32 %v1410_v38, %v1409_v53 }
 0x282   :  { %v1485_v34 = vpop.f32.mrf.mxu1  ;;  %v1554_v35 = vpop.f32.mrf.mxu0 }
 0x283   :  { %v8822_v32 = vadd.f32 %v1549_v57, %v1485_v34 }
 0x284   :  { %v1487_v37 = vpop.f32.mrf.mxu1 }
 0x285   :  { %v8829_v40 = vadd.f32 %v1551_v26, %v1487_v37  ;;  %v1572_v46 = vmul.f32 %v8822_v32, %v8822_v32  ;;  %v1556_v20 = vsel %vm1398_vm14, %v8822_v32, 0.0 }
 0x286   :  { %v1489_v41 = vpop.f32.mrf.mxu1  ;;  %v1557_v60 = vrot.slane %v1556_v20, 4 }
 0x287   :  { %v1573_v7 = vmul.f32 %v8829_v40, %v8829_v40  ;;  %v1563_v16 = vsel %vm1406_vm6, %v8829_v40, 0.0  ;;  %v1574_v45 = vsel %vm1398_vm14, %v1572_v46, 0.0  ;;  %v1404_v41 = vrot.slane %v1403_v56, 1 }
 0x288   :  { %v1490_v44 = vpop.f32.mrf.mxu1  ;;  %v1564_v24 = vrot.slane %v1563_v16, 4  ;;  %v1575_v57 = vrot.slane %v1574_v45, 4  ;;  %v1558_v34 = vadd.f32 %v1557_v60, %v1556_v20 }
 0x289   :  { %v1581_v21 = vsel %vm1406_vm6, %v1573_v7, 0.0  ;;  %v8881_v50 = vadd.f32 %v1404_v41, %v1403_v56 }
 0x28a   :  { %v1582_v51 = vrot.slane %v1581_v21, 4  ;;  %v1565_v63 = vadd.f32 %v1564_v24, %v1563_v16  ;;  %v1576_v43 = vadd.f32 %v1575_v57, %v1574_v45 }
 0x28c   :  { %v1583_v35 = vadd.f32 %v1582_v51, %v1581_v21  ;;  %v1566_v44 = vrot.slane %v1565_v63, 2  ;;  %v1577_v61 = vrot.slane %v1576_v43, 2 }
 0x28e   :  { %v1567_v62 = vadd.f32 %v1566_v44, %v1565_v63 }
 0x2b4   :  { %v2019_v3 = vpop.f32.mrf.mxu0 }
 0x2b6   :  { %v2021_v4 = vpop.f32.mrf.mxu0 }
 0x2b8   :  { %v2023_v6 = vpop.f32.mrf.mxu0 }
 0x2b9   :  { %v1412_v6 = vrot.slane %v1411_v30, 1 }
 0x2ba   :  { %v1838_v8 = vpop.f32.mrf.mxu1  ;;  %v2024_v13 = vpop.f32.mrf.mxu0 }
 0x2bb   :  { %v8857_v9 = vadd.f32 %v2019_v3, %v1838_v8  ;;  %v8879_v13 = vadd.f32 %v1428_v33, %v1427_v49  ;;  %v1413_v11 = vadd.f32 %v1412_v6, %v1411_v30 }
 0x2bc   :  { %v1840_v19 = vpop.f32.mrf.mxu1 }
 0x2bd   :  { %v8852_v31 = vadd.f32 %v2021_v4, %v1840_v19  ;;  %v2042_v22 = vmul.f32 %v8857_v9, %v8857_v9  ;;  %v2026_v48 = vsel %vm1398_vm14, %v8857_v9, 0.0  ;;  %v8877_v4 = vadd.f32 %v1421_v27, %v1420_v58 }
 0x2be   :  { %v1842_v5 = vpop.f32.mrf.mxu1  ;;  %v2027_v26 = vrot.slane %v2026_v48, 4  ;;  %v1559_v19 = vrot.slane %v1558_v34, 2  ;;  %v1430_v46 = vrot.slane %v8879_v13, 1  ;;  %v1568_v58 = vrot.slane %v1567_v62, 1 }
 0x2bf   :  { %v2043_v18 = vmul.f32 %v8852_v31, %v8852_v31  ;;  %v2033_v25 = vsel %vm1406_vm6, %v8852_v31, 0.0  ;;  %v2044_v54 = vsel %vm1398_vm14, %v2042_v22, 0.0  ;;  %v1584_v5 = vrot.slane %v1583_v35, 2 }
 0x2c0   :  { %v1843_v39 = vpop.f32.mrf.mxu1  ;;  %v2034_v55 = vrot.slane %v2033_v25, 4  ;;  %v2045_v36 = vrot.slane %v2044_v54, 4  ;;  %v2028_v1 = vadd.f32 %v2027_v26, %v2026_v48  ;;  %v1423_v7 = vrot.slane %v8877_v4, 1 }
 0x2c1   :  { %v2051_v52 = vsel %vm1406_vm6, %v2043_v18, 0.0  ;;  %v1560_v16 = vadd.f32 %v1559_v19, %v1558_v34  ;;  %v1585_v17 = vadd.f32 %v1584_v5, %v1583_v35 }
 0x2c2   :  { %v2052_v59 = vrot.slane %v2051_v52, 4  ;;  %v2035_v28 = vadd.f32 %v2034_v55, %v2033_v25  ;;  %v2046_v39 = vadd.f32 %v2045_v36, %v2044_v54  ;;  %v2029_v2 = vrot.slane %v2028_v1, 2 }
 0x2c3   :  { %v1578_v25 = vadd.f32 %v1577_v61, %v1576_v43  ;;  %v1561_v54 = vrot.slane %v1560_v16, 1  ;;  %v1586_v26 = vrot.slane %v1585_v17, 1 }
 0x2c4   :  { %v2053_v8 = vadd.f32 %v2052_v59, %v2051_v52  ;;  %v2036_v29 = vrot.slane %v2035_v28, 2  ;;  %v2047_v18 = vrot.slane %v2046_v39, 2  ;;  %v2030_v38 = vadd.f32 %v2029_v2, %v2028_v1 }
 0x2c5   :  { %v1587_v19 = vadd.f32 %v1586_v26, %v1585_v17  ;;  %v8919_v26 = vld [vmem:[#allocation14 + $0x154] ss:$8 sps:$4 sm:$0xff]  }
 0x2c6   :  { %v2054_v14 = vrot.slane %v2053_v8, 2  ;;  %v2037_v21 = vadd.f32 %v2036_v29, %v2035_v28  ;;  %v2048_v27 = vadd.f32 %v2047_v18, %v2046_v39  ;;  %v1569_v28 = vadd.f32 %v1568_v58, %v1567_v62  ;;  %2992 = vmatprep.subr.bf16.mxu0 %v8919_v26 }
 0x2c7   :  { %v2031_v41 = vrot.slane %v2030_v38, 1  ;;  %v1424_v58 = vadd.f32 %v1423_v7, %v8877_v4  ;;  %v2387_v7 = vld [vmem:[%s10472_s5 + $0x10] sm:$0xff] }
 0x2c8   :  { %v2055_v49 = vadd.f32 %v2054_v14, %v2053_v8  ;;  %v2038_v30 = vrot.slane %v2037_v21, 1  ;;  %v1562_v8 = vadd.f32 %v1561_v54, %v1560_v16  ;;  %v2049_v5 = vrot.slane %v2048_v27, 1 }
 0x2c9   :  { %v2032_v14 = vadd.f32 %v2031_v41, %v2030_v38  ;;  %v1571_v18 = vadd.f32 %v1569_v28, %v1413_v11 }
 0x2ca   :  { %v2056_v43 = vrot.slane %v2055_v49, 1  ;;  %v1570_v16 = vadd.f32 %v1562_v8, %v8881_v50  ;;  %v2388_v50 = vld [vmem:[%s10472_s5 + $0x18] sm:$0xff]  ;;  %v2375_v8 = vld [vmem:[#allocation11] sm:$0x1] }
 0x2cb   :  { %2421 = vmatprep.subr.mxu1 %v2388_v50 }
 0x2ec   :  { %v2155_v37 = vpop.f32.mrf.mxu0 }
 0x2ee   :  { %v2157_v3 = vpop.f32.mrf.mxu0 }
 0x2f0   :  { %v2159_v47 = vpop.f32.mrf.mxu0 }
 0x2f1   :  { %v2039_v47 = vadd.f32 %v2038_v30, %v2037_v21  ;;  %v8925_v30 = vld [vmem:[#allocation14 + $0x144] ss:$8 sps:$4 sm:$0xff]  }
 0x2f2   :  { %v2114_v0 = vpop.f32.mrf.mxu1  ;;  %v2160_v42 = vpop.f32.mrf.mxu0 }
 0x2f3   :  { %v8884_v53 = vadd.f32 %v2155_v37, %v2114_v0  ;;  %v1579_v37 = vrot.slane %v1578_v25, 1  ;;  %v1431_v0 = vadd.f32 %v1430_v46, %v8879_v13  ;;  %v2041_v21 = vadd.f32 %v2039_v47, %v1571_v18  ;;  %v8947_v18 = vld [vmem:[#allocation14 + $0x54] ss:$8 sps:$4 sm:$0xff]  }
 0x2f4   :  { %v2116_v20 = vpop.f32.mrf.mxu1 }
 0x2f5   :  { %v2162_v22 = vsel %vm1398_vm14, %v8884_v53, 0.0  ;;  %v2178_v23 = vmul.f32 %v8884_v53, %v8884_v53  ;;  %v8891_v24 = vadd.f32 %v2157_v3, %v2116_v20  ;;  %v1580_v42 = vadd.f32 %v1579_v37, %v1578_v25 }
 0x2f6   :  { %v2163_v45 = vrot.slane %v2162_v22, 4  ;;  %v2118_v48 = vpop.f32.mrf.mxu1 }
 0x2f7   :  { %v2180_v60 = vsel %vm1398_vm14, %v2178_v23, 0.0  ;;  %v2169_v51 = vsel %vm1406_vm6, %v8891_v24, 0.0  ;;  %v2179_v52 = vmul.f32 %v8891_v24, %v8891_v24  ;;  %v1588_v54 = vadd.f32 %v1580_v42, %v1424_v58  ;;  %v8940_v42 = vld [vmem:[#allocation14 + $0x64] ss:$8 sps:$4 sm:$0xff]   ;;  %v8962_v58 = vld [vmem:[#allocation14 + $0x30] ss:$8 sps:$4 sm:$0xff]  }
 0x2f8   :  { %v2164_v55 = vadd.f32 %v2163_v45, %v2162_v22  ;;  %v2181_v56 = vrot.slane %v2180_v60, 4  ;;  %v2170_v57 = vrot.slane %v2169_v51, 4  ;;  %v2119_v63 = vpop.f32.mrf.mxu1  ;;  %v2057_v22 = vadd.f32 %v2056_v43, %v2055_v49 }
 0x2f9   :  { %v2187_v59 = vsel %vm1406_vm6, %v2179_v52, 0.0  ;;  %v2050_v45 = vadd.f32 %v2049_v5, %v2048_v27  ;;  %v2040_v52 = vadd.f32 %v2032_v14, %v1570_v16  ;;  %v8917_v63 = vld [vmem:[#allocation14 + $0x150] ss:$8 sps:$4 sm:$0xff]   ;;  %v8923_v27 = vld [vmem:[#allocation14 + $0x140] ss:$8 sps:$4 sm:$0xff]   ;;  %vm210_vm6 = vcmask 783364  }
 0x2fa   :  { %v2165_v33 = vrot.slane %v2164_v55, 2  ;;  %v2182_v34 = vadd.f32 %v2181_v56, %v2180_v60  ;;  %v2171_v35 = vadd.f32 %v2170_v57, %v2169_v51  ;;  %v2188_v36 = vrot.slane %v2187_v59, 4  ;;  %v2386_v56 = vld [vmem:[%s10472_s5 + $0x8] sm:$0xff]  ;;  %v2385_v57 = vld [vmem:[%s10472_s5] sm:$0xff] }
 0x2fb   :  { %v1589_v60 = vadd.f32 %v1587_v19, %v1431_v0  ;;  %v8944_v14 = vld [vmem:[#allocation14 + $0x60] ss:$8 sps:$4 sm:$0xff]  }
 0x2fc   :  { %v2166_v44 = vadd.f32 %v2165_v33, %v2164_v55  ;;  %v2183_v1 = vrot.slane %v2182_v34, 2  ;;  %v2172_v3 = vrot.slane %v2171_v35, 2  ;;  %v2189_v6 = vadd.f32 %v2188_v36, %v2187_v59  ;;  %v8929_v59 = vld [vmem:[#allocation14 + $0x130] ss:$8 sps:$4 sm:$0xff]   ;;  %v8931_v33 = vld [vmem:[#allocation14 + $0x134] ss:$8 sps:$4 sm:$0xff]  }
 0x2fd   :  { %v2059_v25 = vadd.f32 %v2057_v22, %v1589_v60  ;;  %v2058_v55 = vadd.f32 %v2050_v45, %v1588_v54  ;;  %v8956_v22 = vld [vmem:[#allocation14 + $0x40] ss:$8 sps:$4 sm:$0xff]   ;;  %v8980_v60 = vld [vmem:[#allocation14 + $0x110] ss:$8 sps:$4 sm:$0xff]   ;;  %v8989_v54 = vld [vmem:[#allocation14 + $0x104] ss:$8 sps:$4 sm:$0xff]  }
 0x2fe   :  { %v2167_v39 = vrot.slane %v2166_v44, 1  ;;  %v2184_v29 = vadd.f32 %v2183_v1, %v2182_v34  ;;  %v2173_v61 = vadd.f32 %v2172_v3, %v2171_v35  ;;  %v2190_v2 = vrot.slane %v2189_v6, 2  ;;  %v2380_v3 = vld [vmem:[#allocation10] sm:$0x1]  ;;  %v8966_v16 = vld [vmem:[#allocation14 + $0x120] ss:$8 sps:$4 sm:$0xff]  }
 0x2ff   :  { %v8972_v45 = vld [vmem:[#allocation14 + $0x20] ss:$8 sps:$4 sm:$0xff]  }
 0x300   :  { %v2174_v62 = vrot.slane %v2173_v61, 1  ;;  %v2191_v20 = vadd.f32 %v2190_v2, %v2189_v6  ;;  %v2185_v23 = vrot.slane %v2184_v29, 1  ;;  %v2168_v17 = vadd.f32 %v2167_v39, %v2166_v44  ;;  %v2379_v39 = vld [vmem:[#allocation13] sm:$0x1]  ;;  %v8938_v2 = vld [vmem:[#allocation14 + $0x70] ss:$8 sps:$4 sm:$0xff]  }
 0x302   :  { %v2175_v48 = vadd.f32 %v2174_v62, %v2173_v61  ;;  %v2192_v51 = vrot.slane %v2191_v20, 1  ;;  %v2186_v13 = vadd.f32 %v2185_v23, %v2184_v29  ;;  %v2176_v38 = vadd.f32 %v2168_v17, %v2040_v52  ;;  %v8935_v61 = vld [vmem:[#allocation14 + $0x74] ss:$8 sps:$4 sm:$0xff]   ;;  %v8950_v62 = vld [vmem:[#allocation14 + $0x50] ss:$8 sps:$4 sm:$0xff]  }
 0x303   :  { %v8959_v23 = vld [vmem:[#allocation14 + $0x34] ss:$8 sps:$4 sm:$0xff]   ;;  %v8968_v17 = vld [vmem:[#allocation14 + $0x124] ss:$8 sps:$4 sm:$0xff]   ;;  %v8986_v52 = vld [vmem:[#allocation14 + $0x10] ss:$8 sps:$4 sm:$0xff]  }
 0x304   :  { %v2177_v46 = vadd.f32 %v2175_v48, %v2041_v21  ;;  %v2193_v11 = vadd.f32 %v2192_v51, %v2191_v20  ;;  %v2194_v4 = vadd.f32 %v2186_v13, %v2058_v55  ;;  %v8953_v20 = vld [vmem:[#allocation14 + $0x44] ss:$8 sps:$4 sm:$0xff]   ;;  %v8977_v48 = vld [vmem:[#allocation14 + $0x114] ss:$8 sps:$4 sm:$0xff]   ;;  %v8992_v13 = vld [vmem:[#allocation14 + $0x100] ss:$8 sps:$4 sm:$0xff]  }
 0x305   :  { %v8974_v21 = vld [vmem:[#allocation14 + $0x24] ss:$8 sps:$4 sm:$0xff]   ;;  %v8984_v51 = vld [vmem:[#allocation14 + $0x14] ss:$8 sps:$4 sm:$0xff]   ;;  %v9006_v55 = vld [vmem:[#allocation14 + $0xd0] ss:$8 sps:$4 sm:$0xff]  }
 0x306   :  { %6323 = vmatprep.mubr.msk.f32.mxu1 %vm1169_vm1, %v2177_v46  ;;  %v2195_v49 = vadd.f32 %v2193_v11, %v2059_v25  ;;  %v8995_v46 = vld [vmem:[#allocation14 + $0x4] ss:$8 sps:$4 sm:$0xff]   ;;  %v8998_v25 = vld [vmem:[#allocation14] ss:$8 sps:$4 sm:$0xff]   ;;  %v9002_v11 = vld [vmem:[#allocation14 + $0xf0] ss:$8 sps:$4 sm:$0xff]  }
 0x307   :  { %2292 = vmatmul.mubr.f32.vlgmr.msra.gmra.mxu1 %v2176_v38  ;;  %v9004_v38 = vld [vmem:[#allocation14 + $0xf4] ss:$8 sps:$4 sm:$0xff]  }
 0x308   :  { %6324 = vmatprep.mubr.msk.f32.mxu0 %vm1169_vm1, %v2195_v49  ;;  %2457 = vmatprep.mubr.f32.mxu1 %v10510_v10  ;;  %v9008_v49 = vld [vmem:[#allocation14 + $0xd4] ss:$8 sps:$4 sm:$0xff]  }
 0x309   :  { %2367 = vmatmul.mubr.f32.vlgmr.msra.gmra.mxu0 %v2194_v4  ;;  %2422 = vmatpush1.msra.mxu1 %v2387_v7  ;;  %v9011_v4 = vld [vmem:[#allocation14 + $0xe4] ss:$8 sps:$4 sm:$0xff]  }
 0x30a   :  { %2423 = vmatprep.subr.mxu1 %v2386_v56  ;;  %2993 = vmatpush1.bf16.msra.mxu0 %v8917_v63 }
 0x30b   :  { %2424 = vmatpush1.msra.mxu1 %v2385_v57  ;;  %2994 = vmatprep.subr.bf16.mxu0 %v8925_v30 }
 0x30c   :  { %2495 = vmatprep.subr.mxu1 %v2388_v50  ;;  %v9013_v50 = vld [vmem:[#allocation14 + $0xc4] ss:$8 sps:$4 sm:$0xff]  }
 0x30d   :  { %10588 = vst [vmem:[#allocation40_spill] sm:$0xff] %v9013_v50 }
 0x30e   :  { %2995 = vmatpush1.bf16.msra.mxu0 %v8923_v27 }
 0x30f   :  { %2996 = vmatprep.subr.bf16.mxu0 %v8931_v33 }
 0x312   :  { %2997 = vmatpush1.bf16.msra.mxu0 %v8929_v59 }
 0x313   :  { %2998 = vmatprep.subr.bf16.mxu0 %v8968_v17 }
 0x316   :  { %2999 = vmatpush1.bf16.msra.mxu0 %v8966_v16 }
 0x317   :  { %3000 = vmatprep.subr.bf16.mxu0 %v8977_v48 }
 0x31a   :  { %3001 = vmatpush1.bf16.msra.mxu0 %v8980_v60 }
 0x31b   :  { %3002 = vmatprep.subr.bf16.mxu0 %v8989_v54 }
 0x31e   :  { %3003 = vmatpush1.bf16.msra.mxu0 %v8992_v13 }
 0x31f   :  { %3004 = vmatprep.subr.bf16.mxu0 %v9004_v38 }
 0x322   :  { %3005 = vmatpush1.bf16.msra.mxu0 %v9002_v11 }
 0x323   :  { %3006 = vmatprep.subr.bf16.mxu0 %v9011_v4 }
 0x3c7   :  { %v2293_v34 = vpop.f32.mrf.mxu1 }
 0x3c8   :  { %v2298_v35 = vmul.f32 0.0025510204, %v2293_v34  ;;  %v9026_v34 = vld [vmem:[#allocation14 + $0xb4] ss:$8 sps:$4 sm:$0xff]  }
 0x3c9   :  { %v2295_v36 = vpop.f32.mrf.mxu1  ;;  %v2368_v37 = vpop.f32.mrf.mxu0  ;;  %10592 = vst [vmem:[#allocation44_spill] sm:$0xff] %v9026_v34 }
 0x3ca   :  { %v2373_v28 = vmul.f32 %v2298_v35, %v2298_v35  ;;  %v2372_v41 = vmul.f32 0.0025510204, %v2368_v37  ;;  %v2381_v6 = vadd.f32 %v2380_v3, %v2298_v35  ;;  %v9029_v35 = vld [vmem:[#allocation14 + $0x1b0] ss:$8 sps:$4 sm:$0xff]   ;;  %v9035_v37 = vld [vmem:[#allocation14 + $0x1a4] ss:$8 sps:$4 sm:$0xff]  }
 0x3cb   :  { %v2370_v43 = vpop.f32.mrf.mxu0  ;;  %10593 = vst [vmem:[#allocation45_spill] sm:$0xff] %v9029_v35  ;;  %v9033_v36 = vld [vmem:[#allocation14 + $0xb0] ss:$8 sps:$4 sm:$0xff]   ;;  %10595 = vst [vmem:[#allocation47_spill] sm:$0xff] %v9035_v37 }
 0x3cc   :  { %v2374_v44 = vsub.f32 %v2372_v41, %v2373_v28  ;;  %v2382_v5 = vsub.f32 %v2380_v3, %v2381_v6  ;;  %10594 = vst [vmem:[#allocation46_spill] sm:$0xff] %v9033_v36  ;;  %v9038_v28 = vld [vmem:[#allocation14 + $0xa4] ss:$8 sps:$4 sm:$0xff]   ;;  %v9041_v41 = vld [vmem:[#allocation14 + $0x1a0] ss:$8 sps:$4 sm:$0xff]  }
 0x3cd   :  { %10596 = vst [vmem:[#allocation48_spill] sm:$0xff] %v9038_v28  ;;  %10597 = vst [vmem:[#allocation49_spill] sm:$0xff] %v9041_v41  ;;  %v9045_v43 = vld [vmem:[#allocation14 + $0xa0] ss:$8 sps:$4 sm:$0xff]   ;;  %v9053_v3 = vld [vmem:[#allocation14 + $0x190] ss:$8 sps:$4 sm:$0xff]  }
 0x3ce   :  { %v2376_v1 = vadd.f32 1e-05, %v2374_v44  ;;  %10598 = vst [vmem:[#allocation50_spill] sm:$0xff] %v9045_v43  ;;  %v9047_v44 = vld [vmem:[#allocation14 + $0x194] ss:$8 sps:$4 sm:$0xff]   ;;  %10601 = vst [vmem:[#allocation53_spill] sm:$0xff] %v9053_v3 }
 0x3cf   :  { %10599 = vst [vmem:[#allocation51_spill] sm:$0xff] %v9047_v44  ;;  %v9057_v6 = vld [vmem:[#allocation14 + $0x90] ss:$8 sps:$4 sm:$0xff]  }
 0x3d0   :  { %7278 = vrsqrt.f32 %v2376_v1  ;;  %v9050_v1 = vld [vmem:[#allocation14 + $0x94] ss:$8 sps:$4 sm:$0xff]   ;;  %10602 = vst [vmem:[#allocation54_spill] sm:$0xff] %v9057_v6 }
 0x3d1   :  { %10600 = vst [vmem:[#allocation52_spill] sm:$0xff] %v9050_v1 }
 0x3dd   :  { %v7279_v19 = vpop.eup %7278 }
 0x3de   :  { %v2378_v47 = vmul.f32 %v7279_v19, %v2375_v8  ;;  %v9059_v8 = vld [vmem:[#allocation14 + $0x184] ss:$8 sps:$4 sm:$0xff]  }
 0x3df   :  { %10603 = vst [vmem:[#allocation55_spill] sm:$0xff] %v9059_v8  ;;  %v9062_v19 = vld [vmem:[#allocation14 + $0x84] ss:$8 sps:$4 sm:$0xff]  }
 0x3e0   :  { %6325 = vmatmul.mubr.msk.f32.vlgmr.msra.gmra.mxu1 %vm2389_vm3, %v2378_v47  ;;  %v2383_v29 = vmul.f32 %v2382_v5, %v2378_v47  ;;  %10604 = vst [vmem:[#allocation56_spill] sm:$0xff] %v9062_v19  ;;  %v9065_v5 = vld [vmem:[#allocation14 + $0x180] ss:$8 sps:$4 sm:$0xff]  }
 0x3e1   :  { %2496 = vmatpush1.msra.mxu1 %v2387_v7  ;;  %2531 = vmatprep.mubr.f32.mxu1 %v10510_v10  ;;  %v9017_v7 = vld [vmem:[#allocation14 + $0xe0] ss:$8 sps:$4 sm:$0xff]   ;;  %10605 = vst [vmem:[#allocation57_spill] sm:$0xff] %v9065_v5 }
 0x3e2   :  { %2497 = vmatprep.subr.mxu1 %v2386_v56  ;;  %v2384_v0 = vadd.f32 %v2383_v29, %v2379_v39  ;;  %10589 = vst [vmem:[#allocation41_spill] sm:$0xff] %v9017_v7  ;;  %v9021_v56 = vld [vmem:[#allocation14 + $0xc0] ss:$8 sps:$4 sm:$0xff]   ;;  %3007 = vmatpush1.bf16.msra.mxu0 %v9017_v7  ;;  %v9071_v39 = vld [vmem:[#allocation14 + $0x174] ss:$8 sps:$4 sm:$0xff]  }
 0x3e3   :  { %2498 = vmatpush1.msra.mxu1 %v2385_v57  ;;  %10590 = vst [vmem:[#allocation42_spill] sm:$0xff] %v9021_v56  ;;  %v9023_v57 = vld [vmem:[#allocation14 + $0x1b4] ss:$8 sps:$4 sm:$0xff]   ;;  %v9069_v47 = vld [vmem:[#allocation14 + $0x80] ss:$8 sps:$4 sm:$0xff]   ;;  %10607 = vst [vmem:[#allocation59_spill] sm:$0xff] %v9071_v39 }
 0x3e4   :  { %6326 = vmatmul.mubr.msk.f32.vlgmr.msra.gmra.mxu1 %vm2389_vm3, %v2384_v0  ;;  %3184 = vmatprep.subr.bf16.mxu1 %v8935_v61  ;;  %10591 = vst [vmem:[#allocation43_spill] sm:$0xff] %v9023_v57  ;;  %10606 = vst [vmem:[#allocation58_spill] sm:$0xff] %v9069_v47  ;;  %v9075_v29 = vld [vmem:[#allocation14 + $0x170] ss:$8 sps:$4 sm:$0xff]   ;;  %v9079_v0 = vld [vmem:[#allocation14 + $0x164] ss:$8 sps:$4 sm:$0xff]  }
 0x3e5   :  { %3185 = vmatpush1.bf16.msra.mxu1 %v8938_v2  ;;  %3012 = vmatprep.subr.bf16.mxu0 %v9023_v57  ;;  %10608 = vst [vmem:[#allocation60_spill] sm:$0xff] %v9075_v29  ;;  %10609 = vst [vmem:[#allocation61_spill] sm:$0xff] %v9079_v0  ;;  %v9083_v10 = vld [vmem:[#allocation14 + $0x160] ss:$8 sps:$4 sm:$0xff]  }
 0x3e6   :  { %3186 = vmatprep.subr.bf16.mxu1 %v8940_v42  ;;  %3013 = vmatpush2.bf16.msra.mxu0 %v9029_v35  ;;  %10610 = vst [vmem:[#allocation62_spill] sm:$0xff] %v9083_v10  ;;  %v2576_v57 = vld [vmem:[#allocation3] sm:$0x22]  ;;  %v2634_v7 = vld [vmem:[#allocation3 + $0x10] sm:$0x44]  ;;  %vm211_vm3 = vmor %vm210_vm6, %vm209_vm4 }
 0x3e7   :  { %3014 = vmatprep.subr.bf16.mxu0 %v9035_v37 }
 0x3e9   :  { %3187 = vmatpush1.bf16.msra.mxu1 %v8944_v14 }
 0x3ea   :  { %3188 = vmatprep.subr.bf16.mxu1 %v8947_v18  ;;  %3015 = vmatpush2.bf16.msra.mxu0 %v9041_v41 }
 0x3eb   :  { %3016 = vmatprep.subr.bf16.mxu0 %v9047_v44 }
 0x3ed   :  { %3189 = vmatpush1.bf16.msra.mxu1 %v8950_v62 }
 0x3ee   :  { %3190 = vmatprep.subr.bf16.mxu1 %v8953_v20  ;;  %3017 = vmatpush2.bf16.msra.mxu0 %v9053_v3 }
 0x3ef   :  { %3018 = vmatprep.subr.bf16.mxu0 %v9059_v8 }
 0x3f1   :  { %3191 = vmatpush1.bf16.msra.mxu1 %v8956_v22 }
 0x3f2   :  { %3192 = vmatprep.subr.bf16.mxu1 %v8959_v23  ;;  %3019 = vmatpush2.bf16.msra.mxu0 %v9065_v5 }
 0x3f3   :  { %3020 = vmatprep.subr.bf16.mxu0 %v9071_v39 }
 0x3f5   :  { %3193 = vmatpush1.bf16.msra.mxu1 %v8962_v58 }
 0x3f6   :  { %3194 = vmatprep.subr.bf16.mxu1 %v8974_v21  ;;  %3021 = vmatpush2.bf16.msra.mxu0 %v9075_v29 }
 0x3f7   :  { %3022 = vmatprep.subr.bf16.mxu0 %v9079_v0 }
 0x3f9   :  { %3195 = vmatpush1.bf16.msra.mxu1 %v8972_v45 }
 0x3fa   :  { %3196 = vmatprep.subr.bf16.mxu1 %v8984_v51  ;;  %3023 = vmatpush2.bf16.msra.mxu0 %v9083_v10 }
 0x3fb   :  { %3300 = vmatprep.subr.bf16.mxu0 %v8919_v26 }
 0x3fd   :  { %3197 = vmatpush1.bf16.msra.mxu1 %v8986_v52 }
 0x3fe   :  { %3198 = vmatprep.subr.bf16.mxu1 %v8995_v46 }
 0x401   :  { %3199 = vmatpush1.bf16.msra.mxu1 %v8998_v25 }
 0x402   :  { %3204 = vmatprep.subr.bf16.mxu1 %v9008_v49 }
 0x405   :  { %3205 = vmatpush2.bf16.msra.mxu1 %v9006_v55 }
 0x406   :  { %3206 = vmatprep.subr.bf16.mxu1 %v9013_v50  ;;  %v9425_v50 = vld [vmem:[#allocation14 + $0x324] ss:$8 sps:$4 sm:$0xff]  }
 0x409   :  { %3207 = vmatpush2.bf16.msra.mxu1 %v9021_v56 }
 0x40a   :  { %3208 = vmatprep.subr.bf16.mxu1 %v9026_v34 }
 0x40d   :  { %3209 = vmatpush2.bf16.msra.mxu1 %v9033_v36 }
 0x40e   :  { %3210 = vmatprep.subr.bf16.mxu1 %v9038_v28 }
 0x411   :  { %3211 = vmatpush2.bf16.msra.mxu1 %v9045_v43 }
 0x412   :  { %3212 = vmatprep.subr.bf16.mxu1 %v9050_v1 }
 0x415   :  { %3213 = vmatpush2.bf16.msra.mxu1 %v9057_v6 }
 0x416   :  { %3214 = vmatprep.subr.bf16.mxu1 %v9062_v19  ;;  %v10611_v19 = vld [vmem:[#allocation33_spill] sm:$0xff] }
 0x419   :  { %3215 = vmatpush2.bf16.msra.mxu1 %v9069_v47 }
 0x41a   :  { %3352 = vmatprep.subr.bf16.mxu1 %v8935_v61 }
 0x4a0   :  { %v2459_v5 = vpop.f32.mrf.mxu1 }
 0x4a1   :  { %v2541_v6 = vrot.slane %v2459_v5, %v10611_v19 }
 0x4a2   :  { %v2461_v47 = vpop.f32.mrf.mxu1 }
 0x4a3   :  { %v2545_v39 = vrot.slane %v2461_v47, %v10611_v19  ;;  %v2546_v3 = vmul.f32 %v2541_v6, %v8698_v12  ;;  %v2607_v61 = vmul.f32 %v2541_v6, %v8822_v32  ;;  %v2660_v1 = vmul.f32 %v2541_v6, %v8857_v9 }
 0x4a4   :  { %v2533_v8 = vpop.f32.mrf.mxu1  ;;  %v2713_v10 = vmul.f32 %v2541_v6, %v8884_v53 }
 0x4a5   :  { %v2551_v29 = vrot.slane %v2533_v8, %v10611_v19  ;;  %v2547_v26 = vmul.f32 %v2545_v39, %v8705_v15  ;;  %v2608_v5 = vmul.f32 %v2545_v39, %v8829_v40  ;;  %v2661_v47 = vmul.f32 %v2545_v39, %v8852_v31  ;;  %v2571_v31 = vld [vmem:[#allocation3] sm:$0x11] }
 0x4a6   :  { %v2535_v0 = vpop.f32.mrf.mxu1  ;;  %v2714_v41 = vmul.f32 %v2545_v39, %v8891_v24  ;;  %v2581_v39 = vld [vmem:[#allocation3] sm:$0x44] }
 0x4a7   :  { %v2556_v43 = vadd.f32 %v2551_v29, %v2546_v3  ;;  %v2609_v44 = vadd.f32 %v2607_v61, %v2551_v29  ;;  %v2555_v12 = vrot.slane %v2535_v0, %v10611_v19  ;;  %v2662_v32 = vadd.f32 %v2660_v1, %v2551_v29  ;;  %v2586_v0 = vld [vmem:[#allocation3] sm:$0x88]  ;;  %v2598_v1 = vld [vmem:[#allocation3 + $0x8] sm:$0x22] }
 0x4a8   :  { %v2715_v28 = vadd.f32 %v2713_v10, %v2551_v29  ;;  %v2624_v10 = vld [vmem:[#allocation3 + $0x10] sm:$0x11] }
 0x4a9   :  { %v2557_v8 = vadd.f32 %v2555_v12, %v2547_v26  ;;  %v2610_v36 = vadd.f32 %v2608_v5, %v2555_v12  ;;  %v2663_v9 = vadd.f32 %v2661_v47, %v2555_v12  ;;  %v2716_v37 = vadd.f32 %v2714_v41, %v2555_v12  ;;  %v2639_v12 = vld [vmem:[#allocation3 + $0x10] sm:$0x88] }
 0x4aa   :  { %v2558_v35 = vmax.f32 %v2556_v43, 0.0  ;;  %v2611_v53 = vmax.f32 %v2609_v44, 0.0  ;;  %v2664_v34 = vmax.f32 %v2662_v32, 0.0  ;;  %v2717_v40 = vmax.f32 %v2715_v28, 0.0 }
 0x4ab   :  { %v2559_v6 = vmax.f32 %v2557_v8, 0.0  ;;  %v2612_v15 = vmax.f32 %v2610_v36, 0.0  ;;  %v2665_v3 = vmax.f32 %v2663_v9, 0.0  ;;  %v2718_v61 = vmax.f32 %v2716_v37, 0.0  ;;  %v2592_v36 = vld [vmem:[#allocation3 + $0x8] sm:$0x11] }
 0x4ac   :  { %v2629_v37 = vld [vmem:[#allocation3 + $0x10] sm:$0x22]  ;;  %v9432_v8 = vld [vmem:[#allocation14 + $0x320] ss:$8 sps:$4 sm:$0xff]  }
 0x4ad   :  { %v6746_v56 = vpack.c.bf16 %v2559_v6, %v2558_v35  ;;  %v6747_v24 = vpack.c.bf16 %v2612_v15, %v2611_v53  ;;  %v9100_v29 = vpack.c.bf16 %v2665_v3, %v2664_v34  ;;  %v9102_v26 = vpack.c.bf16 %v2718_v61, %v2717_v40  ;;  %v2604_v61 = vld [vmem:[#allocation3 + $0x8] sm:$0x44]  ;;  %v2651_v40 = vld [vmem:[#allocation3 + $0x18] sm:$0x22] }
 0x4af   :  { %v2568_v41 = vshll.u32 %v6746_v56, 16  ;;  %v2574_v43 = vrot.slane %v6746_v56, 7  ;;  %v2584_v44 = vrot.slane %v6746_v56, 6  ;;  %v6329_v5 = vrot.slane %v6746_v56, 9 }
 0x4b0   :  { %v2621_v47 = vshll.u32 %v6747_v24, 16  ;;  %v2627_v28 = vrot.slane %v6747_v24, 7  ;;  %v2637_v35 = vrot.slane %v6747_v24, 6  ;;  %v6333_v32 = vrot.slane %v6747_v24, 9 }
 0x4b1   :  { %v2572_v9 = vsel %vm7814_vm10, %v2568_v41, %v2571_v31  ;;  %v2577_v34 = vsel %vm8082_vm12, %v2574_v43, %v2576_v57  ;;  %v2579_v6 = vrot.slane %v2568_v41, 7  ;;  %v2587_v3 = vsel %vm8137_vm5, %v2584_v44, %v2586_v0 }
 0x4b2   :  { %2573 = vst [vmem:[#allocation3] sm:$0x11] %v2572_v9  ;;  %2578 = vst [vmem:[#allocation3] sm:$0x22] %v2577_v34  ;;  %v6328_v56 = vrot.slane %v2568_v41, 10  ;;  %v2599_v19 = vsel %vm8082_vm12, %v6329_v5, %v2598_v1  ;;  %v6330_v24 = vrot.slane %v2568_v41, 9  ;;  %v2625_v31 = vsel %vm7814_vm10, %v2621_v47, %v2624_v10 }
 0x4b3   :  { %2588 = vst [vmem:[#allocation3] sm:$0x88] %v2587_v3  ;;  %v2582_v57 = vsel %vm8122_vm8, %v2579_v6, %v2581_v39  ;;  %2600 = vst [vmem:[#allocation3 + $0x8] sm:$0x22] %v2599_v19  ;;  %v2630_v0 = vsel %vm8082_vm12, %v2627_v28, %v2629_v37  ;;  %v2632_v43 = vrot.slane %v2621_v47, 7  ;;  %v2640_v44 = vsel %vm8137_vm5, %v2637_v35, %v2639_v12 }
 0x4b4   :  { %2626 = vst [vmem:[#allocation3 + $0x10] sm:$0x11] %v2625_v31  ;;  %v2645_v9 = vld [vmem:[#allocation3 + $0x18] sm:$0x11]  ;;  %v2710_v34 = vld [vmem:[#allocation3 + $0x8] sm:$0x88]  ;;  %v2593_v1 = vsel %vm7814_vm10, %v6328_v56, %v2592_v36  ;;  %v2605_v10 = vsel %vm8122_vm8, %v6330_v24, %v2604_v61  ;;  %v2652_v39 = vsel %vm8082_vm12, %v6333_v32, %v2651_v40 }
 0x4b5   :  { %2583 = vst [vmem:[#allocation3] sm:$0x44] %v2582_v57  ;;  %2631 = vst [vmem:[#allocation3 + $0x10] sm:$0x22] %v2630_v0  ;;  %v6332_v19 = vrot.slane %v2621_v47, 10  ;;  %v2635_v5 = vsel %vm8122_vm8, %v2632_v43, %v2634_v7  ;;  %v6334_v37 = vrot.slane %v2621_v47, 9  ;;  %v2711_v6 = vsel %vm8114_vm15, %v9100_v29, %v2710_v34 }
 0x4b6   :  { %2641 = vst [vmem:[#allocation3 + $0x10] sm:$0x88] %v2640_v44  ;;  %v2657_v41 = vld [vmem:[#allocation3 + $0x18] sm:$0x44]  ;;  %2594 = vst [vmem:[#allocation3 + $0x8] sm:$0x11] %v2593_v1 }
 0x4b7   :  { %2606 = vst [vmem:[#allocation3 + $0x8] sm:$0x44] %v2605_v10  ;;  %2653 = vst [vmem:[#allocation3 + $0x18] sm:$0x22] %v2652_v39  ;;  %v2679_v28 = vshrl.u32 %v9100_v29, 16  ;;  %v2646_v35 = vsel %vm7814_vm10, %v6332_v19, %v2645_v9  ;;  %v2658_v32 = vsel %vm8122_vm8, %v6334_v37, %v2657_v41  ;;  %v2673_v3 = vrot.slane %v9100_v29, 7 }
 0x4b8   :  { %v2763_v36 = vld [vmem:[#allocation3 + $0x18] sm:$0x88]  ;;  %2636 = vst [vmem:[#allocation3 + $0x10] sm:$0x44] %v2635_v5  ;;  %2647 = vst [vmem:[#allocation3 + $0x18] sm:$0x11] %v2646_v35 }
 0x4b9   :  { %v2686_v7 = vrot.slane %v9100_v29, 6  ;;  %v6337_v47 = vrot.slane %v9100_v29, 9  ;;  %2712 = vst [vmem:[#allocation3 + $0x8] sm:$0x88] %v2711_v6  ;;  %2659 = vst [vmem:[#allocation3 + $0x18] sm:$0x44] %v2658_v32  ;;  %v2764_v24 = vsel %vm8114_vm15, %v9102_v26, %v2763_v36 }
 0x4ba   :  { %v2681_v61 = vrot.slane %v2679_v28, 6  ;;  %v6336_v40 = vrot.slane %v2679_v28, 9  ;;  %v2732_v56 = vshrl.u32 %v9102_v26, 16  ;;  %v2675_v31 = vld [vmem:[#allocation3] sm:$0x22]  ;;  %v2726_v0 = vrot.slane %v9102_v26, 7 }
 0x4bb   :  { %v2688_v57 = vld [vmem:[#allocation3] sm:$0x88]  ;;  %v2739_v43 = vrot.slane %v9102_v26, 6  ;;  %2765 = vst [vmem:[#allocation3 + $0x18] sm:$0x88] %v2764_v24  ;;  %v2676_v29 = vsel %vm8030_vm7, %v2673_v3, %v2675_v31  ;;  %v6341_v10 = vrot.slane %v9102_v26, 9 }
 0x4bc   :  { %v2689_v9 = vsel %vm8114_vm15, %v2686_v7, %v2688_v57  ;;  %v2700_v34 = vld [vmem:[#allocation3 + $0x8] sm:$0x22]  ;;  %v2734_v1 = vrot.slane %v2732_v56, 6  ;;  %2677 = vst [vmem:[#allocation3] sm:$0x22] %v2676_v29 }
 0x4bd   :  { %v2683_v19 = vld [vmem:[#allocation3] sm:$0x44]  ;;  %2690 = vst [vmem:[#allocation3] sm:$0x88] %v2689_v9  ;;  %v2701_v39 = vsel %vm8030_vm7, %v6337_v47, %v2700_v34  ;;  %v2728_v41 = vld [vmem:[#allocation3 + $0x10] sm:$0x22] }
 0x4be   :  { %v2741_v5 = vld [vmem:[#allocation3 + $0x10] sm:$0x88]  ;;  %v2684_v36 = vsel %vm8069_vm9, %v2681_v61, %v2683_v19  ;;  %v2694_v35 = vld [vmem:[#allocation3 + $0x8] sm:$0x11]  ;;  %2702 = vst [vmem:[#allocation3 + $0x8] sm:$0x22] %v2701_v39  ;;  %v2729_v32 = vsel %vm8030_vm7, %v2726_v0, %v2728_v41 }
 0x4bf   :  { %v2706_v6 = vld [vmem:[#allocation3 + $0x8] sm:$0x44]  ;;  %v2742_v26 = vsel %vm8114_vm15, %v2739_v43, %v2741_v5  ;;  %v2753_v3 = vld [vmem:[#allocation3 + $0x18] sm:$0x22]  ;;  %2685 = vst [vmem:[#allocation3] sm:$0x44] %v2684_v36  ;;  %v2695_v24 = vsel %vm7943_vm0, %v6336_v40, %v2694_v35 }
 0x4c0   :  { %v2707_v47 = vsel %vm8069_vm9, %v2679_v28, %v2706_v6  ;;  %2730 = vst [vmem:[#allocation3 + $0x10] sm:$0x22] %v2729_v32  ;;  %v2736_v31 = vld [vmem:[#allocation3 + $0x10] sm:$0x44]  ;;  %2743 = vst [vmem:[#allocation3 + $0x10] sm:$0x88] %v2742_v26  ;;  %v2754_v57 = vsel %vm8030_vm7, %v6341_v10, %v2753_v3 }
 0x4c1   :  { %v6340_v61 = vrot.slane %v2732_v56, 9  ;;  %2696 = vst [vmem:[#allocation3 + $0x8] sm:$0x11] %v2695_v24  ;;  %2708 = vst [vmem:[#allocation3 + $0x8] sm:$0x44] %v2707_v47  ;;  %v2737_v0 = vsel %vm8069_vm9, %v2734_v1, %v2736_v31 }
 0x4c2   :  { %v2747_v43 = vld [vmem:[#allocation3 + $0x18] sm:$0x11]  ;;  %2755 = vst [vmem:[#allocation3 + $0x18] sm:$0x22] %v2754_v57  ;;  %2738 = vst [vmem:[#allocation3 + $0x10] sm:$0x44] %v2737_v0 }
 0x4c3   :  { %v2748_v40 = vsel %vm7943_vm0, %v6340_v61, %v2747_v43  ;;  %v2759_v29 = vld [vmem:[#allocation3 + $0x18] sm:$0x44]  ;;  %v9415_v37 = vld [vmem:[#allocation14 + $0x334] ss:$8 sps:$4 sm:$0xff]   ;;  %v9422_v12 = vld [vmem:[#allocation14 + $0x330] ss:$8 sps:$4 sm:$0xff]  }
 0x4c4   :  { %2749 = vst [vmem:[#allocation3 + $0x18] sm:$0x11] %v2748_v40  ;;  %v2760_v28 = vsel %vm8069_vm9, %v2732_v56, %v2759_v29  ;;  %v9263_v29 = vld [vmem:[#allocation14 + $0x314] ss:$8 sps:$4 sm:$0xff]   ;;  %v9412_v7 = vld [vmem:[#allocation14 + $0x340] ss:$8 sps:$4 sm:$0xff]  }
 0x4c5   :  { %2761 = vst [vmem:[#allocation3 + $0x18] sm:$0x44] %v2760_v28  ;;  %v9268_v28 = vld [vmem:[#allocation14 + $0x220] ss:$8 sps:$4 sm:$0xff]  }
 0x4c6   :  { %v2766_v9 = vld [vmem:[#allocation3] sm:$0xff] }
 0x4c7   :  { %v9418_v44 = vld [vmem:[#allocation14 + $0x240] ss:$8 sps:$4 sm:$0xff]  }
 0x4c8   :  { %v2767_v34 = vld [vmem:[#allocation3 + $0x8] sm:$0x77] }
 0x4c9   :  { %v9170_v10 = vld [vmem:[#allocation3 + $0x8] sm:$0xff]  ;;  %v6375_v19 = vcombine.high %v2766_v9, %v2767_v34  ;;  %v6374_v39 = vcombine.low %v2766_v9, %v2767_v34  ;;  %v9172_v41 = vld [vmem:[#allocation3 + $0x10] sm:$0xff] }
 0x4ca   :  { %v6344_v1 = vcombine.high %v2766_v9, %v9170_v10  ;;  %v6343_v5 = vcombine.low %v2766_v9, %v9170_v10  ;;  %v9429_v53 = vld [vmem:[#allocation3 + $0x10] sm:$0xee] }
 0x4cb   :  { %6404 = vmatprep.mubr.msk.bf16.mxu1 %vm1169_vm1, %v6375_v19  ;;  %v9273_v19 = vld [vmem:[#allocation14 + $0x214] ss:$8 sps:$4 sm:$0xff]  }
 0x4cc   :  { %v9177_v36 = vld [vmem:[#allocation3 + $0x18] sm:$0x77]  ;;  %v2844_v35 = vshll.u32 %v6344_v1, 16  ;;  %v2837_v6 = vshll.u32 %v6343_v5, 16  ;;  %3217 = vmatmul.mubr.bf16.vlgmr.msra.gmra.mxu1 %v6374_v39  ;;  %v2842_v32 = vshrl.u32 %v6344_v1, 16  ;;  %v2835_v24 = vshrl.u32 %v6343_v5, 16 }
 0x4cd   :  { %v6409_v56 = vcombine.high %v9172_v41, %v9177_v36  ;;  %v9181_v26 = vld [vmem:[#allocation3 + $0x18] sm:$0xff]  ;;  %3353 = vmatpush1.bf16.msra.mxu1 %v8938_v2 }
 0x4ce   :  { %v2846_v3 = vrot.slane %v2844_v35, 1  ;;  %v2839_v47 = vrot.slane %v2837_v6, 1  ;;  %v6406_v31 = vcombine.high %v9172_v41, %v9181_v26  ;;  %3354 = vmatprep.subr.bf16.mxu1 %v8940_v42  ;;  %v10625_v42 = vld [vmem:[#allocation45_spill] sm:$0xff]  ;;  %v10642_v39 = vld [vmem:[#allocation62_spill] sm:$0xff]  ;;  %v9284_v35 = vld [vmem:[#allocation14 + $0x210] ss:$8 sps:$4 sm:$0xff]  }
 0x4cf   :  { %6410 = vmatprep.mubr.msk.bf16.mxu1 %vm1169_vm1, %v6409_v56  ;;  %v9281_v5 = vld [vmem:[#allocation14 + $0x304] ss:$8 sps:$4 sm:$0xff]   ;;  %v9292_v56 = vld [vmem:[#allocation14 + $0x300] ss:$8 sps:$4 sm:$0xff]  }
 0x4d0   :  { %v9188_v61 = vor.u32 %v2846_v3, %v2842_v32  ;;  %v9190_v57 = vor.u32 %v2839_v47, %v2835_v24  ;;  %v3292_v0 = vshll.u32 %v6406_v31, 16  ;;  %v3290_v2 = vshrl.u32 %v6406_v31, 16  ;;  %v9288_v6 = vld [vmem:[#allocation14 + $0x204] ss:$8 sps:$4 sm:$0xff]   ;;  %v9295_v32 = vld [vmem:[#allocation14 + $0x2f4] ss:$8 sps:$4 sm:$0xff]  }
 0x4d1   :  { %3355 = vmatpush1.bf16.msra.mxu1 %v8944_v14  ;;  %v10626_v14 = vld [vmem:[#allocation47_spill] sm:$0xff]  ;;  %v9298_v3 = vld [vmem:[#allocation14 + $0x200] ss:$8 sps:$4 sm:$0xff]   ;;  %v9307_v31 = vld [vmem:[#allocation14 + $0x2e4] ss:$8 sps:$4 sm:$0xff]  }
 0x4d2   :  { %6373 = vmatprep.mubr.msk.bf16.mxu0 %vm1169_vm1, %v9188_v61  ;;  %v3294_v43 = vrot.slane %v3292_v0, 1  ;;  %3356 = vmatprep.subr.bf16.mxu1 %v8947_v18  ;;  %v10627_v18 = vld [vmem:[#allocation46_spill] sm:$0xff]  ;;  %v9301_v24 = vld [vmem:[#allocation14 + $0x1f4] ss:$8 sps:$4 sm:$0xff]   ;;  %v9304_v47 = vld [vmem:[#allocation14 + $0x2f0] ss:$8 sps:$4 sm:$0xff]  }
 0x4d3   :  { %3025 = vmatmul.mubr.bf16.vlgmr.msra.gmra.mxu0 %v9190_v57  ;;  %v9313_v0 = vld [vmem:[#allocation14 + $0x1e4] ss:$8 sps:$4 sm:$0xff]  }
 0x4d4   :  { %3301 = vmatpush1.bf16.msra.mxu0 %v8917_v63  ;;  %v9198_v40 = vor.u32 %v3294_v43, %v3290_v2  ;;  %v10620_v63 = vld [vmem:[#allocation40_spill] sm:$0xff]  ;;  %v9316_v2 = vld [vmem:[#allocation14 + $0x2e0] ss:$8 sps:$4 sm:$0xff]  }
 0x4d5   :  { %3302 = vmatprep.subr.bf16.mxu0 %v8925_v30  ;;  %3357 = vmatpush1.bf16.msra.mxu1 %v8950_v62  ;;  %v10622_v30 = vld [vmem:[#allocation43_spill] sm:$0xff]  ;;  %v10628_v62 = vld [vmem:[#allocation48_spill] sm:$0xff] }
 0x4d6   :  { %6407 = vmatprep.mubr.msk.bf16.mxu0 %vm1169_vm1, %v9198_v40  ;;  %3358 = vmatprep.subr.bf16.mxu1 %v8953_v20  ;;  %v10629_v20 = vld [vmem:[#allocation49_spill] sm:$0xff]  ;;  %v9319_v43 = vld [vmem:[#allocation14 + $0x2d4] ss:$8 sps:$4 sm:$0xff]  }
 0x4d8   :  { %3303 = vmatpush1.bf16.msra.mxu0 %v8923_v27  ;;  %v10621_v27 = vld [vmem:[#allocation41_spill] sm:$0xff] }
 0x4d9   :  { %3304 = vmatprep.subr.bf16.mxu0 %v8931_v33  ;;  %3359 = vmatpush1.bf16.msra.mxu1 %v8956_v22  ;;  %v10624_v33 = vld [vmem:[#allocation44_spill] sm:$0xff]  ;;  %v10630_v22 = vld [vmem:[#allocation51_spill] sm:$0xff] }
 0x4da   :  { %3360 = vmatprep.subr.bf16.mxu1 %v8959_v23  ;;  %v10631_v23 = vld [vmem:[#allocation50_spill] sm:$0xff] }
 0x4dc   :  { %3305 = vmatpush1.bf16.msra.mxu0 %v8929_v59  ;;  %v10623_v59 = vld [vmem:[#allocation42_spill] sm:$0xff] }
 0x4dd   :  { %3306 = vmatprep.subr.bf16.mxu0 %v8968_v17  ;;  %3361 = vmatpush1.bf16.msra.mxu1 %v8962_v58  ;;  %v10632_v58 = vld [vmem:[#allocation52_spill] sm:$0xff]  ;;  %v10634_v17 = vld [vmem:[#allocation55_spill] sm:$0xff] }
 0x4de   :  { %3362 = vmatprep.subr.bf16.mxu1 %v8974_v21  ;;  %v10635_v21 = vld [vmem:[#allocation54_spill] sm:$0xff] }
 0x4e0   :  { %3307 = vmatpush1.bf16.msra.mxu0 %v8966_v16  ;;  %v10633_v16 = vld [vmem:[#allocation53_spill] sm:$0xff] }
 0x4e1   :  { %3308 = vmatprep.subr.bf16.mxu0 %v8977_v48  ;;  %3363 = vmatpush1.bf16.msra.mxu1 %v8972_v45  ;;  %v6405_v45 = vcombine.low %v9172_v41, %v9181_v26  ;;  %v10636_v48 = vld [vmem:[#allocation56_spill] sm:$0xff] }
 0x4e2   :  { %3364 = vmatprep.subr.bf16.mxu1 %v8984_v51  ;;  %v10637_v51 = vld [vmem:[#allocation57_spill] sm:$0xff] }
 0x4e3   :  { %v3283_v34 = vshrl.u32 %v6405_v45, 16 }
 0x4e4   :  { %3309 = vmatpush1.bf16.msra.mxu0 %v8980_v60  ;;  %v9247_v60 = vld [vmem:[#allocation14 + $0x234] ss:$8 sps:$4 sm:$0xff]  }
 0x4e5   :  { %3310 = vmatprep.subr.bf16.mxu0 %v8989_v54  ;;  %3365 = vmatpush1.bf16.msra.mxu1 %v8986_v52  ;;  %v10638_v52 = vld [vmem:[#allocation59_spill] sm:$0xff]  ;;  %v3285_v54 = vshll.u32 %v6405_v45, 16 }
 0x4e6   :  { %3366 = vmatprep.subr.bf16.mxu1 %v8995_v46  ;;  %v9252_v46 = vld [vmem:[#allocation14 + $0x230] ss:$8 sps:$4 sm:$0xff]   ;;  %v9367_v45 = vld [vmem:[#allocation14 + $0x374] ss:$8 sps:$4 sm:$0xff]  }
 0x4e8   :  { %3311 = vmatpush1.bf16.msra.mxu0 %v8992_v13  ;;  %v10639_v13 = vld [vmem:[#allocation58_spill] sm:$0xff] }
 0x4e9   :  { %3312 = vmatprep.subr.bf16.mxu0 %v9004_v38  ;;  %3367 = vmatpush1.bf16.msra.mxu1 %v8998_v25  ;;  %v6408_v25 = vcombine.low %v9172_v41, %v9177_v36  ;;  %v9259_v38 = vld [vmem:[#allocation3] sm:$0xee] }
 0x4ea   :  { %3372 = vmatprep.subr.bf16.mxu1 %v9008_v49  ;;  %v10641_v49 = vld [vmem:[#allocation61_spill] sm:$0xff]  ;;  %v6412_v9 = vcombine.high %v9259_v38, %v9170_v10  ;;  %v9276_v41 = vld [vmem:[#allocation14 + $0x310] ss:$8 sps:$4 sm:$0xff]   ;;  %v6411_v15 = vcombine.low %v9259_v38, %v9170_v10 }
 0x4eb   :  { %v4061_v38 = vld [vmem:[%s10477_s10 + $0x30] sm:$0xff] }
 0x4ec   :  { %3313 = vmatpush1.bf16.msra.mxu0 %v9002_v11  ;;  %v9257_v11 = vld [vmem:[#allocation14 + $0x224] ss:$8 sps:$4 sm:$0xff]   ;;  %v3502_v36 = vrot.slane %v6412_v9, 1  ;;  %v9400_v9 = vld [vmem:[#allocation14 + $0x350] ss:$8 sps:$4 sm:$0xff]  }
 0x4ed   :  { %3314 = vmatprep.subr.bf16.mxu0 %v9011_v4  ;;  %3373 = vmatpush2.bf16.msra.mxu1 %v9006_v55  ;;  %v10640_v55 = vld [vmem:[#allocation60_spill] sm:$0xff]  ;;  %v3287_v4 = vrot.slane %v3285_v54, 1 }
 0x4ee   :  { %3374 = vmatprep.subr.bf16.mxu1 %v10620_v63  ;;  %v9322_v63 = vld [vmem:[#allocation14 + $0x1e0] ss:$8 sps:$4 sm:$0xff]   ;;  %v9382_v54 = vld [vmem:[#allocation14 + $0x270] ss:$8 sps:$4 sm:$0xff]  }
 0x4ef   :  { %v9278_v1 = vor.u32 %v3287_v4, %v3283_v34  ;;  %v9397_v4 = vld [vmem:[#allocation14 + $0x254] ss:$8 sps:$4 sm:$0xff]   ;;  %v9403_v34 = vld [vmem:[#allocation14 + $0x344] ss:$8 sps:$4 sm:$0xff]  }
 0x4f0   :  { %3315 = vmatpush1.bf16.msra.mxu0 %v10621_v27  ;;  %v9325_v27 = vld [vmem:[#allocation14 + $0x1d4] ss:$8 sps:$4 sm:$0xff]  }
 0x4f1   :  { %3320 = vmatprep.subr.bf16.mxu0 %v10622_v30  ;;  %3375 = vmatpush2.bf16.msra.mxu1 %v10623_v59  ;;  %10643 = vst [vmem:[#allocation40_spill] sm:$0xff] %v9278_v1  ;;  %v9328_v30 = vld [vmem:[#allocation14 + $0x2d0] ss:$8 sps:$4 sm:$0xff]   ;;  %v9331_v59 = vld [vmem:[#allocation14 + $0x2c4] ss:$8 sps:$4 sm:$0xff]  }
 0x4f2   :  { %3376 = vmatprep.subr.bf16.mxu1 %v10624_v33  ;;  %v9334_v33 = vld [vmem:[#allocation14 + $0x1d0] ss:$8 sps:$4 sm:$0xff]  }
 0x4f4   :  { %3321 = vmatpush2.bf16.msra.mxu0 %v10625_v42  ;;  %v9337_v42 = vld [vmem:[#allocation14 + $0x1c4] ss:$8 sps:$4 sm:$0xff]  }
 0x4f5   :  { %3322 = vmatprep.subr.bf16.mxu0 %v10626_v14  ;;  %3377 = vmatpush2.bf16.msra.mxu1 %v10627_v18  ;;  %v9340_v14 = vld [vmem:[#allocation14 + $0x2c0] ss:$8 sps:$4 sm:$0xff]   ;;  %v9343_v18 = vld [vmem:[#allocation14 + $0x2b4] ss:$8 sps:$4 sm:$0xff]  }
 0x4f6   :  { %3378 = vmatprep.subr.bf16.mxu1 %v10628_v62  ;;  %v9346_v62 = vld [vmem:[#allocation14 + $0x1c0] ss:$8 sps:$4 sm:$0xff]  }
 0x4f8   :  { %3323 = vmatpush2.bf16.msra.mxu0 %v10629_v20  ;;  %v9349_v20 = vld [vmem:[#allocation14 + $0x294] ss:$8 sps:$4 sm:$0xff]  }
 0x4f9   :  { %3324 = vmatprep.subr.bf16.mxu0 %v10630_v22  ;;  %3379 = vmatpush2.bf16.msra.mxu1 %v10631_v23  ;;  %v9352_v22 = vld [vmem:[#allocation14 + $0x2b0] ss:$8 sps:$4 sm:$0xff]   ;;  %v9355_v23 = vld [vmem:[#allocation14 + $0x2a4] ss:$8 sps:$4 sm:$0xff]  }
 0x4fa   :  { %3380 = vmatprep.subr.bf16.mxu1 %v10632_v58  ;;  %v9358_v58 = vld [vmem:[#allocation14 + $0x290] ss:$8 sps:$4 sm:$0xff]  }
 0x4fb   :  { %v10645_v10 = vld [vmem:[#allocation40_spill] sm:$0xff] }
 0x4fc   :  { %3325 = vmatpush2.bf16.msra.mxu0 %v10633_v16  ;;  %v9361_v16 = vld [vmem:[#allocation14 + $0x284] ss:$8 sps:$4 sm:$0xff]  }
 0x4fd   :  { %3326 = vmatprep.subr.bf16.mxu0 %v10634_v17  ;;  %3381 = vmatpush2.bf16.msra.mxu1 %v10635_v21  ;;  %v9364_v17 = vld [vmem:[#allocation14 + $0x2a0] ss:$8 sps:$4 sm:$0xff]  }
 0x4fe   :  { %3382 = vmatprep.subr.bf16.mxu1 %v10636_v48  ;;  %v9370_v21 = vld [vmem:[#allocation14 + $0x280] ss:$8 sps:$4 sm:$0xff]   ;;  %v9373_v48 = vld [vmem:[#allocation14 + $0x274] ss:$8 sps:$4 sm:$0xff]  }
 0x500   :  { %3327 = vmatpush2.bf16.msra.mxu0 %v10637_v51  ;;  %v9376_v51 = vld [vmem:[#allocation14 + $0x370] ss:$8 sps:$4 sm:$0xff]  }
 0x501   :  { %3328 = vmatprep.subr.bf16.mxu0 %v10638_v52  ;;  %3383 = vmatpush2.bf16.msra.mxu1 %v10639_v13  ;;  %v9379_v52 = vld [vmem:[#allocation14 + $0x364] ss:$8 sps:$4 sm:$0xff]  }
 0x502   :  { %3830 = vmatprep.subr.bf16.mxu1 %v9247_v60  ;;  %v9385_v13 = vld [vmem:[#allocation14 + $0x264] ss:$8 sps:$4 sm:$0xff]  }
 0x504   :  { %3329 = vmatpush2.bf16.msra.mxu0 %v10640_v55  ;;  %3385 = vmatmul.mubr.bf16.vlgmr.msra.gmra.mxu1 %v6408_v25  ;;  %v9388_v25 = vld [vmem:[#allocation14 + $0x360] ss:$8 sps:$4 sm:$0xff]   ;;  %v9391_v55 = vld [vmem:[#allocation14 + $0x354] ss:$8 sps:$4 sm:$0xff]  }
 0x505   :  { %3330 = vmatprep.subr.bf16.mxu0 %v10641_v49  ;;  %3831 = vmatpush1.bf16.msra.mxu1 %v9252_v46  ;;  %v9394_v49 = vld [vmem:[#allocation14 + $0x260] ss:$8 sps:$4 sm:$0xff]  }
 0x506   :  { %6470 = vmatprep.mubr.msk.bf16.mxu1 %vm1169_vm1, %v9188_v61  ;;  %3832 = vmatprep.subr.bf16.mxu1 %v9257_v11  ;;  %v9310_v61 = vld [vmem:[#allocation14 + $0x1f0] ss:$8 sps:$4 sm:$0xff]  }
 0x508   :  { %3331 = vmatpush2.bf16.msra.mxu0 %v10642_v39  ;;  %v9406_v39 = vld [vmem:[#allocation14 + $0x250] ss:$8 sps:$4 sm:$0xff]  }
 0x509   :  { %3647 = vmatprep.subr.bf16.mxu0 %v9263_v29  ;;  %3833 = vmatpush1.bf16.msra.mxu1 %v9268_v28 }
 0x50a   :  { %3834 = vmatprep.subr.bf16.mxu1 %v9273_v19 }
 0x50b   :  { %3333 = vmatmul.mubr.bf16.vlgmr.msra.gmra.mxu0 %v9278_v1  ;;  %v3501_v1 = vrot.slane %v6411_v15, 1  ;;  %v10644_v15 = vmov 0.0  }
 0x50c   :  { %3648 = vmatpush1.bf16.msra.mxu0 %v9276_v41  ;;  %6441 = vmatprep.mubr.msk.bf16.mxu0 %vm1169_vm1, %v3502_v36  ;;  %v9409_v36 = vld [vmem:[#allocation14 + $0x244] ss:$8 sps:$4 sm:$0xff]  }
 0x50d   :  { %3649 = vmatprep.subr.bf16.mxu0 %v9281_v5  ;;  %3835 = vmatpush1.bf16.msra.mxu1 %v9284_v35 }
 0x50e   :  { %3836 = vmatprep.subr.bf16.mxu1 %v9288_v6 }
 0x510   :  { %3650 = vmatpush1.bf16.msra.mxu0 %v9292_v56 }
 0x511   :  { %3651 = vmatprep.subr.bf16.mxu0 %v9295_v32  ;;  %3837 = vmatpush1.bf16.msra.mxu1 %v9298_v3 }
 0x512   :  { %3838 = vmatprep.subr.bf16.mxu1 %v9301_v24 }
 0x514   :  { %3652 = vmatpush1.bf16.msra.mxu0 %v9304_v47 }
 0x515   :  { %3653 = vmatprep.subr.bf16.mxu0 %v9307_v31  ;;  %3839 = vmatpush1.bf16.msra.mxu1 %v9310_v61 }
 0x516   :  { %3840 = vmatprep.subr.bf16.mxu1 %v9313_v0 }
 0x518   :  { %3654 = vmatpush1.bf16.msra.mxu0 %v9316_v2 }
 0x519   :  { %3655 = vmatprep.subr.bf16.mxu0 %v9319_v43  ;;  %3841 = vmatpush1.bf16.msra.mxu1 %v9322_v63 }
 0x51a   :  { %3842 = vmatprep.subr.bf16.mxu1 %v9325_v27 }
 0x51c   :  { %3656 = vmatpush1.bf16.msra.mxu0 %v9328_v30 }
 0x51d   :  { %3657 = vmatprep.subr.bf16.mxu0 %v9331_v59  ;;  %3843 = vmatpush1.bf16.msra.mxu1 %v9334_v33 }
 0x51e   :  { %3844 = vmatprep.subr.bf16.mxu1 %v9337_v42 }
 0x520   :  { %3658 = vmatpush1.bf16.msra.mxu0 %v9340_v14 }
 0x521   :  { %3659 = vmatprep.subr.bf16.mxu0 %v9343_v18  ;;  %3845 = vmatpush1.bf16.msra.mxu1 %v9346_v62 }
 0x522   :  { %3850 = vmatprep.subr.bf16.mxu1 %v9349_v20 }
 0x524   :  { %3660 = vmatpush1.bf16.msra.mxu0 %v9352_v22 }
 0x525   :  { %3661 = vmatprep.subr.bf16.mxu0 %v9355_v23  ;;  %3851 = vmatpush2.bf16.msra.mxu1 %v9358_v58 }
 0x526   :  { %3852 = vmatprep.subr.bf16.mxu1 %v9361_v16 }
 0x528   :  { %3662 = vmatpush1.bf16.msra.mxu0 %v9364_v17 }
 0x529   :  { %3667 = vmatprep.subr.bf16.mxu0 %v9367_v45  ;;  %3853 = vmatpush2.bf16.msra.mxu1 %v9370_v21 }
 0x52a   :  { %3854 = vmatprep.subr.bf16.mxu1 %v9373_v48 }
 0x52c   :  { %3668 = vmatpush2.bf16.msra.mxu0 %v9376_v51 }
 0x52d   :  { %3669 = vmatprep.subr.bf16.mxu0 %v9379_v52  ;;  %3855 = vmatpush2.bf16.msra.mxu1 %v9382_v54 }
 0x52e   :  { %3856 = vmatprep.subr.bf16.mxu1 %v9385_v13 }
 0x530   :  { %3670 = vmatpush2.bf16.msra.mxu0 %v9388_v25 }
 0x531   :  { %3671 = vmatprep.subr.bf16.mxu0 %v9391_v55  ;;  %3857 = vmatpush2.bf16.msra.mxu1 %v9394_v49 }
 0x532   :  { %3858 = vmatprep.subr.bf16.mxu1 %v9397_v4 }
 0x534   :  { %3672 = vmatpush2.bf16.msra.mxu0 %v9400_v9 }
 0x535   :  { %3673 = vmatprep.subr.bf16.mxu0 %v9403_v34  ;;  %3859 = vmatpush2.bf16.msra.mxu1 %v9406_v39 }
 0x536   :  { %3860 = vmatprep.subr.bf16.mxu1 %v9409_v36 }
 0x538   :  { %3674 = vmatpush2.bf16.msra.mxu0 %v9412_v7 }
 0x539   :  { %3675 = vmatprep.subr.bf16.mxu0 %v9415_v37  ;;  %3861 = vmatpush2.bf16.msra.mxu1 %v9418_v44 }
 0x53a   :  { %3970 = vmatprep.subr.bf16.mxu1 %v9247_v60  ;;  %v6472_v60 = vcombine.high %v9429_v53, %v9181_v26 }
 0x53c   :  { %3676 = vmatpush2.bf16.msra.mxu0 %v9422_v12  ;;  %3863 = vmatmul.mubr.bf16.vlgmr.msra.gmra.mxu1 %v9190_v57  ;;  %v3922_v57 = vrot.slane %v6472_v60, 1 }
 0x53d   :  { %3677 = vmatprep.subr.bf16.mxu0 %v9425_v50  ;;  %3971 = vmatpush1.bf16.msra.mxu1 %v9252_v46 }
 0x53e   :  { %6474 = vmatprep.mubr.msk.bf16.mxu1 %vm1169_vm1, %v9198_v40  ;;  %3972 = vmatprep.subr.bf16.mxu1 %v9257_v11  ;;  %v6471_v40 = vcombine.low %v9429_v53, %v9181_v26  ;;  %v4066_v53 = vld [vmem:[%s10477_s10 + $0x58] sm:$0xff]  ;;  %v4063_v26 = vld [vmem:[%s10477_s10 + $0x40] sm:$0xff] }
 0x53f   :  { %v4062_v11 = vld [vmem:[%s10477_s10 + $0x38] sm:$0xff] }
 0x540   :  { %3678 = vmatpush2.bf16.msra.mxu0 %v9432_v8  ;;  %v3921_v46 = vrot.slane %v6471_v40, 1 }
 0x541   :  { %3927 = vmatprep.subr.bf16.mxu0 %v9263_v29  ;;  %3973 = vmatpush1.bf16.msra.mxu1 %v9268_v28  ;;  %v4060_v29 = vld [vmem:[%s10477_s10 + $0x28] sm:$0xff]  ;;  %v4059_v28 = vld [vmem:[%s10477_s10 + $0x20] sm:$0xff] }
 0x542   :  { %3974 = vmatprep.subr.bf16.mxu1 %v9273_v19  ;;  %v4058_v19 = vld [vmem:[%s10477_s10 + $0x18] sm:$0xff] }
 0x543   :  { %3680 = vmatmul.mubr.bf16.vlgmr.msra.gmra.mxu0 %v3501_v1  ;;  %v4056_v1 = vld [vmem:[%s10477_s10 + $0x8] sm:$0xff] }
 0x544   :  { %3928 = vmatpush1.bf16.msra.mxu0 %v9276_v41  ;;  %6473 = vmatprep.mubr.msk.bf16.mxu0 %vm1169_vm1, %v3922_v57  ;;  %v4057_v41 = vld [vmem:[%s10477_s10 + $0x10] sm:$0xff] }
 0x545   :  { %3929 = vmatprep.subr.bf16.mxu0 %v9281_v5  ;;  %3975 = vmatpush1.bf16.msra.mxu1 %v9284_v35  ;;  %v4055_v5 = vld [vmem:[%s10477_s10] sm:$0xff]  ;;  %v4082_v35 = vld [vmem:[%s10477_s10 + $0xd8] sm:$0xff] }
 0x546   :  { %3976 = vmatprep.subr.bf16.mxu1 %v9288_v6  ;;  %v4081_v6 = vld [vmem:[%s10477_s10 + $0xd0] sm:$0xff] }
 0x548   :  { %3930 = vmatpush1.bf16.msra.mxu0 %v9292_v56  ;;  %v4080_v56 = vld [vmem:[%s10477_s10 + $0xc8] sm:$0xff] }
 0x549   :  { %3931 = vmatprep.subr.bf16.mxu0 %v9295_v32  ;;  %3977 = vmatpush1.bf16.msra.mxu1 %v9298_v3  ;;  %v4079_v32 = vld [vmem:[%s10477_s10 + $0xc0] sm:$0xff]  ;;  %v4078_v3 = vld [vmem:[%s10477_s10 + $0xb8] sm:$0xff] }
 0x54a   :  { %3978 = vmatprep.subr.bf16.mxu1 %v9301_v24  ;;  %v4077_v24 = vld [vmem:[%s10477_s10 + $0xb0] sm:$0xff] }
 0x54c   :  { %3932 = vmatpush1.bf16.msra.mxu0 %v9304_v47  ;;  %v4076_v47 = vld [vmem:[%s10477_s10 + $0xa8] sm:$0xff] }
 0x54d   :  { %3933 = vmatprep.subr.bf16.mxu0 %v9307_v31  ;;  %3979 = vmatpush1.bf16.msra.mxu1 %v9310_v61  ;;  %v4075_v31 = vld [vmem:[%s10477_s10 + $0xa0] sm:$0xff]  ;;  %v4074_v61 = vld [vmem:[%s10477_s10 + $0x98] sm:$0xff] }
 0x54e   :  { %3980 = vmatprep.subr.bf16.mxu1 %v9313_v0  ;;  %v4073_v0 = vld [vmem:[%s10477_s10 + $0x90] sm:$0xff] }
 0x550   :  { %3934 = vmatpush1.bf16.msra.mxu0 %v9316_v2  ;;  %v4072_v2 = vld [vmem:[%s10477_s10 + $0x88] sm:$0xff] }
 0x551   :  { %3935 = vmatprep.subr.bf16.mxu0 %v9319_v43  ;;  %3981 = vmatpush1.bf16.msra.mxu1 %v9322_v63  ;;  %v4071_v43 = vld [vmem:[%s10477_s10 + $0x80] sm:$0xff] }
 0x552   :  { %3982 = vmatprep.subr.bf16.mxu1 %v9325_v27 }
 0x554   :  { %3936 = vmatpush1.bf16.msra.mxu0 %v9328_v30 }
 0x555   :  { %3937 = vmatprep.subr.bf16.mxu0 %v9331_v59  ;;  %3983 = vmatpush1.bf16.msra.mxu1 %v9334_v33 }
 0x556   :  { %3984 = vmatprep.subr.bf16.mxu1 %v9337_v42 }
 0x558   :  { %3938 = vmatpush1.bf16.msra.mxu0 %v9340_v14 }
 0x559   :  { %3939 = vmatprep.subr.bf16.mxu0 %v9343_v18  ;;  %3985 = vmatpush1.bf16.msra.mxu1 %v9346_v62 }
 0x55a   :  { %3990 = vmatprep.subr.bf16.mxu1 %v9349_v20 }
 0x55c   :  { %3940 = vmatpush1.bf16.msra.mxu0 %v9352_v22 }
 0x55d   :  { %3941 = vmatprep.subr.bf16.mxu0 %v9355_v23  ;;  %3991 = vmatpush2.bf16.msra.mxu1 %v9358_v58 }
 0x55e   :  { %3992 = vmatprep.subr.bf16.mxu1 %v9361_v16 }
 0x560   :  { %3942 = vmatpush1.bf16.msra.mxu0 %v9364_v17 }
 0x561   :  { %3947 = vmatprep.subr.bf16.mxu0 %v9367_v45  ;;  %3993 = vmatpush2.bf16.msra.mxu1 %v9370_v21 }
 0x562   :  { %3994 = vmatprep.subr.bf16.mxu1 %v9373_v48 }
 0x564   :  { %3948 = vmatpush2.bf16.msra.mxu0 %v9376_v51 }
 0x565   :  { %3949 = vmatprep.subr.bf16.mxu0 %v9379_v52  ;;  %3995 = vmatpush2.bf16.msra.mxu1 %v9382_v54 }
 0x566   :  { %3996 = vmatprep.subr.bf16.mxu1 %v9385_v13 }
 0x568   :  { %3950 = vmatpush2.bf16.msra.mxu0 %v9388_v25 }
 0x569   :  { %3951 = vmatprep.subr.bf16.mxu0 %v9391_v55  ;;  %3997 = vmatpush2.bf16.msra.mxu1 %v9394_v49 }
 0x56a   :  { %3998 = vmatprep.subr.bf16.mxu1 %v9397_v4 }
 0x56c   :  { %3952 = vmatpush2.bf16.msra.mxu0 %v9400_v9 }
 0x56d   :  { %3953 = vmatprep.subr.bf16.mxu0 %v9403_v34  ;;  %3999 = vmatpush2.bf16.msra.mxu1 %v9406_v39 }
 0x56e   :  { %4000 = vmatprep.subr.bf16.mxu1 %v9409_v36 }
 0x570   :  { %3954 = vmatpush2.bf16.msra.mxu0 %v9412_v7  ;;  %v4064_v7 = vld [vmem:[%s10477_s10 + $0x48] sm:$0xff] }
 0x571   :  { %3955 = vmatprep.subr.bf16.mxu0 %v9415_v37  ;;  %4001 = vmatpush2.bf16.msra.mxu1 %v9418_v44  ;;  %v4070_v44 = vld [vmem:[%s10477_s10 + $0x78] sm:$0xff]  ;;  %v4065_v37 = vld [vmem:[%s10477_s10 + $0x50] sm:$0xff] }
 0x572   :  { %4161 = vmatprep.subr.mxu1 %v10644_v15 }
 0x574   :  { %3956 = vmatpush2.bf16.msra.mxu0 %v9422_v12  ;;  %4003 = vmatmul.mubr.bf16.vlgmr.msra.gmra.mxu1 %v10645_v10  ;;  %v4069_v12 = vld [vmem:[%s10477_s10 + $0x70] sm:$0xff] }
 0x575   :  { %3957 = vmatprep.subr.bf16.mxu0 %v9425_v50  ;;  %4162 = vmatpush1.msra.mxu1 %v4070_v44  ;;  %v4068_v50 = vld [vmem:[%s10477_s10 + $0x68] sm:$0xff] }
 0x576   :  { %4163 = vmatprep.subr.mxu1 %v10644_v15 }
 0x577   :  { %4164 = vmatpush1.msra.mxu1 %v4069_v12 }
 0x578   :  { %3958 = vmatpush2.bf16.msra.mxu0 %v9432_v8  ;;  %4165 = vmatprep.subr.mxu1 %v10644_v15  ;;  %v4067_v8 = vld [vmem:[%s10477_s10 + $0x60] sm:$0xff] }
 0x579   :  { %4086 = vmatprep.subr.mxu0 %v10644_v15  ;;  %4166 = vmatpush1.msra.mxu1 %v4068_v50 }
 0x57a   :  { %4167 = vmatprep.subr.mxu1 %v10644_v15 }
 0x57b   :  { %3960 = vmatmul.mubr.bf16.vlgmr.msra.gmra.mxu0 %v3921_v46  ;;  %4168 = vmatpush1.msra.mxu1 %v4067_v8 }
 0x57c   :  { %4087 = vmatpush1.msra.mxu0 %v4070_v44  ;;  %4169 = vmatprep.subr.mxu1 %v10644_v15 }
 0x57d   :  { %4088 = vmatprep.subr.mxu0 %v10644_v15  ;;  %4170 = vmatpush1.msra.mxu1 %v4066_v53 }
 0x57e   :  { %4089 = vmatpush1.msra.mxu0 %v4069_v12  ;;  %4171 = vmatprep.subr.mxu1 %v10644_v15 }
 0x57f   :  { %4090 = vmatprep.subr.mxu0 %v10644_v15  ;;  %4172 = vmatpush1.msra.mxu1 %v4065_v37 }
 0x580   :  { %4091 = vmatpush1.msra.mxu0 %v4068_v50  ;;  %4173 = vmatprep.subr.mxu1 %v10644_v15 }
 0x581   :  { %4092 = vmatprep.subr.mxu0 %v10644_v15  ;;  %4174 = vmatpush1.msra.mxu1 %v4064_v7 }
 0x582   :  { %4093 = vmatpush1.msra.mxu0 %v4067_v8  ;;  %4175 = vmatprep.subr.mxu1 %v10644_v15 }
 0x583   :  { %4094 = vmatprep.subr.mxu0 %v10644_v15  ;;  %4176 = vmatpush1.msra.mxu1 %v4063_v26 }
 0x584   :  { %4095 = vmatpush1.msra.mxu0 %v4066_v53  ;;  %4177 = vmatprep.subr.mxu1 %v10644_v15 }
 0x585   :  { %4096 = vmatprep.subr.mxu0 %v10644_v15  ;;  %4178 = vmatpush1.msra.mxu1 %v4062_v11 }
 0x586   :  { %4097 = vmatpush1.msra.mxu0 %v4065_v37  ;;  %4179 = vmatprep.subr.mxu1 %v10644_v15 }
 0x587   :  { %4098 = vmatprep.subr.mxu0 %v10644_v15  ;;  %4180 = vmatpush1.msra.mxu1 %v4061_v38 }
 0x588   :  { %4099 = vmatpush1.msra.mxu0 %v4064_v7  ;;  %4181 = vmatprep.subr.mxu1 %v10644_v15 }
 0x589   :  { %4100 = vmatprep.subr.mxu0 %v10644_v15  ;;  %4182 = vmatpush1.msra.mxu1 %v4060_v29 }
 0x58a   :  { %4101 = vmatpush1.msra.mxu0 %v4063_v26  ;;  %4183 = vmatprep.subr.mxu1 %v10644_v15 }
 0x58b   :  { %4102 = vmatprep.subr.mxu0 %v10644_v15  ;;  %4184 = vmatpush1.msra.mxu1 %v4059_v28 }
 0x58c   :  { %4103 = vmatpush1.msra.mxu0 %v4062_v11  ;;  %4185 = vmatprep.subr.mxu1 %v10644_v15  ;;  %v3218_v27 = vpop.f32.mrf.mxu1 }
 0x58d   :  { %4104 = vmatprep.subr.mxu0 %v10644_v15  ;;  %4186 = vmatpush1.msra.mxu1 %v4058_v19 }
 0x58e   :  { %4105 = vmatpush1.msra.mxu0 %v4061_v38  ;;  %4187 = vmatprep.subr.mxu1 %v10644_v15  ;;  %v3220_v59 = vpop.f32.mrf.mxu1 }
 0x58f   :  { %4106 = vmatprep.subr.mxu0 %v10644_v15  ;;  %4188 = vmatpush1.msra.mxu1 %v4057_v41 }
 0x590   :  { %4107 = vmatpush1.msra.mxu0 %v4060_v29  ;;  %4189 = vmatprep.subr.mxu1 %v10644_v15  ;;  %v3222_v42 = vpop.f32.mrf.mxu1 }
 0x591   :  { %4108 = vmatprep.subr.mxu0 %v10644_v15  ;;  %4190 = vmatpush1.msra.mxu1 %v4056_v1 }
 0x592   :  { %4109 = vmatpush1.msra.mxu0 %v4059_v28  ;;  %4191 = vmatprep.subr.mxu1 %v10644_v15  ;;  %v3224_v18 = vpop.f32.mrf.mxu1 }
 0x593   :  { %4110 = vmatprep.subr.mxu0 %v10644_v15  ;;  %4192 = vmatpush1.msra.mxu1 %v4055_v5  ;;  %v3026_v63 = vpop.f32.mrf.mxu0 }
 0x594   :  { %4111 = vmatpush1.msra.mxu0 %v4058_v19  ;;  %4201 = vmatprep.subr.mxu1 %v10644_v15  ;;  %v9652_v4 = vadd.f32 %v3218_v27, %v3026_v63 }
 0x595   :  { %4112 = vmatprep.subr.mxu0 %v10644_v15  ;;  %4202 = vmatpush2.msra.mxu1 %v4082_v35  ;;  %v3028_v30 = vpop.f32.mrf.mxu0 }
 0x596   :  { %4113 = vmatpush1.msra.mxu0 %v4057_v41  ;;  %4203 = vmatprep.subr.mxu1 %v10644_v15  ;;  %v9646_v13 = vadd.f32 %v3220_v59, %v3028_v30  ;;  %v3248_v50 = vmul.f32 %v9652_v4, %v9652_v4 }
 0x597   :  { %4114 = vmatprep.subr.mxu0 %v10644_v15  ;;  %4204 = vmatpush2.msra.mxu1 %v4081_v6  ;;  %v3030_v33 = vpop.f32.mrf.mxu0 }
 0x598   :  { %4115 = vmatpush1.msra.mxu0 %v4056_v1  ;;  %4205 = vmatprep.subr.mxu1 %v10644_v15  ;;  %v9642_v51 = vadd.f32 %v3222_v42, %v3030_v33  ;;  %v3236_v60 = vsel %vm1169_vm1, %v9646_v13, 0.0  ;;  %v3249_v57 = vmul.f32 %v9646_v13, %v9646_v13 }
 0x599   :  { %4116 = vmatprep.subr.mxu0 %v10644_v15  ;;  %4206 = vmatpush2.msra.mxu1 %v4080_v56  ;;  %v3032_v14 = vpop.f32.mrf.mxu0 }
 0x59a   :  { %4117 = vmatpush1.msra.mxu0 %v4055_v5  ;;  %4207 = vmatprep.subr.mxu1 %v10644_v15  ;;  %v9644_v52 = vadd.f32 %v3224_v18, %v3032_v14  ;;  %v3228_v55 = vsel %vm3227_vm11, %v9642_v51, 0.0  ;;  %v3250_v49 = vmul.f32 %v9642_v51, %v9642_v51  ;;  %v3260_v26 = vsel %vm1169_vm1, %v3249_v57, 0.0 }
 0x59b   :  { %4126 = vmatprep.subr.mxu0 %v10644_v15  ;;  %4208 = vmatpush2.msra.mxu1 %v4079_v32  ;;  %v3229_v10 = vadd.f32 %v3228_v55, %v9652_v4 }
 0x59c   :  { %4127 = vmatpush2.msra.mxu0 %v4082_v35  ;;  %4209 = vmatprep.subr.mxu1 %v10644_v15  ;;  %v3238_v9 = vsel %vm3237_vm2, %v9644_v52, 0.0  ;;  %v3251_v34 = vmul.f32 %v9644_v52, %v9644_v52  ;;  %v3252_v46 = vsel %vm3227_vm11, %v3250_v49, 0.0 }
 0x59d   :  { %4128 = vmatprep.subr.mxu0 %v10644_v15  ;;  %4210 = vmatpush2.msra.mxu1 %v4078_v3  ;;  %v3239_v44 = vadd.f32 %v3238_v9, %v3236_v60  ;;  %v3230_v11 = vrot.slane %v3229_v10, 4  ;;  %v3253_v38 = vadd.f32 %v3252_v46, %v3248_v50 }
 0x59e   :  { %4129 = vmatpush2.msra.mxu0 %v4081_v6  ;;  %4211 = vmatprep.subr.mxu1 %v10644_v15  ;;  %v3261_v8 = vsel %vm3237_vm2, %v3251_v34, 0.0 }
 0x59f   :  { %4130 = vmatprep.subr.mxu0 %v10644_v15  ;;  %4212 = vmatpush2.msra.mxu1 %v4077_v24  ;;  %v3240_v19 = vrot.slane %v3239_v44, 4  ;;  %v3262_v41 = vadd.f32 %v3261_v8, %v3260_v26 }
 0x5a0   :  { %4131 = vmatpush2.msra.mxu0 %v4080_v56  ;;  %4213 = vmatprep.subr.mxu1 %v10644_v15 }
 0x5a1   :  { %4132 = vmatprep.subr.mxu0 %v10644_v15  ;;  %4214 = vmatpush2.msra.mxu1 %v4076_v47 }
 0x5a2   :  { %4133 = vmatpush2.msra.mxu0 %v4079_v32  ;;  %4215 = vmatprep.subr.mxu1 %v10644_v15 }
 0x5a3   :  { %4134 = vmatprep.subr.mxu0 %v10644_v15  ;;  %4216 = vmatpush2.msra.mxu1 %v4075_v31 }
 0x5a4   :  { %4135 = vmatpush2.msra.mxu0 %v4078_v3  ;;  %4217 = vmatprep.subr.mxu1 %v10644_v15 }
 0x5a5   :  { %4136 = vmatprep.subr.mxu0 %v10644_v15  ;;  %4218 = vmatpush2.msra.mxu1 %v4074_v61 }
 0x5a6   :  { %4137 = vmatpush2.msra.mxu0 %v4077_v24  ;;  %4219 = vmatprep.subr.mxu1 %v10644_v15  ;;  %v3231_v24 = vadd.f32 %v3230_v11, %v3229_v10 }
 0x5a7   :  { %4138 = vmatprep.subr.mxu0 %v10644_v15  ;;  %4220 = vmatpush2.msra.mxu1 %v4073_v0 }
 0x5a8   :  { %4139 = vmatpush2.msra.mxu0 %v4076_v47  ;;  %4221 = vmatprep.subr.mxu1 %v10644_v15  ;;  %v3254_v47 = vrot.slane %v3253_v38, 4 }
 0x5a9   :  { %4140 = vmatprep.subr.mxu0 %v10644_v15  ;;  %4222 = vmatpush2.msra.mxu1 %v4072_v2 }
 0x5aa   :  { %4141 = vmatpush2.msra.mxu0 %v4075_v31  ;;  %4223 = vmatprep.subr.mxu1 %v10644_v15 }
 0x5ab   :  { %4142 = vmatprep.subr.mxu0 %v10644_v15  ;;  %4224 = vmatpush2.msra.mxu1 %v4071_v43 }
 0x5ac   :  { %4143 = vmatpush2.msra.mxu0 %v4074_v61 }
 0x5ad   :  { %4144 = vmatprep.subr.mxu0 %v10644_v15 }
 0x5ae   :  { %4145 = vmatpush2.msra.mxu0 %v4073_v0  ;;  %v3241_v0 = vadd.f32 %v3240_v19, %v3239_v44 }
 0x5af   :  { %4146 = vmatprep.subr.mxu0 %v10644_v15 }
 0x5b0   :  { %4147 = vmatpush2.msra.mxu0 %v4072_v2  ;;  %v3263_v2 = vrot.slane %v3262_v41, 4 }
 0x5b1   :  { %4148 = vmatprep.subr.mxu0 %v10644_v15 }
 0x5b2   :  { %4149 = vmatpush2.msra.mxu0 %v4071_v43 }
 0x5c4   :  { %v3386_v20 = vpop.f32.mrf.mxu1 }
 0x5c6   :  { %v3388_v23 = vpop.f32.mrf.mxu1 }
 0x5c8   :  { %v3390_v16 = vpop.f32.mrf.mxu1 }
 0x5ca   :  { %v3392_v45 = vpop.f32.mrf.mxu1 }
 0x5cb   :  { %v3334_v62 = vpop.f32.mrf.mxu0 }
 0x5cc   :  { %v9676_v29 = vadd.f32 %v3386_v20, %v3334_v62  ;;  %v3232_v20 = vrot.slane %v3231_v24, 2 }
 0x5cd   :  { %v3336_v22 = vpop.f32.mrf.mxu0 }
 0x5ce   :  { %v9671_v53 = vadd.f32 %v3388_v23, %v3336_v22  ;;  %v3414_v31 = vmul.f32 %v9676_v29, %v9676_v29  ;;  %v3233_v46 = vadd.f32 %v3232_v20, %v3231_v24 }
 0x5cf   :  { %v3338_v58 = vpop.f32.mrf.mxu0 }
 0x5d0   :  { %v9658_v36 = vadd.f32 %v3390_v16, %v3338_v58  ;;  %v3415_v35 = vmul.f32 %v9671_v53, %v9671_v53  ;;  %v3403_v27 = vsel %vm1169_vm1, %v9671_v53, 0.0  ;;  %v3255_v58 = vadd.f32 %v3254_v47, %v3253_v38 }
 0x5d1   :  { %v3340_v17 = vpop.f32.mrf.mxu0 }
 0x5d2   :  { %v9666_v12 = vadd.f32 %v3392_v45, %v3340_v17  ;;  %v3416_v7 = vmul.f32 %v9658_v36, %v9658_v36  ;;  %v3395_v6 = vsel %vm3227_vm11, %v9658_v36, 0.0  ;;  %v3426_v30 = vsel %vm1169_vm1, %v3415_v35, 0.0 }
 0x5d3   :  { %v3396_v59 = vadd.f32 %v3395_v6, %v9676_v29  ;;  %v3256_v44 = vrot.slane %v3255_v58, 2  ;;  %v3234_v35 = vrot.slane %v3233_v46, 1 }
 0x5d4   :  { %v3417_v1 = vmul.f32 %v9666_v12, %v9666_v12  ;;  %v3418_v56 = vsel %vm3227_vm11, %v3416_v7, 0.0  ;;  %v3404_v61 = vsel %vm3237_vm2, %v9666_v12, 0.0 }
 0x5d5   :  { %v3419_v33 = vadd.f32 %v3418_v56, %v3414_v31  ;;  %v3405_v42 = vadd.f32 %v3404_v61, %v3403_v27  ;;  %v3397_v55 = vrot.slane %v3396_v59, 4  ;;  %v9720_v6 = vadd.f32 %v3256_v44, %v3255_v58 }
 0x5d6   :  { %v3427_v43 = vsel %vm3237_vm2, %v3417_v1, 0.0 }
 0x5d7   :  { %v3428_v22 = vadd.f32 %v3427_v43, %v3426_v30  ;;  %v3420_v9 = vrot.slane %v3419_v33, 4  ;;  %v3406_v34 = vrot.slane %v3405_v42, 4  ;;  %v3398_v26 = vadd.f32 %v3397_v55, %v3396_v59 }
 0x5d9   :  { %v3421_v11 = vadd.f32 %v3420_v9, %v3419_v33  ;;  %v3407_v38 = vadd.f32 %v3406_v34, %v3405_v42  ;;  %v9724_v42 = vadd.f32 %v3234_v35, %v3233_v46 }
 0x5db   :  { %v3408_v43 = vrot.slane %v3407_v38, 2 }
 0x5dd   :  { %v3409_v55 = vadd.f32 %v3408_v43, %v3407_v38 }
 0x5fc   :  { %v3864_v48 = vpop.f32.mrf.mxu1 }
 0x5fe   :  { %v3866_v25 = vpop.f32.mrf.mxu1 }
 0x600   :  { %v3868_v40 = vpop.f32.mrf.mxu1 }
 0x602   :  { %v3870_v28 = vpop.f32.mrf.mxu1 }
 0x603   :  { %v3681_v21 = vpop.f32.mrf.mxu0 }
 0x604   :  { %v9708_v23 = vadd.f32 %v3864_v48, %v3681_v21  ;;  %v3429_v48 = vrot.slane %v3428_v22, 4 }
 0x605   :  { %v3683_v54 = vpop.f32.mrf.mxu0 }
 0x606   :  { %v9687_v32 = vadd.f32 %v3866_v25, %v3683_v54  ;;  %v3242_v54 = vrot.slane %v3241_v0, 2  ;;  %v3264_v25 = vadd.f32 %v3263_v2, %v3262_v41  ;;  %v3892_v60 = vmul.f32 %v9708_v23, %v9708_v23 }
 0x607   :  { %v3685_v39 = vpop.f32.mrf.mxu0  ;;  %v3422_v2 = vrot.slane %v3421_v11, 2 }
 0x608   :  { %v9689_v3 = vadd.f32 %v3868_v40, %v3685_v39  ;;  %v3893_v14 = vmul.f32 %v9687_v32, %v9687_v32  ;;  %v3881_v16 = vsel %vm1169_vm1, %v9687_v32, 0.0  ;;  %v3243_v50 = vadd.f32 %v3242_v54, %v3241_v0 }
 0x609   :  { %v3687_v37 = vpop.f32.mrf.mxu0  ;;  %v3265_v7 = vrot.slane %v3264_v25, 2  ;;  %v3399_v0 = vrot.slane %v3398_v26, 2  ;;  %v3423_v54 = vadd.f32 %v3422_v2, %v3421_v11  ;;  %v3410_v11 = vrot.slane %v3409_v55, 1 }
 0x60a   :  { %v9680_v5 = vadd.f32 %v3870_v28, %v3687_v37  ;;  %v3894_v18 = vmul.f32 %v9689_v3, %v9689_v3  ;;  %v3873_v17 = vsel %vm3227_vm11, %v9689_v3, 0.0  ;;  %v3904_v39 = vsel %vm1169_vm1, %v3893_v14, 0.0 }
 0x60b   :  { %v3874_v57 = vadd.f32 %v3873_v17, %v9708_v23  ;;  %v3430_v28 = vadd.f32 %v3429_v48, %v3428_v22  ;;  %v3244_v56 = vrot.slane %v3243_v50, 1  ;;  %v9722_v24 = vadd.f32 %v3265_v7, %v3264_v25 }
 0x60c   :  { %v3895_v63 = vmul.f32 %v9680_v5, %v9680_v5  ;;  %v3882_v62 = vsel %vm3237_vm2, %v9680_v5, 0.0  ;;  %v3896_v21 = vsel %vm3227_vm11, %v3894_v18, 0.0  ;;  %v3258_v14 = vrot.slane %v9720_v6, 1 }
 0x60d   :  { %v3883_v49 = vadd.f32 %v3882_v62, %v3881_v16  ;;  %v3897_v8 = vadd.f32 %v3896_v21, %v3892_v60  ;;  %v3875_v19 = vrot.slane %v3874_v57, 4  ;;  %v9729_v62 = vadd.f32 %v3244_v56, %v3243_v50 }
 0x60e   :  { %v3905_v45 = vsel %vm3237_vm2, %v3895_v63, 0.0  ;;  %v3431_v63 = vrot.slane %v3430_v28, 2  ;;  %v3267_v17 = vrot.slane %v9722_v24, 1 }
 0x60f   :  { %v3906_v10 = vadd.f32 %v3905_v45, %v3904_v39  ;;  %v3884_v37 = vrot.slane %v3883_v49, 4  ;;  %v3898_v47 = vrot.slane %v3897_v8, 4  ;;  %v3876_v27 = vadd.f32 %v3875_v19, %v3874_v57 }
 0x610   :  { %v3400_v45 = vadd.f32 %v3399_v0, %v3398_v26 }
 0x611   :  { %v3907_v41 = vrot.slane %v3906_v10, 4  ;;  %v3885_v31 = vadd.f32 %v3884_v37, %v3883_v49  ;;  %v3899_v20 = vadd.f32 %v3898_v47, %v3897_v8  ;;  %v3432_v49 = vadd.f32 %v3431_v63, %v3430_v28 }
 0x612   :  { %v3877_v9 = vrot.slane %v3876_v27, 2  ;;  %v3401_v2 = vrot.slane %v3400_v45, 1 }
 0x613   :  { %v3908_v30 = vadd.f32 %v3907_v41, %v3906_v10  ;;  %v3886_v22 = vrot.slane %v3885_v31, 2  ;;  %v3433_v43 = vrot.slane %v3432_v49, 1 }
 0x614   :  { %v3878_v41 = vadd.f32 %v3877_v9, %v3876_v27 }
 0x615   :  { %v3909_v34 = vrot.slane %v3908_v30, 2  ;;  %v3887_v46 = vadd.f32 %v3886_v22, %v3885_v31 }
 0x616   :  { %v3879_v27 = vrot.slane %v3878_v41, 1 }
 0x634   :  { %v4004_v40 = vpop.f32.mrf.mxu1 }
 0x636   :  { %v4006_v1 = vpop.f32.mrf.mxu1 }
 0x638   :  { %v4008_v59 = vpop.f32.mrf.mxu1 }
 0x63a   :  { %v4010_v39 = vpop.f32.mrf.mxu1 }
 0x63b   :  { %v3961_v61 = vpop.f32.mrf.mxu0 }
 0x63c   :  { %v9731_v58 = vadd.f32 %v4004_v40, %v3961_v61  ;;  %v3900_v40 = vrot.slane %v3899_v20, 2 }
 0x63d   :  { %v3963_v33 = vpop.f32.mrf.mxu0 }
 0x63e   :  { %v9727_v18 = vadd.f32 %v4006_v1, %v3963_v33  ;;  %v4032_v44 = vmul.f32 %v9731_v58, %v9731_v58  ;;  %v3910_v1 = vadd.f32 %v3909_v34, %v3908_v30  ;;  %v3901_v63 = vadd.f32 %v3900_v40, %v3899_v20 }
 0x63f   :  { %v3965_v16 = vpop.f32.mrf.mxu0 }
 0x640   :  { %v9734_v25 = vadd.f32 %v4008_v59, %v3965_v16  ;;  %v4033_v48 = vmul.f32 %v9727_v18, %v9727_v18  ;;  %v4021_v8 = vsel %vm1169_vm1, %v9727_v18, 0.0  ;;  %v3888_v59 = vrot.slane %v3887_v46, 1 }
 0x641   :  { %v3967_v21 = vpop.f32.mrf.mxu0  ;;  %v3911_v30 = vrot.slane %v3910_v1, 1 }
 0x642   :  { %v4013_v60 = vsel %vm3227_vm11, %v9734_v25, 0.0  ;;  %v4034_v57 = vmul.f32 %v9734_v25, %v9734_v25  ;;  %v9742_v10 = vadd.f32 %v4010_v39, %v3967_v21  ;;  %v4044_v35 = vsel %vm1169_vm1, %v4033_v48, 0.0 }
 0x643   :  { %v4014_v50 = vadd.f32 %v4013_v60, %v9731_v58  ;;  %v3424_v21 = vrot.slane %v3423_v54, 1  ;;  %v3411_v60 = vadd.f32 %v3410_v11, %v3409_v55 }
 0x644   :  { %v4036_v37 = vsel %vm3227_vm11, %v4034_v57, 0.0  ;;  %v4022_v7 = vsel %vm3237_vm2, %v9742_v10, 0.0  ;;  %v4035_v26 = vmul.f32 %v9742_v10, %v9742_v10 }
 0x645   :  { %v4015_v38 = vrot.slane %v4014_v50, 4  ;;  %v4037_v28 = vadd.f32 %v4036_v37, %v4032_v44  ;;  %v4023_v19 = vadd.f32 %v4022_v7, %v4021_v8  ;;  %v3402_v44 = vadd.f32 %v3401_v2, %v3400_v45 }
 0x646   :  { %v4045_v56 = vsel %vm3237_vm2, %v4035_v26, 0.0  ;;  %v3434_v8 = vadd.f32 %v3433_v43, %v3432_v49  ;;  %v3902_v37 = vrot.slane %v3901_v63, 1  ;;  %v3425_v55 = vadd.f32 %v3424_v21, %v3423_v54 }
 0x647   :  { %v4016_v47 = vadd.f32 %v4015_v38, %v4014_v50  ;;  %v4038_v31 = vrot.slane %v4037_v28, 4  ;;  %v4024_v61 = vrot.slane %v4023_v19, 4  ;;  %v4046_v0 = vadd.f32 %v4045_v56, %v4044_v35 }
 0x648   :  { %v3889_v50 = vadd.f32 %v3888_v59, %v3887_v46  ;;  %v3413_v38 = vadd.f32 %v3411_v60, %v9729_v62  ;;  %v3912_v35 = vadd.f32 %v3911_v30, %v3910_v1  ;;  %v3259_v49 = vadd.f32 %v3258_v14, %v9720_v6  ;;  %v4245_v6 = vld [vmem:[#allocation16 + $0x8] sm:$0xff]  ;;  %v4244_v14 = vld [vmem:[#allocation16] sm:$0xff] }
 0x649   :  { %v4017_v33 = vrot.slane %v4016_v47, 2  ;;  %v4039_v22 = vadd.f32 %v4038_v31, %v4037_v28  ;;  %v4025_v16 = vadd.f32 %v4024_v61, %v4023_v19  ;;  %v4047_v39 = vrot.slane %v4046_v0, 4  ;;  %4280 = vmatprep.subr.mxu0 %v4245_v6  ;;  %4354 = vmatprep.subr.mxu1 %v4245_v6  ;;  %v7205_v6 = vld [vmem:[%s10482_s15 + $0xb0] sm:$0xff]  }
 0x64a   :  { %v3880_v28 = vadd.f32 %v3879_v27, %v3878_v41  ;;  %v3268_v19 = vadd.f32 %v3267_v17, %v9722_v24  ;;  %v3412_v31 = vadd.f32 %v3402_v44, %v9724_v42  ;;  %v3903_v46 = vadd.f32 %v3902_v37, %v3901_v63  ;;  %v4234_v44 = vld [vmem:[#allocation19] sm:$0x1] }
 0x64b   :  { %v4018_v9 = vadd.f32 %v4017_v33, %v4016_v47  ;;  %v4040_v34 = vrot.slane %v4039_v22, 2  ;;  %v4026_v48 = vrot.slane %v4025_v16, 2  ;;  %v4048_v57 = vadd.f32 %v4047_v39, %v4046_v0 }
 0x64c   :  { %v3891_v61 = vadd.f32 %v3889_v50, %v3413_v38  ;;  %v3436_v2 = vadd.f32 %v3434_v8, %v3268_v19  ;;  %v3890_v41 = vadd.f32 %v3880_v28, %v3412_v31  ;;  %v3435_v43 = vadd.f32 %v3425_v55, %v3259_v49  ;;  %v7176_v8 = vld [vmem:[%s10482_s15 + $0xa8] sm:$0xff]   ;;  %v7178_v38 = vld [vmem:[%s10482_s15 + $0xa0] sm:$0xff]   ;;  %v7175_v19 = vld [vmem:[%s10482_s15 + $0x30] sm:$0xff]  }
 0x64d   :  { %v4027_v7 = vadd.f32 %v4026_v48, %v4025_v16  ;;  %v4049_v26 = vrot.slane %v4048_v57, 2  ;;  %v4019_v20 = vrot.slane %v4018_v9, 1  ;;  %v4041_v40 = vadd.f32 %v4040_v34, %v4039_v22  ;;  %v7180_v55 = vld [vmem:[%s10482_s15 + $0x98] sm:$0xff]   ;;  %v7183_v31 = vld [vmem:[%s10482_s15 + $0x10] sm:$0xff]   ;;  %v7185_v49 = vld [vmem:[%s10482_s15 + $0x8] sm:$0xff]  }
 0x64e   :  { %v3914_v54 = vadd.f32 %v3912_v35, %v3436_v2  ;;  %v3913_v33 = vadd.f32 %v3903_v46, %v3435_v43  ;;  %v10646_v63 = vmov 0   ;;  %v7179_v35 = vld [vmem:[%s10482_s15 + $0x20] sm:$0xff]   ;;  %v7189_v2 = vld [vmem:[%s10482_s15 + $0x68] sm:$0xff]   ;;  %v7192_v43 = vld [vmem:[%s10482_s15 + $0xd8] sm:$0xff]  }
 0x64f   :  { %v4028_v11 = vrot.slane %v4027_v7, 1  ;;  %v4050_v56 = vadd.f32 %v4049_v26, %v4048_v57  ;;  %v4042_v47 = vrot.slane %v4041_v40, 1  ;;  %v4020_v45 = vadd.f32 %v4019_v20, %v4018_v9  ;;  %v4238_v26 = vld [vmem:[#allocation20] sm:$0x1]  ;;  %212 = vst.msk [vmem:[#allocation4 + $0x38] sm:$0x33] %vm211_vm3, %v10646_v63 }
 0x650   :  { %v7186_v46 = vld [vmem:[%s10482_s15 + $0x80] sm:$0xff]  }
 0x651   :  { %v4029_v0 = vadd.f32 %v4028_v11, %v4027_v7  ;;  %v4051_v62 = vrot.slane %v4050_v56, 1  ;;  %v4043_v24 = vadd.f32 %v4042_v47, %v4041_v40  ;;  %v4030_v59 = vadd.f32 %v4020_v45, %v3890_v41  ;;  %v7174_v40 = vld [vmem:[%s10482_s15 + $0x38] sm:$0xff]   ;;  %v7177_v11 = vld [vmem:[%s10482_s15 + $0x28] sm:$0xff]   ;;  %v7182_v47 = vld [vmem:[%s10482_s15 + $0x90] sm:$0xff]  }
 0x652   :  { %v7184_v45 = vld [vmem:[%s10482_s15 + $0x88] sm:$0xff]   ;;  %v7191_v41 = vld [vmem:[%s10482_s15 + $0x60] sm:$0xff]  }
 0x653   :  { %v4031_v17 = vadd.f32 %v4029_v0, %v3891_v61  ;;  %v4052_v1 = vadd.f32 %v4051_v62, %v4050_v56  ;;  %v4053_v22 = vadd.f32 %v4043_v24, %v3913_v33  ;;  %v7181_v56 = vld [vmem:[%s10482_s15 + $0x18] sm:$0xff]   ;;  %v7187_v61 = vld [vmem:[%s10482_s15] sm:$0xff]   ;;  %v7190_v62 = vld [vmem:[%s10482_s15 + $0x70] sm:$0xff]  }
 0x654   :  { %v7188_v0 = vld [vmem:[%s10482_s15 + $0x78] sm:$0xff]   ;;  %v7198_v33 = vld [vmem:[%s10482_s15 + $0xc0] sm:$0xff]  }
 0x655   :  { %6475 = vmatprep.mubr.msk.f32.mxu0 %vm1169_vm1, %v4031_v17  ;;  %v4054_v42 = vadd.f32 %v4052_v1, %v3914_v54  ;;  %v7193_v24 = vld [vmem:[%s10482_s15 + $0x58] sm:$0xff]   ;;  %v7194_v17 = vld [vmem:[%s10482_s15 + $0xd0] sm:$0xff]   ;;  %v7196_v1 = vld [vmem:[%s10482_s15 + $0xc8] sm:$0xff]  }
 0x656   :  { %4151 = vmatmul.mubr.f32.vlgmr.msra.gmra.mxu0 %v4030_v59  ;;  %v7195_v54 = vld [vmem:[%s10482_s15 + $0x50] sm:$0xff]   ;;  %v7197_v59 = vld [vmem:[%s10482_s15 + $0x48] sm:$0xff]  }
 0x657   :  { %6476 = vmatprep.mubr.msk.f32.mxu1 %vm1169_vm1, %v4054_v42  ;;  %4314 = vmatprep.mubr.f32.mxu0 %v10644_v15  ;;  %v7199_v42 = vld [vmem:[%s10482_s15 + $0x40] sm:$0xff]  }
 0x658   :  { %4226 = vmatmul.mubr.f32.vlgmr.msra.gmra.mxu1 %v4053_v22  ;;  %4281 = vmatpush1.msra.mxu0 %v4244_v14  ;;  %v7200_v22 = vld [vmem:[%s10482_s15 + $0xb8] sm:$0xff]  }
 0x659   :  { %4388 = vmatprep.mubr.f32.mxu1 %v10644_v15  ;;  %4355 = vmatpush1.msra.mxu1 %v4244_v14  ;;  %v4239_v15 = vld [vmem:[#allocation17] sm:$0x1] }
 0x65a   :  { %5160 = vmatprep.subr.bf16.mxu1 %v10646_v63  ;;  %5015 = vmatprep.subr.bf16.mxu0 %v10646_v63 }
 0x716   :  { %v4152_v16 = vpop.f32.mrf.mxu0 }
 0x717   :  { %v4157_v39 = vmul.f32 0.0006377551, %v4152_v16 }
 0x718   :  { %v4154_v21 = vpop.f32.mrf.mxu0  ;;  %v4227_v60 = vpop.f32.mrf.mxu1 }
 0x719   :  { %v4232_v27 = vmul.f32 %v4157_v39, %v4157_v39  ;;  %v4231_v30 = vmul.f32 0.0006377551, %v4227_v60  ;;  %v4240_v57 = vadd.f32 %v4239_v15, %v4157_v39  ;;  %v10647_v39 = vld [vmem:[#allocation33_spill] sm:$0xff] }
 0x71a   :  { %v4229_v9 = vpop.f32.mrf.mxu1 }
 0x71b   :  { %v4233_v34 = vsub.f32 %v4231_v30, %v4232_v27  ;;  %v4241_v37 = vsub.f32 %v4239_v15, %v4240_v57 }
 0x71d   :  { %v4235_v48 = vadd.f32 1e-05, %v4233_v34 }
 0x71f   :  { %7280 = vrsqrt.f32 %v4235_v48 }
 0x72c   :  { %v7281_v50 = vpop.eup %7280 }
 0x72d   :  { %v4237_v7 = vmul.f32 %v7281_v50, %v4234_v44 }
 0x72f   :  { %6477 = vmatmul.mubr.msk.f32.vlgmr.msra.gmra.mxu0 %vm4246_vm13, %v4237_v7  ;;  %v4242_v20 = vmul.f32 %v4241_v37, %v4237_v7 }
 0x730   :  { %5016 = vmatpush1.bf16.msra.mxu0 %v7176_v8 }
 0x731   :  { %v4243_v28 = vadd.f32 %v4242_v20, %v4238_v26  ;;  %5017 = vmatprep.subr.bf16.mxu0 %v10646_v63 }
 0x733   :  { %6478 = vmatmul.mubr.msk.f32.vlgmr.msra.gmra.mxu1 %vm4246_vm13, %v4243_v28 }
 0x734   :  { %5161 = vmatpush1.bf16.msra.mxu1 %v7174_v40  ;;  %5018 = vmatpush1.bf16.msra.mxu0 %v7178_v38 }
 0x735   :  { %5162 = vmatprep.subr.bf16.mxu1 %v10646_v63  ;;  %5019 = vmatprep.subr.bf16.mxu0 %v10646_v63 }
 0x738   :  { %5163 = vmatpush1.bf16.msra.mxu1 %v7175_v19  ;;  %5020 = vmatpush1.bf16.msra.mxu0 %v7180_v55 }
 0x739   :  { %5164 = vmatprep.subr.bf16.mxu1 %v10646_v63  ;;  %5021 = vmatprep.subr.bf16.mxu0 %v10646_v63 }
 0x73c   :  { %5165 = vmatpush1.bf16.msra.mxu1 %v7177_v11  ;;  %5022 = vmatpush1.bf16.msra.mxu0 %v7182_v47 }
 0x73d   :  { %5166 = vmatprep.subr.bf16.mxu1 %v10646_v63  ;;  %5023 = vmatprep.subr.bf16.mxu0 %v10646_v63 }
 0x740   :  { %5167 = vmatpush1.bf16.msra.mxu1 %v7179_v35  ;;  %5024 = vmatpush1.bf16.msra.mxu0 %v7184_v45 }
 0x741   :  { %5168 = vmatprep.subr.bf16.mxu1 %v10646_v63  ;;  %5025 = vmatprep.subr.bf16.mxu0 %v10646_v63 }
 0x744   :  { %5169 = vmatpush1.bf16.msra.mxu1 %v7181_v56  ;;  %5026 = vmatpush1.bf16.msra.mxu0 %v7186_v46 }
 0x745   :  { %5170 = vmatprep.subr.bf16.mxu1 %v10646_v63  ;;  %5027 = vmatprep.subr.bf16.mxu0 %v10646_v63 }
 0x748   :  { %5171 = vmatpush1.bf16.msra.mxu1 %v7183_v31  ;;  %5028 = vmatpush1.bf16.msra.mxu0 %v7188_v0 }
 0x749   :  { %5172 = vmatprep.subr.bf16.mxu1 %v10646_v63  ;;  %5029 = vmatprep.subr.bf16.mxu0 %v10646_v63 }
 0x74c   :  { %5173 = vmatpush1.bf16.msra.mxu1 %v7185_v49  ;;  %5030 = vmatpush1.bf16.msra.mxu0 %v7190_v62 }
 0x74d   :  { %5174 = vmatprep.subr.bf16.mxu1 %v10646_v63  ;;  %5035 = vmatprep.subr.bf16.mxu0 %v10646_v63 }
 0x750   :  { %5175 = vmatpush1.bf16.msra.mxu1 %v7187_v61  ;;  %5036 = vmatpush2.bf16.msra.mxu0 %v7192_v43 }
 0x751   :  { %5180 = vmatprep.subr.bf16.mxu1 %v10646_v63  ;;  %5037 = vmatprep.subr.bf16.mxu0 %v10646_v63 }
 0x754   :  { %5181 = vmatpush2.bf16.msra.mxu1 %v7189_v2  ;;  %5038 = vmatpush2.bf16.msra.mxu0 %v7194_v17  ;;  %v4471_v2 = vld [vmem:[#allocation4 + $0x8] sm:$0x88] }
 0x755   :  { %5182 = vmatprep.subr.bf16.mxu1 %v10646_v63  ;;  %5039 = vmatprep.subr.bf16.mxu0 %v10646_v63 }
 0x758   :  { %5183 = vmatpush2.bf16.msra.mxu1 %v7191_v41  ;;  %5040 = vmatpush2.bf16.msra.mxu0 %v7196_v1  ;;  %v4481_v41 = vld [vmem:[#allocation4 + $0x10] sm:$0x11]  ;;  %v4486_v1 = vld [vmem:[#allocation4 + $0x10] sm:$0x22] }
 0x759   :  { %5184 = vmatprep.subr.bf16.mxu1 %v10646_v63  ;;  %5041 = vmatprep.subr.bf16.mxu0 %v10646_v63 }
 0x75c   :  { %5185 = vmatpush2.bf16.msra.mxu1 %v7193_v24  ;;  %5042 = vmatpush2.bf16.msra.mxu0 %v7198_v33 }
 0x75d   :  { %5186 = vmatprep.subr.bf16.mxu1 %v10646_v63  ;;  %5043 = vmatprep.subr.bf16.mxu0 %v10646_v63 }
 0x760   :  { %5187 = vmatpush2.bf16.msra.mxu1 %v7195_v54  ;;  %5044 = vmatpush2.bf16.msra.mxu0 %v7200_v22 }
 0x761   :  { %5188 = vmatprep.subr.bf16.mxu1 %v10646_v63  ;;  %5045 = vmatprep.subr.bf16.mxu0 %v10646_v63 }
 0x764   :  { %5189 = vmatpush2.bf16.msra.mxu1 %v7197_v59  ;;  %5046 = vmatpush2.bf16.msra.mxu0 %v7205_v6  ;;  %v4539_v59 = vld [vmem:[#allocation4 + $0x20] sm:$0x11] }
 0x765   :  { %5190 = vmatprep.subr.bf16.mxu1 %v10646_v63  ;;  %5343 = vmatprep.subr.bf16.mxu0 %v10646_v63 }
 0x768   :  { %5191 = vmatpush2.bf16.msra.mxu1 %v7199_v42 }
 0x769   :  { %5644 = vmatprep.subr.bf16.mxu1 %v10646_v63 }
 0x7ef   :  { %v4316_v14 = vpop.f32.mrf.mxu0 }
 0x7f0   :  { %v4398_v21 = vrot.slane %v4316_v14, %v10647_v39  ;;  %v4496_v14 = vld [vmem:[#allocation4 + $0x10] sm:$0x88] }
 0x7f1   :  { %v4318_v16 = vpop.f32.mrf.mxu0 }
 0x7f2   :  { %v4402_v27 = vrot.slane %v4318_v16, %v10647_v39  ;;  %v4403_v9 = vmul.f32 %v4398_v21, %v9652_v4  ;;  %v4405_v34 = vmul.f32 %v4398_v21, %v9642_v51  ;;  %v4511_v48 = vmul.f32 %v4398_v21, %v9676_v29 }
 0x7f3   :  { %v4390_v60 = vpop.f32.mrf.mxu1  ;;  %v4513_v15 = vmul.f32 %v4398_v21, %v9658_v36  ;;  %v4609_v57 = vmul.f32 %v4398_v21, %v9708_v23  ;;  %v4611_v44 = vmul.f32 %v4398_v21, %v9689_v3  ;;  %v4713_v50 = vmul.f32 %v4398_v21, %v9731_v58 }
 0x7f4   :  { %v4410_v30 = vrot.slane %v4390_v60, %v10647_v39  ;;  %v4715_v8 = vmul.f32 %v4398_v21, %v9734_v25  ;;  %v4404_v37 = vmul.f32 %v4402_v27, %v9646_v13  ;;  %v4406_v4 = vmul.f32 %v4402_v27, %v9644_v52 }
 0x7f5   :  { %v4392_v20 = vpop.f32.mrf.mxu1  ;;  %v4512_v51 = vmul.f32 %v4402_v27, %v9671_v53  ;;  %v4514_v29 = vmul.f32 %v4402_v27, %v9666_v12  ;;  %v4610_v36 = vmul.f32 %v4402_v27, %v9687_v32  ;;  %v4612_v23 = vmul.f32 %v4402_v27, %v9680_v5 }
 0x7f6   :  { %v4415_v7 = vadd.f32 %v4410_v30, %v4403_v9  ;;  %v4417_v26 = vadd.f32 %v4410_v30, %v4405_v34  ;;  %v4714_v3 = vmul.f32 %v4402_v27, %v9727_v18  ;;  %v4716_v58 = vmul.f32 %v4402_v27, %v9742_v10  ;;  %v4543_v9 = vld [vmem:[#allocation4 + $0x20] sm:$0x22] }
 0x7f7   :  { %v4515_v25 = vadd.f32 %v4511_v48, %v4410_v30  ;;  %v4517_v40 = vadd.f32 %v4513_v15, %v4410_v30  ;;  %v4613_v13 = vadd.f32 %v4609_v57, %v4410_v30  ;;  %v4615_v38 = vadd.f32 %v4611_v44, %v4410_v30 }
 0x7f8   :  { %v4414_v28 = vrot.slane %v4392_v20, %v10647_v39  ;;  %v4419_v19 = vmax.f32 %v4415_v7, 0.0  ;;  %v4421_v52 = vmax.f32 %v4417_v26, 0.0  ;;  %v4717_v55 = vadd.f32 %v4713_v50, %v4410_v30  ;;  %v4548_v26 = vld [vmem:[#allocation4 + $0x20] sm:$0x44]  ;;  %v4559_v20 = vld [vmem:[#allocation4 + $0x28] sm:$0x11] }
 0x7f9   :  { %v4719_v53 = vadd.f32 %v4715_v8, %v4410_v30  ;;  %v4519_v56 = vmax.f32 %v4515_v25, 0.0  ;;  %v4521_v17 = vmax.f32 %v4517_v40, 0.0  ;;  %v4617_v54 = vmax.f32 %v4613_v13, 0.0 }
 0x7fa   :  { %v4416_v11 = vadd.f32 %v4414_v28, %v4404_v37  ;;  %v4418_v12 = vadd.f32 %v4414_v28, %v4406_v4  ;;  %v4516_v35 = vadd.f32 %v4512_v51, %v4414_v28  ;;  %v4518_v32 = vadd.f32 %v4514_v29, %v4414_v28  ;;  %v4586_v4 = vld [vmem:[#allocation4 + $0x30] sm:$0x11] }
 0x7fb   :  { %v4614_v5 = vadd.f32 %v4610_v36, %v4414_v28  ;;  %v4616_v47 = vadd.f32 %v4612_v23, %v4414_v28  ;;  %v4718_v18 = vadd.f32 %v4714_v3, %v4414_v28  ;;  %v4720_v49 = vadd.f32 %v4716_v58, %v4414_v28  ;;  %v4571_v3 = vld [vmem:[#allocation4 + $0x28] sm:$0x44]  ;;  %v4590_v58 = vld [vmem:[#allocation4 + $0x30] sm:$0x22] }
 0x7fc   :  { %v4420_v31 = vmax.f32 %v4416_v11, 0.0  ;;  %v4422_v10 = vmax.f32 %v4418_v12, 0.0  ;;  %v4520_v45 = vmax.f32 %v4516_v35, 0.0  ;;  %v4522_v46 = vmax.f32 %v4518_v32, 0.0  ;;  %v4606_v12 = vld [vmem:[#allocation4 + $0x38] sm:$0x11] }
 0x7fd   :  { %v4618_v61 = vmax.f32 %v4614_v5, 0.0  ;;  %v4620_v24 = vmax.f32 %v4616_v47, 0.0  ;;  %v4722_v33 = vmax.f32 %v4718_v18, 0.0  ;;  %v4619_v42 = vmax.f32 %v4615_v38, 0.0  ;;  %v4582_v47 = vld [vmem:[#allocation4 + $0x28] sm:$0x88] }
 0x7fe   :  { %v9901_v0 = vpack.c.bf16 %v4420_v31, %v4419_v19  ;;  %v9903_v62 = vpack.c.bf16 %v4422_v10, %v4421_v52  ;;  %v6752_v43 = vpack.c.bf16 %v4520_v45, %v4519_v56  ;;  %v4721_v22 = vmax.f32 %v4717_v55, 0.0  ;;  %v4595_v19 = vld [vmem:[#allocation4 + $0x30] sm:$0x44] }
 0x7ff   :  { %v4723_v6 = vmax.f32 %v4719_v53, 0.0  ;;  %v4724_v16 = vmax.f32 %v4720_v49, 0.0  ;;  %v6753_v48 = vpack.c.bf16 %v4522_v46, %v4521_v17  ;;  %v9915_v15 = vpack.c.bf16 %v4618_v61, %v4617_v54  ;;  %v4600_v46 = vld [vmem:[#allocation4 + $0x30] sm:$0x88]  ;;  %v4434_v61 = vld [vmem:[#allocation4] sm:$0x11] }
 0x800   :  { %v4472_v21 = vsel %vm8137_vm5, %v9901_v0, %v4471_v2  ;;  %v9909_v60 = vshll.u32 %v9903_v62, 16  ;;  %v4484_v27 = vrot.slane %v9903_v62, 7  ;;  %v4494_v30 = vrot.slane %v9903_v62, 6 }
 0x801   :  { %4473 = vst [vmem:[#allocation4 + $0x8] sm:$0x88] %v4472_v21  ;;  %v9913_v34 = vshll.u32 %v6752_v43, 16  ;;  %v9917_v57 = vpack.c.bf16 %v4620_v24, %v4619_v42  ;;  %v9926_v51 = vpack.c.bf16 %v4722_v33, %v4721_v22  ;;  %v9929_v29 = vshll.u32 %v9901_v0, 16  ;;  %v4710_v22 = vld [vmem:[#allocation4 + $0x18] sm:$0x44] }
 0x802   :  { %v4482_v50 = vsel %vm7814_vm10, %v9909_v60, %v4481_v41  ;;  %v4487_v37 = vsel %vm8082_vm12, %v4484_v27, %v4486_v1  ;;  %v4497_v7 = vsel %vm8137_vm5, %v4494_v30, %v4496_v14  ;;  %v4540_v36 = vsel %vm7814_vm10, %v6752_v43, %v4539_v59 }
 0x803   :  { %4488 = vst [vmem:[#allocation4 + $0x10] sm:$0x22] %v4487_v37  ;;  %4498 = vst [vmem:[#allocation4 + $0x10] sm:$0x88] %v4497_v7  ;;  %v4544_v23 = vsel %vm8082_vm12, %v9913_v34, %v4543_v9  ;;  %v9936_v25 = vpack.c.bf16 %v4724_v16, %v4723_v6  ;;  %v4437_v40 = vrot.slane %v9901_v0, 7  ;;  %v4447_v13 = vrot.slane %v9901_v0, 6 }
 0x804   :  { %4483 = vst [vmem:[#allocation4 + $0x10] sm:$0x11] %v4482_v50  ;;  %4541 = vst [vmem:[#allocation4 + $0x20] sm:$0x11] %v4540_v36  ;;  %v4546_v38 = vrot.slane %v6752_v43, 7  ;;  %v6487_v28 = vrot.slane %v6752_v43, 10  ;;  %v4587_v53 = vsel %vm7814_vm10, %v6753_v48, %v4586_v4  ;;  %v4435_v9 = vsel %vm7814_vm10, %v9929_v29, %v4434_v61 }
 0x805   :  { %4545 = vst [vmem:[#allocation4 + $0x20] sm:$0x22] %v4544_v23  ;;  %v6489_v52 = vrot.slane %v6752_v43, 9  ;;  %v4578_v55 = vshll.u32 %v6753_v48, 16  ;;  %v4593_v11 = vrot.slane %v6753_v48, 7  ;;  %v6481_v35 = vrot.slane %v9901_v0, 9 }
 0x806   :  { %v4549_v56 = vsel %vm8122_vm8, %v4546_v38, %v4548_v26  ;;  %v4560_v5 = vsel %vm7814_vm10, %v6487_v28, %v4559_v20  ;;  %4588 = vst [vmem:[#allocation4 + $0x30] sm:$0x11] %v4587_v53  ;;  %v6491_v18 = vrot.slane %v6753_v48, 10  ;;  %v6480_v2 = vrot.slane %v9929_v29, 10  ;;  %v4439_v6 = vld [vmem:[#allocation4] sm:$0x22] }
 0x807   :  { %4550 = vst [vmem:[#allocation4 + $0x20] sm:$0x44] %v4549_v56  ;;  %4561 = vst [vmem:[#allocation4 + $0x28] sm:$0x11] %v4560_v5  ;;  %v4572_v31 = vsel %vm8122_vm8, %v6489_v52, %v4571_v3  ;;  %v4580_v10 = vrot.slane %v4578_v55, 5  ;;  %v4591_v45 = vsel %vm8082_vm12, %v4578_v55, %v4590_v58  ;;  %v4596_v49 = vsel %vm8122_vm8, %v4593_v11, %v4595_v19 }
 0x808   :  { %v6482_v41 = vrot.slane %v9929_v29, 9  ;;  %4573 = vst [vmem:[#allocation4 + $0x28] sm:$0x44] %v4572_v31  ;;  %4592 = vst [vmem:[#allocation4 + $0x30] sm:$0x22] %v4591_v45  ;;  %v4598_v43 = vrot.slane %v4578_v55, 7  ;;  %v4607_v24 = vsel %vm7814_vm10, %v6491_v18, %v4606_v12 }
 0x809   :  { %4597 = vst [vmem:[#allocation4 + $0x30] sm:$0x44] %v4596_v49  ;;  %v4665_v17 = vld [vmem:[#allocation4 + $0x8] sm:$0x88]  ;;  %v6485_v54 = vrot.slane %v9903_v62, 9  ;;  %v4583_v1 = vsel %vm8137_vm5, %v4580_v10, %v4582_v47  ;;  %v4677_v42 = vrot.slane %v9917_v57, 7  ;;  %v4440_v49 = vsel %vm8082_vm12, %v4437_v40, %v4439_v6 }
 0x80a   :  { %4608 = vst [vmem:[#allocation4 + $0x38] sm:$0x11] %v4607_v24  ;;  %v4666_v33 = vsel %vm8114_vm15, %v9915_v15, %v4665_v17  ;;  %4584 = vst [vmem:[#allocation4 + $0x28] sm:$0x88] %v4583_v1  ;;  %v4601_v14 = vsel %vm8137_vm5, %v4598_v43, %v4600_v46  ;;  %v4679_v16 = vld [vmem:[#allocation4 + $0x10] sm:$0x22] }
 0x80b   :  { %v9967_v21 = vshrl.u32 %v9917_v57, 16  ;;  %v4690_v27 = vrot.slane %v9917_v57, 6  ;;  %v4692_v30 = vld [vmem:[#allocation4 + $0x10] sm:$0x88]  ;;  %4667 = vst [vmem:[#allocation4 + $0x8] sm:$0x88] %v4666_v33  ;;  %v4680_v26 = vsel %vm8030_vm7, %v4677_v42, %v4679_v16 }
 0x80c   :  { %v4489_v48 = vrot.slane %v9909_v60, 7  ;;  %v6484_v50 = vrot.slane %v9909_v60, 10  ;;  %v4533_v37 = vrot.slane %v9913_v34, 5  ;;  %4602 = vst [vmem:[#allocation4 + $0x30] sm:$0x88] %v4601_v14  ;;  %v4551_v4 = vrot.slane %v9913_v34, 7 }
 0x80d   :  { %v4733_v20 = vld [vmem:[#allocation4 + $0x20] sm:$0x11]  ;;  %4436 = vst [vmem:[#allocation4] sm:$0x11] %v4435_v9  ;;  %v6488_v36 = vrot.slane %v9913_v34, 10  ;;  %v4693_v23 = vsel %vm8114_vm15, %v4690_v27, %v4692_v30  ;;  %v4711_v58 = vsel %vm8069_vm9, %v9967_v21, %v4710_v22  ;;  %v9986_v28 = vshrl.u32 %v9915_v15, 16 }
 0x80e   :  { %4681 = vst [vmem:[#allocation4 + $0x10] sm:$0x22] %v4680_v26  ;;  %v4449_v38 = vld [vmem:[#allocation4] sm:$0x88]  ;;  %v4734_v52 = vsel %vm7943_vm0, %v9926_v51, %v4733_v20  ;;  %v4744_v55 = vrot.slane %v9926_v51, 7  ;;  %v6502_v53 = vrot.slane %v9926_v51, 10 }
 0x80f   :  { %v4782_v11 = vld [vmem:[#allocation4 + $0x30] sm:$0x11]  ;;  %4694 = vst [vmem:[#allocation4 + $0x10] sm:$0x88] %v4693_v23  ;;  %4712 = vst [vmem:[#allocation4 + $0x18] sm:$0x44] %v4711_v58  ;;  %v4450_v27 = vsel %vm8137_vm5, %v4447_v13, %v4449_v38 }
 0x810   :  { %v4444_v12 = vld [vmem:[#allocation4] sm:$0x44]  ;;  %v4455_v56 = vld [vmem:[#allocation4 + $0x8] sm:$0x11]  ;;  %v9994_v5 = vshrl.u32 %v9926_v51, 16  ;;  %v6504_v31 = vrot.slane %v9926_v51, 9  ;;  %v4783_v10 = vsel %vm7943_vm0, %v9936_v25, %v4782_v11 }
 0x811   :  { %v4746_v47 = vld [vmem:[#allocation4 + $0x20] sm:$0x44]  ;;  %v4757_v18 = vld [vmem:[#allocation4 + $0x28] sm:$0x11]  ;;  %v4812_v45 = vld [vmem:[#allocation4 + $0x38] sm:$0x22]  ;;  %v4456_v38 = vsel %vm7814_vm10, %v6480_v2, %v4455_v56 }
 0x812   :  { %4735 = vst [vmem:[#allocation4 + $0x20] sm:$0x11] %v4734_v52  ;;  %v4461_v46 = vld [vmem:[#allocation4 + $0x8] sm:$0x22]  ;;  %v4747_v61 = vsel %vm8069_vm9, %v4744_v55, %v4746_v47  ;;  %v4758_v43 = vsel %vm7943_vm0, %v6502_v53, %v4757_v18  ;;  %v4769_v24 = vld [vmem:[#allocation4 + $0x28] sm:$0x44] }
 0x813   :  { %4784 = vst [vmem:[#allocation4 + $0x30] sm:$0x11] %v4783_v10  ;;  %v4786_v51 = vshrl.u32 %v9936_v25, 16  ;;  %v4790_v17 = vld [vmem:[#allocation4 + $0x30] sm:$0x22]  ;;  %v4793_v1 = vrot.slane %v9936_v25, 7  ;;  %v4770_v40 = vsel %vm8069_vm9, %v6504_v31, %v4769_v24  ;;  %v4462_v2 = vsel %vm8082_vm12, %v6481_v35, %v4461_v46 }
 0x814   :  { %4441 = vst [vmem:[#allocation4] sm:$0x22] %v4440_v49  ;;  %v4467_v33 = vld [vmem:[#allocation4 + $0x8] sm:$0x44]  ;;  %v4491_v42 = vld [vmem:[#allocation4 + $0x10] sm:$0x44] }
 0x815   :  { %v4795_v22 = vld [vmem:[#allocation4 + $0x30] sm:$0x44]  ;;  %v6507_v6 = vrot.slane %v9936_v25, 10  ;;  %v4806_v14 = vld [vmem:[#allocation4 + $0x38] sm:$0x11]  ;;  %v4442_v16 = vrot.slane %v9929_v29, 7  ;;  %v4492_v0 = vsel %vm8122_vm8, %v4489_v48, %v4491_v42 }
 0x816   :  { %4748 = vst [vmem:[#allocation4 + $0x20] sm:$0x44] %v4747_v61  ;;  %4759 = vst [vmem:[#allocation4 + $0x28] sm:$0x11] %v4758_v43  ;;  %v4502_v30 = vld [vmem:[#allocation4 + $0x18] sm:$0x11]  ;;  %v4796_v20 = vsel %vm8069_vm9, %v4793_v1, %v4795_v22 }
 0x817   :  { %v4775_v9 = vld [vmem:[#allocation4 + $0x28] sm:$0x88]  ;;  %v4788_v26 = vrot.slane %v4786_v51, 7  ;;  %v4798_v23 = vrot.slane %v4786_v51, 6  ;;  %v6508_v58 = vrot.slane %v4786_v51, 9  ;;  %v4807_v55 = vsel %vm7943_vm0, %v6507_v6, %v4806_v14 }
 0x818   :  { %4771 = vst [vmem:[#allocation4 + $0x28] sm:$0x44] %v4770_v40  ;;  %4451 = vst [vmem:[#allocation4] sm:$0x88] %v4450_v27  ;;  %v4776_v25 = vsel %vm8114_vm15, %v9994_v5, %v4775_v9  ;;  %v4800_v52 = vld [vmem:[#allocation4 + $0x30] sm:$0x88]  ;;  %v4445_v13 = vsel %vm8122_vm8, %v4442_v16, %v4444_v12  ;;  %v4503_v46 = vsel %vm7814_vm10, %v6484_v50, %v4502_v30 }
 0x819   :  { %4797 = vst [vmem:[#allocation4 + $0x30] sm:$0x44] %v4796_v20  ;;  %v4508_v53 = vld [vmem:[#allocation4 + $0x18] sm:$0x22]  ;;  %v4535_v11 = vld [vmem:[#allocation4 + $0x18] sm:$0x88]  ;;  %v4791_v47 = vsel %vm8030_vm7, %v4788_v26, %v4790_v17  ;;  %v4801_v18 = vsel %vm8114_vm15, %v4798_v23, %v4800_v52  ;;  %v4813_v31 = vsel %vm8030_vm7, %v6508_v58, %v4812_v45  ;;  %v4468_v45 = vsel %vm8122_vm8, %v6482_v41, %v4467_v33 }
 0x81a   :  { %4777 = vst [vmem:[#allocation4 + $0x28] sm:$0x88] %v4776_v25  ;;  %4808 = vst [vmem:[#allocation4 + $0x38] sm:$0x11] %v4807_v55  ;;  %v4553_v12 = vld [vmem:[#allocation4 + $0x20] sm:$0x88]  ;;  %v4509_v29 = vsel %vm8082_vm12, %v6485_v54, %v4508_v53  ;;  %v4536_v32 = vsel %vm8137_vm5, %v4533_v37, %v4535_v11 }
 0x81b   :  { %4446 = vst [vmem:[#allocation4] sm:$0x44] %v4445_v13  ;;  %4457 = vst [vmem:[#allocation4 + $0x8] sm:$0x11] %v4456_v38  ;;  %v4565_v56 = vld [vmem:[#allocation4 + $0x28] sm:$0x22]  ;;  %v4554_v60 = vsel %vm8137_vm5, %v4551_v4, %v4553_v12 }
 0x81c   :  { %v4741_v10 = vld [vmem:[#allocation4 + $0x20] sm:$0x22]  ;;  %v4628_v49 = vrot.slane %v9915_v15, 7  ;;  %v4739_v61 = vrot.slane %v9994_v5, 7  ;;  %4792 = vst [vmem:[#allocation4 + $0x30] sm:$0x22] %v4791_v47  ;;  %v4566_v62 = vsel %vm8082_vm12, %v6488_v36, %v4565_v56 }
 0x81d   :  { %4802 = vst [vmem:[#allocation4 + $0x30] sm:$0x88] %v4801_v18  ;;  %4814 = vst [vmem:[#allocation4 + $0x38] sm:$0x22] %v4813_v31  ;;  %v4671_v35 = vld [vmem:[#allocation4 + $0x10] sm:$0x11] }
 0x81e   :  { %4463 = vst [vmem:[#allocation4 + $0x8] sm:$0x22] %v4462_v2  ;;  %4469 = vst [vmem:[#allocation4 + $0x8] sm:$0x44] %v4468_v45  ;;  %v6496_v41 = vrot.slane %v9986_v28, 11  ;;  %v4742_v44 = vsel %vm8030_vm7, %v4739_v61, %v4741_v10  ;;  %v4641_v54 = vrot.slane %v9915_v15, 6 }
 0x81f   :  { %4493 = vst [vmem:[#allocation4 + $0x10] sm:$0x44] %v4492_v0  ;;  %v4630_v48 = vld [vmem:[#allocation4] sm:$0x22]  ;;  %4504 = vst [vmem:[#allocation4 + $0x18] sm:$0x11] %v4503_v46 }
 0x820   :  { %4510 = vst [vmem:[#allocation4 + $0x18] sm:$0x22] %v4509_v29  ;;  %4537 = vst [vmem:[#allocation4 + $0x18] sm:$0x88] %v4536_v32  ;;  %v4631_v50 = vsel %vm8030_vm7, %v4628_v49, %v4630_v48  ;;  %v4672_v37 = vsel %vm7943_vm0, %v6496_v41, %v4671_v35  ;;  %v4643_v39 = vld [vmem:[#allocation4] sm:$0x88] }
 0x821   :  { %4555 = vst [vmem:[#allocation4 + $0x20] sm:$0x88] %v4554_v60  ;;  %4567 = vst [vmem:[#allocation4 + $0x28] sm:$0x22] %v4566_v62  ;;  %v6494_v34 = vrot.slane %v9915_v15, 9  ;;  %v4636_v8 = vrot.slane %v9986_v28, 6  ;;  %v4644_v4 = vsel %vm8114_vm15, %v4641_v54, %v4643_v39 }
 0x822   :  { %4743 = vst [vmem:[#allocation4 + $0x20] sm:$0x22] %v4742_v44  ;;  %4632 = vst [vmem:[#allocation4] sm:$0x22] %v4631_v50  ;;  %v6493_v36 = vrot.slane %v9986_v28, 9  ;;  %v4685_v43 = vrot.slane %v9967_v21, 6 }
 0x823   :  { %4673 = vst [vmem:[#allocation4 + $0x10] sm:$0x11] %v4672_v37  ;;  %v6499_v24 = vrot.slane %v9917_v57, 9  ;;  %v4638_v51 = vld [vmem:[#allocation4] sm:$0x44]  ;;  %v6498_v1 = vrot.slane %v9967_v21, 9 }
 0x824   :  { %4645 = vst [vmem:[#allocation4] sm:$0x88] %v4644_v4  ;;  %v4649_v17 = vld [vmem:[#allocation4 + $0x8] sm:$0x11]  ;;  %v4749_v33 = vrot.slane %v9994_v5, 6  ;;  %v4639_v15 = vsel %vm8069_vm9, %v4636_v8, %v4638_v51  ;;  %v10092_v22 = vld [vmem:[#allocation4 + $0x30] sm:$0xff] }
 0x825   :  { %v4650_v42 = vsel %vm7943_vm0, %v6493_v36, %v4649_v17  ;;  %v4655_v40 = vld [vmem:[#allocation4 + $0x8] sm:$0x22]  ;;  %4640 = vst [vmem:[#allocation4] sm:$0x44] %v4639_v15  ;;  %v4661_v6 = vld [vmem:[#allocation4 + $0x8] sm:$0x44] }
 0x826   :  { %4651 = vst [vmem:[#allocation4 + $0x8] sm:$0x11] %v4650_v42  ;;  %v4656_v57 = vsel %vm8030_vm7, %v6494_v34, %v4655_v40  ;;  %v4687_v14 = vld [vmem:[#allocation4 + $0x10] sm:$0x44]  ;;  %v10096_v16 = vld [vmem:[#allocation4 + $0x38] sm:$0x33]  ;;  %v4662_v27 = vsel %vm8069_vm9, %v9986_v28, %v4661_v6 }
 0x827   :  { %v6503_v21 = vrot.slane %v9994_v5, 9  ;;  %4657 = vst [vmem:[#allocation4 + $0x8] sm:$0x22] %v4656_v57  ;;  %v4688_v30 = vsel %vm8069_vm9, %v4685_v43, %v4687_v14  ;;  %v4698_v9 = vld [vmem:[#allocation4 + $0x18] sm:$0x11]  ;;  %v6720_v20 = vcombine.low %v10092_v22, %v10096_v16  ;;  %v7203_v53 = vld [vmem:[%s10482_s15 + $0xa8] sm:$0xff]  }
 0x828   :  { %v4704_v26 = vld [vmem:[#allocation4 + $0x18] sm:$0x22]  ;;  %4663 = vst [vmem:[#allocation4 + $0x8] sm:$0x44] %v4662_v27  ;;  %4689 = vst [vmem:[#allocation4 + $0x10] sm:$0x44] %v4688_v30  ;;  %v4699_v23 = vsel %vm7943_vm0, %v6498_v1, %v4698_v9 }
 0x829   :  { %v4705_v5 = vsel %vm8030_vm7, %v6499_v24, %v4704_v26  ;;  %v4751_v58 = vld [vmem:[#allocation4 + $0x20] sm:$0x88]  ;;  %v4763_v25 = vld [vmem:[#allocation4 + $0x28] sm:$0x22]  ;;  %4700 = vst [vmem:[#allocation4 + $0x18] sm:$0x11] %v4699_v23 }
 0x82a   :  { %4706 = vst [vmem:[#allocation4 + $0x18] sm:$0x22] %v4705_v5  ;;  %v4752_v3 = vsel %vm8114_vm15, %v4749_v33, %v4751_v58  ;;  %v4764_v28 = vsel %vm8030_vm7, %v6503_v21, %v4763_v25  ;;  %v5417_v0 = vld [vmem:[#allocation4 + $0x18] sm:$0x88]  ;;  %v7206_v35 = vld [vmem:[%s10482_s15 + $0xa0] sm:$0xff]   ;;  %v7209_v37 = vld [vmem:[%s10482_s15 + $0x118] sm:$0xff]  }
 0x82b   :  { %4753 = vst [vmem:[#allocation4 + $0x20] sm:$0x88] %v4752_v3  ;;  %4765 = vst [vmem:[#allocation4 + $0x28] sm:$0x22] %v4764_v28  ;;  %vm10656_vm10 = vsmask.f32 7424 }
 0x82c   :  { %v4815_v52 = vld [vmem:[#allocation4] sm:$0xff]  ;;  %vm10657_vm0 = vmmov %vm10656_vm10  ;;  %v7215_v21 = vld [vmem:[%s10482_s15 + $0x110] sm:$0xff]   ;;  %vm10658_vm7 = vsmask.f32 4352  ;;  %vm5698_vm9 = vcmask 1044480   ;;  %vm5411_vm5 = vcmask 228352  }
 0x82d   :  { %v10148_v4 = vld [vmem:[#allocation4] sm:$0xee]  ;;  %v7216_v9 = vld [vmem:[%s10482_s15 + $0x90] sm:$0xff]   ;;  %v7217_v3 = vld [vmem:[%s10482_s15 + $0x108] sm:$0xff]  }
 0x82e   :  { %v7211_v1 = vld [vmem:[%s10482_s15 + $0x98] sm:$0xff]   ;;  %vm10659_vm12 = vmmov %vm10658_vm7 }
 0x82f   :  { %v10114_v55 = vld [vmem:[#allocation4 + $0x8] sm:$0xff]  ;;  %v4817_v19 = vld [vmem:[#allocation4 + $0x10] sm:$0xff]  ;;  %vm10660_vm15 = vmmov %vm10658_vm7 }
 0x830   :  { %v6538_v13 = vcombine.high %v4815_v52, %v10114_v55  ;;  %v6537_v38 = vcombine.low %v4815_v52, %v10114_v55  ;;  %v6604_v57 = vcombine.high %v10148_v4, %v10114_v55  ;;  %vm10661_vm8 = vmmov %vm10658_vm7 }
 0x831   :  { %v4818_v11 = vld [vmem:[#allocation4 + $0x18] sm:$0x33] }
 0x832   :  { %v4847_v59 = vld [vmem:[#allocation4 + $0x18] sm:$0x77]  ;;  %v10125_v18 = vld [vmem:[#allocation4 + $0x20] sm:$0xff]  ;;  %v10127_v31 = vld [vmem:[#allocation4 + $0x28] sm:$0xff]  ;;  %6573 = vmatprep.mubr.msk.bf16.mxu1 %vm1169_vm1, %v6538_v13  ;;  %v6558_v2 = vcombine.high %v4817_v19, %v4818_v11  ;;  %v4908_v12 = vshll.u32 %v6538_v13, 16  ;;  %v4896_v56 = vshll.u32 %v6537_v38, 16  ;;  %v6557_v42 = vcombine.low %v4817_v19, %v4818_v11 }
 0x833   :  { %v10121_v47 = vcombine.high %v4817_v19, %v4847_v59  ;;  %v10123_v7 = vcombine.low %v4817_v19, %v4847_v59  ;;  %5193 = vmatmul.mubr.bf16.vlgmr.msra.gmra.mxu1 %v6537_v38  ;;  %v4906_v10 = vshrl.u32 %v6538_v13, 16  ;;  %v4894_v61 = vshrl.u32 %v6537_v38, 16 }
 0x834   :  { %5645 = vmatpush1.bf16.msra.mxu1 %v7203_v53  ;;  %6574 = vmatprep.mubr.msk.bf16.mxu1 %vm1169_vm1, %v6558_v2  ;;  %v4910_v46 = vrot.slane %v4908_v12, 1  ;;  %v4898_v29 = vrot.slane %v4896_v56, 1  ;;  %v6651_v41 = vcombine.high %v5417_v0, %v10125_v18  ;;  %v10139_v32 = vcombine.high %v10127_v31, %v10092_v22  ;;  %v7220_v53 = vld [vmem:[%s10482_s15 + $0x88] sm:$0xff]   ;;  %v7221_v2 = vld [vmem:[%s10482_s15 + $0x100] sm:$0xff]   ;;  %v7223_v56 = vld [vmem:[%s10482_s15 + $0xf8] sm:$0xff]  }
 0x835   :  { %v4913_v49 = vshll.u32 %v10121_v47, 16  ;;  %v4901_v45 = vshll.u32 %v10123_v7, 16  ;;  %5646 = vmatprep.subr.bf16.mxu1 %v10646_v63  ;;  %v4920_v39 = vshrl.u32 %v10121_v47, 16  ;;  %v10161_v6 = vcombine.low %v5417_v0, %v10125_v18  ;;  %v7222_v12 = vld [vmem:[%s10482_s15 + $0x80] sm:$0xff]   ;;  %v7228_v0 = vld [vmem:[%s10482_s15 + $0xd8] sm:$0xff]  }
 0x836   :  { %v4911_v62 = vor.u32 %v4910_v46, %v4906_v10  ;;  %v4899_v44 = vor.u32 %v4898_v29, %v4894_v61  ;;  %v5518_v54 = vshrl.u32 %v6651_v41, 16  ;;  %v5521_v50 = vshll.u32 %v6651_v41, 16  ;;  %v7224_v10 = vld [vmem:[%s10482_s15 + $0x78] sm:$0xff]   ;;  %v7226_v61 = vld [vmem:[%s10482_s15 + $0x70] sm:$0xff]   ;;  %v7231_v29 = vld [vmem:[%s10482_s15 + $0x148] sm:$0xff]  }
 0x837   :  { %v4915_v48 = vrot.slane %v4913_v49, 1  ;;  %v4903_v60 = vrot.slane %v4901_v45, 1  ;;  %v5526_v34 = vshrl.u32 %v10139_v32, 16  ;;  %v5529_v8 = vshll.u32 %v10139_v32, 16  ;;  %v7225_v49 = vld [vmem:[%s10482_s15 + $0xf0] sm:$0xff]   ;;  %v7227_v45 = vld [vmem:[%s10482_s15 + $0xe8] sm:$0xff]  }
 0x838   :  { %5647 = vmatpush1.bf16.msra.mxu1 %v7206_v35  ;;  %v5520_v24 = vrot.slane %v5518_v54, 3  ;;  %v5523_v51 = vrot.slane %v5521_v50, 4  ;;  %v10170_v27 = vcombine.low %v10127_v31, %v10092_v22  ;;  %v4917_v26 = vshrl.u32 %v10123_v7, 16  ;;  %v7229_v35 = vld [vmem:[%s10482_s15 + $0xe0] sm:$0xff]   ;;  %v7230_v46 = vld [vmem:[%s10482_s15 + $0xd0] sm:$0xff]  }
 0x839   :  { %v4916_v36 = vsel %vm10656_vm10, %v4911_v62, %v4915_v48  ;;  %v4904_v43 = vsel %vm10657_vm0, %v4899_v44, %v4903_v60  ;;  %5648 = vmatprep.subr.bf16.mxu1 %v10646_v63  ;;  %v4922_v17 = vor.u32 %v4920_v39, %v4915_v48  ;;  %v5528_v33 = vrot.slane %v5526_v34, 3  ;;  %v7233_v48 = vld [vmem:[%s10482_s15 + $0x140] sm:$0xff]   ;;  %v7235_v44 = vld [vmem:[%s10482_s15 + $0x138] sm:$0xff]  }
 0x83a   :  { %6555 = vmatprep.mubr.msk.bf16.mxu0 %vm1169_vm1, %v4916_v36  ;;  %v5531_v15 = vrot.slane %v5529_v8, 4  ;;  %v5524_v40 = vor.u32 %v5523_v51, %v5520_v24  ;;  %v5248_v23 = vrot.slane %v6604_v57, 1  ;;  %v5249_v5 = vrot.slane %v10121_v47, 1  ;;  %v7236_v34 = vld [vmem:[%s10482_s15 + $0xb8] sm:$0xff]   ;;  %v7239_v57 = vld [vmem:[%s10482_s15 + $0x128] sm:$0xff]   ;;  %v7250_v47 = vld [vmem:[%s10482_s15 + $0x100] sm:$0xff]  }
 0x83b   :  { %5048 = vmatmul.mubr.bf16.vlgmr.msra.gmra.mxu0 %v4904_v43  ;;  %5201 = vmatmul.mubr.bf16.gmra.mxu1 %v6557_v42  ;;  %v5702_v58 = vrot.slane %v6651_v41, 3  ;;  %v5703_v25 = vrot.slane %v10139_v32, 3  ;;  %v6718_v28 = vcombine.low %v10125_v18, %v10127_v31  ;;  %v5699_v52 = vrot.slane %v10161_v6, 3  ;;  %v7232_v41 = vld [vmem:[%s10482_s15 + $0xc8] sm:$0xff]   ;;  %v7237_v43 = vld [vmem:[%s10482_s15 + $0x130] sm:$0xff]  }
 0x83c   :  { %5344 = vmatpush1.bf16.msra.mxu0 %v7209_v37  ;;  %6556 = vmatprep.mubr.msk.bf16.mxu0 %vm1169_vm1, %v4922_v17  ;;  %v10163_v14 = vor.u32 %v5531_v15, %v5528_v33  ;;  %v5700_v19 = vrot.slane %v10170_v27, 3  ;;  %v4919_v13 = vor.u32 %v4917_v26, %v4903_v60  ;;  %v5250_v59 = vsel %vm1398_vm14, %v5248_v23, %v5249_v5  ;;  %v7234_v60 = vld [vmem:[%s10482_s15 + $0xc0] sm:$0xff]   ;;  %v7238_v33 = vld [vmem:[%s10482_s15 + $0xb0] sm:$0xff]  }
 0x83d   :  { %5345 = vmatprep.subr.bf16.mxu0 %v10646_v63  ;;  %5649 = vmatpush1.bf16.msra.mxu1 %v7211_v1  ;;  %v10194_v38 = vsel %vm5698_vm9, %v5702_v58, %v5703_v25  ;;  %v6655_v62 = vcombine.high %v10096_v16, %v10096_v16  ;;  %v5501_v54 = vshrl.u32 %v10161_v6, 16  ;;  %v5504_v50 = vshll.u32 %v10161_v6, 16 }
 0x83e   :  { %v5533_v30 = vsel %vm10658_vm7, %v5524_v40, %v10163_v14  ;;  %5650 = vmatprep.subr.bf16.mxu1 %v10646_v63  ;;  %v10202_v11 = vsel %vm5698_vm9, %v5699_v52, %v5700_v19  ;;  %v5509_v37 = vshrl.u32 %v10170_v27, 16  ;;  %v5512_v39 = vshll.u32 %v10170_v27, 16  ;;  %v7243_v52 = vld [vmem:[%s10482_s15 + $0x120] sm:$0xff]  }
 0x83f   :  { %6670 = vmatprep.mubr.msk.bf16.mxu1 %vm1169_vm1, %v5533_v30  ;;  %v5544_v8 = vshrl.u32 %v6655_v62, 16  ;;  %v5547_v36 = vshll.u32 %v6655_v62, 16  ;;  %v5503_v24 = vrot.slane %v5501_v54, 3  ;;  %v5506_v51 = vrot.slane %v5504_v50, 4  ;;  %v7261_v62 = vld [vmem:[%s10482_s15] sm:$0xff]   ;;  %v7263_v54 = vld [vmem:[%s10482_s15 + $0x68] sm:$0xff]  }
 0x840   :  { %5346 = vmatpush1.bf16.msra.mxu0 %v7215_v21  ;;  %v5511_v17 = vrot.slane %v5509_v37, 3  ;;  %v5514_v1 = vrot.slane %v5512_v39, 4  ;;  %v6654_v15 = vcombine.low %v10096_v16, %v10096_v16  ;;  %v6603_v30 = vcombine.low %v10148_v4, %v10114_v55  ;;  %v7244_v4 = vld [vmem:[%s10482_s15 + $0x110] sm:$0xff]   ;;  %v7264_v50 = vld [vmem:[%s10482_s15 + $0x138] sm:$0xff]   ;;  %v7265_v37 = vld [vmem:[%s10482_s15 + $0x60] sm:$0xff]  }
 0x841   :  { %5347 = vmatprep.subr.bf16.mxu0 %v10646_v63  ;;  %5651 = vmatpush1.bf16.msra.mxu1 %v7216_v9  ;;  %v5546_v42 = vrot.slane %v5544_v8, 3  ;;  %v5549_v40 = vrot.slane %v5547_v36, 4  ;;  %v5507_v6 = vor.u32 %v5506_v51, %v5503_v24  ;;  %v7242_v9 = vld [vmem:[%s10482_s15 + $0x118] sm:$0xff]   ;;  %v7266_v39 = vld [vmem:[%s10482_s15 + $0x130] sm:$0xff]   ;;  %v7268_v8 = vld [vmem:[%s10482_s15 + $0x128] sm:$0xff]  }
 0x842   :  { %5652 = vmatprep.subr.bf16.mxu1 %v10646_v63  ;;  %v5515_v21 = vor.u32 %v5514_v1, %v5511_v17  ;;  %v5535_v26 = vshrl.u32 %v6654_v15, 16  ;;  %v5538_v23 = vshll.u32 %v6654_v15, 16  ;;  %v7269_v36 = vld [vmem:[%s10482_s15 + $0x50] sm:$0xff]   ;;  %v7271_v24 = vld [vmem:[%s10482_s15 + $0x48] sm:$0xff]   ;;  %v6721_v17 = vcombine.high %v10092_v22, %v10096_v16  ;;  %v7274_v1 = vld [vmem:[%s10482_s15 + $0x40] sm:$0xff]  }
 0x843   :  { %5056 = vmatmul.mubr.bf16.gmra.mxu0 %v4919_v13  ;;  %v5550_v58 = vor.u32 %v5549_v40, %v5546_v42  ;;  %v5245_v13 = vrot.slane %v6603_v30, 1  ;;  %v5421_v51 = vld [vmem:[#allocation4 + $0x38] sm:$0x11] }
 0x844   :  { %5348 = vmatpush1.bf16.msra.mxu0 %v7217_v3  ;;  %6619 = vmatprep.mubr.msk.bf16.mxu0 %vm1169_vm1, %v5250_v59  ;;  %v5516_v3 = vsel %vm10659_vm12, %v5507_v6, %v5515_v21  ;;  %v5537_v59 = vrot.slane %v5535_v26, 3  ;;  %v6672_v40 = vcombine.low %v5421_v51, %v5421_v51 }
 0x845   :  { %5349 = vmatprep.subr.bf16.mxu0 %v10646_v63  ;;  %5653 = vmatpush1.bf16.msra.mxu1 %v7220_v53  ;;  %v5551_v55 = vsel %vm10660_vm15, %v10163_v14, %v5550_v58  ;;  %v5246_v53 = vrot.slane %v10123_v7, 1  ;;  %v7246_v14 = vld [vmem:[%s10482_s15 + $0x38] sm:$0xff]  }
 0x846   :  { %5654 = vmatprep.subr.bf16.mxu1 %v10646_v63 }
 0x848   :  { %5350 = vmatpush1.bf16.msra.mxu0 %v7221_v2  ;;  %v5540_v2 = vrot.slane %v5538_v23, 4 }
 0x849   :  { %5351 = vmatprep.subr.bf16.mxu0 %v10646_v63  ;;  %5655 = vmatpush1.bf16.msra.mxu1 %v7222_v12  ;;  %v5247_v12 = vsel %vm1398_vm14, %v5245_v13, %v5246_v53  ;;  %v10443_v13 = vld [vmem:[#allocation22] ss:$0 sm:$0xff] }
 0x84a   :  { %5656 = vmatprep.subr.bf16.mxu1 %v10646_v63 }
 0x84c   :  { %5352 = vmatpush1.bf16.msra.mxu0 %v7223_v56  ;;  %v5541_v56 = vor.u32 %v5540_v2, %v5537_v59 }
 0x84d   :  { %5353 = vmatprep.subr.bf16.mxu0 %v10646_v63  ;;  %5657 = vmatpush1.bf16.msra.mxu1 %v7224_v10  ;;  %v7247_v10 = vld [vmem:[%s10482_s15 + $0x108] sm:$0xff]  }
 0x84e   :  { %5658 = vmatprep.subr.bf16.mxu1 %v10646_v63  ;;  %v5542_v7 = vsel %vm10661_vm8, %v5515_v21, %v5541_v56 }
 0x850   :  { %5354 = vmatpush1.bf16.msra.mxu0 %v7225_v49  ;;  %v6719_v49 = vcombine.high %v10125_v18, %v10127_v31  ;;  %v5705_v18 = vrot.slane %v6672_v40, 3 }
 0x851   :  { %5355 = vmatprep.subr.bf16.mxu0 %v10646_v63  ;;  %5659 = vmatpush1.bf16.msra.mxu1 %v7226_v61  ;;  %v7249_v61 = vld [vmem:[%s10482_s15 + $0x30] sm:$0xff]  }
 0x852   :  { %5664 = vmatprep.subr.bf16.mxu1 %v10646_v63 }
 0x854   :  { %5356 = vmatpush1.bf16.msra.mxu0 %v7227_v45  ;;  %v7252_v45 = vld [vmem:[%s10482_s15 + $0xf8] sm:$0xff]  }
 0x855   :  { %5357 = vmatprep.subr.bf16.mxu0 %v10646_v63  ;;  %5665 = vmatpush2.bf16.msra.mxu1 %v7228_v0  ;;  %v7253_v0 = vld [vmem:[%s10482_s15 + $0x20] sm:$0xff]  }
 0x856   :  { %5666 = vmatprep.subr.bf16.mxu1 %v10646_v63 }
 0x858   :  { %5358 = vmatpush1.bf16.msra.mxu0 %v7229_v35  ;;  %v7254_v35 = vld [vmem:[%s10482_s15 + $0xf0] sm:$0xff]  }
 0x859   :  { %5363 = vmatprep.subr.bf16.mxu0 %v10646_v63  ;;  %5667 = vmatpush2.bf16.msra.mxu1 %v7230_v46  ;;  %v7255_v46 = vld [vmem:[%s10482_s15 + $0x18] sm:$0xff]  }
 0x85a   :  { %5668 = vmatprep.subr.bf16.mxu1 %v10646_v63 }
 0x85c   :  { %5364 = vmatpush2.bf16.msra.mxu0 %v7231_v29  ;;  %v7257_v29 = vld [vmem:[%s10482_s15 + $0x10] sm:$0xff]  }
 0x85d   :  { %5365 = vmatprep.subr.bf16.mxu0 %v10646_v63  ;;  %5669 = vmatpush2.bf16.msra.mxu1 %v7232_v41  ;;  %v7258_v41 = vld [vmem:[%s10482_s15 + $0xe0] sm:$0xff]  }
 0x85e   :  { %5670 = vmatprep.subr.bf16.mxu1 %v10646_v63 }
 0x860   :  { %5366 = vmatpush2.bf16.msra.mxu0 %v7233_v48  ;;  %v7259_v48 = vld [vmem:[%s10482_s15 + $0x8] sm:$0xff]  }
 0x861   :  { %5367 = vmatprep.subr.bf16.mxu0 %v10646_v63  ;;  %5671 = vmatpush2.bf16.msra.mxu1 %v7234_v60  ;;  %v7260_v60 = vld [vmem:[%s10482_s15 + $0x148] sm:$0xff]  }
 0x862   :  { %5672 = vmatprep.subr.bf16.mxu1 %v10646_v63 }
 0x864   :  { %5368 = vmatpush2.bf16.msra.mxu0 %v7235_v44  ;;  %v7262_v44 = vld [vmem:[%s10482_s15 + $0x140] sm:$0xff]  }
 0x865   :  { %5369 = vmatprep.subr.bf16.mxu0 %v10646_v63  ;;  %5673 = vmatpush2.bf16.msra.mxu1 %v7236_v34  ;;  %v7267_v34 = vld [vmem:[%s10482_s15 + $0x58] sm:$0xff]  }
 0x866   :  { %5674 = vmatprep.subr.bf16.mxu1 %v10646_v63 }
 0x868   :  { %5370 = vmatpush2.bf16.msra.mxu0 %v7237_v43  ;;  %v7270_v43 = vld [vmem:[%s10482_s15 + $0x120] sm:$0xff]  }
 0x869   :  { %5371 = vmatprep.subr.bf16.mxu0 %v10646_v63  ;;  %5675 = vmatpush2.bf16.msra.mxu1 %v7238_v33  ;;  %v6673_v33 = vcombine.high %v5421_v51, %v5421_v51 }
 0x86a   :  { %5974 = vmatprep.subr.bf16.mxu1 %v10646_v63 }
 0x86b   :  { %v5707_v15 = vrot.slane %v6673_v33, 3 }
 0x86c   :  { %5372 = vmatpush2.bf16.msra.mxu0 %v7239_v57  ;;  %5677 = vmatmul.mubr.bf16.vlgmr.msra.gmra.mxu1 %v5516_v3 }
 0x86d   :  { %5373 = vmatprep.subr.bf16.mxu0 %v10646_v63  ;;  %6671 = vmatprep.mubr.msk.bf16.mxu1 %vm1169_vm1, %v5551_v55  ;;  %v5708_v42 = vsel %vm5698_vm9, %v5703_v25, %v5707_v15 }
 0x86e   :  { %5975 = vmatpush1.bf16.msra.mxu1 %v7242_v9 }
 0x86f   :  { %5976 = vmatprep.subr.bf16.mxu1 %v10646_v63 }
 0x870   :  { %5374 = vmatpush2.bf16.msra.mxu0 %v7243_v52 }
 0x871   :  { %5801 = vmatprep.subr.bf16.mxu0 %v10646_v63 }
 0x872   :  { %5977 = vmatpush1.bf16.msra.mxu1 %v7244_v4 }
 0x873   :  { %5376 = vmatmul.mubr.bf16.vlgmr.msra.gmra.mxu0 %v5247_v12  ;;  %5978 = vmatprep.subr.bf16.mxu1 %v10646_v63 }
 0x874   :  { %6620 = vmatprep.mubr.msk.bf16.mxu0 %vm1169_vm1, %v5249_v5  ;;  %5802 = vmatpush1.bf16.msra.mxu0 %v7246_v14  ;;  %v7251_v5 = vld [vmem:[%s10482_s15 + $0x28] sm:$0xff]  }
 0x875   :  { %5685 = vmatmul.mubr.bf16.gmra.mxu1 %v5542_v7  ;;  %5803 = vmatprep.subr.bf16.mxu0 %v10646_v63 }
 0x876   :  { %5979 = vmatpush1.bf16.msra.mxu1 %v7247_v10  ;;  %6736 = vmatprep.mubr.msk.bf16.mxu1 %vm1169_vm1, %v6719_v49 }
 0x877   :  { %5980 = vmatprep.subr.bf16.mxu1 %v10646_v63 }
 0x878   :  { %5804 = vmatpush1.bf16.msra.mxu0 %v7249_v61 }
 0x879   :  { %5805 = vmatprep.subr.bf16.mxu0 %v10646_v63 }
 0x87a   :  { %5981 = vmatpush1.bf16.msra.mxu1 %v7250_v47 }
 0x87b   :  { %5384 = vmatmul.mubr.bf16.gmra.mxu0 %v5246_v53  ;;  %5982 = vmatprep.subr.bf16.mxu1 %v10646_v63 }
 0x87c   :  { %5806 = vmatpush1.bf16.msra.mxu0 %v7251_v5  ;;  %6688 = vmatprep.mubr.msk.bf16.mxu0 %vm1169_vm1, %v10194_v38  ;;  %v7256_v38 = vld [vmem:[%s10482_s15 + $0xe8] sm:$0xff]   ;;  %s7598_s15 = smov [#allocation23]  }
 0x87d   :  { %5807 = vmatprep.subr.bf16.mxu0 %v10646_v63  ;;  %s6051_s26 = sshll.u32 %s7598_s15, 4  ;;  %s6052_s26 = int_to_ptr.vmem [resolvable:$true] %s6051_s26 }
 0x87e   :  { %5983 = vmatpush1.bf16.msra.mxu1 %v7252_v45  ;;  %s7549_s3 = scalar_lea.vmem %s6052_s26, 896  ;;  %p7554_p0 = scmp.lt.s32.totalorder %s6052_s26, %s6052_s26 }
 0x87f   :  { %5984 = vmatprep.subr.bf16.mxu1 %v10646_v63  ;;  %p7550_p13 = scmp.ne.s32.totalorder %s6052_s26, %s7549_s3  ;;  %p7555_p1 = scmp.lt.s32.totalorder %s7549_s3, %s7549_s3 }
 0x880   :  { %5808 = vmatpush1.bf16.msra.mxu0 %v7253_v0 }
 0x881   :  { %5809 = vmatprep.subr.bf16.mxu0 %v10646_v63  ;;  %p7556_p2 = por %p7555_p1, %p7554_p0 }
 0x882   :  { %5985 = vmatpush1.bf16.msra.mxu1 %v7254_v35 }
 0x883   :  { %5986 = vmatprep.subr.bf16.mxu1 %v10646_v63  ;;  %p7557_p3 = pnand %p7556_p2, %p7550_p13 }
 0x884   :  { %5810 = vmatpush1.bf16.msra.mxu0 %v7255_v46 }
 0x885   :  { %5811 = vmatprep.subr.bf16.mxu0 %v10646_v63 }
 0x886   :  { %5987 = vmatpush1.bf16.msra.mxu1 %v7256_v38 }
 0x887   :  { %5988 = vmatprep.subr.bf16.mxu1 %v10646_v63 }
 0x888   :  { %5812 = vmatpush1.bf16.msra.mxu0 %v7257_v29 }
 0x889   :  { %5813 = vmatprep.subr.bf16.mxu0 %v10646_v63 }
 0x88a   :  { %5989 = vmatpush1.bf16.msra.mxu1 %v7258_v41 }
 0x88b   :  { %5994 = vmatprep.subr.bf16.mxu1 %v10646_v63 }
 0x88c   :  { %5814 = vmatpush1.bf16.msra.mxu0 %v7259_v48 }
 0x88d   :  { %5815 = vmatprep.subr.bf16.mxu0 %v10646_v63 }
 0x88e   :  { %5995 = vmatpush2.bf16.msra.mxu1 %v7260_v60 }
 0x88f   :  { %5996 = vmatprep.subr.bf16.mxu1 %v10646_v63 }
 0x890   :  { %5816 = vmatpush1.bf16.msra.mxu0 %v7261_v62 }
 0x891   :  { %5821 = vmatprep.subr.bf16.mxu0 %v10646_v63 }
 0x892   :  { %5997 = vmatpush2.bf16.msra.mxu1 %v7262_v44 }
 0x893   :  { %5998 = vmatprep.subr.bf16.mxu1 %v10646_v63 }
 0x894   :  { %5822 = vmatpush2.bf16.msra.mxu0 %v7263_v54 }
 0x895   :  { %5823 = vmatprep.subr.bf16.mxu0 %v10646_v63 }
 0x896   :  { %5999 = vmatpush2.bf16.msra.mxu1 %v7264_v50 }
 0x897   :  { %6000 = vmatprep.subr.bf16.mxu1 %v10646_v63 }
 0x898   :  { %5824 = vmatpush2.bf16.msra.mxu0 %v7265_v37 }
 0x899   :  { %5825 = vmatprep.subr.bf16.mxu0 %v10646_v63 }
 0x89a   :  { %6001 = vmatpush2.bf16.msra.mxu1 %v7266_v39 }
 0x89b   :  { %6002 = vmatprep.subr.bf16.mxu1 %v10646_v63 }
 0x89c   :  { %5826 = vmatpush2.bf16.msra.mxu0 %v7267_v34 }
 0x89d   :  { %5827 = vmatprep.subr.bf16.mxu0 %v10646_v63 }
 0x89e   :  { %6003 = vmatpush2.bf16.msra.mxu1 %v7268_v8 }
 0x89f   :  { %6004 = vmatprep.subr.bf16.mxu1 %v10646_v63 }
 0x8a0   :  { %5828 = vmatpush2.bf16.msra.mxu0 %v7269_v36 }
 0x8a1   :  { %5829 = vmatprep.subr.bf16.mxu0 %v10646_v63 }
 0x8a2   :  { %6005 = vmatpush2.bf16.msra.mxu1 %v7270_v43 }
 0x8a4   :  { %5830 = vmatpush2.bf16.msra.mxu0 %v7271_v24 }
 0x8a5   :  { %6007 = vmatmul.mubr.bf16.vlgmr.msra.gmra.mxu1 %v6718_v28  ;;  %5831 = vmatprep.subr.bf16.mxu0 %v10646_v63  ;;  %v5706_v63 = vsel %vm5698_vm9, %v5700_v19, %v5705_v18 }
 0x8a6   :  { %6737 = vmatprep.mubr.msk.bf16.mxu1 %vm1169_vm1, %v6721_v17 }
 0x8a8   :  { %5832 = vmatpush2.bf16.msra.mxu0 %v7274_v1 }
 0x8ab   :  { %5834 = vmatmul.mubr.bf16.vlgmr.msra.gmra.mxu0 %v10202_v11 }
 0x8ac   :  { %6689 = vmatprep.mubr.msk.bf16.mxu0 %vm1169_vm1, %v5708_v42  ;;  %vm5415_vm1 = vcmask 224256  }
 0x8ad   :  { %6015 = vmatmul.mubr.bf16.gmra.mxu1 %v6720_v20 }
 0x8b3   :  { %5842 = vmatmul.mubr.bf16.gmra.mxu0 %v5706_v63 }
 0x8f3   :  { %v5194_v31 = vpop.f32.mrf.mxu1 }
 0x8f5   :  { %v5196_v28 = vpop.f32.mrf.mxu1 }
 0x8f7   :  { %v5197_v11 = vpop.f32.mrf.mxu1 }
 0x8f9   :  { %v5199_v57 = vpop.f32.mrf.mxu1 }
 0x8fb   :  { %v5049_v32 = vpop.f32.mrf.mxu0  ;;  %v5202_v6 = vpop.f32.mrf.mxu1 }
 0x8fc   :  { %v5195_v52 = vadd.f32 %v5194_v31, %v5049_v32 }
 0x8fd   :  { %v5051_v25 = vpop.f32.mrf.mxu0  ;;  %v5204_v21 = vpop.f32.mrf.mxu1 }
 0x8ff   :  { %v5052_v30 = vpop.f32.mrf.mxu0  ;;  %v5205_v9 = vpop.f32.mrf.mxu1 }
 0x900   :  { %v5198_v14 = vadd.f32 %v5197_v11, %v5052_v30 }
 0x901   :  { %v5054_v26 = vpop.f32.mrf.mxu0  ;;  %v5207_v23 = vpop.f32.mrf.mxu1 }
 0x903   :  { %v5057_v22 = vpop.f32.mrf.mxu0 }
 0x904   :  { %v5203_v47 = vadd.f32 %v5202_v6, %v5057_v22 }
 0x905   :  { %v5059_v16 = vpop.f32.mrf.mxu0 }
 0x907   :  { %v5060_v20 = vpop.f32.mrf.mxu0 }
 0x908   :  { %v5206_v38 = vadd.f32 %v5205_v9, %v5060_v20 }
 0x909   :  { %v5062_v58 = vpop.f32.mrf.mxu0 }
 0x92c   :  { %v5678_v27 = vpop.f32.mrf.mxu1 }
 0x92e   :  { %v5680_v3 = vpop.f32.mrf.mxu1 }
 0x930   :  { %v5681_v19 = vpop.f32.mrf.mxu1 }
 0x932   :  { %v5683_v55 = vpop.f32.mrf.mxu1 }
 0x933   :  { %v5377_v4 = vpop.f32.mrf.mxu0 }
 0x934   :  { %v5392_v53 = vadd.f32 %v5377_v4, %v5195_v52 }
 0x935   :  { %v5686_v59 = vpop.f32.mrf.mxu1  ;;  %v5379_v2 = vpop.f32.mrf.mxu0 }
 0x936   :  { %v5403_v12 = vadd.f32 %v10443_v13, %v5392_v53 }
 0x937   :  { %v5688_v56 = vpop.f32.mrf.mxu1  ;;  %v5380_v10 = vpop.f32.mrf.mxu0 }
 0x938   :  { %7282 = vtanh.f32 %v5403_v12  ;;  %v5393_v7 = vadd.f32 %v5380_v10, %v5198_v14 }
 0x939   :  { %v5689_v49 = vpop.f32.mrf.mxu1  ;;  %v5382_v61 = vpop.f32.mrf.mxu0 }
 0x93a   :  { %v5404_v5 = vadd.f32 %v10443_v13, %v5393_v7 }
 0x93b   :  { %v5691_v45 = vpop.f32.mrf.mxu1  ;;  %v5385_v0 = vpop.f32.mrf.mxu0 }
 0x93c   :  { %7284 = vtanh.f32 %v5404_v5  ;;  %v5394_v35 = vadd.f32 %v5385_v0, %v5203_v47 }
 0x93d   :  { %v5387_v46 = vpop.f32.mrf.mxu0 }
 0x93e   :  { %v5405_v29 = vadd.f32 %v10443_v13, %v5394_v35 }
 0x93f   :  { %v5388_v41 = vpop.f32.mrf.mxu0 }
 0x940   :  { %7286 = vtanh.f32 %v5405_v29  ;;  %v5395_v48 = vadd.f32 %v5388_v41, %v5206_v38 }
 0x941   :  { %v5390_v60 = vpop.f32.mrf.mxu0 }
 0x942   :  { %v5406_v62 = vadd.f32 %v10443_v13, %v5395_v48 }
 0x944   :  { %7288 = vtanh.f32 %v5406_v62 }
 0x945   :  { %v7283_v44 = vpop.eup %7282 }
 0x946   :  { %5412 = vst.msk [vmem:[#allocation23] sm:$0xff] %vm5411_vm5, %v7283_v44 }
 0x949   :  { %v7285_v54 = vpop.eup %7284 }
 0x94a   :  { %5413 = vst.msk [vmem:[#allocation23 + $0x8] sm:$0xff] %vm5411_vm5, %v7285_v54 }
 0x94d   :  { %v7287_v50 = vpop.eup %7286 }
 0x94e   :  { %5414 = vst.msk [vmem:[#allocation23 + $0x10] sm:$0xff] %vm5411_vm5, %v7287_v50 }
 0x951   :  { %v7289_v37 = vpop.eup %7288 }
 0x952   :  { %5416 = vst.msk [vmem:[#allocation23 + $0x18] sm:$0xf] %vm5415_vm1, %v7289_v37 }
 0x965   :  { %v6008_v39 = vpop.f32.mrf.mxu1 }
 0x967   :  { %v6010_v34 = vpop.f32.mrf.mxu1 }
 0x969   :  { %v6011_v8 = vpop.f32.mrf.mxu1 }
 0x96b   :  { %v6013_v36 = vpop.f32.mrf.mxu1  ;;  %v5835_v43 = vpop.f32.mrf.mxu0 }
 0x96c   :  { %v5836_v24 = vadd.f32 %v5835_v43, %v5678_v27 }
 0x96d   :  { %v6016_v51 = vpop.f32.mrf.mxu1  ;;  %v5837_v17 = vpop.f32.mrf.mxu0 }
 0x96e   :  { %v6023_v1 = vadd.f32 %v6008_v39, %v5836_v24 }
 0x96f   :  { %v6018_v33 = vpop.f32.mrf.mxu1  ;;  %v5838_v15 = vpop.f32.mrf.mxu0 }
 0x970   :  { %v6034_v42 = vadd.f32 %v10443_v13, %v6023_v1  ;;  %v5839_v40 = vadd.f32 %v5838_v15, %v5681_v19 }
 0x971   :  { %v6019_v18 = vpop.f32.mrf.mxu1  ;;  %v5840_v63 = vpop.f32.mrf.mxu0 }
 0x972   :  { %7290 = vtanh.f32 %v6034_v42  ;;  %v6024_v31 = vadd.f32 %v6011_v8, %v5839_v40 }
 0x973   :  { %v6021_v28 = vpop.f32.mrf.mxu1  ;;  %v5843_v11 = vpop.f32.mrf.mxu0 }
 0x974   :  { %v6035_v57 = vadd.f32 %v10443_v13, %v6024_v31  ;;  %v5844_v32 = vadd.f32 %v5843_v11, %v5686_v59 }
 0x975   :  { %v5845_v6 = vpop.f32.mrf.mxu0 }
 0x976   :  { %7292 = vtanh.f32 %v6035_v57  ;;  %v6025_v25 = vadd.f32 %v6016_v51, %v5844_v32 }
 0x977   :  { %v5846_v21 = vpop.f32.mrf.mxu0 }
 0x978   :  { %v6036_v30 = vadd.f32 %v10443_v13, %v6025_v25  ;;  %v5847_v9 = vadd.f32 %v5846_v21, %v5689_v49 }
 0x979   :  { %v5848_v26 = vpop.f32.mrf.mxu0 }
 0x97a   :  { %7294 = vtanh.f32 %v6036_v30  ;;  %v6026_v23 = vadd.f32 %v6019_v18, %v5847_v9 }
 0x97c   :  { %v6037_v22 = vadd.f32 %v10443_v13, %v6026_v23 }
 0x97e   :  { %7296 = vtanh.f32 %v6037_v22 }
 0x97f   :  { %v7291_v16 = vpop.eup %7290 }
 0x980   :  { %6042 = vst.msk [vmem:[#allocation23 + $0x1c] sm:$0xff] %vm5411_vm5, %v7291_v16 }
 0x983   :  { %v7293_v20 = vpop.eup %7292 }
 0x984   :  { %6043 = vst.msk [vmem:[#allocation23 + $0x24] sm:$0xff] %vm5411_vm5, %v7293_v20 }
 0x987   :  { %v7295_v58 = vpop.eup %7294 }
 0x988   :  { %6044 = vst.msk [vmem:[#allocation23 + $0x2c] sm:$0xff] %vm5411_vm5, %v7295_v58 }
 0x98b   :  { %v7297_v27 = vpop.eup %7296 }
 0x98c   :  { %6045 = vst.msk [vmem:[#allocation23 + $0x34] sm:$0xf] %vm5415_vm1, %v7297_v27 }
 0x98d   :  { %7560 = shalt.err (!%p7557_p3)
}
 0x98e   :  { %6057 = dma.vmem_to_hbm [thread:$0]  %s6052_s26, 896, %s10484_s17, [#allocation7], %s7587_s2, %s7587_s2, %s7588_s25  }
 0x98f   :  { %7581 = dma.done.wait [#allocation7], 896  }
 0x990   :  { %7582 = vsyncadd [#allocation7], 4294966400 }
 0x991   :  { %6061 = vsyncpa [#allocation6], 1 }
 0x992   :  { %6062 = vsyncpa [#allocation9], 1 }
 0x993   :  { %6063 = vsyncpa [#allocation12], 1 }
 0x994   :  { %6064 = vsyncpa [#allocation15], 1 }
 0x995   :  { %6065 = vsyncpa [#allocation18], 1 }
 0x996   :  { %6066 = vsyncpa [#allocation21], 1 }
 0x997   :  { %6067 = vsyncpa [#allocation7], 1 }

</bundles_post_ra>
